<compile_context>
chip_gen: v6e
topology: v6e:2x2x1
jax: 0.10.0
libtpu: 0.0.40
codegen_flags: <defaults>
</compile_context>

<pallas_src>
import math

import jax
import jax.numpy as jnp
from jax.experimental import pallas as pl
from jax.experimental.pallas import tpu as pltpu

HIDDEN = 8
TEST_LENGTH = 4
N_DISEASE = 19
DISEASE_DIM = 8
PACK_WIDTH = 128          # lane-dense packing width for the small-tensor slabs
STATIC_CHUNK = 256        # K-chunk (multiple of 128) for the fused static-head GEMM

# order of the packed small parameters / activations (offsets from pack_rows)
PAR_NAMES = ("cte_w", "cte_b", "month_table", "kw_w", "kw_b", "qw_w", "qw_b",
             "gru_wih0_xa", "gru_wih0_x", "gru_bih0",
             "whh_blk", "bhh_cat", "gru_wih1", "gru_bih1",
             "fc1_w", "fc1_b", "fc2_w", "fc2_b", "static_b_fused")
ACT_NAMES = ("cte", "month_onehot", "mask", "x_flat", "disease_emb")


# ----------------------------- shared math ----------------------------------
def _erf(x):
    # Abramowitz & Stegun 7.1.26 (max abs err 1.5e-7): matches torch's exact
    # (erf-based) GELU to well within the comparison tolerance.
    p = 0.3275911
    a1, a2, a3, a4, a5 = (0.254829592, -0.284496736, 1.421413741,
                          -1.453152027, 1.061405429)
    s = jnp.where(x >= 0.0, 1.0, -1.0)
    ax = jnp.abs(x)
    t = 1.0 / (1.0 + p * ax)
    poly = ((((a5 * t + a4) * t + a3) * t + a2) * t + a1) * t
    return s * (1.0 - poly * jnp.exp(-ax * ax))


def _gelu(x):
    # PyTorch nn.GELU() default is the exact erf formulation.
    return 0.5 * x * (1.0 + _erf(x * 0.7071067811865476))


# ------------------------ wrapper-side weight fusion -------------------------
def _fuse_type_time(type_w, type_b, time_w, time_b, hidden):
    """Linear(C,1).squeeze(-1) then Linear(91,hidden) == one Linear(91*C, hidden)."""
    c = type_w.shape[1]
    w = jnp.einsum("c,th->tch", type_w[0], time_w).reshape(91 * c, hidden)
    b = type_b[0, 0] * jnp.sum(time_w, axis=0, keepdims=True) + time_b
    return w, b


def fuse_static(params, hidden=HIDDEN):
    """Fold the 7 static heads + the `static` Linear into one (10051, hidden) weight."""
    S = params["static_w"]                                       # (7*hidden, hidden)
    sblk = lambda i: S[i * hidden:(i + 1) * hidden, :]

    vac_w, vac_b = _fuse_type_time(params["vac_type_w"], params["vac_type_b"],
                                   params["vac_time_w"], params["vac_time_b"], hidden)
    hos_w, hos_b = _fuse_type_time(params["hos_type_w"], params["hos_type_b"],
                                   params["hos_time_w"], params["hos_time_b"], hidden)
    clm_w, clm_b = _fuse_type_time(params["claim_type_w"], params["claim_type_b"],
                                   params["claim_time_w"], params["claim_time_b"], hidden)

    heads = [  # same order as the PyTorch torch.concat([...], 1)
        (params["county_w"], params["county_b"]),
        (params["covid_w"], params["covid_b"]),
        (params["mob_w"], params["mob_b"]),
        (params["dist_w"], params["dist_b"]),
        (vac_w, vac_b), (hos_w, hos_b), (clm_w, clm_b),
    ]
    w_parts = []
    b_fused = params["static_b"]
    for i, (w, b) in enumerate(heads):
        w_parts.append(jnp.dot(w, sblk(i)))
        b_fused = b_fused + jnp.dot(b, sblk(i))
    return jnp.concatenate(w_parts, axis=0), b_fused             # (10051, h), (1, h)


def pack_rows(arrays, order, width=PACK_WIDTH):
    """Pack 2-D tensors into one lane-dense (rows, 128) f32 slab, 8-row blocks."""
    blocks, layout, off = [], {}, 0
    for name in order:
        a = jnp.asarray(arrays[name], jnp.float32)
        r, c = a.shape
        rp = -(-r // 8) * 8
        blocks.append(jnp.zeros((rp, width), jnp.float32).at[:r, :c].set(a))
        layout[name] = (off, (r, c))
        off += rp
    return jnp.concatenate(blocks, axis=0), layout


def build_operands(params, inputs):
    """Wrapper-side layout glue: fuse weights, pack small tensors, pad static path."""
    B = inputs["mask"].shape[0]
    T = inputs["X"].shape[1]
    f32, bf16 = jnp.float32, jnp.bfloat16

    # Fused static-head weight, stored TRANSPOSED (hidden, K_pad) so it is lane-dense
    # in VMEM (contiguous bf16 burst) instead of a (K, 8) array lane-padded 8->128.
    static_w_fused, static_b_fused = fuse_static(params)          # (10051, 8), (1, 8)
    K = static_w_fused.shape[0]
    k_pad = -(-K // STATIC_CHUNK) * STATIC_CHUNK                   # 10240
    static_wt = (jnp.zeros((HIDDEN, k_pad), f32)
                 .at[:, :K].set(static_w_fused.T).astype(bf16))    # (8, 10240) bf16

    static_cat = jnp.concatenate(
        [inputs["county"], inputs["covid"], inputs["mob"], inputs["distance"],
         inputs["vac"].reshape(B, -1), inputs["hos"].reshape(B, -1),
         inputs["claim"].reshape(B, -1)], axis=1)                  # (B, 10051)
    static_cat = (jnp.zeros((B, k_pad), f32)
                  .at[:, :K].set(static_cat).astype(bf16))         # (B, 10240) bf16

    # blockdiag(whh0, whh1): both h-dependent GRU projections in one (16, 48) weight.
    whh_blk = (jnp.zeros((2 * HIDDEN, 6 * HIDDEN), f32)
               .at[:HIDDEN, :3 * HIDDEN].set(params["gru_whh0"])
               .at[HIDDEN:, 3 * HIDDEN:].set(params["gru_whh1"]))
    bhh_cat = jnp.concatenate([params["gru_bhh0"], params["gru_bhh1"]], axis=1)

    small = {n: params[n] for n in PAR_NAMES
             if n not in ("gru_wih0_xa", "gru_wih0_x", "whh_blk", "bhh_cat",
                          "static_b_fused")}
    small["gru_wih0_xa"] = params["gru_wih0"][:N_DISEASE, :]       # multiplies X @ adj
    small["gru_wih0_x"] = params["gru_wih0"][N_DISEASE:, :]        # multiplies raw X
    small["whh_blk"] = whh_blk
    small["bhh_cat"] = bhh_cat
    small["static_b_fused"] = static_b_fused
    par_pack, par_layout = pack_rows(small, PAR_NAMES)

    x_flat = jnp.transpose(inputs["X"], (1, 0, 2)).reshape(T * B, N_DISEASE)
    acts = {"cte": inputs["cte"],
            "month_onehot": jax.nn.one_hot(inputs["month"], 13, dtype=f32),
            "mask": inputs["mask"],
            "x_flat": x_flat,
            "disease_emb": inputs["disease_emb"]}
    act_pack, act_layout = pack_rows(acts, ACT_NAMES)

    operands = (act_pack, static_cat, static_wt, par_pack)         # 4 operands total
    return operands, act_layout, par_layout, B, T, k_pad


# ------------------------------ Pallas kernel --------------------------------
def make_pallas_forward(act_layout, par_layout, batch, n_steps, k_pad,
                        hidden=HIDDEN, out_len=TEST_LENGTH):
    f32 = jnp.float32
    hd = hidden

    def kernel(act_ref, sx_ref, swt_ref, pack_ref, o_ref):

        def a(name):          # lazy slice of the packed activation operand
            off, (r, c) = act_layout[name]
            return act_ref[off:off + r, :c]

        def p(name):          # lazy slice of the packed parameter operand
            off, (r, c) = par_layout[name]
            return pack_ref[off:off + r, :c]

        # --- dynamic adjacency: softmax(K @ Q.T) over disease embeddings -------
        demb = a("disease_emb")                                          # (19, 8)
        K = jnp.dot(demb, p("kw_w"), preferred_element_type=f32) + p("kw_b")
        Q = jnp.dot(demb, p("qw_w"), preferred_element_type=f32) + p("qw_b")
        s = jax.lax.dot_general(K, Q, (((1,), (1,)), ((), ())),
                                preferred_element_type=f32)              # (19, 19)
        s = s - jnp.max(s, axis=-1, keepdims=True)
        e = jnp.exp(s)
        adj = e / jnp.sum(e, axis=-1, keepdims=True)   # exact softmax (one-shot, cheap)

        # --- hoisted GRU layer-0 input projection for every timestep -----------
        # gx0_t = [x_t@adj | x_t] @ W_ih0 + b  ==  x_t @ (adj@W_top + W_bot) + b
        w0_eff = (jnp.dot(adj, p("gru_wih0_xa"), preferred_element_type=f32)
                  + p("gru_wih0_x"))                                     # (19, 24)
        gx0_all = (jnp.dot(a("x_flat"), w0_eff, preferred_element_type=f32)
                   + p("gru_bih0"))                                      # (T*B, 24)

        # --- fused static embedding: bf16 lane-dense transposed weight ---------
        # accumulate over lane-aligned K-chunks; each chunk contracts the lane axis
        # of both operands (a @ b.T form) with f32 accumulation on the MXU.
        acc = jnp.zeros((batch, hd), f32)
        for kk in range(k_pad // STATIC_CHUNK):
            c0 = kk * STATIC_CHUNK
            acc = acc + jax.lax.dot_general(
                sx_ref[:, c0:c0 + STATIC_CHUNK],          # (B, 256) bf16
                swt_ref[:, c0:c0 + STATIC_CHUNK],         # (8, 256) bf16
                (((1,), (1,)), ((), ())), preferred_element_type=f32)
        static_emb = acc + p("static_b_fused")                           # (B, 8)

        # --- location & month heads --------------------------------------------
        cte_f = (jnp.dot(a("cte"), p("cte_w"), preferred_element_type=f32)
                 + p("cte_b"))
        month_f = jnp.dot(a("month_onehot"), p("month_table"),
                          preferred_element_type=f32)

        # --- recurrence: the only serial chain, kept on the VPU ----------------
        whh_blk, bhh_cat = p("whh_blk"), p("bhh_cat")     # blockdiag(whh0, whh1)
        wih1, bih1 = p("gru_wih1"), p("gru_bih1")

        # robust last-visit select (avoids exact float equality on the mask sum)
        last_visit = jnp.sum(a("mask"), axis=1, keepdims=True) - 1.0     # (B, 1)

        def vpu_mm(h, w, b):
            # tiny (B,k)@(k,n)+b as lane-slice + broadcast MACs on the VPU: keeps the
            # serialized recurrence off the MXU weight-stage / MRF-pop path (v5e/v6e).
            out = jnp.broadcast_to(b, (h.shape[0], w.shape[1]))
            for j in range(h.shape[1]):
                out = out + h[:, j:j + 1] * w[j:j + 1, :]
            return out

        def gates(gx, gh, h_prev):                  # PyTorch GRU order [r | z | n]
            r = jax.nn.sigmoid(gx[:, :hd] + gh[:, :hd])
            z = jax.nn.sigmoid(gx[:, hd:2 * hd] + gh[:, hd:2 * hd])
            n = jnp.tanh(gx[:, 2 * hd:] + r * gh[:, 2 * hd:])
            return (1.0 - z) * n + z * h_prev

        h1 = jnp.zeros((batch, hd), f32)
        h2 = jnp.zeros((batch, hd), f32)
        dyn = jnp.zeros((batch, hd), f32)
        for t in range(n_steps):                    # static trip count -> unrolled
            gx0 = gx0_all[t * batch:(t + 1) * batch, :]
            # both h-dependent projections of this step in one fused pass
            gh_cat = vpu_mm(jnp.concatenate([h1, h2], axis=1), whh_blk, bhh_cat)
            h1 = gates(gx0, gh_cat[:, :3 * hd], h1)
            gx1 = vpu_mm(h1, wih1, bih1)
            h2 = gates(gx1, gh_cat[:, 3 * hd:], h2)
            sel = (jnp.abs(last_visit - t) < 0.5).astype(f32)
            dyn = dyn + sel * h2

        # --- final head: GELU -> Linear(4h, h) -> GELU -> Linear(h, L) -> exp ---
        cat = jnp.concatenate([dyn, static_emb, cte_f, month_f], axis=1)  # (B, 32)
        hfc = (jnp.dot(_gelu(cat), p("fc1_w"), preferred_element_type=f32)
               + p("fc1_b"))
        out = (jnp.dot(_gelu(hfc), p("fc2_w"), preferred_element_type=f32)
               + p("fc2_b"))
        o_ref[...] = jnp.exp(out)

    # TODO(synk): when B grows, grid over B with dimension_semantics=("parallel",)
    # (uses both v7x TensorCores), block static_cat/act_pack along B so their DMAs
    # pipeline, and keep the (8, K_pad) bf16 weight on a constant index_map — at
    # ~160 KB its double-buffering is free, unlike the old 5 MiB lane-padded layout.
    return pl.pallas_call(
        kernel,
        out_shape=jax.ShapeDtypeStruct((batch, out_len), jnp.float32),
        # Everything fits easily in VMEM (~1 MiB total): whole-array blocks, no grid.
        in_specs=[pl.BlockSpec(memory_space=pltpu.MemorySpace.VMEM)] * 4,
        out_specs=pl.BlockSpec(memory_space=pltpu.MemorySpace.VMEM),
        compiler_params=pltpu.CompilerParams(vmem_limit_bytes=32 * 1024 * 1024),
    )


# ------------------------ parameters / inputs / reference --------------------
def init_params(key, hidden=HIDDEN, test_length=TEST_LENGTH):
    params = {}
    keys = iter(jax.random.split(key, 64))

    def linear(name, fan_in, fan_out):
        bound = 1.0 / math.sqrt(fan_in)
        params[name + "_w"] = jax.random.uniform(
            next(keys), (fan_in, fan_out), jnp.float32, -bound, bound)
        params[name + "_b"] = jax.random.uniform(
            next(keys), (1, fan_out), jnp.float32, -bound, bound)

    def type_linear(name, fan_in):      # Linear(fan_in, 1); weight kept as (1, C)
        bound = 1.0 / math.sqrt(fan_in)
        params[name + "_w"] = jax.random.uniform(
            next(keys), (1, fan_in), jnp.float32, -bound, bound)
        params[name + "_b"] = jax.random.uniform(
            next(keys), (1, 1), jnp.float32, -bound, bound)

    linear("county", 14, hidden)
    linear("covid", 91, hidden)
    linear("mob", 2334, hidden)
    linear("dist", 2334, hidden)
    type_linear("vac_type", 34)
    linear("vac_time", 91, hidden)
    type_linear("hos_type", 4)
    linear("hos_time", 91, hidden)
    type_linear("claim_type", 20)
    linear("claim_time", 91, hidden)
    linear("static", 7 * hidden, hidden)
    linear("cte", 3, hidden)
    params["month_table"] = jax.random.uniform(
        next(keys), (13, hidden), jnp.float32, -0.1, 0.1)
    linear("kw", DISEASE_DIM, hidden)
    linear("qw", DISEASE_DIM, hidden)

    def gru_layer(suffix, in_dim):      # xavier-normal weights, zero biases
        std_ih = math.sqrt(2.0 / (in_dim + 3 * hidden))
        std_hh = math.sqrt(2.0 / (hidden + 3 * hidden))
        params[f"gru_wih{suffix}"] = std_ih * jax.random.normal(
            next(keys), (in_dim, 3 * hidden), jnp.float32)
        params[f"gru_whh{suffix}"] = std_hh * jax.random.normal(
            next(keys), (hidden, 3 * hidden), jnp.float32)
        params[f"gru_bih{suffix}"] = jnp.zeros((1, 3 * hidden), jnp.float32)
        params[f"gru_bhh{suffix}"] = jnp.zeros((1, 3 * hidden), jnp.float32)

    gru_layer("0", 2 * N_DISEASE)
    gru_layer("1", hidden)
    linear("fc1", 4 * hidden, hidden)
    linear("fc2", hidden, test_length)
    return params


def make_inputs(key, batch=2, seq=8):
    ks = jax.random.split(key, 12)
    f32 = jnp.float32
    county = 0.5 * jax.random.normal(ks[0], (batch, 14), f32)
    covid = 0.5 * jax.random.normal(ks[1], (batch, 91), f32)
    distance = 0.5 * jax.random.normal(ks[2], (batch, 2334), f32)
    mob = 0.5 * jax.random.normal(ks[3], (batch, 2334), f32)
    vac = 0.5 * jax.random.normal(ks[4], (batch, 91, 34), f32)
    hos = 0.5 * jax.random.normal(ks[5], (batch, 91, 4), f32)
    claim = 0.5 * jax.random.normal(ks[6], (batch, 91, 20), f32)
    cte = 0.5 * jax.random.normal(ks[7], (batch, 3), f32)
    X = 0.5 * jax.random.normal(ks[8], (batch, seq, N_DISEASE), f32)
    month = jax.random.randint(ks[9], (batch,), 0, 13)
    disease_emb = 0.5 * jax.random.normal(ks[10], (N_DISEASE, DISEASE_DIM), f32)
    lengths = jax.random.randint(ks[11], (batch,), 1, seq + 1)      # lengths >= 1
    mask = (jnp.arange(seq)[None, :] < lengths[:, None]).astype(f32)
    return {"county": county, "covid": covid, "distance": distance, "mob": mob,
            "vac": vac, "hos": hos, "claim": claim, "cte": cte,
            "X": X, "month": month, "disease_emb": disease_emb, "mask": mask}


def reference_forward(d, inputs, hidden=HIDDEN):
    """Pure-JAX reference implementing the original, UNFUSED math (validates fusion)."""
    f32 = jnp.float32
    dot = lambda a, b: jnp.dot(a, b, preferred_element_type=f32)
    lin = lambda x, w, b: dot(x, d[w]) + d[b]

    county_f = lin(inputs["county"], "county_w", "county_b")
    covid_f = lin(inputs["covid"], "covid_w", "covid_b")
    mob_f = lin(inputs["mob"], "mob_w", "mob_b")
    dist_f = lin(inputs["distance"], "dist_w", "dist_b")

    def type_then_time(x3d, tw, tb, timw, timb):
        t = jnp.sum(x3d * d[tw][None, :, :], axis=-1) + d[tb][0, 0]
        return dot(t, d[timw]) + d[timb]

    vac_f = type_then_time(inputs["vac"], "vac_type_w", "vac_type_b",
                           "vac_time_w", "vac_time_b")
    hos_f = type_then_time(inputs["hos"], "hos_type_w", "hos_type_b",
                           "hos_time_w", "hos_time_b")
    claim_f = type_then_time(inputs["claim"], "claim_type_w", "claim_type_b",
                             "claim_time_w", "claim_time_b")

    static_in = jnp.concatenate(
        [county_f, covid_f, mob_f, dist_f, vac_f, hos_f, claim_f], axis=1)
    static_emb = dot(static_in, d["static_w"]) + d["static_b"]

    cte_f = lin(inputs["cte"], "cte_w", "cte_b")
    month_f = dot(jax.nn.one_hot(inputs["month"], 13, dtype=f32), d["month_table"])

    K = lin(inputs["disease_emb"], "kw_w", "kw_b")
    Q = lin(inputs["disease_emb"], "qw_w", "qw_b")
    adj = jax.nn.softmax(
        jax.lax.dot_general(K, Q, (((1,), (1,)), ((), ())),
                            preferred_element_type=f32), axis=-1)

    X, mask = inputs["X"], inputs["mask"]
    B, T, _ = X.shape
    last_visit = jnp.sum(mask, axis=1, keepdims=True) - 1.0

    def gru_cell(x, h_prev, wih, whh, bih, bhh):
        gx = dot(x, d[wih]) + d[bih]
        gh = dot(h_prev, d[whh]) + d[bhh]
        r = jax.nn.sigmoid(gx[:, :hidden] + gh[:, :hidden])
        z = jax.nn.sigmoid(gx[:, hidden:2 * hidden] + gh[:, hidden:2 * hidden])
        n = jnp.tanh(gx[:, 2 * hidden:] + r * gh[:, 2 * hidden:])
        return (1.0 - z) * n + z * h_prev

    h1 = jnp.zeros((B, hidden), f32)
    h2 = jnp.zeros((B, hidden), f32)
    dyn = jnp.zeros((B, hidden), f32)
    for t in range(T):
        x_raw = X[:, t, :]
        xin = jnp.concatenate([dot(x_raw, adj), x_raw], axis=-1)
        h1 = gru_cell(xin, h1, "gru_wih0", "gru_whh0", "gru_bih0", "gru_bhh0")
        h2 = gru_cell(h1, h2, "gru_wih1", "gru_whh1", "gru_bih1", "gru_bhh1")
        sel = (last_visit == float(t)).astype(f32)
        dyn = dyn + sel * h2

    cat = jnp.concatenate([dyn, static_emb, cte_f, month_f], axis=1)
    hfc = dot(_gelu(cat), d["fc1_w"]) + d["fc1_b"]
    out = dot(_gelu(hfc), d["fc2_w"]) + d["fc2_b"]
    return jnp.exp(out)


if __name__ == "__main__":
    key = jax.random.PRNGKey(0)
    kp, ki = jax.random.split(key)
    params = init_params(kp)
    inputs = make_inputs(ki, batch=2, seq=8)

    (operands, act_layout, par_layout,
     batch, n_steps, k_pad) = build_operands(params, inputs)
    fwd = make_pallas_forward(act_layout, par_layout, batch, n_steps, k_pad)
    out = jax.block_until_ready(fwd(*operands))

    with jax.default_matmul_precision("float32"):
        ref = jax.block_until_ready(reference_forward(params, inputs))

    assert out.shape == (batch, TEST_LENGTH)
    assert bool(jnp.all(jnp.isfinite(out)))
    assert bool(jnp.allclose(out, ref, rtol=5e-2, atol=5e-3)), (out, ref)
    print("KERNEL_OK")
</pallas_src>

<mosaic_0001>
module attributes {stable_mosaic.version = 11 : i64} {
  func.func @kernel(%arg0: memref<64x128xf32, #tpu.memory_space<vmem>>, %arg1: memref<2x10240xbf16, #tpu.memory_space<vmem>>, %arg2: memref<8x10240xbf16, #tpu.memory_space<vmem>>, %arg3: memref<224x128xf32, #tpu.memory_space<vmem>>, %arg4: memref<2x4xf32, #tpu.memory_space<vmem>>) attributes {dimension_semantics = [], scalar_prefetch = 0 : i64, scratch_operands = 0 : i64, tpu.core_type = #tpu.core_type<tc>} {
    %c40 = arith.constant 40 : index
    %c0 = arith.constant 0 : index
    %0 = vector.load %arg0[%c40, %c0] : memref<64x128xf32, #tpu.memory_space<vmem>>, vector<19x8xf32>
    %c32 = arith.constant 32 : index
    %c0_0 = arith.constant 0 : index
    %1 = vector.load %arg3[%c32, %c0_0] : memref<224x128xf32, #tpu.memory_space<vmem>>, vector<8x8xf32>
    %cst = arith.constant dense<0.000000e+00> : vector<19x8xf32>
    %2 = tpu.matmul %0, %1, %cst {dimension_numbers = #tpu.dot_dimension_numbers<[1], [0], [0], [1], [0, 0, 1, 1], [], []>} : vector<19x8xf32>, vector<8x8xf32>, vector<19x8xf32> -> vector<19x8xf32>
    %c40_1 = arith.constant 40 : index
    %c0_2 = arith.constant 0 : index
    %3 = vector.load %arg3[%c40_1, %c0_2] : memref<224x128xf32, #tpu.memory_space<vmem>>, vector<1x8xf32>
    %4 = vector.broadcast %3 : vector<1x8xf32> to vector<19x8xf32>
    %5 = arith.addf %2, %4 : vector<19x8xf32>
    %c48 = arith.constant 48 : index
    %c0_3 = arith.constant 0 : index
    %6 = vector.load %arg3[%c48, %c0_3] : memref<224x128xf32, #tpu.memory_space<vmem>>, vector<8x8xf32>
    %cst_4 = arith.constant dense<0.000000e+00> : vector<19x8xf32>
    %7 = tpu.matmul %0, %6, %cst_4 {dimension_numbers = #tpu.dot_dimension_numbers<[1], [0], [0], [1], [0, 0, 1, 1], [], []>} : vector<19x8xf32>, vector<8x8xf32>, vector<19x8xf32> -> vector<19x8xf32>
    %c56 = arith.constant 56 : index
    %c0_5 = arith.constant 0 : index
    %8 = vector.load %arg3[%c56, %c0_5] : memref<224x128xf32, #tpu.memory_space<vmem>>, vector<1x8xf32>
    %9 = vector.broadcast %8 : vector<1x8xf32> to vector<19x8xf32>
    %10 = arith.addf %7, %9 : vector<19x8xf32>
    %cst_6 = arith.constant dense<0.000000e+00> : vector<19x19xf32>
    %11 = tpu.matmul %5, %10, %cst_6 {dimension_numbers = #tpu.dot_dimension_numbers<[1], [1], [0], [0], [0, 0, 1, 0], [], []>} : vector<19x8xf32>, vector<19x8xf32>, vector<19x19xf32> -> vector<19x19xf32>
    %cst_7 = arith.constant dense<0xFF800000> : vector<19xf32>
    %12 = vector.multi_reduction <maximumf>, %11, %cst_7 [1] : vector<19x19xf32> to vector<19xf32>
    %13 = vector.shape_cast %12 : vector<19xf32> to vector<19x1xf32>
    %14 = vector.broadcast %13 : vector<19x1xf32> to vector<19x19xf32>
    %15 = arith.subf %11, %14 : vector<19x19xf32>
    %16 = math.exp %15 : vector<19x19xf32>
    %cst_8 = arith.constant dense<0.000000e+00> : vector<19xf32>
    %17 = vector.multi_reduction <add>, %16, %cst_8 [1] : vector<19x19xf32> to vector<19xf32>
    %18 = vector.shape_cast %17 : vector<19xf32> to vector<19x1xf32>
    %19 = vector.broadcast %18 : vector<19x1xf32> to vector<19x19xf32>
    %20 = arith.divf %16, %19 : vector<19x19xf32>
    %c64 = arith.constant 64 : index
    %c0_9 = arith.constant 0 : index
    %21 = vector.load %arg3[%c64, %c0_9] : memref<224x128xf32, #tpu.memory_space<vmem>>, vector<19x24xf32>
    %cst_10 = arith.constant dense<0.000000e+00> : vector<19x24xf32>
    %22 = tpu.matmul %20, %21, %cst_10 {dimension_numbers = #tpu.dot_dimension_numbers<[1], [0], [0], [1], [0, 0, 1, 1], [], []>} : vector<19x19xf32>, vector<19x24xf32>, vector<19x24xf32> -> vector<19x24xf32>
    %c88 = arith.constant 88 : index
    %c0_11 = arith.constant 0 : index
    %23 = vector.load %arg3[%c88, %c0_11] : memref<224x128xf32, #tpu.memory_space<vmem>>, vector<19x24xf32>
    %24 = arith.addf %22, %23 : vector<19x24xf32>
    %c24 = arith.constant 24 : index
    %c0_12 = arith.constant 0 : index
    %25 = vector.load %arg0[%c24, %c0_12] : memref<64x128xf32, #tpu.memory_space<vmem>>, vector<16x19xf32>
    %cst_13 = arith.constant dense<0.000000e+00> : vector<16x24xf32>
    %26 = tpu.matmul %25, %24, %cst_13 {dimension_numbers = #tpu.dot_dimension_numbers<[1], [0], [0], [1], [0, 0, 1, 1], [], []>} : vector<16x19xf32>, vector<19x24xf32>, vector<16x24xf32> -> vector<16x24xf32>
    %c112 = arith.constant 112 : index
    %c0_14 = arith.constant 0 : index
    %27 = vector.load %arg3[%c112, %c0_14] : memref<224x128xf32, #tpu.memory_space<vmem>>, vector<1x24xf32>
    %28 = vector.broadcast %27 : vector<1x24xf32> to vector<16x24xf32>
    %29 = arith.addf %26, %28 : vector<16x24xf32>
    %cst_15 = arith.constant 0.000000e+00 : f32
    %30 = vector.broadcast %cst_15 : f32 to vector<2x8xf32>
    %c0_16 = arith.constant 0 : index
    %c0_17 = arith.constant 0 : index
    %31 = vector.load %arg1[%c0_16, %c0_17] : memref<2x10240xbf16, #tpu.memory_space<vmem>>, vector<2x256xbf16>
    %c0_18 = arith.constant 0 : index
    %c0_19 = arith.constant 0 : index
    %32 = vector.load %arg2[%c0_18, %c0_19] : memref<8x10240xbf16, #tpu.memory_space<vmem>>, vector<8x256xbf16>
    %cst_20 = arith.constant dense<0.000000e+00> : vector<2x8xf32>
    %33 = tpu.matmul %31, %32, %cst_20 {dimension_numbers = #tpu.dot_dimension_numbers<[1], [1], [0], [0], [0, 0, 1, 0], [], []>} : vector<2x256xbf16>, vector<8x256xbf16>, vector<2x8xf32> -> vector<2x8xf32>
    %34 = arith.addf %30, %33 : vector<2x8xf32>
    %c0_21 = arith.constant 0 : index
    %c256 = arith.constant 256 : index
    %35 = vector.load %arg1[%c0_21, %c256] : memref<2x10240xbf16, #tpu.memory_space<vmem>>, vector<2x256xbf16>
    %c0_22 = arith.constant 0 : index
    %c256_23 = arith.constant 256 : index
    %36 = vector.load %arg2[%c0_22, %c256_23] : memref<8x10240xbf16, #tpu.memory_space<vmem>>, vector<8x256xbf16>
    %cst_24 = arith.constant dense<0.000000e+00> : vector<2x8xf32>
    %37 = tpu.matmul %35, %36, %cst_24 {dimension_numbers = #tpu.dot_dimension_numbers<[1], [1], [0], [0], [0, 0, 1, 0], [], []>} : vector<2x256xbf16>, vector<8x256xbf16>, vector<2x8xf32> -> vector<2x8xf32>
    %38 = arith.addf %34, %37 : vector<2x8xf32>
    %c0_25 = arith.constant 0 : index
    %c512 = arith.constant 512 : index
    %39 = vector.load %arg1[%c0_25, %c512] : memref<2x10240xbf16, #tpu.memory_space<vmem>>, vector<2x256xbf16>
    %c0_26 = arith.constant 0 : index
    %c512_27 = arith.constant 512 : index
    %40 = vector.load %arg2[%c0_26, %c512_27] : memref<8x10240xbf16, #tpu.memory_space<vmem>>, vector<8x256xbf16>
    %cst_28 = arith.constant dense<0.000000e+00> : vector<2x8xf32>
    %41 = tpu.matmul %39, %40, %cst_28 {dimension_numbers = #tpu.dot_dimension_numbers<[1], [1], [0], [0], [0, 0, 1, 0], [], []>} : vector<2x256xbf16>, vector<8x256xbf16>, vector<2x8xf32> -> vector<2x8xf32>
    %42 = arith.addf %38, %41 : vector<2x8xf32>
    %c0_29 = arith.constant 0 : index
    %c768 = arith.constant 768 : index
    %43 = vector.load %arg1[%c0_29, %c768] : memref<2x10240xbf16, #tpu.memory_space<vmem>>, vector<2x256xbf16>
    %c0_30 = arith.constant 0 : index
    %c768_31 = arith.constant 768 : index
    %44 = vector.load %arg2[%c0_30, %c768_31] : memref<8x10240xbf16, #tpu.memory_space<vmem>>, vector<8x256xbf16>
    %cst_32 = arith.constant dense<0.000000e+00> : vector<2x8xf32>
    %45 = tpu.matmul %43, %44, %cst_32 {dimension_numbers = #tpu.dot_dimension_numbers<[1], [1], [0], [0], [0, 0, 1, 0], [], []>} : vector<2x256xbf16>, vector<8x256xbf16>, vector<2x8xf32> -> vector<2x8xf32>
    %46 = arith.addf %42, %45 : vector<2x8xf32>
    %c0_33 = arith.constant 0 : index
    %c1024 = arith.constant 1024 : index
    %47 = vector.load %arg1[%c0_33, %c1024] : memref<2x10240xbf16, #tpu.memory_space<vmem>>, vector<2x256xbf16>
    %c0_34 = arith.constant 0 : index
    %c1024_35 = arith.constant 1024 : index
    %48 = vector.load %arg2[%c0_34, %c1024_35] : memref<8x10240xbf16, #tpu.memory_space<vmem>>, vector<8x256xbf16>
    %cst_36 = arith.constant dense<0.000000e+00> : vector<2x8xf32>
    %49 = tpu.matmul %47, %48, %cst_36 {dimension_numbers = #tpu.dot_dimension_numbers<[1], [1], [0], [0], [0, 0, 1, 0], [], []>} : vector<2x256xbf16>, vector<8x256xbf16>, vector<2x8xf32> -> vector<2x8xf32>
    %50 = arith.addf %46, %49 : vector<2x8xf32>
    %c0_37 = arith.constant 0 : index
    %c1280 = arith.constant 1280 : index
    %51 = vector.load %arg1[%c0_37, %c1280] : memref<2x10240xbf16, #tpu.memory_space<vmem>>, vector<2x256xbf16>
    %c0_38 = arith.constant 0 : index
    %c1280_39 = arith.constant 1280 : index
    %52 = vector.load %arg2[%c0_38, %c1280_39] : memref<8x10240xbf16, #tpu.memory_space<vmem>>, vector<8x256xbf16>
    %cst_40 = arith.constant dense<0.000000e+00> : vector<2x8xf32>
    %53 = tpu.matmul %51, %52, %cst_40 {dimension_numbers = #tpu.dot_dimension_numbers<[1], [1], [0], [0], [0, 0, 1, 0], [], []>} : vector<2x256xbf16>, vector<8x256xbf16>, vector<2x8xf32> -> vector<2x8xf32>
    %54 = arith.addf %50, %53 : vector<2x8xf32>
    %c0_41 = arith.constant 0 : index
    %c1536 = arith.constant 1536 : index
    %55 = vector.load %arg1[%c0_41, %c1536] : memref<2x10240xbf16, #tpu.memory_space<vmem>>, vector<2x256xbf16>
    %c0_42 = arith.constant 0 : index
    %c1536_43 = arith.constant 1536 : index
    %56 = vector.load %arg2[%c0_42, %c1536_43] : memref<8x10240xbf16, #tpu.memory_space<vmem>>, vector<8x256xbf16>
    %cst_44 = arith.constant dense<0.000000e+00> : vector<2x8xf32>
    %57 = tpu.matmul %55, %56, %cst_44 {dimension_numbers = #tpu.dot_dimension_numbers<[1], [1], [0], [0], [0, 0, 1, 0], [], []>} : vector<2x256xbf16>, vector<8x256xbf16>, vector<2x8xf32> -> vector<2x8xf32>
    %58 = arith.addf %54, %57 : vector<2x8xf32>
    %c0_45 = arith.constant 0 : index
    %c1792 = arith.constant 1792 : index
    %59 = vector.load %arg1[%c0_45, %c1792] : memref<2x10240xbf16, #tpu.memory_space<vmem>>, vector<2x256xbf16>
    %c0_46 = arith.constant 0 : index
    %c1792_47 = arith.constant 1792 : index
    %60 = vector.load %arg2[%c0_46, %c1792_47] : memref<8x10240xbf16, #tpu.memory_space<vmem>>, vector<8x256xbf16>
    %cst_48 = arith.constant dense<0.000000e+00> : vector<2x8xf32>
    %61 = tpu.matmul %59, %60, %cst_48 {dimension_numbers = #tpu.dot_dimension_numbers<[1], [1], [0], [0], [0, 0, 1, 0], [], []>} : vector<2x256xbf16>, vector<8x256xbf16>, vector<2x8xf32> -> vector<2x8xf32>
    %62 = arith.addf %58, %61 : vector<2x8xf32>
    %c0_49 = arith.constant 0 : index
    %c2048 = arith.constant 2048 : index
    %63 = vector.load %arg1[%c0_49, %c2048] : memref<2x10240xbf16, #tpu.memory_space<vmem>>, vector<2x256xbf16>
    %c0_50 = arith.constant 0 : index
    %c2048_51 = arith.constant 2048 : index
    %64 = vector.load %arg2[%c0_50, %c2048_51] : memref<8x10240xbf16, #tpu.memory_space<vmem>>, vector<8x256xbf16>
    %cst_52 = arith.constant dense<0.000000e+00> : vector<2x8xf32>
    %65 = tpu.matmul %63, %64, %cst_52 {dimension_numbers = #tpu.dot_dimension_numbers<[1], [1], [0], [0], [0, 0, 1, 0], [], []>} : vector<2x256xbf16>, vector<8x256xbf16>, vector<2x8xf32> -> vector<2x8xf32>
    %66 = arith.addf %62, %65 : vector<2x8xf32>
    %c0_53 = arith.constant 0 : index
    %c2304 = arith.constant 2304 : index
    %67 = vector.load %arg1[%c0_53, %c2304] : memref<2x10240xbf16, #tpu.memory_space<vmem>>, vector<2x256xbf16>
    %c0_54 = arith.constant 0 : index
    %c2304_55 = arith.constant 2304 : index
    %68 = vector.load %arg2[%c0_54, %c2304_55] : memref<8x10240xbf16, #tpu.memory_space<vmem>>, vector<8x256xbf16>
    %cst_56 = arith.constant dense<0.000000e+00> : vector<2x8xf32>
    %69 = tpu.matmul %67, %68, %cst_56 {dimension_numbers = #tpu.dot_dimension_numbers<[1], [1], [0], [0], [0, 0, 1, 0], [], []>} : vector<2x256xbf16>, vector<8x256xbf16>, vector<2x8xf32> -> vector<2x8xf32>
    %70 = arith.addf %66, %69 : vector<2x8xf32>
    %c0_57 = arith.constant 0 : index
    %c2560 = arith.constant 2560 : index
    %71 = vector.load %arg1[%c0_57, %c2560] : memref<2x10240xbf16, #tpu.memory_space<vmem>>, vector<2x256xbf16>
    %c0_58 = arith.constant 0 : index
    %c2560_59 = arith.constant 2560 : index
    %72 = vector.load %arg2[%c0_58, %c2560_59] : memref<8x10240xbf16, #tpu.memory_space<vmem>>, vector<8x256xbf16>
    %cst_60 = arith.constant dense<0.000000e+00> : vector<2x8xf32>
    %73 = tpu.matmul %71, %72, %cst_60 {dimension_numbers = #tpu.dot_dimension_numbers<[1], [1], [0], [0], [0, 0, 1, 0], [], []>} : vector<2x256xbf16>, vector<8x256xbf16>, vector<2x8xf32> -> vector<2x8xf32>
    %74 = arith.addf %70, %73 : vector<2x8xf32>
    %c0_61 = arith.constant 0 : index
    %c2816 = arith.constant 2816 : index
    %75 = vector.load %arg1[%c0_61, %c2816] : memref<2x10240xbf16, #tpu.memory_space<vmem>>, vector<2x256xbf16>
    %c0_62 = arith.constant 0 : index
    %c2816_63 = arith.constant 2816 : index
    %76 = vector.load %arg2[%c0_62, %c2816_63] : memref<8x10240xbf16, #tpu.memory_space<vmem>>, vector<8x256xbf16>
    %cst_64 = arith.constant dense<0.000000e+00> : vector<2x8xf32>
    %77 = tpu.matmul %75, %76, %cst_64 {dimension_numbers = #tpu.dot_dimension_numbers<[1], [1], [0], [0], [0, 0, 1, 0], [], []>} : vector<2x256xbf16>, vector<8x256xbf16>, vector<2x8xf32> -> vector<2x8xf32>
    %78 = arith.addf %74, %77 : vector<2x8xf32>
    %c0_65 = arith.constant 0 : index
    %c3072 = arith.constant 3072 : index
    %79 = vector.load %arg1[%c0_65, %c3072] : memref<2x10240xbf16, #tpu.memory_space<vmem>>, vector<2x256xbf16>
    %c0_66 = arith.constant 0 : index
    %c3072_67 = arith.constant 3072 : index
    %80 = vector.load %arg2[%c0_66, %c3072_67] : memref<8x10240xbf16, #tpu.memory_space<vmem>>, vector<8x256xbf16>
    %cst_68 = arith.constant dense<0.000000e+00> : vector<2x8xf32>
    %81 = tpu.matmul %79, %80, %cst_68 {dimension_numbers = #tpu.dot_dimension_numbers<[1], [1], [0], [0], [0, 0, 1, 0], [], []>} : vector<2x256xbf16>, vector<8x256xbf16>, vector<2x8xf32> -> vector<2x8xf32>
    %82 = arith.addf %78, %81 : vector<2x8xf32>
    %c0_69 = arith.constant 0 : index
    %c3328 = arith.constant 3328 : index
    %83 = vector.load %arg1[%c0_69, %c3328] : memref<2x10240xbf16, #tpu.memory_space<vmem>>, vector<2x256xbf16>
    %c0_70 = arith.constant 0 : index
    %c3328_71 = arith.constant 3328 : index
    %84 = vector.load %arg2[%c0_70, %c3328_71] : memref<8x10240xbf16, #tpu.memory_space<vmem>>, vector<8x256xbf16>
    %cst_72 = arith.constant dense<0.000000e+00> : vector<2x8xf32>
    %85 = tpu.matmul %83, %84, %cst_72 {dimension_numbers = #tpu.dot_dimension_numbers<[1], [1], [0], [0], [0, 0, 1, 0], [], []>} : vector<2x256xbf16>, vector<8x256xbf16>, vector<2x8xf32> -> vector<2x8xf32>
    %86 = arith.addf %82, %85 : vector<2x8xf32>
    %c0_73 = arith.constant 0 : index
    %c3584 = arith.constant 3584 : index
    %87 = vector.load %arg1[%c0_73, %c3584] : memref<2x10240xbf16, #tpu.memory_space<vmem>>, vector<2x256xbf16>
    %c0_74 = arith.constant 0 : index
    %c3584_75 = arith.constant 3584 : index
    %88 = vector.load %arg2[%c0_74, %c3584_75] : memref<8x10240xbf16, #tpu.memory_space<vmem>>, vector<8x256xbf16>
    %cst_76 = arith.constant dense<0.000000e+00> : vector<2x8xf32>
    %89 = tpu.matmul %87, %88, %cst_76 {dimension_numbers = #tpu.dot_dimension_numbers<[1], [1], [0], [0], [0, 0, 1, 0], [], []>} : vector<2x256xbf16>, vector<8x256xbf16>, vector<2x8xf32> -> vector<2x8xf32>
    %90 = arith.addf %86, %89 : vector<2x8xf32>
    %c0_77 = arith.constant 0 : index
    %c3840 = arith.constant 3840 : index
    %91 = vector.load %arg1[%c0_77, %c3840] : memref<2x10240xbf16, #tpu.memory_space<vmem>>, vector<2x256xbf16>
    %c0_78 = arith.constant 0 : index
    %c3840_79 = arith.constant 3840 : index
    %92 = vector.load %arg2[%c0_78, %c3840_79] : memref<8x10240xbf16, #tpu.memory_space<vmem>>, vector<8x256xbf16>
    %cst_80 = arith.constant dense<0.000000e+00> : vector<2x8xf32>
    %93 = tpu.matmul %91, %92, %cst_80 {dimension_numbers = #tpu.dot_dimension_numbers<[1], [1], [0], [0], [0, 0, 1, 0], [], []>} : vector<2x256xbf16>, vector<8x256xbf16>, vector<2x8xf32> -> vector<2x8xf32>
    %94 = arith.addf %90, %93 : vector<2x8xf32>
    %c0_81 = arith.constant 0 : index
    %c4096 = arith.constant 4096 : index
    %95 = vector.load %arg1[%c0_81, %c4096] : memref<2x10240xbf16, #tpu.memory_space<vmem>>, vector<2x256xbf16>
    %c0_82 = arith.constant 0 : index
    %c4096_83 = arith.constant 4096 : index
    %96 = vector.load %arg2[%c0_82, %c4096_83] : memref<8x10240xbf16, #tpu.memory_space<vmem>>, vector<8x256xbf16>
    %cst_84 = arith.constant dense<0.000000e+00> : vector<2x8xf32>
    %97 = tpu.matmul %95, %96, %cst_84 {dimension_numbers = #tpu.dot_dimension_numbers<[1], [1], [0], [0], [0, 0, 1, 0], [], []>} : vector<2x256xbf16>, vector<8x256xbf16>, vector<2x8xf32> -> vector<2x8xf32>
    %98 = arith.addf %94, %97 : vector<2x8xf32>
    %c0_85 = arith.constant 0 : index
    %c4352 = arith.constant 4352 : index
    %99 = vector.load %arg1[%c0_85, %c4352] : memref<2x10240xbf16, #tpu.memory_space<vmem>>, vector<2x256xbf16>
    %c0_86 = arith.constant 0 : index
    %c4352_87 = arith.constant 4352 : index
    %100 = vector.load %arg2[%c0_86, %c4352_87] : memref<8x10240xbf16, #tpu.memory_space<vmem>>, vector<8x256xbf16>
    %cst_88 = arith.constant dense<0.000000e+00> : vector<2x8xf32>
    %101 = tpu.matmul %99, %100, %cst_88 {dimension_numbers = #tpu.dot_dimension_numbers<[1], [1], [0], [0], [0, 0, 1, 0], [], []>} : vector<2x256xbf16>, vector<8x256xbf16>, vector<2x8xf32> -> vector<2x8xf32>
    %102 = arith.addf %98, %101 : vector<2x8xf32>
    %c0_89 = arith.constant 0 : index
    %c4608 = arith.constant 4608 : index
    %103 = vector.load %arg1[%c0_89, %c4608] : memref<2x10240xbf16, #tpu.memory_space<vmem>>, vector<2x256xbf16>
    %c0_90 = arith.constant 0 : index
    %c4608_91 = arith.constant 4608 : index
    %104 = vector.load %arg2[%c0_90, %c4608_91] : memref<8x10240xbf16, #tpu.memory_space<vmem>>, vector<8x256xbf16>
    %cst_92 = arith.constant dense<0.000000e+00> : vector<2x8xf32>
    %105 = tpu.matmul %103, %104, %cst_92 {dimension_numbers = #tpu.dot_dimension_numbers<[1], [1], [0], [0], [0, 0, 1, 0], [], []>} : vector<2x256xbf16>, vector<8x256xbf16>, vector<2x8xf32> -> vector<2x8xf32>
    %106 = arith.addf %102, %105 : vector<2x8xf32>
    %c0_93 = arith.constant 0 : index
    %c4864 = arith.constant 4864 : index
    %107 = vector.load %arg1[%c0_93, %c4864] : memref<2x10240xbf16, #tpu.memory_space<vmem>>, vector<2x256xbf16>
    %c0_94 = arith.constant 0 : index
    %c4864_95 = arith.constant 4864 : index
    %108 = vector.load %arg2[%c0_94, %c4864_95] : memref<8x10240xbf16, #tpu.memory_space<vmem>>, vector<8x256xbf16>
    %cst_96 = arith.constant dense<0.000000e+00> : vector<2x8xf32>
    %109 = tpu.matmul %107, %108, %cst_96 {dimension_numbers = #tpu.dot_dimension_numbers<[1], [1], [0], [0], [0, 0, 1, 0], [], []>} : vector<2x256xbf16>, vector<8x256xbf16>, vector<2x8xf32> -> vector<2x8xf32>
    %110 = arith.addf %106, %109 : vector<2x8xf32>
    %c0_97 = arith.constant 0 : index
    %c5120 = arith.constant 5120 : index
    %111 = vector.load %arg1[%c0_97, %c5120] : memref<2x10240xbf16, #tpu.memory_space<vmem>>, vector<2x256xbf16>
    %c0_98 = arith.constant 0 : index
    %c5120_99 = arith.constant 5120 : index
    %112 = vector.load %arg2[%c0_98, %c5120_99] : memref<8x10240xbf16, #tpu.memory_space<vmem>>, vector<8x256xbf16>
    %cst_100 = arith.constant dense<0.000000e+00> : vector<2x8xf32>
    %113 = tpu.matmul %111, %112, %cst_100 {dimension_numbers = #tpu.dot_dimension_numbers<[1], [1], [0], [0], [0, 0, 1, 0], [], []>} : vector<2x256xbf16>, vector<8x256xbf16>, vector<2x8xf32> -> vector<2x8xf32>
    %114 = arith.addf %110, %113 : vector<2x8xf32>
    %c0_101 = arith.constant 0 : index
    %c5376 = arith.constant 5376 : index
    %115 = vector.load %arg1[%c0_101, %c5376] : memref<2x10240xbf16, #tpu.memory_space<vmem>>, vector<2x256xbf16>
    %c0_102 = arith.constant 0 : index
    %c5376_103 = arith.constant 5376 : index
    %116 = vector.load %arg2[%c0_102, %c5376_103] : memref<8x10240xbf16, #tpu.memory_space<vmem>>, vector<8x256xbf16>
    %cst_104 = arith.constant dense<0.000000e+00> : vector<2x8xf32>
    %117 = tpu.matmul %115, %116, %cst_104 {dimension_numbers = #tpu.dot_dimension_numbers<[1], [1], [0], [0], [0, 0, 1, 0], [], []>} : vector<2x256xbf16>, vector<8x256xbf16>, vector<2x8xf32> -> vector<2x8xf32>
    %118 = arith.addf %114, %117 : vector<2x8xf32>
    %c0_105 = arith.constant 0 : index
    %c5632 = arith.constant 5632 : index
    %119 = vector.load %arg1[%c0_105, %c5632] : memref<2x10240xbf16, #tpu.memory_space<vmem>>, vector<2x256xbf16>
    %c0_106 = arith.constant 0 : index
    %c5632_107 = arith.constant 5632 : index
    %120 = vector.load %arg2[%c0_106, %c5632_107] : memref<8x10240xbf16, #tpu.memory_space<vmem>>, vector<8x256xbf16>
    %cst_108 = arith.constant dense<0.000000e+00> : vector<2x8xf32>
    %121 = tpu.matmul %119, %120, %cst_108 {dimension_numbers = #tpu.dot_dimension_numbers<[1], [1], [0], [0], [0, 0, 1, 0], [], []>} : vector<2x256xbf16>, vector<8x256xbf16>, vector<2x8xf32> -> vector<2x8xf32>
    %122 = arith.addf %118, %121 : vector<2x8xf32>
    %c0_109 = arith.constant 0 : index
    %c5888 = arith.constant 5888 : index
    %123 = vector.load %arg1[%c0_109, %c5888] : memref<2x10240xbf16, #tpu.memory_space<vmem>>, vector<2x256xbf16>
    %c0_110 = arith.constant 0 : index
    %c5888_111 = arith.constant 5888 : index
    %124 = vector.load %arg2[%c0_110, %c5888_111] : memref<8x10240xbf16, #tpu.memory_space<vmem>>, vector<8x256xbf16>
    %cst_112 = arith.constant dense<0.000000e+00> : vector<2x8xf32>
    %125 = tpu.matmul %123, %124, %cst_112 {dimension_numbers = #tpu.dot_dimension_numbers<[1], [1], [0], [0], [0, 0, 1, 0], [], []>} : vector<2x256xbf16>, vector<8x256xbf16>, vector<2x8xf32> -> vector<2x8xf32>
    %126 = arith.addf %122, %125 : vector<2x8xf32>
    %c0_113 = arith.constant 0 : index
    %c6144 = arith.constant 6144 : index
    %127 = vector.load %arg1[%c0_113, %c6144] : memref<2x10240xbf16, #tpu.memory_space<vmem>>, vector<2x256xbf16>
    %c0_114 = arith.constant 0 : index
    %c6144_115 = arith.constant 6144 : index
    %128 = vector.load %arg2[%c0_114, %c6144_115] : memref<8x10240xbf16, #tpu.memory_space<vmem>>, vector<8x256xbf16>
    %cst_116 = arith.constant dense<0.000000e+00> : vector<2x8xf32>
    %129 = tpu.matmul %127, %128, %cst_116 {dimension_numbers = #tpu.dot_dimension_numbers<[1], [1], [0], [0], [0, 0, 1, 0], [], []>} : vector<2x256xbf16>, vector<8x256xbf16>, vector<2x8xf32> -> vector<2x8xf32>
    %130 = arith.addf %126, %129 : vector<2x8xf32>
    %c0_117 = arith.constant 0 : index
    %c6400 = arith.constant 6400 : index
    %131 = vector.load %arg1[%c0_117, %c6400] : memref<2x10240xbf16, #tpu.memory_space<vmem>>, vector<2x256xbf16>
    %c0_118 = arith.constant 0 : index
    %c6400_119 = arith.constant 6400 : index
    %132 = vector.load %arg2[%c0_118, %c6400_119] : memref<8x10240xbf16, #tpu.memory_space<vmem>>, vector<8x256xbf16>
    %cst_120 = arith.constant dense<0.000000e+00> : vector<2x8xf32>
    %133 = tpu.matmul %131, %132, %cst_120 {dimension_numbers = #tpu.dot_dimension_numbers<[1], [1], [0], [0], [0, 0, 1, 0], [], []>} : vector<2x256xbf16>, vector<8x256xbf16>, vector<2x8xf32> -> vector<2x8xf32>
    %134 = arith.addf %130, %133 : vector<2x8xf32>
    %c0_121 = arith.constant 0 : index
    %c6656 = arith.constant 6656 : index
    %135 = vector.load %arg1[%c0_121, %c6656] : memref<2x10240xbf16, #tpu.memory_space<vmem>>, vector<2x256xbf16>
    %c0_122 = arith.constant 0 : index
    %c6656_123 = arith.constant 6656 : index
    %136 = vector.load %arg2[%c0_122, %c6656_123] : memref<8x10240xbf16, #tpu.memory_space<vmem>>, vector<8x256xbf16>
    %cst_124 = arith.constant dense<0.000000e+00> : vector<2x8xf32>
    %137 = tpu.matmul %135, %136, %cst_124 {dimension_numbers = #tpu.dot_dimension_numbers<[1], [1], [0], [0], [0, 0, 1, 0], [], []>} : vector<2x256xbf16>, vector<8x256xbf16>, vector<2x8xf32> -> vector<2x8xf32>
    %138 = arith.addf %134, %137 : vector<2x8xf32>
    %c0_125 = arith.constant 0 : index
    %c6912 = arith.constant 6912 : index
    %139 = vector.load %arg1[%c0_125, %c6912] : memref<2x10240xbf16, #tpu.memory_space<vmem>>, vector<2x256xbf16>
    %c0_126 = arith.constant 0 : index
    %c6912_127 = arith.constant 6912 : index
    %140 = vector.load %arg2[%c0_126, %c6912_127] : memref<8x10240xbf16, #tpu.memory_space<vmem>>, vector<8x256xbf16>
    %cst_128 = arith.constant dense<0.000000e+00> : vector<2x8xf32>
    %141 = tpu.matmul %139, %140, %cst_128 {dimension_numbers = #tpu.dot_dimension_numbers<[1], [1], [0], [0], [0, 0, 1, 0], [], []>} : vector<2x256xbf16>, vector<8x256xbf16>, vector<2x8xf32> -> vector<2x8xf32>
    %142 = arith.addf %138, %141 : vector<2x8xf32>
    %c0_129 = arith.constant 0 : index
    %c7168 = arith.constant 7168 : index
    %143 = vector.load %arg1[%c0_129, %c7168] : memref<2x10240xbf16, #tpu.memory_space<vmem>>, vector<2x256xbf16>
    %c0_130 = arith.constant 0 : index
    %c7168_131 = arith.constant 7168 : index
    %144 = vector.load %arg2[%c0_130, %c7168_131] : memref<8x10240xbf16, #tpu.memory_space<vmem>>, vector<8x256xbf16>
    %cst_132 = arith.constant dense<0.000000e+00> : vector<2x8xf32>
    %145 = tpu.matmul %143, %144, %cst_132 {dimension_numbers = #tpu.dot_dimension_numbers<[1], [1], [0], [0], [0, 0, 1, 0], [], []>} : vector<2x256xbf16>, vector<8x256xbf16>, vector<2x8xf32> -> vector<2x8xf32>
    %146 = arith.addf %142, %145 : vector<2x8xf32>
    %c0_133 = arith.constant 0 : index
    %c7424 = arith.constant 7424 : index
    %147 = vector.load %arg1[%c0_133, %c7424] : memref<2x10240xbf16, #tpu.memory_space<vmem>>, vector<2x256xbf16>
    %c0_134 = arith.constant 0 : index
    %c7424_135 = arith.constant 7424 : index
    %148 = vector.load %arg2[%c0_134, %c7424_135] : memref<8x10240xbf16, #tpu.memory_space<vmem>>, vector<8x256xbf16>
    %cst_136 = arith.constant dense<0.000000e+00> : vector<2x8xf32>
    %149 = tpu.matmul %147, %148, %cst_136 {dimension_numbers = #tpu.dot_dimension_numbers<[1], [1], [0], [0], [0, 0, 1, 0], [], []>} : vector<2x256xbf16>, vector<8x256xbf16>, vector<2x8xf32> -> vector<2x8xf32>
    %150 = arith.addf %146, %149 : vector<2x8xf32>
    %c0_137 = arith.constant 0 : index
    %c7680 = arith.constant 7680 : index
    %151 = vector.load %arg1[%c0_137, %c7680] : memref<2x10240xbf16, #tpu.memory_space<vmem>>, vector<2x256xbf16>
    %c0_138 = arith.constant 0 : index
    %c7680_139 = arith.constant 7680 : index
    %152 = vector.load %arg2[%c0_138, %c7680_139] : memref<8x10240xbf16, #tpu.memory_space<vmem>>, vector<8x256xbf16>
    %cst_140 = arith.constant dense<0.000000e+00> : vector<2x8xf32>
    %153 = tpu.matmul %151, %152, %cst_140 {dimension_numbers = #tpu.dot_dimension_numbers<[1], [1], [0], [0], [0, 0, 1, 0], [], []>} : vector<2x256xbf16>, vector<8x256xbf16>, vector<2x8xf32> -> vector<2x8xf32>
    %154 = arith.addf %150, %153 : vector<2x8xf32>
    %c0_141 = arith.constant 0 : index
    %c7936 = arith.constant 7936 : index
    %155 = vector.load %arg1[%c0_141, %c7936] : memref<2x10240xbf16, #tpu.memory_space<vmem>>, vector<2x256xbf16>
    %c0_142 = arith.constant 0 : index
    %c7936_143 = arith.constant 7936 : index
    %156 = vector.load %arg2[%c0_142, %c7936_143] : memref<8x10240xbf16, #tpu.memory_space<vmem>>, vector<8x256xbf16>
    %cst_144 = arith.constant dense<0.000000e+00> : vector<2x8xf32>
    %157 = tpu.matmul %155, %156, %cst_144 {dimension_numbers = #tpu.dot_dimension_numbers<[1], [1], [0], [0], [0, 0, 1, 0], [], []>} : vector<2x256xbf16>, vector<8x256xbf16>, vector<2x8xf32> -> vector<2x8xf32>
    %158 = arith.addf %154, %157 : vector<2x8xf32>
    %c0_145 = arith.constant 0 : index
    %c8192 = arith.constant 8192 : index
    %159 = vector.load %arg1[%c0_145, %c8192] : memref<2x10240xbf16, #tpu.memory_space<vmem>>, vector<2x256xbf16>
    %c0_146 = arith.constant 0 : index
    %c8192_147 = arith.constant 8192 : index
    %160 = vector.load %arg2[%c0_146, %c8192_147] : memref<8x10240xbf16, #tpu.memory_space<vmem>>, vector<8x256xbf16>
    %cst_148 = arith.constant dense<0.000000e+00> : vector<2x8xf32>
    %161 = tpu.matmul %159, %160, %cst_148 {dimension_numbers = #tpu.dot_dimension_numbers<[1], [1], [0], [0], [0, 0, 1, 0], [], []>} : vector<2x256xbf16>, vector<8x256xbf16>, vector<2x8xf32> -> vector<2x8xf32>
    %162 = arith.addf %158, %161 : vector<2x8xf32>
    %c0_149 = arith.constant 0 : index
    %c8448 = arith.constant 8448 : index
    %163 = vector.load %arg1[%c0_149, %c8448] : memref<2x10240xbf16, #tpu.memory_space<vmem>>, vector<2x256xbf16>
    %c0_150 = arith.constant 0 : index
    %c8448_151 = arith.constant 8448 : index
    %164 = vector.load %arg2[%c0_150, %c8448_151] : memref<8x10240xbf16, #tpu.memory_space<vmem>>, vector<8x256xbf16>
    %cst_152 = arith.constant dense<0.000000e+00> : vector<2x8xf32>
    %165 = tpu.matmul %163, %164, %cst_152 {dimension_numbers = #tpu.dot_dimension_numbers<[1], [1], [0], [0], [0, 0, 1, 0], [], []>} : vector<2x256xbf16>, vector<8x256xbf16>, vector<2x8xf32> -> vector<2x8xf32>
    %166 = arith.addf %162, %165 : vector<2x8xf32>
    %c0_153 = arith.constant 0 : index
    %c8704 = arith.constant 8704 : index
    %167 = vector.load %arg1[%c0_153, %c8704] : memref<2x10240xbf16, #tpu.memory_space<vmem>>, vector<2x256xbf16>
    %c0_154 = arith.constant 0 : index
    %c8704_155 = arith.constant 8704 : index
    %168 = vector.load %arg2[%c0_154, %c8704_155] : memref<8x10240xbf16, #tpu.memory_space<vmem>>, vector<8x256xbf16>
    %cst_156 = arith.constant dense<0.000000e+00> : vector<2x8xf32>
    %169 = tpu.matmul %167, %168, %cst_156 {dimension_numbers = #tpu.dot_dimension_numbers<[1], [1], [0], [0], [0, 0, 1, 0], [], []>} : vector<2x256xbf16>, vector<8x256xbf16>, vector<2x8xf32> -> vector<2x8xf32>
    %170 = arith.addf %166, %169 : vector<2x8xf32>
    %c0_157 = arith.constant 0 : index
    %c8960 = arith.constant 8960 : index
    %171 = vector.load %arg1[%c0_157, %c8960] : memref<2x10240xbf16, #tpu.memory_space<vmem>>, vector<2x256xbf16>
    %c0_158 = arith.constant 0 : index
    %c8960_159 = arith.constant 8960 : index
    %172 = vector.load %arg2[%c0_158, %c8960_159] : memref<8x10240xbf16, #tpu.memory_space<vmem>>, vector<8x256xbf16>
    %cst_160 = arith.constant dense<0.000000e+00> : vector<2x8xf32>
    %173 = tpu.matmul %171, %172, %cst_160 {dimension_numbers = #tpu.dot_dimension_numbers<[1], [1], [0], [0], [0, 0, 1, 0], [], []>} : vector<2x256xbf16>, vector<8x256xbf16>, vector<2x8xf32> -> vector<2x8xf32>
    %174 = arith.addf %170, %173 : vector<2x8xf32>
    %c0_161 = arith.constant 0 : index
    %c9216 = arith.constant 9216 : index
    %175 = vector.load %arg1[%c0_161, %c9216] : memref<2x10240xbf16, #tpu.memory_space<vmem>>, vector<2x256xbf16>
    %c0_162 = arith.constant 0 : index
    %c9216_163 = arith.constant 9216 : index
    %176 = vector.load %arg2[%c0_162, %c9216_163] : memref<8x10240xbf16, #tpu.memory_space<vmem>>, vector<8x256xbf16>
    %cst_164 = arith.constant dense<0.000000e+00> : vector<2x8xf32>
    %177 = tpu.matmul %175, %176, %cst_164 {dimension_numbers = #tpu.dot_dimension_numbers<[1], [1], [0], [0], [0, 0, 1, 0], [], []>} : vector<2x256xbf16>, vector<8x256xbf16>, vector<2x8xf32> -> vector<2x8xf32>
    %178 = arith.addf %174, %177 : vector<2x8xf32>
    %c0_165 = arith.constant 0 : index
    %c9472 = arith.constant 9472 : index
    %179 = vector.load %arg1[%c0_165, %c9472] : memref<2x10240xbf16, #tpu.memory_space<vmem>>, vector<2x256xbf16>
    %c0_166 = arith.constant 0 : index
    %c9472_167 = arith.constant 9472 : index
    %180 = vector.load %arg2[%c0_166, %c9472_167] : memref<8x10240xbf16, #tpu.memory_space<vmem>>, vector<8x256xbf16>
    %cst_168 = arith.constant dense<0.000000e+00> : vector<2x8xf32>
    %181 = tpu.matmul %179, %180, %cst_168 {dimension_numbers = #tpu.dot_dimension_numbers<[1], [1], [0], [0], [0, 0, 1, 0], [], []>} : vector<2x256xbf16>, vector<8x256xbf16>, vector<2x8xf32> -> vector<2x8xf32>
    %182 = arith.addf %178, %181 : vector<2x8xf32>
    %c0_169 = arith.constant 0 : index
    %c9728 = arith.constant 9728 : index
    %183 = vector.load %arg1[%c0_169, %c9728] : memref<2x10240xbf16, #tpu.memory_space<vmem>>, vector<2x256xbf16>
    %c0_170 = arith.constant 0 : index
    %c9728_171 = arith.constant 9728 : index
    %184 = vector.load %arg2[%c0_170, %c9728_171] : memref<8x10240xbf16, #tpu.memory_space<vmem>>, vector<8x256xbf16>
    %cst_172 = arith.constant dense<0.000000e+00> : vector<2x8xf32>
    %185 = tpu.matmul %183, %184, %cst_172 {dimension_numbers = #tpu.dot_dimension_numbers<[1], [1], [0], [0], [0, 0, 1, 0], [], []>} : vector<2x256xbf16>, vector<8x256xbf16>, vector<2x8xf32> -> vector<2x8xf32>
    %186 = arith.addf %182, %185 : vector<2x8xf32>
    %c0_173 = arith.constant 0 : index
    %c9984 = arith.constant 9984 : index
    %187 = vector.load %arg1[%c0_173, %c9984] : memref<2x10240xbf16, #tpu.memory_space<vmem>>, vector<2x256xbf16>
    %c0_174 = arith.constant 0 : index
    %c9984_175 = arith.constant 9984 : index
    %188 = vector.load %arg2[%c0_174, %c9984_175] : memref<8x10240xbf16, #tpu.memory_space<vmem>>, vector<8x256xbf16>
    %cst_176 = arith.constant dense<0.000000e+00> : vector<2x8xf32>
    %189 = tpu.matmul %187, %188, %cst_176 {dimension_numbers = #tpu.dot_dimension_numbers<[1], [1], [0], [0], [0, 0, 1, 0], [], []>} : vector<2x256xbf16>, vector<8x256xbf16>, vector<2x8xf32> -> vector<2x8xf32>
    %190 = arith.addf %186, %189 : vector<2x8xf32>
    %c216 = arith.constant 216 : index
    %c0_177 = arith.constant 0 : index
    %191 = vector.load %arg3[%c216, %c0_177] : memref<224x128xf32, #tpu.memory_space<vmem>>, vector<1x8xf32>
    %192 = vector.broadcast %191 : vector<1x8xf32> to vector<2x8xf32>
    %193 = arith.addf %190, %192 : vector<2x8xf32>
    %c0_178 = arith.constant 0 : index
    %c0_179 = arith.constant 0 : index
    %194 = vector.load %arg0[%c0_178, %c0_179] : memref<64x128xf32, #tpu.memory_space<vmem>>, vector<2x3xf32>
    %c0_180 = arith.constant 0 : index
    %c0_181 = arith.constant 0 : index
    %195 = vector.load %arg3[%c0_180, %c0_181] : memref<224x128xf32, #tpu.memory_space<vmem>>, vector<3x8xf32>
    %cst_182 = arith.constant dense<0.000000e+00> : vector<2x8xf32>
    %196 = tpu.matmul %194, %195, %cst_182 {dimension_numbers = #tpu.dot_dimension_numbers<[1], [0], [0], [1], [0, 0, 1, 1], [], []>} : vector<2x3xf32>, vector<3x8xf32>, vector<2x8xf32> -> vector<2x8xf32>
    %c8 = arith.constant 8 : index
    %c0_183 = arith.constant 0 : index
    %197 = vector.load %arg3[%c8, %c0_183] : memref<224x128xf32, #tpu.memory_space<vmem>>, vector<1x8xf32>
    %198 = vector.broadcast %197 : vector<1x8xf32> to vector<2x8xf32>
    %199 = arith.addf %196, %198 : vector<2x8xf32>
    %c8_184 = arith.constant 8 : index
    %c0_185 = arith.constant 0 : index
    %200 = vector.load %arg0[%c8_184, %c0_185] : memref<64x128xf32, #tpu.memory_space<vmem>>, vector<2x13xf32>
    %c16 = arith.constant 16 : index
    %c0_186 = arith.constant 0 : index
    %201 = vector.load %arg3[%c16, %c0_186] : memref<224x128xf32, #tpu.memory_space<vmem>>, vector<13x8xf32>
    %cst_187 = arith.constant dense<0.000000e+00> : vector<2x8xf32>
    %202 = tpu.matmul %200, %201, %cst_187 {dimension_numbers = #tpu.dot_dimension_numbers<[1], [0], [0], [1], [0, 0, 1, 1], [], []>} : vector<2x13xf32>, vector<13x8xf32>, vector<2x8xf32> -> vector<2x8xf32>
    %c120 = arith.constant 120 : index
    %c0_188 = arith.constant 0 : index
    %203 = vector.load %arg3[%c120, %c0_188] : memref<224x128xf32, #tpu.memory_space<vmem>>, vector<16x48xf32>
    %c136 = arith.constant 136 : index
    %c0_189 = arith.constant 0 : index
    %204 = vector.load %arg3[%c136, %c0_189] : memref<224x128xf32, #tpu.memory_space<vmem>>, vector<1x48xf32>
    %c144 = arith.constant 144 : index
    %c0_190 = arith.constant 0 : index
    %205 = vector.load %arg3[%c144, %c0_190] : memref<224x128xf32, #tpu.memory_space<vmem>>, vector<8x24xf32>
    %c152 = arith.constant 152 : index
    %c0_191 = arith.constant 0 : index
    %206 = vector.load %arg3[%c152, %c0_191] : memref<224x128xf32, #tpu.memory_space<vmem>>, vector<1x24xf32>
    %c16_192 = arith.constant 16 : index
    %c0_193 = arith.constant 0 : index
    %207 = vector.load %arg0[%c16_192, %c0_193] : memref<64x128xf32, #tpu.memory_space<vmem>>, vector<2x8xf32>
    %cst_194 = arith.constant dense<0.000000e+00> : vector<2xf32>
    %208 = vector.multi_reduction <add>, %207, %cst_194 [1] : vector<2x8xf32> to vector<2xf32>
    %209 = vector.shape_cast %208 : vector<2xf32> to vector<2x1xf32>
    %cst_195 = arith.constant 1.000000e+00 : f32
    %210 = vector.broadcast %cst_195 : f32 to vector<2x1xf32>
    %211 = arith.subf %209, %210 : vector<2x1xf32>
    %cst_196 = arith.constant 0.000000e+00 : f32
    %212 = vector.broadcast %cst_196 : f32 to vector<2x8xf32>
    %cst_197 = arith.constant 0.000000e+00 : f32
    %213 = vector.broadcast %cst_197 : f32 to vector<2x8xf32>
    %cst_198 = arith.constant 0.000000e+00 : f32
    %214 = vector.broadcast %cst_198 : f32 to vector<2x8xf32>
    %215 = vector.extract_strided_slice %29 {offsets = [0, 0], sizes = [2, 24], strides = [1, 1]} : vector<16x24xf32> to vector<2x24xf32>
    %216 = tpu.concatenate %212, %213 in 1 : vector<2x8xf32>, vector<2x8xf32> -> vector<2x16xf32>
    %217 = vector.shape_cast %204 : vector<1x48xf32> to vector<1x48xf32>
    %218 = vector.broadcast %217 : vector<1x48xf32> to vector<2x48xf32>
    %219 = vector.extract_strided_slice %216 {offsets = [0, 0], sizes = [2, 1], strides = [1, 1]} : vector<2x16xf32> to vector<2x1xf32>
    %220 = vector.extract_strided_slice %203 {offsets = [0, 0], sizes = [1, 48], strides = [1, 1]} : vector<16x48xf32> to vector<1x48xf32>
    %221 = vector.broadcast %219 : vector<2x1xf32> to vector<2x48xf32>
    %222 = vector.broadcast %220 : vector<1x48xf32> to vector<2x48xf32>
    %223 = arith.mulf %221, %222 : vector<2x48xf32>
    %224 = arith.addf %218, %223 : vector<2x48xf32>
    %225 = vector.extract_strided_slice %216 {offsets = [0, 1], sizes = [2, 1], strides = [1, 1]} : vector<2x16xf32> to vector<2x1xf32>
    %226 = vector.extract_strided_slice %203 {offsets = [1, 0], sizes = [1, 48], strides = [1, 1]} : vector<16x48xf32> to vector<1x48xf32>
    %227 = vector.broadcast %225 : vector<2x1xf32> to vector<2x48xf32>
    %228 = vector.broadcast %226 : vector<1x48xf32> to vector<2x48xf32>
    %229 = arith.mulf %227, %228 : vector<2x48xf32>
    %230 = arith.addf %224, %229 : vector<2x48xf32>
    %231 = vector.extract_strided_slice %216 {offsets = [0, 2], sizes = [2, 1], strides = [1, 1]} : vector<2x16xf32> to vector<2x1xf32>
    %232 = vector.extract_strided_slice %203 {offsets = [2, 0], sizes = [1, 48], strides = [1, 1]} : vector<16x48xf32> to vector<1x48xf32>
    %233 = vector.broadcast %231 : vector<2x1xf32> to vector<2x48xf32>
    %234 = vector.broadcast %232 : vector<1x48xf32> to vector<2x48xf32>
    %235 = arith.mulf %233, %234 : vector<2x48xf32>
    %236 = arith.addf %230, %235 : vector<2x48xf32>
    %237 = vector.extract_strided_slice %216 {offsets = [0, 3], sizes = [2, 1], strides = [1, 1]} : vector<2x16xf32> to vector<2x1xf32>
    %238 = vector.extract_strided_slice %203 {offsets = [3, 0], sizes = [1, 48], strides = [1, 1]} : vector<16x48xf32> to vector<1x48xf32>
    %239 = vector.broadcast %237 : vector<2x1xf32> to vector<2x48xf32>
    %240 = vector.broadcast %238 : vector<1x48xf32> to vector<2x48xf32>
    %241 = arith.mulf %239, %240 : vector<2x48xf32>
    %242 = arith.addf %236, %241 : vector<2x48xf32>
    %243 = vector.extract_strided_slice %216 {offsets = [0, 4], sizes = [2, 1], strides = [1, 1]} : vector<2x16xf32> to vector<2x1xf32>
    %244 = vector.extract_strided_slice %203 {offsets = [4, 0], sizes = [1, 48], strides = [1, 1]} : vector<16x48xf32> to vector<1x48xf32>
    %245 = vector.broadcast %243 : vector<2x1xf32> to vector<2x48xf32>
    %246 = vector.broadcast %244 : vector<1x48xf32> to vector<2x48xf32>
    %247 = arith.mulf %245, %246 : vector<2x48xf32>
    %248 = arith.addf %242, %247 : vector<2x48xf32>
    %249 = vector.extract_strided_slice %216 {offsets = [0, 5], sizes = [2, 1], strides = [1, 1]} : vector<2x16xf32> to vector<2x1xf32>
    %250 = vector.extract_strided_slice %203 {offsets = [5, 0], sizes = [1, 48], strides = [1, 1]} : vector<16x48xf32> to vector<1x48xf32>
    %251 = vector.broadcast %249 : vector<2x1xf32> to vector<2x48xf32>
    %252 = vector.broadcast %250 : vector<1x48xf32> to vector<2x48xf32>
    %253 = arith.mulf %251, %252 : vector<2x48xf32>
    %254 = arith.addf %248, %253 : vector<2x48xf32>
    %255 = vector.extract_strided_slice %216 {offsets = [0, 6], sizes = [2, 1], strides = [1, 1]} : vector<2x16xf32> to vector<2x1xf32>
    %256 = vector.extract_strided_slice %203 {offsets = [6, 0], sizes = [1, 48], strides = [1, 1]} : vector<16x48xf32> to vector<1x48xf32>
    %257 = vector.broadcast %255 : vector<2x1xf32> to vector<2x48xf32>
    %258 = vector.broadcast %256 : vector<1x48xf32> to vector<2x48xf32>
    %259 = arith.mulf %257, %258 : vector<2x48xf32>
    %260 = arith.addf %254, %259 : vector<2x48xf32>
    %261 = vector.extract_strided_slice %216 {offsets = [0, 7], sizes = [2, 1], strides = [1, 1]} : vector<2x16xf32> to vector<2x1xf32>
    %262 = vector.extract_strided_slice %203 {offsets = [7, 0], sizes = [1, 48], strides = [1, 1]} : vector<16x48xf32> to vector<1x48xf32>
    %263 = vector.broadcast %261 : vector<2x1xf32> to vector<2x48xf32>
    %264 = vector.broadcast %262 : vector<1x48xf32> to vector<2x48xf32>
    %265 = arith.mulf %263, %264 : vector<2x48xf32>
    %266 = arith.addf %260, %265 : vector<2x48xf32>
    %267 = vector.extract_strided_slice %216 {offsets = [0, 8], sizes = [2, 1], strides = [1, 1]} : vector<2x16xf32> to vector<2x1xf32>
    %268 = vector.extract_strided_slice %203 {offsets = [8, 0], sizes = [1, 48], strides = [1, 1]} : vector<16x48xf32> to vector<1x48xf32>
    %269 = vector.broadcast %267 : vector<2x1xf32> to vector<2x48xf32>
    %270 = vector.broadcast %268 : vector<1x48xf32> to vector<2x48xf32>
    %271 = arith.mulf %269, %270 : vector<2x48xf32>
    %272 = arith.addf %266, %271 : vector<2x48xf32>
    %273 = vector.extract_strided_slice %216 {offsets = [0, 9], sizes = [2, 1], strides = [1, 1]} : vector<2x16xf32> to vector<2x1xf32>
    %274 = vector.extract_strided_slice %203 {offsets = [9, 0], sizes = [1, 48], strides = [1, 1]} : vector<16x48xf32> to vector<1x48xf32>
    %275 = vector.broadcast %273 : vector<2x1xf32> to vector<2x48xf32>
    %276 = vector.broadcast %274 : vector<1x48xf32> to vector<2x48xf32>
    %277 = arith.mulf %275, %276 : vector<2x48xf32>
    %278 = arith.addf %272, %277 : vector<2x48xf32>
    %279 = vector.extract_strided_slice %216 {offsets = [0, 10], sizes = [2, 1], strides = [1, 1]} : vector<2x16xf32> to vector<2x1xf32>
    %280 = vector.extract_strided_slice %203 {offsets = [10, 0], sizes = [1, 48], strides = [1, 1]} : vector<16x48xf32> to vector<1x48xf32>
    %281 = vector.broadcast %279 : vector<2x1xf32> to vector<2x48xf32>
    %282 = vector.broadcast %280 : vector<1x48xf32> to vector<2x48xf32>
    %283 = arith.mulf %281, %282 : vector<2x48xf32>
    %284 = arith.addf %278, %283 : vector<2x48xf32>
    %285 = vector.extract_strided_slice %216 {offsets = [0, 11], sizes = [2, 1], strides = [1, 1]} : vector<2x16xf32> to vector<2x1xf32>
    %286 = vector.extract_strided_slice %203 {offsets = [11, 0], sizes = [1, 48], strides = [1, 1]} : vector<16x48xf32> to vector<1x48xf32>
    %287 = vector.broadcast %285 : vector<2x1xf32> to vector<2x48xf32>
    %288 = vector.broadcast %286 : vector<1x48xf32> to vector<2x48xf32>
    %289 = arith.mulf %287, %288 : vector<2x48xf32>
    %290 = arith.addf %284, %289 : vector<2x48xf32>
    %291 = vector.extract_strided_slice %216 {offsets = [0, 12], sizes = [2, 1], strides = [1, 1]} : vector<2x16xf32> to vector<2x1xf32>
    %292 = vector.extract_strided_slice %203 {offsets = [12, 0], sizes = [1, 48], strides = [1, 1]} : vector<16x48xf32> to vector<1x48xf32>
    %293 = vector.broadcast %291 : vector<2x1xf32> to vector<2x48xf32>
    %294 = vector.broadcast %292 : vector<1x48xf32> to vector<2x48xf32>
    %295 = arith.mulf %293, %294 : vector<2x48xf32>
    %296 = arith.addf %290, %295 : vector<2x48xf32>
    %297 = vector.extract_strided_slice %216 {offsets = [0, 13], sizes = [2, 1], strides = [1, 1]} : vector<2x16xf32> to vector<2x1xf32>
    %298 = vector.extract_strided_slice %203 {offsets = [13, 0], sizes = [1, 48], strides = [1, 1]} : vector<16x48xf32> to vector<1x48xf32>
    %299 = vector.broadcast %297 : vector<2x1xf32> to vector<2x48xf32>
    %300 = vector.broadcast %298 : vector<1x48xf32> to vector<2x48xf32>
    %301 = arith.mulf %299, %300 : vector<2x48xf32>
    %302 = arith.addf %296, %301 : vector<2x48xf32>
    %303 = vector.extract_strided_slice %216 {offsets = [0, 14], sizes = [2, 1], strides = [1, 1]} : vector<2x16xf32> to vector<2x1xf32>
    %304 = vector.extract_strided_slice %203 {offsets = [14, 0], sizes = [1, 48], strides = [1, 1]} : vector<16x48xf32> to vector<1x48xf32>
    %305 = vector.broadcast %303 : vector<2x1xf32> to vector<2x48xf32>
    %306 = vector.broadcast %304 : vector<1x48xf32> to vector<2x48xf32>
    %307 = arith.mulf %305, %306 : vector<2x48xf32>
    %308 = arith.addf %302, %307 : vector<2x48xf32>
    %309 = vector.extract_strided_slice %216 {offsets = [0, 15], sizes = [2, 1], strides = [1, 1]} : vector<2x16xf32> to vector<2x1xf32>
    %310 = vector.extract_strided_slice %203 {offsets = [15, 0], sizes = [1, 48], strides = [1, 1]} : vector<16x48xf32> to vector<1x48xf32>
    %311 = vector.broadcast %309 : vector<2x1xf32> to vector<2x48xf32>
    %312 = vector.broadcast %310 : vector<1x48xf32> to vector<2x48xf32>
    %313 = arith.mulf %311, %312 : vector<2x48xf32>
    %314 = arith.addf %308, %313 : vector<2x48xf32>
    %315 = vector.extract_strided_slice %314 {offsets = [0, 0], sizes = [2, 24], strides = [1, 1]} : vector<2x48xf32> to vector<2x24xf32>
    %316 = vector.extract_strided_slice %215 {offsets = [0, 0], sizes = [2, 8], strides = [1, 1]} : vector<2x24xf32> to vector<2x8xf32>
    %317 = vector.extract_strided_slice %315 {offsets = [0, 0], sizes = [2, 8], strides = [1, 1]} : vector<2x24xf32> to vector<2x8xf32>
    %318 = arith.addf %316, %317 : vector<2x8xf32>
    %319 = arith.negf %318 : vector<2x8xf32>
    %320 = math.exp %319 : vector<2x8xf32>
    %cst_199 = arith.constant 1.000000e+00 : f32
    %321 = vector.broadcast %cst_199 : f32 to vector<2x8xf32>
    %322 = arith.addf %321, %320 : vector<2x8xf32>
    %323 = arith.divf %321, %322 : vector<2x8xf32>
    %324 = vector.extract_strided_slice %215 {offsets = [0, 8], sizes = [2, 8], strides = [1, 1]} : vector<2x24xf32> to vector<2x8xf32>
    %325 = vector.extract_strided_slice %315 {offsets = [0, 8], sizes = [2, 8], strides = [1, 1]} : vector<2x24xf32> to vector<2x8xf32>
    %326 = arith.addf %324, %325 : vector<2x8xf32>
    %327 = arith.negf %326 : vector<2x8xf32>
    %328 = math.exp %327 : vector<2x8xf32>
    %cst_200 = arith.constant 1.000000e+00 : f32
    %329 = vector.broadcast %cst_200 : f32 to vector<2x8xf32>
    %330 = arith.addf %329, %328 : vector<2x8xf32>
    %331 = arith.divf %329, %330 : vector<2x8xf32>
    %332 = vector.extract_strided_slice %215 {offsets = [0, 16], sizes = [2, 8], strides = [1, 1]} : vector<2x24xf32> to vector<2x8xf32>
    %333 = vector.extract_strided_slice %315 {offsets = [0, 16], sizes = [2, 8], strides = [1, 1]} : vector<2x24xf32> to vector<2x8xf32>
    %334 = arith.mulf %323, %333 : vector<2x8xf32>
    %335 = arith.addf %332, %334 : vector<2x8xf32>
    %336 = math.tanh %335 : vector<2x8xf32>
    %cst_201 = arith.constant 1.000000e+00 : f32
    %337 = vector.broadcast %cst_201 : f32 to vector<2x8xf32>
    %338 = arith.subf %337, %331 : vector<2x8xf32>
    %339 = arith.mulf %338, %336 : vector<2x8xf32>
    %340 = arith.mulf %331, %212 : vector<2x8xf32>
    %341 = arith.addf %339, %340 : vector<2x8xf32>
    %342 = vector.shape_cast %206 : vector<1x24xf32> to vector<1x24xf32>
    %343 = vector.broadcast %342 : vector<1x24xf32> to vector<2x24xf32>
    %344 = vector.extract_strided_slice %341 {offsets = [0, 0], sizes = [2, 1], strides = [1, 1]} : vector<2x8xf32> to vector<2x1xf32>
    %345 = vector.extract_strided_slice %205 {offsets = [0, 0], sizes = [1, 24], strides = [1, 1]} : vector<8x24xf32> to vector<1x24xf32>
    %346 = vector.broadcast %344 : vector<2x1xf32> to vector<2x24xf32>
    %347 = vector.broadcast %345 : vector<1x24xf32> to vector<2x24xf32>
    %348 = arith.mulf %346, %347 : vector<2x24xf32>
    %349 = arith.addf %343, %348 : vector<2x24xf32>
    %350 = vector.extract_strided_slice %341 {offsets = [0, 1], sizes = [2, 1], strides = [1, 1]} : vector<2x8xf32> to vector<2x1xf32>
    %351 = vector.extract_strided_slice %205 {offsets = [1, 0], sizes = [1, 24], strides = [1, 1]} : vector<8x24xf32> to vector<1x24xf32>
    %352 = vector.broadcast %350 : vector<2x1xf32> to vector<2x24xf32>
    %353 = vector.broadcast %351 : vector<1x24xf32> to vector<2x24xf32>
    %354 = arith.mulf %352, %353 : vector<2x24xf32>
    %355 = arith.addf %349, %354 : vector<2x24xf32>
    %356 = vector.extract_strided_slice %341 {offsets = [0, 2], sizes = [2, 1], strides = [1, 1]} : vector<2x8xf32> to vector<2x1xf32>
    %357 = vector.extract_strided_slice %205 {offsets = [2, 0], sizes = [1, 24], strides = [1, 1]} : vector<8x24xf32> to vector<1x24xf32>
    %358 = vector.broadcast %356 : vector<2x1xf32> to vector<2x24xf32>
    %359 = vector.broadcast %357 : vector<1x24xf32> to vector<2x24xf32>
    %360 = arith.mulf %358, %359 : vector<2x24xf32>
    %361 = arith.addf %355, %360 : vector<2x24xf32>
    %362 = vector.extract_strided_slice %341 {offsets = [0, 3], sizes = [2, 1], strides = [1, 1]} : vector<2x8xf32> to vector<2x1xf32>
    %363 = vector.extract_strided_slice %205 {offsets = [3, 0], sizes = [1, 24], strides = [1, 1]} : vector<8x24xf32> to vector<1x24xf32>
    %364 = vector.broadcast %362 : vector<2x1xf32> to vector<2x24xf32>
    %365 = vector.broadcast %363 : vector<1x24xf32> to vector<2x24xf32>
    %366 = arith.mulf %364, %365 : vector<2x24xf32>
    %367 = arith.addf %361, %366 : vector<2x24xf32>
    %368 = vector.extract_strided_slice %341 {offsets = [0, 4], sizes = [2, 1], strides = [1, 1]} : vector<2x8xf32> to vector<2x1xf32>
    %369 = vector.extract_strided_slice %205 {offsets = [4, 0], sizes = [1, 24], strides = [1, 1]} : vector<8x24xf32> to vector<1x24xf32>
    %370 = vector.broadcast %368 : vector<2x1xf32> to vector<2x24xf32>
    %371 = vector.broadcast %369 : vector<1x24xf32> to vector<2x24xf32>
    %372 = arith.mulf %370, %371 : vector<2x24xf32>
    %373 = arith.addf %367, %372 : vector<2x24xf32>
    %374 = vector.extract_strided_slice %341 {offsets = [0, 5], sizes = [2, 1], strides = [1, 1]} : vector<2x8xf32> to vector<2x1xf32>
    %375 = vector.extract_strided_slice %205 {offsets = [5, 0], sizes = [1, 24], strides = [1, 1]} : vector<8x24xf32> to vector<1x24xf32>
    %376 = vector.broadcast %374 : vector<2x1xf32> to vector<2x24xf32>
    %377 = vector.broadcast %375 : vector<1x24xf32> to vector<2x24xf32>
    %378 = arith.mulf %376, %377 : vector<2x24xf32>
    %379 = arith.addf %373, %378 : vector<2x24xf32>
    %380 = vector.extract_strided_slice %341 {offsets = [0, 6], sizes = [2, 1], strides = [1, 1]} : vector<2x8xf32> to vector<2x1xf32>
    %381 = vector.extract_strided_slice %205 {offsets = [6, 0], sizes = [1, 24], strides = [1, 1]} : vector<8x24xf32> to vector<1x24xf32>
    %382 = vector.broadcast %380 : vector<2x1xf32> to vector<2x24xf32>
    %383 = vector.broadcast %381 : vector<1x24xf32> to vector<2x24xf32>
    %384 = arith.mulf %382, %383 : vector<2x24xf32>
    %385 = arith.addf %379, %384 : vector<2x24xf32>
    %386 = vector.extract_strided_slice %341 {offsets = [0, 7], sizes = [2, 1], strides = [1, 1]} : vector<2x8xf32> to vector<2x1xf32>
    %387 = vector.extract_strided_slice %205 {offsets = [7, 0], sizes = [1, 24], strides = [1, 1]} : vector<8x24xf32> to vector<1x24xf32>
    %388 = vector.broadcast %386 : vector<2x1xf32> to vector<2x24xf32>
    %389 = vector.broadcast %387 : vector<1x24xf32> to vector<2x24xf32>
    %390 = arith.mulf %388, %389 : vector<2x24xf32>
    %391 = arith.addf %385, %390 : vector<2x24xf32>
    %392 = vector.extract_strided_slice %314 {offsets = [0, 24], sizes = [2, 24], strides = [1, 1]} : vector<2x48xf32> to vector<2x24xf32>
    %393 = vector.extract_strided_slice %391 {offsets = [0, 0], sizes = [2, 8], strides = [1, 1]} : vector<2x24xf32> to vector<2x8xf32>
    %394 = vector.extract_strided_slice %392 {offsets = [0, 0], sizes = [2, 8], strides = [1, 1]} : vector<2x24xf32> to vector<2x8xf32>
    %395 = arith.addf %393, %394 : vector<2x8xf32>
    %396 = arith.negf %395 : vector<2x8xf32>
    %397 = math.exp %396 : vector<2x8xf32>
    %cst_202 = arith.constant 1.000000e+00 : f32
    %398 = vector.broadcast %cst_202 : f32 to vector<2x8xf32>
    %399 = arith.addf %398, %397 : vector<2x8xf32>
    %400 = arith.divf %398, %399 : vector<2x8xf32>
    %401 = vector.extract_strided_slice %391 {offsets = [0, 8], sizes = [2, 8], strides = [1, 1]} : vector<2x24xf32> to vector<2x8xf32>
    %402 = vector.extract_strided_slice %392 {offsets = [0, 8], sizes = [2, 8], strides = [1, 1]} : vector<2x24xf32> to vector<2x8xf32>
    %403 = arith.addf %401, %402 : vector<2x8xf32>
    %404 = arith.negf %403 : vector<2x8xf32>
    %405 = math.exp %404 : vector<2x8xf32>
    %cst_203 = arith.constant 1.000000e+00 : f32
    %406 = vector.broadcast %cst_203 : f32 to vector<2x8xf32>
    %407 = arith.addf %406, %405 : vector<2x8xf32>
    %408 = arith.divf %406, %407 : vector<2x8xf32>
    %409 = vector.extract_strided_slice %391 {offsets = [0, 16], sizes = [2, 8], strides = [1, 1]} : vector<2x24xf32> to vector<2x8xf32>
    %410 = vector.extract_strided_slice %392 {offsets = [0, 16], sizes = [2, 8], strides = [1, 1]} : vector<2x24xf32> to vector<2x8xf32>
    %411 = arith.mulf %400, %410 : vector<2x8xf32>
    %412 = arith.addf %409, %411 : vector<2x8xf32>
    %413 = math.tanh %412 : vector<2x8xf32>
    %cst_204 = arith.constant 1.000000e+00 : f32
    %414 = vector.broadcast %cst_204 : f32 to vector<2x8xf32>
    %415 = arith.subf %414, %408 : vector<2x8xf32>
    %416 = arith.mulf %415, %413 : vector<2x8xf32>
    %417 = arith.mulf %408, %213 : vector<2x8xf32>
    %418 = arith.addf %416, %417 : vector<2x8xf32>
    %cst_205 = arith.constant 0.000000e+00 : f32
    %419 = vector.broadcast %cst_205 : f32 to vector<2x1xf32>
    %420 = arith.subf %211, %419 : vector<2x1xf32>
    %421 = math.absf %420 : vector<2x1xf32>
    %cst_206 = arith.constant 5.000000e-01 : f32
    %422 = vector.broadcast %cst_206 : f32 to vector<2x1xf32>
    %423 = arith.cmpf olt, %421, %422 : vector<2x1xf32>
    %424 = arith.extui %423 : vector<2x1xi1> to vector<2x1xi32>
    %425 = arith.sitofp %424 : vector<2x1xi32> to vector<2x1xf32>
    %426 = vector.broadcast %425 : vector<2x1xf32> to vector<2x8xf32>
    %427 = arith.mulf %426, %418 : vector<2x8xf32>
    %428 = arith.addf %214, %427 : vector<2x8xf32>
    %429 = vector.extract_strided_slice %29 {offsets = [2, 0], sizes = [2, 24], strides = [1, 1]} : vector<16x24xf32> to vector<2x24xf32>
    %430 = tpu.concatenate %341, %418 in 1 : vector<2x8xf32>, vector<2x8xf32> -> vector<2x16xf32>
    %431 = vector.shape_cast %204 : vector<1x48xf32> to vector<1x48xf32>
    %432 = vector.broadcast %431 : vector<1x48xf32> to vector<2x48xf32>
    %433 = vector.extract_strided_slice %430 {offsets = [0, 0], sizes = [2, 1], strides = [1, 1]} : vector<2x16xf32> to vector<2x1xf32>
    %434 = vector.extract_strided_slice %203 {offsets = [0, 0], sizes = [1, 48], strides = [1, 1]} : vector<16x48xf32> to vector<1x48xf32>
    %435 = vector.broadcast %433 : vector<2x1xf32> to vector<2x48xf32>
    %436 = vector.broadcast %434 : vector<1x48xf32> to vector<2x48xf32>
    %437 = arith.mulf %435, %436 : vector<2x48xf32>
    %438 = arith.addf %432, %437 : vector<2x48xf32>
    %439 = vector.extract_strided_slice %430 {offsets = [0, 1], sizes = [2, 1], strides = [1, 1]} : vector<2x16xf32> to vector<2x1xf32>
    %440 = vector.extract_strided_slice %203 {offsets = [1, 0], sizes = [1, 48], strides = [1, 1]} : vector<16x48xf32> to vector<1x48xf32>
    %441 = vector.broadcast %439 : vector<2x1xf32> to vector<2x48xf32>
    %442 = vector.broadcast %440 : vector<1x48xf32> to vector<2x48xf32>
    %443 = arith.mulf %441, %442 : vector<2x48xf32>
    %444 = arith.addf %438, %443 : vector<2x48xf32>
    %445 = vector.extract_strided_slice %430 {offsets = [0, 2], sizes = [2, 1], strides = [1, 1]} : vector<2x16xf32> to vector<2x1xf32>
    %446 = vector.extract_strided_slice %203 {offsets = [2, 0], sizes = [1, 48], strides = [1, 1]} : vector<16x48xf32> to vector<1x48xf32>
    %447 = vector.broadcast %445 : vector<2x1xf32> to vector<2x48xf32>
    %448 = vector.broadcast %446 : vector<1x48xf32> to vector<2x48xf32>
    %449 = arith.mulf %447, %448 : vector<2x48xf32>
    %450 = arith.addf %444, %449 : vector<2x48xf32>
    %451 = vector.extract_strided_slice %430 {offsets = [0, 3], sizes = [2, 1], strides = [1, 1]} : vector<2x16xf32> to vector<2x1xf32>
    %452 = vector.extract_strided_slice %203 {offsets = [3, 0], sizes = [1, 48], strides = [1, 1]} : vector<16x48xf32> to vector<1x48xf32>
    %453 = vector.broadcast %451 : vector<2x1xf32> to vector<2x48xf32>
    %454 = vector.broadcast %452 : vector<1x48xf32> to vector<2x48xf32>
    %455 = arith.mulf %453, %454 : vector<2x48xf32>
    %456 = arith.addf %450, %455 : vector<2x48xf32>
    %457 = vector.extract_strided_slice %430 {offsets = [0, 4], sizes = [2, 1], strides = [1, 1]} : vector<2x16xf32> to vector<2x1xf32>
    %458 = vector.extract_strided_slice %203 {offsets = [4, 0], sizes = [1, 48], strides = [1, 1]} : vector<16x48xf32> to vector<1x48xf32>
    %459 = vector.broadcast %457 : vector<2x1xf32> to vector<2x48xf32>
    %460 = vector.broadcast %458 : vector<1x48xf32> to vector<2x48xf32>
    %461 = arith.mulf %459, %460 : vector<2x48xf32>
    %462 = arith.addf %456, %461 : vector<2x48xf32>
    %463 = vector.extract_strided_slice %430 {offsets = [0, 5], sizes = [2, 1], strides = [1, 1]} : vector<2x16xf32> to vector<2x1xf32>
    %464 = vector.extract_strided_slice %203 {offsets = [5, 0], sizes = [1, 48], strides = [1, 1]} : vector<16x48xf32> to vector<1x48xf32>
    %465 = vector.broadcast %463 : vector<2x1xf32> to vector<2x48xf32>
    %466 = vector.broadcast %464 : vector<1x48xf32> to vector<2x48xf32>
    %467 = arith.mulf %465, %466 : vector<2x48xf32>
    %468 = arith.addf %462, %467 : vector<2x48xf32>
    %469 = vector.extract_strided_slice %430 {offsets = [0, 6], sizes = [2, 1], strides = [1, 1]} : vector<2x16xf32> to vector<2x1xf32>
    %470 = vector.extract_strided_slice %203 {offsets = [6, 0], sizes = [1, 48], strides = [1, 1]} : vector<16x48xf32> to vector<1x48xf32>
    %471 = vector.broadcast %469 : vector<2x1xf32> to vector<2x48xf32>
    %472 = vector.broadcast %470 : vector<1x48xf32> to vector<2x48xf32>
    %473 = arith.mulf %471, %472 : vector<2x48xf32>
    %474 = arith.addf %468, %473 : vector<2x48xf32>
    %475 = vector.extract_strided_slice %430 {offsets = [0, 7], sizes = [2, 1], strides = [1, 1]} : vector<2x16xf32> to vector<2x1xf32>
    %476 = vector.extract_strided_slice %203 {offsets = [7, 0], sizes = [1, 48], strides = [1, 1]} : vector<16x48xf32> to vector<1x48xf32>
    %477 = vector.broadcast %475 : vector<2x1xf32> to vector<2x48xf32>
    %478 = vector.broadcast %476 : vector<1x48xf32> to vector<2x48xf32>
    %479 = arith.mulf %477, %478 : vector<2x48xf32>
    %480 = arith.addf %474, %479 : vector<2x48xf32>
    %481 = vector.extract_strided_slice %430 {offsets = [0, 8], sizes = [2, 1], strides = [1, 1]} : vector<2x16xf32> to vector<2x1xf32>
    %482 = vector.extract_strided_slice %203 {offsets = [8, 0], sizes = [1, 48], strides = [1, 1]} : vector<16x48xf32> to vector<1x48xf32>
    %483 = vector.broadcast %481 : vector<2x1xf32> to vector<2x48xf32>
    %484 = vector.broadcast %482 : vector<1x48xf32> to vector<2x48xf32>
    %485 = arith.mulf %483, %484 : vector<2x48xf32>
    %486 = arith.addf %480, %485 : vector<2x48xf32>
    %487 = vector.extract_strided_slice %430 {offsets = [0, 9], sizes = [2, 1], strides = [1, 1]} : vector<2x16xf32> to vector<2x1xf32>
    %488 = vector.extract_strided_slice %203 {offsets = [9, 0], sizes = [1, 48], strides = [1, 1]} : vector<16x48xf32> to vector<1x48xf32>
    %489 = vector.broadcast %487 : vector<2x1xf32> to vector<2x48xf32>
    %490 = vector.broadcast %488 : vector<1x48xf32> to vector<2x48xf32>
    %491 = arith.mulf %489, %490 : vector<2x48xf32>
    %492 = arith.addf %486, %491 : vector<2x48xf32>
    %493 = vector.extract_strided_slice %430 {offsets = [0, 10], sizes = [2, 1], strides = [1, 1]} : vector<2x16xf32> to vector<2x1xf32>
    %494 = vector.extract_strided_slice %203 {offsets = [10, 0], sizes = [1, 48], strides = [1, 1]} : vector<16x48xf32> to vector<1x48xf32>
    %495 = vector.broadcast %493 : vector<2x1xf32> to vector<2x48xf32>
    %496 = vector.broadcast %494 : vector<1x48xf32> to vector<2x48xf32>
    %497 = arith.mulf %495, %496 : vector<2x48xf32>
    %498 = arith.addf %492, %497 : vector<2x48xf32>
    %499 = vector.extract_strided_slice %430 {offsets = [0, 11], sizes = [2, 1], strides = [1, 1]} : vector<2x16xf32> to vector<2x1xf32>
    %500 = vector.extract_strided_slice %203 {offsets = [11, 0], sizes = [1, 48], strides = [1, 1]} : vector<16x48xf32> to vector<1x48xf32>
    %501 = vector.broadcast %499 : vector<2x1xf32> to vector<2x48xf32>
    %502 = vector.broadcast %500 : vector<1x48xf32> to vector<2x48xf32>
    %503 = arith.mulf %501, %502 : vector<2x48xf32>
    %504 = arith.addf %498, %503 : vector<2x48xf32>
    %505 = vector.extract_strided_slice %430 {offsets = [0, 12], sizes = [2, 1], strides = [1, 1]} : vector<2x16xf32> to vector<2x1xf32>
    %506 = vector.extract_strided_slice %203 {offsets = [12, 0], sizes = [1, 48], strides = [1, 1]} : vector<16x48xf32> to vector<1x48xf32>
    %507 = vector.broadcast %505 : vector<2x1xf32> to vector<2x48xf32>
    %508 = vector.broadcast %506 : vector<1x48xf32> to vector<2x48xf32>
    %509 = arith.mulf %507, %508 : vector<2x48xf32>
    %510 = arith.addf %504, %509 : vector<2x48xf32>
    %511 = vector.extract_strided_slice %430 {offsets = [0, 13], sizes = [2, 1], strides = [1, 1]} : vector<2x16xf32> to vector<2x1xf32>
    %512 = vector.extract_strided_slice %203 {offsets = [13, 0], sizes = [1, 48], strides = [1, 1]} : vector<16x48xf32> to vector<1x48xf32>
    %513 = vector.broadcast %511 : vector<2x1xf32> to vector<2x48xf32>
    %514 = vector.broadcast %512 : vector<1x48xf32> to vector<2x48xf32>
    %515 = arith.mulf %513, %514 : vector<2x48xf32>
    %516 = arith.addf %510, %515 : vector<2x48xf32>
    %517 = vector.extract_strided_slice %430 {offsets = [0, 14], sizes = [2, 1], strides = [1, 1]} : vector<2x16xf32> to vector<2x1xf32>
    %518 = vector.extract_strided_slice %203 {offsets = [14, 0], sizes = [1, 48], strides = [1, 1]} : vector<16x48xf32> to vector<1x48xf32>
    %519 = vector.broadcast %517 : vector<2x1xf32> to vector<2x48xf32>
    %520 = vector.broadcast %518 : vector<1x48xf32> to vector<2x48xf32>
    %521 = arith.mulf %519, %520 : vector<2x48xf32>
    %522 = arith.addf %516, %521 : vector<2x48xf32>
    %523 = vector.extract_strided_slice %430 {offsets = [0, 15], sizes = [2, 1], strides = [1, 1]} : vector<2x16xf32> to vector<2x1xf32>
    %524 = vector.extract_strided_slice %203 {offsets = [15, 0], sizes = [1, 48], strides = [1, 1]} : vector<16x48xf32> to vector<1x48xf32>
    %525 = vector.broadcast %523 : vector<2x1xf32> to vector<2x48xf32>
    %526 = vector.broadcast %524 : vector<1x48xf32> to vector<2x48xf32>
    %527 = arith.mulf %525, %526 : vector<2x48xf32>
    %528 = arith.addf %522, %527 : vector<2x48xf32>
    %529 = vector.extract_strided_slice %528 {offsets = [0, 0], sizes = [2, 24], strides = [1, 1]} : vector<2x48xf32> to vector<2x24xf32>
    %530 = vector.extract_strided_slice %429 {offsets = [0, 0], sizes = [2, 8], strides = [1, 1]} : vector<2x24xf32> to vector<2x8xf32>
    %531 = vector.extract_strided_slice %529 {offsets = [0, 0], sizes = [2, 8], strides = [1, 1]} : vector<2x24xf32> to vector<2x8xf32>
    %532 = arith.addf %530, %531 : vector<2x8xf32>
    %533 = arith.negf %532 : vector<2x8xf32>
    %534 = math.exp %533 : vector<2x8xf32>
    %cst_207 = arith.constant 1.000000e+00 : f32
    %535 = vector.broadcast %cst_207 : f32 to vector<2x8xf32>
    %536 = arith.addf %535, %534 : vector<2x8xf32>
    %537 = arith.divf %535, %536 : vector<2x8xf32>
    %538 = vector.extract_strided_slice %429 {offsets = [0, 8], sizes = [2, 8], strides = [1, 1]} : vector<2x24xf32> to vector<2x8xf32>
    %539 = vector.extract_strided_slice %529 {offsets = [0, 8], sizes = [2, 8], strides = [1, 1]} : vector<2x24xf32> to vector<2x8xf32>
    %540 = arith.addf %538, %539 : vector<2x8xf32>
    %541 = arith.negf %540 : vector<2x8xf32>
    %542 = math.exp %541 : vector<2x8xf32>
    %cst_208 = arith.constant 1.000000e+00 : f32
    %543 = vector.broadcast %cst_208 : f32 to vector<2x8xf32>
    %544 = arith.addf %543, %542 : vector<2x8xf32>
    %545 = arith.divf %543, %544 : vector<2x8xf32>
    %546 = vector.extract_strided_slice %429 {offsets = [0, 16], sizes = [2, 8], strides = [1, 1]} : vector<2x24xf32> to vector<2x8xf32>
    %547 = vector.extract_strided_slice %529 {offsets = [0, 16], sizes = [2, 8], strides = [1, 1]} : vector<2x24xf32> to vector<2x8xf32>
    %548 = arith.mulf %537, %547 : vector<2x8xf32>
    %549 = arith.addf %546, %548 : vector<2x8xf32>
    %550 = math.tanh %549 : vector<2x8xf32>
    %cst_209 = arith.constant 1.000000e+00 : f32
    %551 = vector.broadcast %cst_209 : f32 to vector<2x8xf32>
    %552 = arith.subf %551, %545 : vector<2x8xf32>
    %553 = arith.mulf %552, %550 : vector<2x8xf32>
    %554 = arith.mulf %545, %341 : vector<2x8xf32>
    %555 = arith.addf %553, %554 : vector<2x8xf32>
    %556 = vector.shape_cast %206 : vector<1x24xf32> to vector<1x24xf32>
    %557 = vector.broadcast %556 : vector<1x24xf32> to vector<2x24xf32>
    %558 = vector.extract_strided_slice %555 {offsets = [0, 0], sizes = [2, 1], strides = [1, 1]} : vector<2x8xf32> to vector<2x1xf32>
    %559 = vector.extract_strided_slice %205 {offsets = [0, 0], sizes = [1, 24], strides = [1, 1]} : vector<8x24xf32> to vector<1x24xf32>
    %560 = vector.broadcast %558 : vector<2x1xf32> to vector<2x24xf32>
    %561 = vector.broadcast %559 : vector<1x24xf32> to vector<2x24xf32>
    %562 = arith.mulf %560, %561 : vector<2x24xf32>
    %563 = arith.addf %557, %562 : vector<2x24xf32>
    %564 = vector.extract_strided_slice %555 {offsets = [0, 1], sizes = [2, 1], strides = [1, 1]} : vector<2x8xf32> to vector<2x1xf32>
    %565 = vector.extract_strided_slice %205 {offsets = [1, 0], sizes = [1, 24], strides = [1, 1]} : vector<8x24xf32> to vector<1x24xf32>
    %566 = vector.broadcast %564 : vector<2x1xf32> to vector<2x24xf32>
    %567 = vector.broadcast %565 : vector<1x24xf32> to vector<2x24xf32>
    %568 = arith.mulf %566, %567 : vector<2x24xf32>
    %569 = arith.addf %563, %568 : vector<2x24xf32>
    %570 = vector.extract_strided_slice %555 {offsets = [0, 2], sizes = [2, 1], strides = [1, 1]} : vector<2x8xf32> to vector<2x1xf32>
    %571 = vector.extract_strided_slice %205 {offsets = [2, 0], sizes = [1, 24], strides = [1, 1]} : vector<8x24xf32> to vector<1x24xf32>
    %572 = vector.broadcast %570 : vector<2x1xf32> to vector<2x24xf32>
    %573 = vector.broadcast %571 : vector<1x24xf32> to vector<2x24xf32>
    %574 = arith.mulf %572, %573 : vector<2x24xf32>
    %575 = arith.addf %569, %574 : vector<2x24xf32>
    %576 = vector.extract_strided_slice %555 {offsets = [0, 3], sizes = [2, 1], strides = [1, 1]} : vector<2x8xf32> to vector<2x1xf32>
    %577 = vector.extract_strided_slice %205 {offsets = [3, 0], sizes = [1, 24], strides = [1, 1]} : vector<8x24xf32> to vector<1x24xf32>
    %578 = vector.broadcast %576 : vector<2x1xf32> to vector<2x24xf32>
    %579 = vector.broadcast %577 : vector<1x24xf32> to vector<2x24xf32>
    %580 = arith.mulf %578, %579 : vector<2x24xf32>
    %581 = arith.addf %575, %580 : vector<2x24xf32>
    %582 = vector.extract_strided_slice %555 {offsets = [0, 4], sizes = [2, 1], strides = [1, 1]} : vector<2x8xf32> to vector<2x1xf32>
    %583 = vector.extract_strided_slice %205 {offsets = [4, 0], sizes = [1, 24], strides = [1, 1]} : vector<8x24xf32> to vector<1x24xf32>
    %584 = vector.broadcast %582 : vector<2x1xf32> to vector<2x24xf32>
    %585 = vector.broadcast %583 : vector<1x24xf32> to vector<2x24xf32>
    %586 = arith.mulf %584, %585 : vector<2x24xf32>
    %587 = arith.addf %581, %586 : vector<2x24xf32>
    %588 = vector.extract_strided_slice %555 {offsets = [0, 5], sizes = [2, 1], strides = [1, 1]} : vector<2x8xf32> to vector<2x1xf32>
    %589 = vector.extract_strided_slice %205 {offsets = [5, 0], sizes = [1, 24], strides = [1, 1]} : vector<8x24xf32> to vector<1x24xf32>
    %590 = vector.broadcast %588 : vector<2x1xf32> to vector<2x24xf32>
    %591 = vector.broadcast %589 : vector<1x24xf32> to vector<2x24xf32>
    %592 = arith.mulf %590, %591 : vector<2x24xf32>
    %593 = arith.addf %587, %592 : vector<2x24xf32>
    %594 = vector.extract_strided_slice %555 {offsets = [0, 6], sizes = [2, 1], strides = [1, 1]} : vector<2x8xf32> to vector<2x1xf32>
    %595 = vector.extract_strided_slice %205 {offsets = [6, 0], sizes = [1, 24], strides = [1, 1]} : vector<8x24xf32> to vector<1x24xf32>
    %596 = vector.broadcast %594 : vector<2x1xf32> to vector<2x24xf32>
    %597 = vector.broadcast %595 : vector<1x24xf32> to vector<2x24xf32>
    %598 = arith.mulf %596, %597 : vector<2x24xf32>
    %599 = arith.addf %593, %598 : vector<2x24xf32>
    %600 = vector.extract_strided_slice %555 {offsets = [0, 7], sizes = [2, 1], strides = [1, 1]} : vector<2x8xf32> to vector<2x1xf32>
    %601 = vector.extract_strided_slice %205 {offsets = [7, 0], sizes = [1, 24], strides = [1, 1]} : vector<8x24xf32> to vector<1x24xf32>
    %602 = vector.broadcast %600 : vector<2x1xf32> to vector<2x24xf32>
    %603 = vector.broadcast %601 : vector<1x24xf32> to vector<2x24xf32>
    %604 = arith.mulf %602, %603 : vector<2x24xf32>
    %605 = arith.addf %599, %604 : vector<2x24xf32>
    %606 = vector.extract_strided_slice %528 {offsets = [0, 24], sizes = [2, 24], strides = [1, 1]} : vector<2x48xf32> to vector<2x24xf32>
    %607 = vector.extract_strided_slice %605 {offsets = [0, 0], sizes = [2, 8], strides = [1, 1]} : vector<2x24xf32> to vector<2x8xf32>
    %608 = vector.extract_strided_slice %606 {offsets = [0, 0], sizes = [2, 8], strides = [1, 1]} : vector<2x24xf32> to vector<2x8xf32>
    %609 = arith.addf %607, %608 : vector<2x8xf32>
    %610 = arith.negf %609 : vector<2x8xf32>
    %611 = math.exp %610 : vector<2x8xf32>
    %cst_210 = arith.constant 1.000000e+00 : f32
    %612 = vector.broadcast %cst_210 : f32 to vector<2x8xf32>
    %613 = arith.addf %612, %611 : vector<2x8xf32>
    %614 = arith.divf %612, %613 : vector<2x8xf32>
    %615 = vector.extract_strided_slice %605 {offsets = [0, 8], sizes = [2, 8], strides = [1, 1]} : vector<2x24xf32> to vector<2x8xf32>
    %616 = vector.extract_strided_slice %606 {offsets = [0, 8], sizes = [2, 8], strides = [1, 1]} : vector<2x24xf32> to vector<2x8xf32>
    %617 = arith.addf %615, %616 : vector<2x8xf32>
    %618 = arith.negf %617 : vector<2x8xf32>
    %619 = math.exp %618 : vector<2x8xf32>
    %cst_211 = arith.constant 1.000000e+00 : f32
    %620 = vector.broadcast %cst_211 : f32 to vector<2x8xf32>
    %621 = arith.addf %620, %619 : vector<2x8xf32>
    %622 = arith.divf %620, %621 : vector<2x8xf32>
    %623 = vector.extract_strided_slice %605 {offsets = [0, 16], sizes = [2, 8], strides = [1, 1]} : vector<2x24xf32> to vector<2x8xf32>
    %624 = vector.extract_strided_slice %606 {offsets = [0, 16], sizes = [2, 8], strides = [1, 1]} : vector<2x24xf32> to vector<2x8xf32>
    %625 = arith.mulf %614, %624 : vector<2x8xf32>
    %626 = arith.addf %623, %625 : vector<2x8xf32>
    %627 = math.tanh %626 : vector<2x8xf32>
    %cst_212 = arith.constant 1.000000e+00 : f32
    %628 = vector.broadcast %cst_212 : f32 to vector<2x8xf32>
    %629 = arith.subf %628, %622 : vector<2x8xf32>
    %630 = arith.mulf %629, %627 : vector<2x8xf32>
    %631 = arith.mulf %622, %418 : vector<2x8xf32>
    %632 = arith.addf %630, %631 : vector<2x8xf32>
    %cst_213 = arith.constant 1.000000e+00 : f32
    %633 = vector.broadcast %cst_213 : f32 to vector<2x1xf32>
    %634 = arith.subf %211, %633 : vector<2x1xf32>
    %635 = math.absf %634 : vector<2x1xf32>
    %cst_214 = arith.constant 5.000000e-01 : f32
    %636 = vector.broadcast %cst_214 : f32 to vector<2x1xf32>
    %637 = arith.cmpf olt, %635, %636 : vector<2x1xf32>
    %638 = arith.extui %637 : vector<2x1xi1> to vector<2x1xi32>
    %639 = arith.sitofp %638 : vector<2x1xi32> to vector<2x1xf32>
    %640 = vector.broadcast %639 : vector<2x1xf32> to vector<2x8xf32>
    %641 = arith.mulf %640, %632 : vector<2x8xf32>
    %642 = arith.addf %428, %641 : vector<2x8xf32>
    %643 = vector.extract_strided_slice %29 {offsets = [4, 0], sizes = [2, 24], strides = [1, 1]} : vector<16x24xf32> to vector<2x24xf32>
    %644 = tpu.concatenate %555, %632 in 1 : vector<2x8xf32>, vector<2x8xf32> -> vector<2x16xf32>
    %645 = vector.shape_cast %204 : vector<1x48xf32> to vector<1x48xf32>
    %646 = vector.broadcast %645 : vector<1x48xf32> to vector<2x48xf32>
    %647 = vector.extract_strided_slice %644 {offsets = [0, 0], sizes = [2, 1], strides = [1, 1]} : vector<2x16xf32> to vector<2x1xf32>
    %648 = vector.extract_strided_slice %203 {offsets = [0, 0], sizes = [1, 48], strides = [1, 1]} : vector<16x48xf32> to vector<1x48xf32>
    %649 = vector.broadcast %647 : vector<2x1xf32> to vector<2x48xf32>
    %650 = vector.broadcast %648 : vector<1x48xf32> to vector<2x48xf32>
    %651 = arith.mulf %649, %650 : vector<2x48xf32>
    %652 = arith.addf %646, %651 : vector<2x48xf32>
    %653 = vector.extract_strided_slice %644 {offsets = [0, 1], sizes = [2, 1], strides = [1, 1]} : vector<2x16xf32> to vector<2x1xf32>
    %654 = vector.extract_strided_slice %203 {offsets = [1, 0], sizes = [1, 48], strides = [1, 1]} : vector<16x48xf32> to vector<1x48xf32>
    %655 = vector.broadcast %653 : vector<2x1xf32> to vector<2x48xf32>
    %656 = vector.broadcast %654 : vector<1x48xf32> to vector<2x48xf32>
    %657 = arith.mulf %655, %656 : vector<2x48xf32>
    %658 = arith.addf %652, %657 : vector<2x48xf32>
    %659 = vector.extract_strided_slice %644 {offsets = [0, 2], sizes = [2, 1], strides = [1, 1]} : vector<2x16xf32> to vector<2x1xf32>
    %660 = vector.extract_strided_slice %203 {offsets = [2, 0], sizes = [1, 48], strides = [1, 1]} : vector<16x48xf32> to vector<1x48xf32>
    %661 = vector.broadcast %659 : vector<2x1xf32> to vector<2x48xf32>
    %662 = vector.broadcast %660 : vector<1x48xf32> to vector<2x48xf32>
    %663 = arith.mulf %661, %662 : vector<2x48xf32>
    %664 = arith.addf %658, %663 : vector<2x48xf32>
    %665 = vector.extract_strided_slice %644 {offsets = [0, 3], sizes = [2, 1], strides = [1, 1]} : vector<2x16xf32> to vector<2x1xf32>
    %666 = vector.extract_strided_slice %203 {offsets = [3, 0], sizes = [1, 48], strides = [1, 1]} : vector<16x48xf32> to vector<1x48xf32>
    %667 = vector.broadcast %665 : vector<2x1xf32> to vector<2x48xf32>
    %668 = vector.broadcast %666 : vector<1x48xf32> to vector<2x48xf32>
    %669 = arith.mulf %667, %668 : vector<2x48xf32>
    %670 = arith.addf %664, %669 : vector<2x48xf32>
    %671 = vector.extract_strided_slice %644 {offsets = [0, 4], sizes = [2, 1], strides = [1, 1]} : vector<2x16xf32> to vector<2x1xf32>
    %672 = vector.extract_strided_slice %203 {offsets = [4, 0], sizes = [1, 48], strides = [1, 1]} : vector<16x48xf32> to vector<1x48xf32>
    %673 = vector.broadcast %671 : vector<2x1xf32> to vector<2x48xf32>
    %674 = vector.broadcast %672 : vector<1x48xf32> to vector<2x48xf32>
    %675 = arith.mulf %673, %674 : vector<2x48xf32>
    %676 = arith.addf %670, %675 : vector<2x48xf32>
    %677 = vector.extract_strided_slice %644 {offsets = [0, 5], sizes = [2, 1], strides = [1, 1]} : vector<2x16xf32> to vector<2x1xf32>
    %678 = vector.extract_strided_slice %203 {offsets = [5, 0], sizes = [1, 48], strides = [1, 1]} : vector<16x48xf32> to vector<1x48xf32>
    %679 = vector.broadcast %677 : vector<2x1xf32> to vector<2x48xf32>
    %680 = vector.broadcast %678 : vector<1x48xf32> to vector<2x48xf32>
    %681 = arith.mulf %679, %680 : vector<2x48xf32>
    %682 = arith.addf %676, %681 : vector<2x48xf32>
    %683 = vector.extract_strided_slice %644 {offsets = [0, 6], sizes = [2, 1], strides = [1, 1]} : vector<2x16xf32> to vector<2x1xf32>
    %684 = vector.extract_strided_slice %203 {offsets = [6, 0], sizes = [1, 48], strides = [1, 1]} : vector<16x48xf32> to vector<1x48xf32>
    %685 = vector.broadcast %683 : vector<2x1xf32> to vector<2x48xf32>
    %686 = vector.broadcast %684 : vector<1x48xf32> to vector<2x48xf32>
    %687 = arith.mulf %685, %686 : vector<2x48xf32>
    %688 = arith.addf %682, %687 : vector<2x48xf32>
    %689 = vector.extract_strided_slice %644 {offsets = [0, 7], sizes = [2, 1], strides = [1, 1]} : vector<2x16xf32> to vector<2x1xf32>
    %690 = vector.extract_strided_slice %203 {offsets = [7, 0], sizes = [1, 48], strides = [1, 1]} : vector<16x48xf32> to vector<1x48xf32>
    %691 = vector.broadcast %689 : vector<2x1xf32> to vector<2x48xf32>
    %692 = vector.broadcast %690 : vector<1x48xf32> to vector<2x48xf32>
    %693 = arith.mulf %691, %692 : vector<2x48xf32>
    %694 = arith.addf %688, %693 : vector<2x48xf32>
    %695 = vector.extract_strided_slice %644 {offsets = [0, 8], sizes = [2, 1], strides = [1, 1]} : vector<2x16xf32> to vector<2x1xf32>
    %696 = vector.extract_strided_slice %203 {offsets = [8, 0], sizes = [1, 48], strides = [1, 1]} : vector<16x48xf32> to vector<1x48xf32>
    %697 = vector.broadcast %695 : vector<2x1xf32> to vector<2x48xf32>
    %698 = vector.broadcast %696 : vector<1x48xf32> to vector<2x48xf32>
    %699 = arith.mulf %697, %698 : vector<2x48xf32>
    %700 = arith.addf %694, %699 : vector<2x48xf32>
    %701 = vector.extract_strided_slice %644 {offsets = [0, 9], sizes = [2, 1], strides = [1, 1]} : vector<2x16xf32> to vector<2x1xf32>
    %702 = vector.extract_strided_slice %203 {offsets = [9, 0], sizes = [1, 48], strides = [1, 1]} : vector<16x48xf32> to vector<1x48xf32>
    %703 = vector.broadcast %701 : vector<2x1xf32> to vector<2x48xf32>
    %704 = vector.broadcast %702 : vector<1x48xf32> to vector<2x48xf32>
    %705 = arith.mulf %703, %704 : vector<2x48xf32>
    %706 = arith.addf %700, %705 : vector<2x48xf32>
    %707 = vector.extract_strided_slice %644 {offsets = [0, 10], sizes = [2, 1], strides = [1, 1]} : vector<2x16xf32> to vector<2x1xf32>
    %708 = vector.extract_strided_slice %203 {offsets = [10, 0], sizes = [1, 48], strides = [1, 1]} : vector<16x48xf32> to vector<1x48xf32>
    %709 = vector.broadcast %707 : vector<2x1xf32> to vector<2x48xf32>
    %710 = vector.broadcast %708 : vector<1x48xf32> to vector<2x48xf32>
    %711 = arith.mulf %709, %710 : vector<2x48xf32>
    %712 = arith.addf %706, %711 : vector<2x48xf32>
    %713 = vector.extract_strided_slice %644 {offsets = [0, 11], sizes = [2, 1], strides = [1, 1]} : vector<2x16xf32> to vector<2x1xf32>
    %714 = vector.extract_strided_slice %203 {offsets = [11, 0], sizes = [1, 48], strides = [1, 1]} : vector<16x48xf32> to vector<1x48xf32>
    %715 = vector.broadcast %713 : vector<2x1xf32> to vector<2x48xf32>
    %716 = vector.broadcast %714 : vector<1x48xf32> to vector<2x48xf32>
    %717 = arith.mulf %715, %716 : vector<2x48xf32>
    %718 = arith.addf %712, %717 : vector<2x48xf32>
    %719 = vector.extract_strided_slice %644 {offsets = [0, 12], sizes = [2, 1], strides = [1, 1]} : vector<2x16xf32> to vector<2x1xf32>
    %720 = vector.extract_strided_slice %203 {offsets = [12, 0], sizes = [1, 48], strides = [1, 1]} : vector<16x48xf32> to vector<1x48xf32>
    %721 = vector.broadcast %719 : vector<2x1xf32> to vector<2x48xf32>
    %722 = vector.broadcast %720 : vector<1x48xf32> to vector<2x48xf32>
    %723 = arith.mulf %721, %722 : vector<2x48xf32>
    %724 = arith.addf %718, %723 : vector<2x48xf32>
    %725 = vector.extract_strided_slice %644 {offsets = [0, 13], sizes = [2, 1], strides = [1, 1]} : vector<2x16xf32> to vector<2x1xf32>
    %726 = vector.extract_strided_slice %203 {offsets = [13, 0], sizes = [1, 48], strides = [1, 1]} : vector<16x48xf32> to vector<1x48xf32>
    %727 = vector.broadcast %725 : vector<2x1xf32> to vector<2x48xf32>
    %728 = vector.broadcast %726 : vector<1x48xf32> to vector<2x48xf32>
    %729 = arith.mulf %727, %728 : vector<2x48xf32>
    %730 = arith.addf %724, %729 : vector<2x48xf32>
    %731 = vector.extract_strided_slice %644 {offsets = [0, 14], sizes = [2, 1], strides = [1, 1]} : vector<2x16xf32> to vector<2x1xf32>
    %732 = vector.extract_strided_slice %203 {offsets = [14, 0], sizes = [1, 48], strides = [1, 1]} : vector<16x48xf32> to vector<1x48xf32>
    %733 = vector.broadcast %731 : vector<2x1xf32> to vector<2x48xf32>
    %734 = vector.broadcast %732 : vector<1x48xf32> to vector<2x48xf32>
    %735 = arith.mulf %733, %734 : vector<2x48xf32>
    %736 = arith.addf %730, %735 : vector<2x48xf32>
    %737 = vector.extract_strided_slice %644 {offsets = [0, 15], sizes = [2, 1], strides = [1, 1]} : vector<2x16xf32> to vector<2x1xf32>
    %738 = vector.extract_strided_slice %203 {offsets = [15, 0], sizes = [1, 48], strides = [1, 1]} : vector<16x48xf32> to vector<1x48xf32>
    %739 = vector.broadcast %737 : vector<2x1xf32> to vector<2x48xf32>
    %740 = vector.broadcast %738 : vector<1x48xf32> to vector<2x48xf32>
    %741 = arith.mulf %739, %740 : vector<2x48xf32>
    %742 = arith.addf %736, %741 : vector<2x48xf32>
    %743 = vector.extract_strided_slice %742 {offsets = [0, 0], sizes = [2, 24], strides = [1, 1]} : vector<2x48xf32> to vector<2x24xf32>
    %744 = vector.extract_strided_slice %643 {offsets = [0, 0], sizes = [2, 8], strides = [1, 1]} : vector<2x24xf32> to vector<2x8xf32>
    %745 = vector.extract_strided_slice %743 {offsets = [0, 0], sizes = [2, 8], strides = [1, 1]} : vector<2x24xf32> to vector<2x8xf32>
    %746 = arith.addf %744, %745 : vector<2x8xf32>
    %747 = arith.negf %746 : vector<2x8xf32>
    %748 = math.exp %747 : vector<2x8xf32>
    %cst_215 = arith.constant 1.000000e+00 : f32
    %749 = vector.broadcast %cst_215 : f32 to vector<2x8xf32>
    %750 = arith.addf %749, %748 : vector<2x8xf32>
    %751 = arith.divf %749, %750 : vector<2x8xf32>
    %752 = vector.extract_strided_slice %643 {offsets = [0, 8], sizes = [2, 8], strides = [1, 1]} : vector<2x24xf32> to vector<2x8xf32>
    %753 = vector.extract_strided_slice %743 {offsets = [0, 8], sizes = [2, 8], strides = [1, 1]} : vector<2x24xf32> to vector<2x8xf32>
    %754 = arith.addf %752, %753 : vector<2x8xf32>
    %755 = arith.negf %754 : vector<2x8xf32>
    %756 = math.exp %755 : vector<2x8xf32>
    %cst_216 = arith.constant 1.000000e+00 : f32
    %757 = vector.broadcast %cst_216 : f32 to vector<2x8xf32>
    %758 = arith.addf %757, %756 : vector<2x8xf32>
    %759 = arith.divf %757, %758 : vector<2x8xf32>
    %760 = vector.extract_strided_slice %643 {offsets = [0, 16], sizes = [2, 8], strides = [1, 1]} : vector<2x24xf32> to vector<2x8xf32>
    %761 = vector.extract_strided_slice %743 {offsets = [0, 16], sizes = [2, 8], strides = [1, 1]} : vector<2x24xf32> to vector<2x8xf32>
    %762 = arith.mulf %751, %761 : vector<2x8xf32>
    %763 = arith.addf %760, %762 : vector<2x8xf32>
    %764 = math.tanh %763 : vector<2x8xf32>
    %cst_217 = arith.constant 1.000000e+00 : f32
    %765 = vector.broadcast %cst_217 : f32 to vector<2x8xf32>
    %766 = arith.subf %765, %759 : vector<2x8xf32>
    %767 = arith.mulf %766, %764 : vector<2x8xf32>
    %768 = arith.mulf %759, %555 : vector<2x8xf32>
    %769 = arith.addf %767, %768 : vector<2x8xf32>
    %770 = vector.shape_cast %206 : vector<1x24xf32> to vector<1x24xf32>
    %771 = vector.broadcast %770 : vector<1x24xf32> to vector<2x24xf32>
    %772 = vector.extract_strided_slice %769 {offsets = [0, 0], sizes = [2, 1], strides = [1, 1]} : vector<2x8xf32> to vector<2x1xf32>
    %773 = vector.extract_strided_slice %205 {offsets = [0, 0], sizes = [1, 24], strides = [1, 1]} : vector<8x24xf32> to vector<1x24xf32>
    %774 = vector.broadcast %772 : vector<2x1xf32> to vector<2x24xf32>
    %775 = vector.broadcast %773 : vector<1x24xf32> to vector<2x24xf32>
    %776 = arith.mulf %774, %775 : vector<2x24xf32>
    %777 = arith.addf %771, %776 : vector<2x24xf32>
    %778 = vector.extract_strided_slice %769 {offsets = [0, 1], sizes = [2, 1], strides = [1, 1]} : vector<2x8xf32> to vector<2x1xf32>
    %779 = vector.extract_strided_slice %205 {offsets = [1, 0], sizes = [1, 24], strides = [1, 1]} : vector<8x24xf32> to vector<1x24xf32>
    %780 = vector.broadcast %778 : vector<2x1xf32> to vector<2x24xf32>
    %781 = vector.broadcast %779 : vector<1x24xf32> to vector<2x24xf32>
    %782 = arith.mulf %780, %781 : vector<2x24xf32>
    %783 = arith.addf %777, %782 : vector<2x24xf32>
    %784 = vector.extract_strided_slice %769 {offsets = [0, 2], sizes = [2, 1], strides = [1, 1]} : vector<2x8xf32> to vector<2x1xf32>
    %785 = vector.extract_strided_slice %205 {offsets = [2, 0], sizes = [1, 24], strides = [1, 1]} : vector<8x24xf32> to vector<1x24xf32>
    %786 = vector.broadcast %784 : vector<2x1xf32> to vector<2x24xf32>
    %787 = vector.broadcast %785 : vector<1x24xf32> to vector<2x24xf32>
    %788 = arith.mulf %786, %787 : vector<2x24xf32>
    %789 = arith.addf %783, %788 : vector<2x24xf32>
    %790 = vector.extract_strided_slice %769 {offsets = [0, 3], sizes = [2, 1], strides = [1, 1]} : vector<2x8xf32> to vector<2x1xf32>
    %791 = vector.extract_strided_slice %205 {offsets = [3, 0], sizes = [1, 24], strides = [1, 1]} : vector<8x24xf32> to vector<1x24xf32>
    %792 = vector.broadcast %790 : vector<2x1xf32> to vector<2x24xf32>
    %793 = vector.broadcast %791 : vector<1x24xf32> to vector<2x24xf32>
    %794 = arith.mulf %792, %793 : vector<2x24xf32>
    %795 = arith.addf %789, %794 : vector<2x24xf32>
    %796 = vector.extract_strided_slice %769 {offsets = [0, 4], sizes = [2, 1], strides = [1, 1]} : vector<2x8xf32> to vector<2x1xf32>
    %797 = vector.extract_strided_slice %205 {offsets = [4, 0], sizes = [1, 24], strides = [1, 1]} : vector<8x24xf32> to vector<1x24xf32>
    %798 = vector.broadcast %796 : vector<2x1xf32> to vector<2x24xf32>
    %799 = vector.broadcast %797 : vector<1x24xf32> to vector<2x24xf32>
    %800 = arith.mulf %798, %799 : vector<2x24xf32>
    %801 = arith.addf %795, %800 : vector<2x24xf32>
    %802 = vector.extract_strided_slice %769 {offsets = [0, 5], sizes = [2, 1], strides = [1, 1]} : vector<2x8xf32> to vector<2x1xf32>
    %803 = vector.extract_strided_slice %205 {offsets = [5, 0], sizes = [1, 24], strides = [1, 1]} : vector<8x24xf32> to vector<1x24xf32>
    %804 = vector.broadcast %802 : vector<2x1xf32> to vector<2x24xf32>
    %805 = vector.broadcast %803 : vector<1x24xf32> to vector<2x24xf32>
    %806 = arith.mulf %804, %805 : vector<2x24xf32>
    %807 = arith.addf %801, %806 : vector<2x24xf32>
    %808 = vector.extract_strided_slice %769 {offsets = [0, 6], sizes = [2, 1], strides = [1, 1]} : vector<2x8xf32> to vector<2x1xf32>
    %809 = vector.extract_strided_slice %205 {offsets = [6, 0], sizes = [1, 24], strides = [1, 1]} : vector<8x24xf32> to vector<1x24xf32>
    %810 = vector.broadcast %808 : vector<2x1xf32> to vector<2x24xf32>
    %811 = vector.broadcast %809 : vector<1x24xf32> to vector<2x24xf32>
    %812 = arith.mulf %810, %811 : vector<2x24xf32>
    %813 = arith.addf %807, %812 : vector<2x24xf32>
    %814 = vector.extract_strided_slice %769 {offsets = [0, 7], sizes = [2, 1], strides = [1, 1]} : vector<2x8xf32> to vector<2x1xf32>
    %815 = vector.extract_strided_slice %205 {offsets = [7, 0], sizes = [1, 24], strides = [1, 1]} : vector<8x24xf32> to vector<1x24xf32>
    %816 = vector.broadcast %814 : vector<2x1xf32> to vector<2x24xf32>
    %817 = vector.broadcast %815 : vector<1x24xf32> to vector<2x24xf32>
    %818 = arith.mulf %816, %817 : vector<2x24xf32>
    %819 = arith.addf %813, %818 : vector<2x24xf32>
    %820 = vector.extract_strided_slice %742 {offsets = [0, 24], sizes = [2, 24], strides = [1, 1]} : vector<2x48xf32> to vector<2x24xf32>
    %821 = vector.extract_strided_slice %819 {offsets = [0, 0], sizes = [2, 8], strides = [1, 1]} : vector<2x24xf32> to vector<2x8xf32>
    %822 = vector.extract_strided_slice %820 {offsets = [0, 0], sizes = [2, 8], strides = [1, 1]} : vector<2x24xf32> to vector<2x8xf32>
    %823 = arith.addf %821, %822 : vector<2x8xf32>
    %824 = arith.negf %823 : vector<2x8xf32>
    %825 = math.exp %824 : vector<2x8xf32>
    %cst_218 = arith.constant 1.000000e+00 : f32
    %826 = vector.broadcast %cst_218 : f32 to vector<2x8xf32>
    %827 = arith.addf %826, %825 : vector<2x8xf32>
    %828 = arith.divf %826, %827 : vector<2x8xf32>
    %829 = vector.extract_strided_slice %819 {offsets = [0, 8], sizes = [2, 8], strides = [1, 1]} : vector<2x24xf32> to vector<2x8xf32>
    %830 = vector.extract_strided_slice %820 {offsets = [0, 8], sizes = [2, 8], strides = [1, 1]} : vector<2x24xf32> to vector<2x8xf32>
    %831 = arith.addf %829, %830 : vector<2x8xf32>
    %832 = arith.negf %831 : vector<2x8xf32>
    %833 = math.exp %832 : vector<2x8xf32>
    %cst_219 = arith.constant 1.000000e+00 : f32
    %834 = vector.broadcast %cst_219 : f32 to vector<2x8xf32>
    %835 = arith.addf %834, %833 : vector<2x8xf32>
    %836 = arith.divf %834, %835 : vector<2x8xf32>
    %837 = vector.extract_strided_slice %819 {offsets = [0, 16], sizes = [2, 8], strides = [1, 1]} : vector<2x24xf32> to vector<2x8xf32>
    %838 = vector.extract_strided_slice %820 {offsets = [0, 16], sizes = [2, 8], strides = [1, 1]} : vector<2x24xf32> to vector<2x8xf32>
    %839 = arith.mulf %828, %838 : vector<2x8xf32>
    %840 = arith.addf %837, %839 : vector<2x8xf32>
    %841 = math.tanh %840 : vector<2x8xf32>
    %cst_220 = arith.constant 1.000000e+00 : f32
    %842 = vector.broadcast %cst_220 : f32 to vector<2x8xf32>
    %843 = arith.subf %842, %836 : vector<2x8xf32>
    %844 = arith.mulf %843, %841 : vector<2x8xf32>
    %845 = arith.mulf %836, %632 : vector<2x8xf32>
    %846 = arith.addf %844, %845 : vector<2x8xf32>
    %cst_221 = arith.constant 2.000000e+00 : f32
    %847 = vector.broadcast %cst_221 : f32 to vector<2x1xf32>
    %848 = arith.subf %211, %847 : vector<2x1xf32>
    %849 = math.absf %848 : vector<2x1xf32>
    %cst_222 = arith.constant 5.000000e-01 : f32
    %850 = vector.broadcast %cst_222 : f32 to vector<2x1xf32>
    %851 = arith.cmpf olt, %849, %850 : vector<2x1xf32>
    %852 = arith.extui %851 : vector<2x1xi1> to vector<2x1xi32>
    %853 = arith.sitofp %852 : vector<2x1xi32> to vector<2x1xf32>
    %854 = vector.broadcast %853 : vector<2x1xf32> to vector<2x8xf32>
    %855 = arith.mulf %854, %846 : vector<2x8xf32>
    %856 = arith.addf %642, %855 : vector<2x8xf32>
    %857 = vector.extract_strided_slice %29 {offsets = [6, 0], sizes = [2, 24], strides = [1, 1]} : vector<16x24xf32> to vector<2x24xf32>
    %858 = tpu.concatenate %769, %846 in 1 : vector<2x8xf32>, vector<2x8xf32> -> vector<2x16xf32>
    %859 = vector.shape_cast %204 : vector<1x48xf32> to vector<1x48xf32>
    %860 = vector.broadcast %859 : vector<1x48xf32> to vector<2x48xf32>
    %861 = vector.extract_strided_slice %858 {offsets = [0, 0], sizes = [2, 1], strides = [1, 1]} : vector<2x16xf32> to vector<2x1xf32>
    %862 = vector.extract_strided_slice %203 {offsets = [0, 0], sizes = [1, 48], strides = [1, 1]} : vector<16x48xf32> to vector<1x48xf32>
    %863 = vector.broadcast %861 : vector<2x1xf32> to vector<2x48xf32>
    %864 = vector.broadcast %862 : vector<1x48xf32> to vector<2x48xf32>
    %865 = arith.mulf %863, %864 : vector<2x48xf32>
    %866 = arith.addf %860, %865 : vector<2x48xf32>
    %867 = vector.extract_strided_slice %858 {offsets = [0, 1], sizes = [2, 1], strides = [1, 1]} : vector<2x16xf32> to vector<2x1xf32>
    %868 = vector.extract_strided_slice %203 {offsets = [1, 0], sizes = [1, 48], strides = [1, 1]} : vector<16x48xf32> to vector<1x48xf32>
    %869 = vector.broadcast %867 : vector<2x1xf32> to vector<2x48xf32>
    %870 = vector.broadcast %868 : vector<1x48xf32> to vector<2x48xf32>
    %871 = arith.mulf %869, %870 : vector<2x48xf32>
    %872 = arith.addf %866, %871 : vector<2x48xf32>
    %873 = vector.extract_strided_slice %858 {offsets = [0, 2], sizes = [2, 1], strides = [1, 1]} : vector<2x16xf32> to vector<2x1xf32>
    %874 = vector.extract_strided_slice %203 {offsets = [2, 0], sizes = [1, 48], strides = [1, 1]} : vector<16x48xf32> to vector<1x48xf32>
    %875 = vector.broadcast %873 : vector<2x1xf32> to vector<2x48xf32>
    %876 = vector.broadcast %874 : vector<1x48xf32> to vector<2x48xf32>
    %877 = arith.mulf %875, %876 : vector<2x48xf32>
    %878 = arith.addf %872, %877 : vector<2x48xf32>
    %879 = vector.extract_strided_slice %858 {offsets = [0, 3], sizes = [2, 1], strides = [1, 1]} : vector<2x16xf32> to vector<2x1xf32>
    %880 = vector.extract_strided_slice %203 {offsets = [3, 0], sizes = [1, 48], strides = [1, 1]} : vector<16x48xf32> to vector<1x48xf32>
    %881 = vector.broadcast %879 : vector<2x1xf32> to vector<2x48xf32>
    %882 = vector.broadcast %880 : vector<1x48xf32> to vector<2x48xf32>
    %883 = arith.mulf %881, %882 : vector<2x48xf32>
    %884 = arith.addf %878, %883 : vector<2x48xf32>
    %885 = vector.extract_strided_slice %858 {offsets = [0, 4], sizes = [2, 1], strides = [1, 1]} : vector<2x16xf32> to vector<2x1xf32>
    %886 = vector.extract_strided_slice %203 {offsets = [4, 0], sizes = [1, 48], strides = [1, 1]} : vector<16x48xf32> to vector<1x48xf32>
    %887 = vector.broadcast %885 : vector<2x1xf32> to vector<2x48xf32>
    %888 = vector.broadcast %886 : vector<1x48xf32> to vector<2x48xf32>
    %889 = arith.mulf %887, %888 : vector<2x48xf32>
    %890 = arith.addf %884, %889 : vector<2x48xf32>
    %891 = vector.extract_strided_slice %858 {offsets = [0, 5], sizes = [2, 1], strides = [1, 1]} : vector<2x16xf32> to vector<2x1xf32>
    %892 = vector.extract_strided_slice %203 {offsets = [5, 0], sizes = [1, 48], strides = [1, 1]} : vector<16x48xf32> to vector<1x48xf32>
    %893 = vector.broadcast %891 : vector<2x1xf32> to vector<2x48xf32>
    %894 = vector.broadcast %892 : vector<1x48xf32> to vector<2x48xf32>
    %895 = arith.mulf %893, %894 : vector<2x48xf32>
    %896 = arith.addf %890, %895 : vector<2x48xf32>
    %897 = vector.extract_strided_slice %858 {offsets = [0, 6], sizes = [2, 1], strides = [1, 1]} : vector<2x16xf32> to vector<2x1xf32>
    %898 = vector.extract_strided_slice %203 {offsets = [6, 0], sizes = [1, 48], strides = [1, 1]} : vector<16x48xf32> to vector<1x48xf32>
    %899 = vector.broadcast %897 : vector<2x1xf32> to vector<2x48xf32>
    %900 = vector.broadcast %898 : vector<1x48xf32> to vector<2x48xf32>
    %901 = arith.mulf %899, %900 : vector<2x48xf32>
    %902 = arith.addf %896, %901 : vector<2x48xf32>
    %903 = vector.extract_strided_slice %858 {offsets = [0, 7], sizes = [2, 1], strides = [1, 1]} : vector<2x16xf32> to vector<2x1xf32>
    %904 = vector.extract_strided_slice %203 {offsets = [7, 0], sizes = [1, 48], strides = [1, 1]} : vector<16x48xf32> to vector<1x48xf32>
    %905 = vector.broadcast %903 : vector<2x1xf32> to vector<2x48xf32>
    %906 = vector.broadcast %904 : vector<1x48xf32> to vector<2x48xf32>
    %907 = arith.mulf %905, %906 : vector<2x48xf32>
    %908 = arith.addf %902, %907 : vector<2x48xf32>
    %909 = vector.extract_strided_slice %858 {offsets = [0, 8], sizes = [2, 1], strides = [1, 1]} : vector<2x16xf32> to vector<2x1xf32>
    %910 = vector.extract_strided_slice %203 {offsets = [8, 0], sizes = [1, 48], strides = [1, 1]} : vector<16x48xf32> to vector<1x48xf32>
    %911 = vector.broadcast %909 : vector<2x1xf32> to vector<2x48xf32>
    %912 = vector.broadcast %910 : vector<1x48xf32> to vector<2x48xf32>
    %913 = arith.mulf %911, %912 : vector<2x48xf32>
    %914 = arith.addf %908, %913 : vector<2x48xf32>
    %915 = vector.extract_strided_slice %858 {offsets = [0, 9], sizes = [2, 1], strides = [1, 1]} : vector<2x16xf32> to vector<2x1xf32>
    %916 = vector.extract_strided_slice %203 {offsets = [9, 0], sizes = [1, 48], strides = [1, 1]} : vector<16x48xf32> to vector<1x48xf32>
    %917 = vector.broadcast %915 : vector<2x1xf32> to vector<2x48xf32>
    %918 = vector.broadcast %916 : vector<1x48xf32> to vector<2x48xf32>
    %919 = arith.mulf %917, %918 : vector<2x48xf32>
    %920 = arith.addf %914, %919 : vector<2x48xf32>
    %921 = vector.extract_strided_slice %858 {offsets = [0, 10], sizes = [2, 1], strides = [1, 1]} : vector<2x16xf32> to vector<2x1xf32>
    %922 = vector.extract_strided_slice %203 {offsets = [10, 0], sizes = [1, 48], strides = [1, 1]} : vector<16x48xf32> to vector<1x48xf32>
    %923 = vector.broadcast %921 : vector<2x1xf32> to vector<2x48xf32>
    %924 = vector.broadcast %922 : vector<1x48xf32> to vector<2x48xf32>
    %925 = arith.mulf %923, %924 : vector<2x48xf32>
    %926 = arith.addf %920, %925 : vector<2x48xf32>
    %927 = vector.extract_strided_slice %858 {offsets = [0, 11], sizes = [2, 1], strides = [1, 1]} : vector<2x16xf32> to vector<2x1xf32>
    %928 = vector.extract_strided_slice %203 {offsets = [11, 0], sizes = [1, 48], strides = [1, 1]} : vector<16x48xf32> to vector<1x48xf32>
    %929 = vector.broadcast %927 : vector<2x1xf32> to vector<2x48xf32>
    %930 = vector.broadcast %928 : vector<1x48xf32> to vector<2x48xf32>
    %931 = arith.mulf %929, %930 : vector<2x48xf32>
    %932 = arith.addf %926, %931 : vector<2x48xf32>
    %933 = vector.extract_strided_slice %858 {offsets = [0, 12], sizes = [2, 1], strides = [1, 1]} : vector<2x16xf32> to vector<2x1xf32>
    %934 = vector.extract_strided_slice %203 {offsets = [12, 0], sizes = [1, 48], strides = [1, 1]} : vector<16x48xf32> to vector<1x48xf32>
    %935 = vector.broadcast %933 : vector<2x1xf32> to vector<2x48xf32>
    %936 = vector.broadcast %934 : vector<1x48xf32> to vector<2x48xf32>
    %937 = arith.mulf %935, %936 : vector<2x48xf32>
    %938 = arith.addf %932, %937 : vector<2x48xf32>
    %939 = vector.extract_strided_slice %858 {offsets = [0, 13], sizes = [2, 1], strides = [1, 1]} : vector<2x16xf32> to vector<2x1xf32>
    %940 = vector.extract_strided_slice %203 {offsets = [13, 0], sizes = [1, 48], strides = [1, 1]} : vector<16x48xf32> to vector<1x48xf32>
    %941 = vector.broadcast %939 : vector<2x1xf32> to vector<2x48xf32>
    %942 = vector.broadcast %940 : vector<1x48xf32> to vector<2x48xf32>
    %943 = arith.mulf %941, %942 : vector<2x48xf32>
    %944 = arith.addf %938, %943 : vector<2x48xf32>
    %945 = vector.extract_strided_slice %858 {offsets = [0, 14], sizes = [2, 1], strides = [1, 1]} : vector<2x16xf32> to vector<2x1xf32>
    %946 = vector.extract_strided_slice %203 {offsets = [14, 0], sizes = [1, 48], strides = [1, 1]} : vector<16x48xf32> to vector<1x48xf32>
    %947 = vector.broadcast %945 : vector<2x1xf32> to vector<2x48xf32>
    %948 = vector.broadcast %946 : vector<1x48xf32> to vector<2x48xf32>
    %949 = arith.mulf %947, %948 : vector<2x48xf32>
    %950 = arith.addf %944, %949 : vector<2x48xf32>
    %951 = vector.extract_strided_slice %858 {offsets = [0, 15], sizes = [2, 1], strides = [1, 1]} : vector<2x16xf32> to vector<2x1xf32>
    %952 = vector.extract_strided_slice %203 {offsets = [15, 0], sizes = [1, 48], strides = [1, 1]} : vector<16x48xf32> to vector<1x48xf32>
    %953 = vector.broadcast %951 : vector<2x1xf32> to vector<2x48xf32>
    %954 = vector.broadcast %952 : vector<1x48xf32> to vector<2x48xf32>
    %955 = arith.mulf %953, %954 : vector<2x48xf32>
    %956 = arith.addf %950, %955 : vector<2x48xf32>
    %957 = vector.extract_strided_slice %956 {offsets = [0, 0], sizes = [2, 24], strides = [1, 1]} : vector<2x48xf32> to vector<2x24xf32>
    %958 = vector.extract_strided_slice %857 {offsets = [0, 0], sizes = [2, 8], strides = [1, 1]} : vector<2x24xf32> to vector<2x8xf32>
    %959 = vector.extract_strided_slice %957 {offsets = [0, 0], sizes = [2, 8], strides = [1, 1]} : vector<2x24xf32> to vector<2x8xf32>
    %960 = arith.addf %958, %959 : vector<2x8xf32>
    %961 = arith.negf %960 : vector<2x8xf32>
    %962 = math.exp %961 : vector<2x8xf32>
    %cst_223 = arith.constant 1.000000e+00 : f32
    %963 = vector.broadcast %cst_223 : f32 to vector<2x8xf32>
    %964 = arith.addf %963, %962 : vector<2x8xf32>
    %965 = arith.divf %963, %964 : vector<2x8xf32>
    %966 = vector.extract_strided_slice %857 {offsets = [0, 8], sizes = [2, 8], strides = [1, 1]} : vector<2x24xf32> to vector<2x8xf32>
    %967 = vector.extract_strided_slice %957 {offsets = [0, 8], sizes = [2, 8], strides = [1, 1]} : vector<2x24xf32> to vector<2x8xf32>
    %968 = arith.addf %966, %967 : vector<2x8xf32>
    %969 = arith.negf %968 : vector<2x8xf32>
    %970 = math.exp %969 : vector<2x8xf32>
    %cst_224 = arith.constant 1.000000e+00 : f32
    %971 = vector.broadcast %cst_224 : f32 to vector<2x8xf32>
    %972 = arith.addf %971, %970 : vector<2x8xf32>
    %973 = arith.divf %971, %972 : vector<2x8xf32>
    %974 = vector.extract_strided_slice %857 {offsets = [0, 16], sizes = [2, 8], strides = [1, 1]} : vector<2x24xf32> to vector<2x8xf32>
    %975 = vector.extract_strided_slice %957 {offsets = [0, 16], sizes = [2, 8], strides = [1, 1]} : vector<2x24xf32> to vector<2x8xf32>
    %976 = arith.mulf %965, %975 : vector<2x8xf32>
    %977 = arith.addf %974, %976 : vector<2x8xf32>
    %978 = math.tanh %977 : vector<2x8xf32>
    %cst_225 = arith.constant 1.000000e+00 : f32
    %979 = vector.broadcast %cst_225 : f32 to vector<2x8xf32>
    %980 = arith.subf %979, %973 : vector<2x8xf32>
    %981 = arith.mulf %980, %978 : vector<2x8xf32>
    %982 = arith.mulf %973, %769 : vector<2x8xf32>
    %983 = arith.addf %981, %982 : vector<2x8xf32>
    %984 = vector.shape_cast %206 : vector<1x24xf32> to vector<1x24xf32>
    %985 = vector.broadcast %984 : vector<1x24xf32> to vector<2x24xf32>
    %986 = vector.extract_strided_slice %983 {offsets = [0, 0], sizes = [2, 1], strides = [1, 1]} : vector<2x8xf32> to vector<2x1xf32>
    %987 = vector.extract_strided_slice %205 {offsets = [0, 0], sizes = [1, 24], strides = [1, 1]} : vector<8x24xf32> to vector<1x24xf32>
    %988 = vector.broadcast %986 : vector<2x1xf32> to vector<2x24xf32>
    %989 = vector.broadcast %987 : vector<1x24xf32> to vector<2x24xf32>
    %990 = arith.mulf %988, %989 : vector<2x24xf32>
    %991 = arith.addf %985, %990 : vector<2x24xf32>
    %992 = vector.extract_strided_slice %983 {offsets = [0, 1], sizes = [2, 1], strides = [1, 1]} : vector<2x8xf32> to vector<2x1xf32>
    %993 = vector.extract_strided_slice %205 {offsets = [1, 0], sizes = [1, 24], strides = [1, 1]} : vector<8x24xf32> to vector<1x24xf32>
    %994 = vector.broadcast %992 : vector<2x1xf32> to vector<2x24xf32>
    %995 = vector.broadcast %993 : vector<1x24xf32> to vector<2x24xf32>
    %996 = arith.mulf %994, %995 : vector<2x24xf32>
    %997 = arith.addf %991, %996 : vector<2x24xf32>
    %998 = vector.extract_strided_slice %983 {offsets = [0, 2], sizes = [2, 1], strides = [1, 1]} : vector<2x8xf32> to vector<2x1xf32>
    %999 = vector.extract_strided_slice %205 {offsets = [2, 0], sizes = [1, 24], strides = [1, 1]} : vector<8x24xf32> to vector<1x24xf32>
    %1000 = vector.broadcast %998 : vector<2x1xf32> to vector<2x24xf32>
    %1001 = vector.broadcast %999 : vector<1x24xf32> to vector<2x24xf32>
    %1002 = arith.mulf %1000, %1001 : vector<2x24xf32>
    %1003 = arith.addf %997, %1002 : vector<2x24xf32>
    %1004 = vector.extract_strided_slice %983 {offsets = [0, 3], sizes = [2, 1], strides = [1, 1]} : vector<2x8xf32> to vector<2x1xf32>
    %1005 = vector.extract_strided_slice %205 {offsets = [3, 0], sizes = [1, 24], strides = [1, 1]} : vector<8x24xf32> to vector<1x24xf32>
    %1006 = vector.broadcast %1004 : vector<2x1xf32> to vector<2x24xf32>
    %1007 = vector.broadcast %1005 : vector<1x24xf32> to vector<2x24xf32>
    %1008 = arith.mulf %1006, %1007 : vector<2x24xf32>
    %1009 = arith.addf %1003, %1008 : vector<2x24xf32>
    %1010 = vector.extract_strided_slice %983 {offsets = [0, 4], sizes = [2, 1], strides = [1, 1]} : vector<2x8xf32> to vector<2x1xf32>
    %1011 = vector.extract_strided_slice %205 {offsets = [4, 0], sizes = [1, 24], strides = [1, 1]} : vector<8x24xf32> to vector<1x24xf32>
    %1012 = vector.broadcast %1010 : vector<2x1xf32> to vector<2x24xf32>
    %1013 = vector.broadcast %1011 : vector<1x24xf32> to vector<2x24xf32>
    %1014 = arith.mulf %1012, %1013 : vector<2x24xf32>
    %1015 = arith.addf %1009, %1014 : vector<2x24xf32>
    %1016 = vector.extract_strided_slice %983 {offsets = [0, 5], sizes = [2, 1], strides = [1, 1]} : vector<2x8xf32> to vector<2x1xf32>
    %1017 = vector.extract_strided_slice %205 {offsets = [5, 0], sizes = [1, 24], strides = [1, 1]} : vector<8x24xf32> to vector<1x24xf32>
    %1018 = vector.broadcast %1016 : vector<2x1xf32> to vector<2x24xf32>
    %1019 = vector.broadcast %1017 : vector<1x24xf32> to vector<2x24xf32>
    %1020 = arith.mulf %1018, %1019 : vector<2x24xf32>
    %1021 = arith.addf %1015, %1020 : vector<2x24xf32>
    %1022 = vector.extract_strided_slice %983 {offsets = [0, 6], sizes = [2, 1], strides = [1, 1]} : vector<2x8xf32> to vector<2x1xf32>
    %1023 = vector.extract_strided_slice %205 {offsets = [6, 0], sizes = [1, 24], strides = [1, 1]} : vector<8x24xf32> to vector<1x24xf32>
    %1024 = vector.broadcast %1022 : vector<2x1xf32> to vector<2x24xf32>
    %1025 = vector.broadcast %1023 : vector<1x24xf32> to vector<2x24xf32>
    %1026 = arith.mulf %1024, %1025 : vector<2x24xf32>
    %1027 = arith.addf %1021, %1026 : vector<2x24xf32>
    %1028 = vector.extract_strided_slice %983 {offsets = [0, 7], sizes = [2, 1], strides = [1, 1]} : vector<2x8xf32> to vector<2x1xf32>
    %1029 = vector.extract_strided_slice %205 {offsets = [7, 0], sizes = [1, 24], strides = [1, 1]} : vector<8x24xf32> to vector<1x24xf32>
    %1030 = vector.broadcast %1028 : vector<2x1xf32> to vector<2x24xf32>
    %1031 = vector.broadcast %1029 : vector<1x24xf32> to vector<2x24xf32>
    %1032 = arith.mulf %1030, %1031 : vector<2x24xf32>
    %1033 = arith.addf %1027, %1032 : vector<2x24xf32>
    %1034 = vector.extract_strided_slice %956 {offsets = [0, 24], sizes = [2, 24], strides = [1, 1]} : vector<2x48xf32> to vector<2x24xf32>
    %1035 = vector.extract_strided_slice %1033 {offsets = [0, 0], sizes = [2, 8], strides = [1, 1]} : vector<2x24xf32> to vector<2x8xf32>
    %1036 = vector.extract_strided_slice %1034 {offsets = [0, 0], sizes = [2, 8], strides = [1, 1]} : vector<2x24xf32> to vector<2x8xf32>
    %1037 = arith.addf %1035, %1036 : vector<2x8xf32>
    %1038 = arith.negf %1037 : vector<2x8xf32>
    %1039 = math.exp %1038 : vector<2x8xf32>
    %cst_226 = arith.constant 1.000000e+00 : f32
    %1040 = vector.broadcast %cst_226 : f32 to vector<2x8xf32>
    %1041 = arith.addf %1040, %1039 : vector<2x8xf32>
    %1042 = arith.divf %1040, %1041 : vector<2x8xf32>
    %1043 = vector.extract_strided_slice %1033 {offsets = [0, 8], sizes = [2, 8], strides = [1, 1]} : vector<2x24xf32> to vector<2x8xf32>
    %1044 = vector.extract_strided_slice %1034 {offsets = [0, 8], sizes = [2, 8], strides = [1, 1]} : vector<2x24xf32> to vector<2x8xf32>
    %1045 = arith.addf %1043, %1044 : vector<2x8xf32>
    %1046 = arith.negf %1045 : vector<2x8xf32>
    %1047 = math.exp %1046 : vector<2x8xf32>
    %cst_227 = arith.constant 1.000000e+00 : f32
    %1048 = vector.broadcast %cst_227 : f32 to vector<2x8xf32>
    %1049 = arith.addf %1048, %1047 : vector<2x8xf32>
    %1050 = arith.divf %1048, %1049 : vector<2x8xf32>
    %1051 = vector.extract_strided_slice %1033 {offsets = [0, 16], sizes = [2, 8], strides = [1, 1]} : vector<2x24xf32> to vector<2x8xf32>
    %1052 = vector.extract_strided_slice %1034 {offsets = [0, 16], sizes = [2, 8], strides = [1, 1]} : vector<2x24xf32> to vector<2x8xf32>
    %1053 = arith.mulf %1042, %1052 : vector<2x8xf32>
    %1054 = arith.addf %1051, %1053 : vector<2x8xf32>
    %1055 = math.tanh %1054 : vector<2x8xf32>
    %cst_228 = arith.constant 1.000000e+00 : f32
    %1056 = vector.broadcast %cst_228 : f32 to vector<2x8xf32>
    %1057 = arith.subf %1056, %1050 : vector<2x8xf32>
    %1058 = arith.mulf %1057, %1055 : vector<2x8xf32>
    %1059 = arith.mulf %1050, %846 : vector<2x8xf32>
    %1060 = arith.addf %1058, %1059 : vector<2x8xf32>
    %cst_229 = arith.constant 3.000000e+00 : f32
    %1061 = vector.broadcast %cst_229 : f32 to vector<2x1xf32>
    %1062 = arith.subf %211, %1061 : vector<2x1xf32>
    %1063 = math.absf %1062 : vector<2x1xf32>
    %cst_230 = arith.constant 5.000000e-01 : f32
    %1064 = vector.broadcast %cst_230 : f32 to vector<2x1xf32>
    %1065 = arith.cmpf olt, %1063, %1064 : vector<2x1xf32>
    %1066 = arith.extui %1065 : vector<2x1xi1> to vector<2x1xi32>
    %1067 = arith.sitofp %1066 : vector<2x1xi32> to vector<2x1xf32>
    %1068 = vector.broadcast %1067 : vector<2x1xf32> to vector<2x8xf32>
    %1069 = arith.mulf %1068, %1060 : vector<2x8xf32>
    %1070 = arith.addf %856, %1069 : vector<2x8xf32>
    %1071 = vector.extract_strided_slice %29 {offsets = [8, 0], sizes = [2, 24], strides = [1, 1]} : vector<16x24xf32> to vector<2x24xf32>
    %1072 = tpu.concatenate %983, %1060 in 1 : vector<2x8xf32>, vector<2x8xf32> -> vector<2x16xf32>
    %1073 = vector.shape_cast %204 : vector<1x48xf32> to vector<1x48xf32>
    %1074 = vector.broadcast %1073 : vector<1x48xf32> to vector<2x48xf32>
    %1075 = vector.extract_strided_slice %1072 {offsets = [0, 0], sizes = [2, 1], strides = [1, 1]} : vector<2x16xf32> to vector<2x1xf32>
    %1076 = vector.extract_strided_slice %203 {offsets = [0, 0], sizes = [1, 48], strides = [1, 1]} : vector<16x48xf32> to vector<1x48xf32>
    %1077 = vector.broadcast %1075 : vector<2x1xf32> to vector<2x48xf32>
    %1078 = vector.broadcast %1076 : vector<1x48xf32> to vector<2x48xf32>
    %1079 = arith.mulf %1077, %1078 : vector<2x48xf32>
    %1080 = arith.addf %1074, %1079 : vector<2x48xf32>
    %1081 = vector.extract_strided_slice %1072 {offsets = [0, 1], sizes = [2, 1], strides = [1, 1]} : vector<2x16xf32> to vector<2x1xf32>
    %1082 = vector.extract_strided_slice %203 {offsets = [1, 0], sizes = [1, 48], strides = [1, 1]} : vector<16x48xf32> to vector<1x48xf32>
    %1083 = vector.broadcast %1081 : vector<2x1xf32> to vector<2x48xf32>
    %1084 = vector.broadcast %1082 : vector<1x48xf32> to vector<2x48xf32>
    %1085 = arith.mulf %1083, %1084 : vector<2x48xf32>
    %1086 = arith.addf %1080, %1085 : vector<2x48xf32>
    %1087 = vector.extract_strided_slice %1072 {offsets = [0, 2], sizes = [2, 1], strides = [1, 1]} : vector<2x16xf32> to vector<2x1xf32>
    %1088 = vector.extract_strided_slice %203 {offsets = [2, 0], sizes = [1, 48], strides = [1, 1]} : vector<16x48xf32> to vector<1x48xf32>
    %1089 = vector.broadcast %1087 : vector<2x1xf32> to vector<2x48xf32>
    %1090 = vector.broadcast %1088 : vector<1x48xf32> to vector<2x48xf32>
    %1091 = arith.mulf %1089, %1090 : vector<2x48xf32>
    %1092 = arith.addf %1086, %1091 : vector<2x48xf32>
    %1093 = vector.extract_strided_slice %1072 {offsets = [0, 3], sizes = [2, 1], strides = [1, 1]} : vector<2x16xf32> to vector<2x1xf32>
    %1094 = vector.extract_strided_slice %203 {offsets = [3, 0], sizes = [1, 48], strides = [1, 1]} : vector<16x48xf32> to vector<1x48xf32>
    %1095 = vector.broadcast %1093 : vector<2x1xf32> to vector<2x48xf32>
    %1096 = vector.broadcast %1094 : vector<1x48xf32> to vector<2x48xf32>
    %1097 = arith.mulf %1095, %1096 : vector<2x48xf32>
    %1098 = arith.addf %1092, %1097 : vector<2x48xf32>
    %1099 = vector.extract_strided_slice %1072 {offsets = [0, 4], sizes = [2, 1], strides = [1, 1]} : vector<2x16xf32> to vector<2x1xf32>
    %1100 = vector.extract_strided_slice %203 {offsets = [4, 0], sizes = [1, 48], strides = [1, 1]} : vector<16x48xf32> to vector<1x48xf32>
    %1101 = vector.broadcast %1099 : vector<2x1xf32> to vector<2x48xf32>
    %1102 = vector.broadcast %1100 : vector<1x48xf32> to vector<2x48xf32>
    %1103 = arith.mulf %1101, %1102 : vector<2x48xf32>
    %1104 = arith.addf %1098, %1103 : vector<2x48xf32>
    %1105 = vector.extract_strided_slice %1072 {offsets = [0, 5], sizes = [2, 1], strides = [1, 1]} : vector<2x16xf32> to vector<2x1xf32>
    %1106 = vector.extract_strided_slice %203 {offsets = [5, 0], sizes = [1, 48], strides = [1, 1]} : vector<16x48xf32> to vector<1x48xf32>
    %1107 = vector.broadcast %1105 : vector<2x1xf32> to vector<2x48xf32>
    %1108 = vector.broadcast %1106 : vector<1x48xf32> to vector<2x48xf32>
    %1109 = arith.mulf %1107, %1108 : vector<2x48xf32>
    %1110 = arith.addf %1104, %1109 : vector<2x48xf32>
    %1111 = vector.extract_strided_slice %1072 {offsets = [0, 6], sizes = [2, 1], strides = [1, 1]} : vector<2x16xf32> to vector<2x1xf32>
    %1112 = vector.extract_strided_slice %203 {offsets = [6, 0], sizes = [1, 48], strides = [1, 1]} : vector<16x48xf32> to vector<1x48xf32>
    %1113 = vector.broadcast %1111 : vector<2x1xf32> to vector<2x48xf32>
    %1114 = vector.broadcast %1112 : vector<1x48xf32> to vector<2x48xf32>
    %1115 = arith.mulf %1113, %1114 : vector<2x48xf32>
    %1116 = arith.addf %1110, %1115 : vector<2x48xf32>
    %1117 = vector.extract_strided_slice %1072 {offsets = [0, 7], sizes = [2, 1], strides = [1, 1]} : vector<2x16xf32> to vector<2x1xf32>
    %1118 = vector.extract_strided_slice %203 {offsets = [7, 0], sizes = [1, 48], strides = [1, 1]} : vector<16x48xf32> to vector<1x48xf32>
    %1119 = vector.broadcast %1117 : vector<2x1xf32> to vector<2x48xf32>
    %1120 = vector.broadcast %1118 : vector<1x48xf32> to vector<2x48xf32>
    %1121 = arith.mulf %1119, %1120 : vector<2x48xf32>
    %1122 = arith.addf %1116, %1121 : vector<2x48xf32>
    %1123 = vector.extract_strided_slice %1072 {offsets = [0, 8], sizes = [2, 1], strides = [1, 1]} : vector<2x16xf32> to vector<2x1xf32>
    %1124 = vector.extract_strided_slice %203 {offsets = [8, 0], sizes = [1, 48], strides = [1, 1]} : vector<16x48xf32> to vector<1x48xf32>
    %1125 = vector.broadcast %1123 : vector<2x1xf32> to vector<2x48xf32>
    %1126 = vector.broadcast %1124 : vector<1x48xf32> to vector<2x48xf32>
    %1127 = arith.mulf %1125, %1126 : vector<2x48xf32>
    %1128 = arith.addf %1122, %1127 : vector<2x48xf32>
    %1129 = vector.extract_strided_slice %1072 {offsets = [0, 9], sizes = [2, 1], strides = [1, 1]} : vector<2x16xf32> to vector<2x1xf32>
    %1130 = vector.extract_strided_slice %203 {offsets = [9, 0], sizes = [1, 48], strides = [1, 1]} : vector<16x48xf32> to vector<1x48xf32>
    %1131 = vector.broadcast %1129 : vector<2x1xf32> to vector<2x48xf32>
    %1132 = vector.broadcast %1130 : vector<1x48xf32> to vector<2x48xf32>
    %1133 = arith.mulf %1131, %1132 : vector<2x48xf32>
    %1134 = arith.addf %1128, %1133 : vector<2x48xf32>
    %1135 = vector.extract_strided_slice %1072 {offsets = [0, 10], sizes = [2, 1], strides = [1, 1]} : vector<2x16xf32> to vector<2x1xf32>
    %1136 = vector.extract_strided_slice %203 {offsets = [10, 0], sizes = [1, 48], strides = [1, 1]} : vector<16x48xf32> to vector<1x48xf32>
    %1137 = vector.broadcast %1135 : vector<2x1xf32> to vector<2x48xf32>
    %1138 = vector.broadcast %1136 : vector<1x48xf32> to vector<2x48xf32>
    %1139 = arith.mulf %1137, %1138 : vector<2x48xf32>
    %1140 = arith.addf %1134, %1139 : vector<2x48xf32>
    %1141 = vector.extract_strided_slice %1072 {offsets = [0, 11], sizes = [2, 1], strides = [1, 1]} : vector<2x16xf32> to vector<2x1xf32>
    %1142 = vector.extract_strided_slice %203 {offsets = [11, 0], sizes = [1, 48], strides = [1, 1]} : vector<16x48xf32> to vector<1x48xf32>
    %1143 = vector.broadcast %1141 : vector<2x1xf32> to vector<2x48xf32>
    %1144 = vector.broadcast %1142 : vector<1x48xf32> to vector<2x48xf32>
    %1145 = arith.mulf %1143, %1144 : vector<2x48xf32>
    %1146 = arith.addf %1140, %1145 : vector<2x48xf32>
    %1147 = vector.extract_strided_slice %1072 {offsets = [0, 12], sizes = [2, 1], strides = [1, 1]} : vector<2x16xf32> to vector<2x1xf32>
    %1148 = vector.extract_strided_slice %203 {offsets = [12, 0], sizes = [1, 48], strides = [1, 1]} : vector<16x48xf32> to vector<1x48xf32>
    %1149 = vector.broadcast %1147 : vector<2x1xf32> to vector<2x48xf32>
    %1150 = vector.broadcast %1148 : vector<1x48xf32> to vector<2x48xf32>
    %1151 = arith.mulf %1149, %1150 : vector<2x48xf32>
    %1152 = arith.addf %1146, %1151 : vector<2x48xf32>
    %1153 = vector.extract_strided_slice %1072 {offsets = [0, 13], sizes = [2, 1], strides = [1, 1]} : vector<2x16xf32> to vector<2x1xf32>
    %1154 = vector.extract_strided_slice %203 {offsets = [13, 0], sizes = [1, 48], strides = [1, 1]} : vector<16x48xf32> to vector<1x48xf32>
    %1155 = vector.broadcast %1153 : vector<2x1xf32> to vector<2x48xf32>
    %1156 = vector.broadcast %1154 : vector<1x48xf32> to vector<2x48xf32>
    %1157 = arith.mulf %1155, %1156 : vector<2x48xf32>
    %1158 = arith.addf %1152, %1157 : vector<2x48xf32>
    %1159 = vector.extract_strided_slice %1072 {offsets = [0, 14], sizes = [2, 1], strides = [1, 1]} : vector<2x16xf32> to vector<2x1xf32>
    %1160 = vector.extract_strided_slice %203 {offsets = [14, 0], sizes = [1, 48], strides = [1, 1]} : vector<16x48xf32> to vector<1x48xf32>
    %1161 = vector.broadcast %1159 : vector<2x1xf32> to vector<2x48xf32>
    %1162 = vector.broadcast %1160 : vector<1x48xf32> to vector<2x48xf32>
    %1163 = arith.mulf %1161, %1162 : vector<2x48xf32>
    %1164 = arith.addf %1158, %1163 : vector<2x48xf32>
    %1165 = vector.extract_strided_slice %1072 {offsets = [0, 15], sizes = [2, 1], strides = [1, 1]} : vector<2x16xf32> to vector<2x1xf32>
    %1166 = vector.extract_strided_slice %203 {offsets = [15, 0], sizes = [1, 48], strides = [1, 1]} : vector<16x48xf32> to vector<1x48xf32>
    %1167 = vector.broadcast %1165 : vector<2x1xf32> to vector<2x48xf32>
    %1168 = vector.broadcast %1166 : vector<1x48xf32> to vector<2x48xf32>
    %1169 = arith.mulf %1167, %1168 : vector<2x48xf32>
    %1170 = arith.addf %1164, %1169 : vector<2x48xf32>
    %1171 = vector.extract_strided_slice %1170 {offsets = [0, 0], sizes = [2, 24], strides = [1, 1]} : vector<2x48xf32> to vector<2x24xf32>
    %1172 = vector.extract_strided_slice %1071 {offsets = [0, 0], sizes = [2, 8], strides = [1, 1]} : vector<2x24xf32> to vector<2x8xf32>
    %1173 = vector.extract_strided_slice %1171 {offsets = [0, 0], sizes = [2, 8], strides = [1, 1]} : vector<2x24xf32> to vector<2x8xf32>
    %1174 = arith.addf %1172, %1173 : vector<2x8xf32>
    %1175 = arith.negf %1174 : vector<2x8xf32>
    %1176 = math.exp %1175 : vector<2x8xf32>
    %cst_231 = arith.constant 1.000000e+00 : f32
    %1177 = vector.broadcast %cst_231 : f32 to vector<2x8xf32>
    %1178 = arith.addf %1177, %1176 : vector<2x8xf32>
    %1179 = arith.divf %1177, %1178 : vector<2x8xf32>
    %1180 = vector.extract_strided_slice %1071 {offsets = [0, 8], sizes = [2, 8], strides = [1, 1]} : vector<2x24xf32> to vector<2x8xf32>
    %1181 = vector.extract_strided_slice %1171 {offsets = [0, 8], sizes = [2, 8], strides = [1, 1]} : vector<2x24xf32> to vector<2x8xf32>
    %1182 = arith.addf %1180, %1181 : vector<2x8xf32>
    %1183 = arith.negf %1182 : vector<2x8xf32>
    %1184 = math.exp %1183 : vector<2x8xf32>
    %cst_232 = arith.constant 1.000000e+00 : f32
    %1185 = vector.broadcast %cst_232 : f32 to vector<2x8xf32>
    %1186 = arith.addf %1185, %1184 : vector<2x8xf32>
    %1187 = arith.divf %1185, %1186 : vector<2x8xf32>
    %1188 = vector.extract_strided_slice %1071 {offsets = [0, 16], sizes = [2, 8], strides = [1, 1]} : vector<2x24xf32> to vector<2x8xf32>
    %1189 = vector.extract_strided_slice %1171 {offsets = [0, 16], sizes = [2, 8], strides = [1, 1]} : vector<2x24xf32> to vector<2x8xf32>
    %1190 = arith.mulf %1179, %1189 : vector<2x8xf32>
    %1191 = arith.addf %1188, %1190 : vector<2x8xf32>
    %1192 = math.tanh %1191 : vector<2x8xf32>
    %cst_233 = arith.constant 1.000000e+00 : f32
    %1193 = vector.broadcast %cst_233 : f32 to vector<2x8xf32>
    %1194 = arith.subf %1193, %1187 : vector<2x8xf32>
    %1195 = arith.mulf %1194, %1192 : vector<2x8xf32>
    %1196 = arith.mulf %1187, %983 : vector<2x8xf32>
    %1197 = arith.addf %1195, %1196 : vector<2x8xf32>
    %1198 = vector.shape_cast %206 : vector<1x24xf32> to vector<1x24xf32>
    %1199 = vector.broadcast %1198 : vector<1x24xf32> to vector<2x24xf32>
    %1200 = vector.extract_strided_slice %1197 {offsets = [0, 0], sizes = [2, 1], strides = [1, 1]} : vector<2x8xf32> to vector<2x1xf32>
    %1201 = vector.extract_strided_slice %205 {offsets = [0, 0], sizes = [1, 24], strides = [1, 1]} : vector<8x24xf32> to vector<1x24xf32>
    %1202 = vector.broadcast %1200 : vector<2x1xf32> to vector<2x24xf32>
    %1203 = vector.broadcast %1201 : vector<1x24xf32> to vector<2x24xf32>
    %1204 = arith.mulf %1202, %1203 : vector<2x24xf32>
    %1205 = arith.addf %1199, %1204 : vector<2x24xf32>
    %1206 = vector.extract_strided_slice %1197 {offsets = [0, 1], sizes = [2, 1], strides = [1, 1]} : vector<2x8xf32> to vector<2x1xf32>
    %1207 = vector.extract_strided_slice %205 {offsets = [1, 0], sizes = [1, 24], strides = [1, 1]} : vector<8x24xf32> to vector<1x24xf32>
    %1208 = vector.broadcast %1206 : vector<2x1xf32> to vector<2x24xf32>
    %1209 = vector.broadcast %1207 : vector<1x24xf32> to vector<2x24xf32>
    %1210 = arith.mulf %1208, %1209 : vector<2x24xf32>
    %1211 = arith.addf %1205, %1210 : vector<2x24xf32>
    %1212 = vector.extract_strided_slice %1197 {offsets = [0, 2], sizes = [2, 1], strides = [1, 1]} : vector<2x8xf32> to vector<2x1xf32>
    %1213 = vector.extract_strided_slice %205 {offsets = [2, 0], sizes = [1, 24], strides = [1, 1]} : vector<8x24xf32> to vector<1x24xf32>
    %1214 = vector.broadcast %1212 : vector<2x1xf32> to vector<2x24xf32>
    %1215 = vector.broadcast %1213 : vector<1x24xf32> to vector<2x24xf32>
    %1216 = arith.mulf %1214, %1215 : vector<2x24xf32>
    %1217 = arith.addf %1211, %1216 : vector<2x24xf32>
    %1218 = vector.extract_strided_slice %1197 {offsets = [0, 3], sizes = [2, 1], strides = [1, 1]} : vector<2x8xf32> to vector<2x1xf32>
    %1219 = vector.extract_strided_slice %205 {offsets = [3, 0], sizes = [1, 24], strides = [1, 1]} : vector<8x24xf32> to vector<1x24xf32>
    %1220 = vector.broadcast %1218 : vector<2x1xf32> to vector<2x24xf32>
    %1221 = vector.broadcast %1219 : vector<1x24xf32> to vector<2x24xf32>
    %1222 = arith.mulf %1220, %1221 : vector<2x24xf32>
    %1223 = arith.addf %1217, %1222 : vector<2x24xf32>
    %1224 = vector.extract_strided_slice %1197 {offsets = [0, 4], sizes = [2, 1], strides = [1, 1]} : vector<2x8xf32> to vector<2x1xf32>
    %1225 = vector.extract_strided_slice %205 {offsets = [4, 0], sizes = [1, 24], strides = [1, 1]} : vector<8x24xf32> to vector<1x24xf32>
    %1226 = vector.broadcast %1224 : vector<2x1xf32> to vector<2x24xf32>
    %1227 = vector.broadcast %1225 : vector<1x24xf32> to vector<2x24xf32>
    %1228 = arith.mulf %1226, %1227 : vector<2x24xf32>
    %1229 = arith.addf %1223, %1228 : vector<2x24xf32>
    %1230 = vector.extract_strided_slice %1197 {offsets = [0, 5], sizes = [2, 1], strides = [1, 1]} : vector<2x8xf32> to vector<2x1xf32>
    %1231 = vector.extract_strided_slice %205 {offsets = [5, 0], sizes = [1, 24], strides = [1, 1]} : vector<8x24xf32> to vector<1x24xf32>
    %1232 = vector.broadcast %1230 : vector<2x1xf32> to vector<2x24xf32>
    %1233 = vector.broadcast %1231 : vector<1x24xf32> to vector<2x24xf32>
    %1234 = arith.mulf %1232, %1233 : vector<2x24xf32>
    %1235 = arith.addf %1229, %1234 : vector<2x24xf32>
    %1236 = vector.extract_strided_slice %1197 {offsets = [0, 6], sizes = [2, 1], strides = [1, 1]} : vector<2x8xf32> to vector<2x1xf32>
    %1237 = vector.extract_strided_slice %205 {offsets = [6, 0], sizes = [1, 24], strides = [1, 1]} : vector<8x24xf32> to vector<1x24xf32>
    %1238 = vector.broadcast %1236 : vector<2x1xf32> to vector<2x24xf32>
    %1239 = vector.broadcast %1237 : vector<1x24xf32> to vector<2x24xf32>
    %1240 = arith.mulf %1238, %1239 : vector<2x24xf32>
    %1241 = arith.addf %1235, %1240 : vector<2x24xf32>
    %1242 = vector.extract_strided_slice %1197 {offsets = [0, 7], sizes = [2, 1], strides = [1, 1]} : vector<2x8xf32> to vector<2x1xf32>
    %1243 = vector.extract_strided_slice %205 {offsets = [7, 0], sizes = [1, 24], strides = [1, 1]} : vector<8x24xf32> to vector<1x24xf32>
    %1244 = vector.broadcast %1242 : vector<2x1xf32> to vector<2x24xf32>
    %1245 = vector.broadcast %1243 : vector<1x24xf32> to vector<2x24xf32>
    %1246 = arith.mulf %1244, %1245 : vector<2x24xf32>
    %1247 = arith.addf %1241, %1246 : vector<2x24xf32>
    %1248 = vector.extract_strided_slice %1170 {offsets = [0, 24], sizes = [2, 24], strides = [1, 1]} : vector<2x48xf32> to vector<2x24xf32>
    %1249 = vector.extract_strided_slice %1247 {offsets = [0, 0], sizes = [2, 8], strides = [1, 1]} : vector<2x24xf32> to vector<2x8xf32>
    %1250 = vector.extract_strided_slice %1248 {offsets = [0, 0], sizes = [2, 8], strides = [1, 1]} : vector<2x24xf32> to vector<2x8xf32>
    %1251 = arith.addf %1249, %1250 : vector<2x8xf32>
    %1252 = arith.negf %1251 : vector<2x8xf32>
    %1253 = math.exp %1252 : vector<2x8xf32>
    %cst_234 = arith.constant 1.000000e+00 : f32
    %1254 = vector.broadcast %cst_234 : f32 to vector<2x8xf32>
    %1255 = arith.addf %1254, %1253 : vector<2x8xf32>
    %1256 = arith.divf %1254, %1255 : vector<2x8xf32>
    %1257 = vector.extract_strided_slice %1247 {offsets = [0, 8], sizes = [2, 8], strides = [1, 1]} : vector<2x24xf32> to vector<2x8xf32>
    %1258 = vector.extract_strided_slice %1248 {offsets = [0, 8], sizes = [2, 8], strides = [1, 1]} : vector<2x24xf32> to vector<2x8xf32>
    %1259 = arith.addf %1257, %1258 : vector<2x8xf32>
    %1260 = arith.negf %1259 : vector<2x8xf32>
    %1261 = math.exp %1260 : vector<2x8xf32>
    %cst_235 = arith.constant 1.000000e+00 : f32
    %1262 = vector.broadcast %cst_235 : f32 to vector<2x8xf32>
    %1263 = arith.addf %1262, %1261 : vector<2x8xf32>
    %1264 = arith.divf %1262, %1263 : vector<2x8xf32>
    %1265 = vector.extract_strided_slice %1247 {offsets = [0, 16], sizes = [2, 8], strides = [1, 1]} : vector<2x24xf32> to vector<2x8xf32>
    %1266 = vector.extract_strided_slice %1248 {offsets = [0, 16], sizes = [2, 8], strides = [1, 1]} : vector<2x24xf32> to vector<2x8xf32>
    %1267 = arith.mulf %1256, %1266 : vector<2x8xf32>
    %1268 = arith.addf %1265, %1267 : vector<2x8xf32>
    %1269 = math.tanh %1268 : vector<2x8xf32>
    %cst_236 = arith.constant 1.000000e+00 : f32
    %1270 = vector.broadcast %cst_236 : f32 to vector<2x8xf32>
    %1271 = arith.subf %1270, %1264 : vector<2x8xf32>
    %1272 = arith.mulf %1271, %1269 : vector<2x8xf32>
    %1273 = arith.mulf %1264, %1060 : vector<2x8xf32>
    %1274 = arith.addf %1272, %1273 : vector<2x8xf32>
    %cst_237 = arith.constant 4.000000e+00 : f32
    %1275 = vector.broadcast %cst_237 : f32 to vector<2x1xf32>
    %1276 = arith.subf %211, %1275 : vector<2x1xf32>
    %1277 = math.absf %1276 : vector<2x1xf32>
    %cst_238 = arith.constant 5.000000e-01 : f32
    %1278 = vector.broadcast %cst_238 : f32 to vector<2x1xf32>
    %1279 = arith.cmpf olt, %1277, %1278 : vector<2x1xf32>
    %1280 = arith.extui %1279 : vector<2x1xi1> to vector<2x1xi32>
    %1281 = arith.sitofp %1280 : vector<2x1xi32> to vector<2x1xf32>
    %1282 = vector.broadcast %1281 : vector<2x1xf32> to vector<2x8xf32>
    %1283 = arith.mulf %1282, %1274 : vector<2x8xf32>
    %1284 = arith.addf %1070, %1283 : vector<2x8xf32>
    %1285 = vector.extract_strided_slice %29 {offsets = [10, 0], sizes = [2, 24], strides = [1, 1]} : vector<16x24xf32> to vector<2x24xf32>
    %1286 = tpu.concatenate %1197, %1274 in 1 : vector<2x8xf32>, vector<2x8xf32> -> vector<2x16xf32>
    %1287 = vector.shape_cast %204 : vector<1x48xf32> to vector<1x48xf32>
    %1288 = vector.broadcast %1287 : vector<1x48xf32> to vector<2x48xf32>
    %1289 = vector.extract_strided_slice %1286 {offsets = [0, 0], sizes = [2, 1], strides = [1, 1]} : vector<2x16xf32> to vector<2x1xf32>
    %1290 = vector.extract_strided_slice %203 {offsets = [0, 0], sizes = [1, 48], strides = [1, 1]} : vector<16x48xf32> to vector<1x48xf32>
    %1291 = vector.broadcast %1289 : vector<2x1xf32> to vector<2x48xf32>
    %1292 = vector.broadcast %1290 : vector<1x48xf32> to vector<2x48xf32>
    %1293 = arith.mulf %1291, %1292 : vector<2x48xf32>
    %1294 = arith.addf %1288, %1293 : vector<2x48xf32>
    %1295 = vector.extract_strided_slice %1286 {offsets = [0, 1], sizes = [2, 1], strides = [1, 1]} : vector<2x16xf32> to vector<2x1xf32>
    %1296 = vector.extract_strided_slice %203 {offsets = [1, 0], sizes = [1, 48], strides = [1, 1]} : vector<16x48xf32> to vector<1x48xf32>
    %1297 = vector.broadcast %1295 : vector<2x1xf32> to vector<2x48xf32>
    %1298 = vector.broadcast %1296 : vector<1x48xf32> to vector<2x48xf32>
    %1299 = arith.mulf %1297, %1298 : vector<2x48xf32>
    %1300 = arith.addf %1294, %1299 : vector<2x48xf32>
    %1301 = vector.extract_strided_slice %1286 {offsets = [0, 2], sizes = [2, 1], strides = [1, 1]} : vector<2x16xf32> to vector<2x1xf32>
    %1302 = vector.extract_strided_slice %203 {offsets = [2, 0], sizes = [1, 48], strides = [1, 1]} : vector<16x48xf32> to vector<1x48xf32>
    %1303 = vector.broadcast %1301 : vector<2x1xf32> to vector<2x48xf32>
    %1304 = vector.broadcast %1302 : vector<1x48xf32> to vector<2x48xf32>
    %1305 = arith.mulf %1303, %1304 : vector<2x48xf32>
    %1306 = arith.addf %1300, %1305 : vector<2x48xf32>
    %1307 = vector.extract_strided_slice %1286 {offsets = [0, 3], sizes = [2, 1], strides = [1, 1]} : vector<2x16xf32> to vector<2x1xf32>
    %1308 = vector.extract_strided_slice %203 {offsets = [3, 0], sizes = [1, 48], strides = [1, 1]} : vector<16x48xf32> to vector<1x48xf32>
    %1309 = vector.broadcast %1307 : vector<2x1xf32> to vector<2x48xf32>
    %1310 = vector.broadcast %1308 : vector<1x48xf32> to vector<2x48xf32>
    %1311 = arith.mulf %1309, %1310 : vector<2x48xf32>
    %1312 = arith.addf %1306, %1311 : vector<2x48xf32>
    %1313 = vector.extract_strided_slice %1286 {offsets = [0, 4], sizes = [2, 1], strides = [1, 1]} : vector<2x16xf32> to vector<2x1xf32>
    %1314 = vector.extract_strided_slice %203 {offsets = [4, 0], sizes = [1, 48], strides = [1, 1]} : vector<16x48xf32> to vector<1x48xf32>
    %1315 = vector.broadcast %1313 : vector<2x1xf32> to vector<2x48xf32>
    %1316 = vector.broadcast %1314 : vector<1x48xf32> to vector<2x48xf32>
    %1317 = arith.mulf %1315, %1316 : vector<2x48xf32>
    %1318 = arith.addf %1312, %1317 : vector<2x48xf32>
    %1319 = vector.extract_strided_slice %1286 {offsets = [0, 5], sizes = [2, 1], strides = [1, 1]} : vector<2x16xf32> to vector<2x1xf32>
    %1320 = vector.extract_strided_slice %203 {offsets = [5, 0], sizes = [1, 48], strides = [1, 1]} : vector<16x48xf32> to vector<1x48xf32>
    %1321 = vector.broadcast %1319 : vector<2x1xf32> to vector<2x48xf32>
    %1322 = vector.broadcast %1320 : vector<1x48xf32> to vector<2x48xf32>
    %1323 = arith.mulf %1321, %1322 : vector<2x48xf32>
    %1324 = arith.addf %1318, %1323 : vector<2x48xf32>
    %1325 = vector.extract_strided_slice %1286 {offsets = [0, 6], sizes = [2, 1], strides = [1, 1]} : vector<2x16xf32> to vector<2x1xf32>
    %1326 = vector.extract_strided_slice %203 {offsets = [6, 0], sizes = [1, 48], strides = [1, 1]} : vector<16x48xf32> to vector<1x48xf32>
    %1327 = vector.broadcast %1325 : vector<2x1xf32> to vector<2x48xf32>
    %1328 = vector.broadcast %1326 : vector<1x48xf32> to vector<2x48xf32>
    %1329 = arith.mulf %1327, %1328 : vector<2x48xf32>
    %1330 = arith.addf %1324, %1329 : vector<2x48xf32>
    %1331 = vector.extract_strided_slice %1286 {offsets = [0, 7], sizes = [2, 1], strides = [1, 1]} : vector<2x16xf32> to vector<2x1xf32>
    %1332 = vector.extract_strided_slice %203 {offsets = [7, 0], sizes = [1, 48], strides = [1, 1]} : vector<16x48xf32> to vector<1x48xf32>
    %1333 = vector.broadcast %1331 : vector<2x1xf32> to vector<2x48xf32>
    %1334 = vector.broadcast %1332 : vector<1x48xf32> to vector<2x48xf32>
    %1335 = arith.mulf %1333, %1334 : vector<2x48xf32>
    %1336 = arith.addf %1330, %1335 : vector<2x48xf32>
    %1337 = vector.extract_strided_slice %1286 {offsets = [0, 8], sizes = [2, 1], strides = [1, 1]} : vector<2x16xf32> to vector<2x1xf32>
    %1338 = vector.extract_strided_slice %203 {offsets = [8, 0], sizes = [1, 48], strides = [1, 1]} : vector<16x48xf32> to vector<1x48xf32>
    %1339 = vector.broadcast %1337 : vector<2x1xf32> to vector<2x48xf32>
    %1340 = vector.broadcast %1338 : vector<1x48xf32> to vector<2x48xf32>
    %1341 = arith.mulf %1339, %1340 : vector<2x48xf32>
    %1342 = arith.addf %1336, %1341 : vector<2x48xf32>
    %1343 = vector.extract_strided_slice %1286 {offsets = [0, 9], sizes = [2, 1], strides = [1, 1]} : vector<2x16xf32> to vector<2x1xf32>
    %1344 = vector.extract_strided_slice %203 {offsets = [9, 0], sizes = [1, 48], strides = [1, 1]} : vector<16x48xf32> to vector<1x48xf32>
    %1345 = vector.broadcast %1343 : vector<2x1xf32> to vector<2x48xf32>
    %1346 = vector.broadcast %1344 : vector<1x48xf32> to vector<2x48xf32>
    %1347 = arith.mulf %1345, %1346 : vector<2x48xf32>
    %1348 = arith.addf %1342, %1347 : vector<2x48xf32>
    %1349 = vector.extract_strided_slice %1286 {offsets = [0, 10], sizes = [2, 1], strides = [1, 1]} : vector<2x16xf32> to vector<2x1xf32>
    %1350 = vector.extract_strided_slice %203 {offsets = [10, 0], sizes = [1, 48], strides = [1, 1]} : vector<16x48xf32> to vector<1x48xf32>
    %1351 = vector.broadcast %1349 : vector<2x1xf32> to vector<2x48xf32>
    %1352 = vector.broadcast %1350 : vector<1x48xf32> to vector<2x48xf32>
    %1353 = arith.mulf %1351, %1352 : vector<2x48xf32>
    %1354 = arith.addf %1348, %1353 : vector<2x48xf32>
    %1355 = vector.extract_strided_slice %1286 {offsets = [0, 11], sizes = [2, 1], strides = [1, 1]} : vector<2x16xf32> to vector<2x1xf32>
    %1356 = vector.extract_strided_slice %203 {offsets = [11, 0], sizes = [1, 48], strides = [1, 1]} : vector<16x48xf32> to vector<1x48xf32>
    %1357 = vector.broadcast %1355 : vector<2x1xf32> to vector<2x48xf32>
    %1358 = vector.broadcast %1356 : vector<1x48xf32> to vector<2x48xf32>
    %1359 = arith.mulf %1357, %1358 : vector<2x48xf32>
    %1360 = arith.addf %1354, %1359 : vector<2x48xf32>
    %1361 = vector.extract_strided_slice %1286 {offsets = [0, 12], sizes = [2, 1], strides = [1, 1]} : vector<2x16xf32> to vector<2x1xf32>
    %1362 = vector.extract_strided_slice %203 {offsets = [12, 0], sizes = [1, 48], strides = [1, 1]} : vector<16x48xf32> to vector<1x48xf32>
    %1363 = vector.broadcast %1361 : vector<2x1xf32> to vector<2x48xf32>
    %1364 = vector.broadcast %1362 : vector<1x48xf32> to vector<2x48xf32>
    %1365 = arith.mulf %1363, %1364 : vector<2x48xf32>
    %1366 = arith.addf %1360, %1365 : vector<2x48xf32>
    %1367 = vector.extract_strided_slice %1286 {offsets = [0, 13], sizes = [2, 1], strides = [1, 1]} : vector<2x16xf32> to vector<2x1xf32>
    %1368 = vector.extract_strided_slice %203 {offsets = [13, 0], sizes = [1, 48], strides = [1, 1]} : vector<16x48xf32> to vector<1x48xf32>
    %1369 = vector.broadcast %1367 : vector<2x1xf32> to vector<2x48xf32>
    %1370 = vector.broadcast %1368 : vector<1x48xf32> to vector<2x48xf32>
    %1371 = arith.mulf %1369, %1370 : vector<2x48xf32>
    %1372 = arith.addf %1366, %1371 : vector<2x48xf32>
    %1373 = vector.extract_strided_slice %1286 {offsets = [0, 14], sizes = [2, 1], strides = [1, 1]} : vector<2x16xf32> to vector<2x1xf32>
    %1374 = vector.extract_strided_slice %203 {offsets = [14, 0], sizes = [1, 48], strides = [1, 1]} : vector<16x48xf32> to vector<1x48xf32>
    %1375 = vector.broadcast %1373 : vector<2x1xf32> to vector<2x48xf32>
    %1376 = vector.broadcast %1374 : vector<1x48xf32> to vector<2x48xf32>
    %1377 = arith.mulf %1375, %1376 : vector<2x48xf32>
    %1378 = arith.addf %1372, %1377 : vector<2x48xf32>
    %1379 = vector.extract_strided_slice %1286 {offsets = [0, 15], sizes = [2, 1], strides = [1, 1]} : vector<2x16xf32> to vector<2x1xf32>
    %1380 = vector.extract_strided_slice %203 {offsets = [15, 0], sizes = [1, 48], strides = [1, 1]} : vector<16x48xf32> to vector<1x48xf32>
    %1381 = vector.broadcast %1379 : vector<2x1xf32> to vector<2x48xf32>
    %1382 = vector.broadcast %1380 : vector<1x48xf32> to vector<2x48xf32>
    %1383 = arith.mulf %1381, %1382 : vector<2x48xf32>
    %1384 = arith.addf %1378, %1383 : vector<2x48xf32>
    %1385 = vector.extract_strided_slice %1384 {offsets = [0, 0], sizes = [2, 24], strides = [1, 1]} : vector<2x48xf32> to vector<2x24xf32>
    %1386 = vector.extract_strided_slice %1285 {offsets = [0, 0], sizes = [2, 8], strides = [1, 1]} : vector<2x24xf32> to vector<2x8xf32>
    %1387 = vector.extract_strided_slice %1385 {offsets = [0, 0], sizes = [2, 8], strides = [1, 1]} : vector<2x24xf32> to vector<2x8xf32>
    %1388 = arith.addf %1386, %1387 : vector<2x8xf32>
    %1389 = arith.negf %1388 : vector<2x8xf32>
    %1390 = math.exp %1389 : vector<2x8xf32>
    %cst_239 = arith.constant 1.000000e+00 : f32
    %1391 = vector.broadcast %cst_239 : f32 to vector<2x8xf32>
    %1392 = arith.addf %1391, %1390 : vector<2x8xf32>
    %1393 = arith.divf %1391, %1392 : vector<2x8xf32>
    %1394 = vector.extract_strided_slice %1285 {offsets = [0, 8], sizes = [2, 8], strides = [1, 1]} : vector<2x24xf32> to vector<2x8xf32>
    %1395 = vector.extract_strided_slice %1385 {offsets = [0, 8], sizes = [2, 8], strides = [1, 1]} : vector<2x24xf32> to vector<2x8xf32>
    %1396 = arith.addf %1394, %1395 : vector<2x8xf32>
    %1397 = arith.negf %1396 : vector<2x8xf32>
    %1398 = math.exp %1397 : vector<2x8xf32>
    %cst_240 = arith.constant 1.000000e+00 : f32
    %1399 = vector.broadcast %cst_240 : f32 to vector<2x8xf32>
    %1400 = arith.addf %1399, %1398 : vector<2x8xf32>
    %1401 = arith.divf %1399, %1400 : vector<2x8xf32>
    %1402 = vector.extract_strided_slice %1285 {offsets = [0, 16], sizes = [2, 8], strides = [1, 1]} : vector<2x24xf32> to vector<2x8xf32>
    %1403 = vector.extract_strided_slice %1385 {offsets = [0, 16], sizes = [2, 8], strides = [1, 1]} : vector<2x24xf32> to vector<2x8xf32>
    %1404 = arith.mulf %1393, %1403 : vector<2x8xf32>
    %1405 = arith.addf %1402, %1404 : vector<2x8xf32>
    %1406 = math.tanh %1405 : vector<2x8xf32>
    %cst_241 = arith.constant 1.000000e+00 : f32
    %1407 = vector.broadcast %cst_241 : f32 to vector<2x8xf32>
    %1408 = arith.subf %1407, %1401 : vector<2x8xf32>
    %1409 = arith.mulf %1408, %1406 : vector<2x8xf32>
    %1410 = arith.mulf %1401, %1197 : vector<2x8xf32>
    %1411 = arith.addf %1409, %1410 : vector<2x8xf32>
    %1412 = vector.shape_cast %206 : vector<1x24xf32> to vector<1x24xf32>
    %1413 = vector.broadcast %1412 : vector<1x24xf32> to vector<2x24xf32>
    %1414 = vector.extract_strided_slice %1411 {offsets = [0, 0], sizes = [2, 1], strides = [1, 1]} : vector<2x8xf32> to vector<2x1xf32>
    %1415 = vector.extract_strided_slice %205 {offsets = [0, 0], sizes = [1, 24], strides = [1, 1]} : vector<8x24xf32> to vector<1x24xf32>
    %1416 = vector.broadcast %1414 : vector<2x1xf32> to vector<2x24xf32>
    %1417 = vector.broadcast %1415 : vector<1x24xf32> to vector<2x24xf32>
    %1418 = arith.mulf %1416, %1417 : vector<2x24xf32>
    %1419 = arith.addf %1413, %1418 : vector<2x24xf32>
    %1420 = vector.extract_strided_slice %1411 {offsets = [0, 1], sizes = [2, 1], strides = [1, 1]} : vector<2x8xf32> to vector<2x1xf32>
    %1421 = vector.extract_strided_slice %205 {offsets = [1, 0], sizes = [1, 24], strides = [1, 1]} : vector<8x24xf32> to vector<1x24xf32>
    %1422 = vector.broadcast %1420 : vector<2x1xf32> to vector<2x24xf32>
    %1423 = vector.broadcast %1421 : vector<1x24xf32> to vector<2x24xf32>
    %1424 = arith.mulf %1422, %1423 : vector<2x24xf32>
    %1425 = arith.addf %1419, %1424 : vector<2x24xf32>
    %1426 = vector.extract_strided_slice %1411 {offsets = [0, 2], sizes = [2, 1], strides = [1, 1]} : vector<2x8xf32> to vector<2x1xf32>
    %1427 = vector.extract_strided_slice %205 {offsets = [2, 0], sizes = [1, 24], strides = [1, 1]} : vector<8x24xf32> to vector<1x24xf32>
    %1428 = vector.broadcast %1426 : vector<2x1xf32> to vector<2x24xf32>
    %1429 = vector.broadcast %1427 : vector<1x24xf32> to vector<2x24xf32>
    %1430 = arith.mulf %1428, %1429 : vector<2x24xf32>
    %1431 = arith.addf %1425, %1430 : vector<2x24xf32>
    %1432 = vector.extract_strided_slice %1411 {offsets = [0, 3], sizes = [2, 1], strides = [1, 1]} : vector<2x8xf32> to vector<2x1xf32>
    %1433 = vector.extract_strided_slice %205 {offsets = [3, 0], sizes = [1, 24], strides = [1, 1]} : vector<8x24xf32> to vector<1x24xf32>
    %1434 = vector.broadcast %1432 : vector<2x1xf32> to vector<2x24xf32>
    %1435 = vector.broadcast %1433 : vector<1x24xf32> to vector<2x24xf32>
    %1436 = arith.mulf %1434, %1435 : vector<2x24xf32>
    %1437 = arith.addf %1431, %1436 : vector<2x24xf32>
    %1438 = vector.extract_strided_slice %1411 {offsets = [0, 4], sizes = [2, 1], strides = [1, 1]} : vector<2x8xf32> to vector<2x1xf32>
    %1439 = vector.extract_strided_slice %205 {offsets = [4, 0], sizes = [1, 24], strides = [1, 1]} : vector<8x24xf32> to vector<1x24xf32>
    %1440 = vector.broadcast %1438 : vector<2x1xf32> to vector<2x24xf32>
    %1441 = vector.broadcast %1439 : vector<1x24xf32> to vector<2x24xf32>
    %1442 = arith.mulf %1440, %1441 : vector<2x24xf32>
    %1443 = arith.addf %1437, %1442 : vector<2x24xf32>
    %1444 = vector.extract_strided_slice %1411 {offsets = [0, 5], sizes = [2, 1], strides = [1, 1]} : vector<2x8xf32> to vector<2x1xf32>
    %1445 = vector.extract_strided_slice %205 {offsets = [5, 0], sizes = [1, 24], strides = [1, 1]} : vector<8x24xf32> to vector<1x24xf32>
    %1446 = vector.broadcast %1444 : vector<2x1xf32> to vector<2x24xf32>
    %1447 = vector.broadcast %1445 : vector<1x24xf32> to vector<2x24xf32>
    %1448 = arith.mulf %1446, %1447 : vector<2x24xf32>
    %1449 = arith.addf %1443, %1448 : vector<2x24xf32>
    %1450 = vector.extract_strided_slice %1411 {offsets = [0, 6], sizes = [2, 1], strides = [1, 1]} : vector<2x8xf32> to vector<2x1xf32>
    %1451 = vector.extract_strided_slice %205 {offsets = [6, 0], sizes = [1, 24], strides = [1, 1]} : vector<8x24xf32> to vector<1x24xf32>
    %1452 = vector.broadcast %1450 : vector<2x1xf32> to vector<2x24xf32>
    %1453 = vector.broadcast %1451 : vector<1x24xf32> to vector<2x24xf32>
    %1454 = arith.mulf %1452, %1453 : vector<2x24xf32>
    %1455 = arith.addf %1449, %1454 : vector<2x24xf32>
    %1456 = vector.extract_strided_slice %1411 {offsets = [0, 7], sizes = [2, 1], strides = [1, 1]} : vector<2x8xf32> to vector<2x1xf32>
    %1457 = vector.extract_strided_slice %205 {offsets = [7, 0], sizes = [1, 24], strides = [1, 1]} : vector<8x24xf32> to vector<1x24xf32>
    %1458 = vector.broadcast %1456 : vector<2x1xf32> to vector<2x24xf32>
    %1459 = vector.broadcast %1457 : vector<1x24xf32> to vector<2x24xf32>
    %1460 = arith.mulf %1458, %1459 : vector<2x24xf32>
    %1461 = arith.addf %1455, %1460 : vector<2x24xf32>
    %1462 = vector.extract_strided_slice %1384 {offsets = [0, 24], sizes = [2, 24], strides = [1, 1]} : vector<2x48xf32> to vector<2x24xf32>
    %1463 = vector.extract_strided_slice %1461 {offsets = [0, 0], sizes = [2, 8], strides = [1, 1]} : vector<2x24xf32> to vector<2x8xf32>
    %1464 = vector.extract_strided_slice %1462 {offsets = [0, 0], sizes = [2, 8], strides = [1, 1]} : vector<2x24xf32> to vector<2x8xf32>
    %1465 = arith.addf %1463, %1464 : vector<2x8xf32>
    %1466 = arith.negf %1465 : vector<2x8xf32>
    %1467 = math.exp %1466 : vector<2x8xf32>
    %cst_242 = arith.constant 1.000000e+00 : f32
    %1468 = vector.broadcast %cst_242 : f32 to vector<2x8xf32>
    %1469 = arith.addf %1468, %1467 : vector<2x8xf32>
    %1470 = arith.divf %1468, %1469 : vector<2x8xf32>
    %1471 = vector.extract_strided_slice %1461 {offsets = [0, 8], sizes = [2, 8], strides = [1, 1]} : vector<2x24xf32> to vector<2x8xf32>
    %1472 = vector.extract_strided_slice %1462 {offsets = [0, 8], sizes = [2, 8], strides = [1, 1]} : vector<2x24xf32> to vector<2x8xf32>
    %1473 = arith.addf %1471, %1472 : vector<2x8xf32>
    %1474 = arith.negf %1473 : vector<2x8xf32>
    %1475 = math.exp %1474 : vector<2x8xf32>
    %cst_243 = arith.constant 1.000000e+00 : f32
    %1476 = vector.broadcast %cst_243 : f32 to vector<2x8xf32>
    %1477 = arith.addf %1476, %1475 : vector<2x8xf32>
    %1478 = arith.divf %1476, %1477 : vector<2x8xf32>
    %1479 = vector.extract_strided_slice %1461 {offsets = [0, 16], sizes = [2, 8], strides = [1, 1]} : vector<2x24xf32> to vector<2x8xf32>
    %1480 = vector.extract_strided_slice %1462 {offsets = [0, 16], sizes = [2, 8], strides = [1, 1]} : vector<2x24xf32> to vector<2x8xf32>
    %1481 = arith.mulf %1470, %1480 : vector<2x8xf32>
    %1482 = arith.addf %1479, %1481 : vector<2x8xf32>
    %1483 = math.tanh %1482 : vector<2x8xf32>
    %cst_244 = arith.constant 1.000000e+00 : f32
    %1484 = vector.broadcast %cst_244 : f32 to vector<2x8xf32>
    %1485 = arith.subf %1484, %1478 : vector<2x8xf32>
    %1486 = arith.mulf %1485, %1483 : vector<2x8xf32>
    %1487 = arith.mulf %1478, %1274 : vector<2x8xf32>
    %1488 = arith.addf %1486, %1487 : vector<2x8xf32>
    %cst_245 = arith.constant 5.000000e+00 : f32
    %1489 = vector.broadcast %cst_245 : f32 to vector<2x1xf32>
    %1490 = arith.subf %211, %1489 : vector<2x1xf32>
    %1491 = math.absf %1490 : vector<2x1xf32>
    %cst_246 = arith.constant 5.000000e-01 : f32
    %1492 = vector.broadcast %cst_246 : f32 to vector<2x1xf32>
    %1493 = arith.cmpf olt, %1491, %1492 : vector<2x1xf32>
    %1494 = arith.extui %1493 : vector<2x1xi1> to vector<2x1xi32>
    %1495 = arith.sitofp %1494 : vector<2x1xi32> to vector<2x1xf32>
    %1496 = vector.broadcast %1495 : vector<2x1xf32> to vector<2x8xf32>
    %1497 = arith.mulf %1496, %1488 : vector<2x8xf32>
    %1498 = arith.addf %1284, %1497 : vector<2x8xf32>
    %1499 = vector.extract_strided_slice %29 {offsets = [12, 0], sizes = [2, 24], strides = [1, 1]} : vector<16x24xf32> to vector<2x24xf32>
    %1500 = tpu.concatenate %1411, %1488 in 1 : vector<2x8xf32>, vector<2x8xf32> -> vector<2x16xf32>
    %1501 = vector.shape_cast %204 : vector<1x48xf32> to vector<1x48xf32>
    %1502 = vector.broadcast %1501 : vector<1x48xf32> to vector<2x48xf32>
    %1503 = vector.extract_strided_slice %1500 {offsets = [0, 0], sizes = [2, 1], strides = [1, 1]} : vector<2x16xf32> to vector<2x1xf32>
    %1504 = vector.extract_strided_slice %203 {offsets = [0, 0], sizes = [1, 48], strides = [1, 1]} : vector<16x48xf32> to vector<1x48xf32>
    %1505 = vector.broadcast %1503 : vector<2x1xf32> to vector<2x48xf32>
    %1506 = vector.broadcast %1504 : vector<1x48xf32> to vector<2x48xf32>
    %1507 = arith.mulf %1505, %1506 : vector<2x48xf32>
    %1508 = arith.addf %1502, %1507 : vector<2x48xf32>
    %1509 = vector.extract_strided_slice %1500 {offsets = [0, 1], sizes = [2, 1], strides = [1, 1]} : vector<2x16xf32> to vector<2x1xf32>
    %1510 = vector.extract_strided_slice %203 {offsets = [1, 0], sizes = [1, 48], strides = [1, 1]} : vector<16x48xf32> to vector<1x48xf32>
    %1511 = vector.broadcast %1509 : vector<2x1xf32> to vector<2x48xf32>
    %1512 = vector.broadcast %1510 : vector<1x48xf32> to vector<2x48xf32>
    %1513 = arith.mulf %1511, %1512 : vector<2x48xf32>
    %1514 = arith.addf %1508, %1513 : vector<2x48xf32>
    %1515 = vector.extract_strided_slice %1500 {offsets = [0, 2], sizes = [2, 1], strides = [1, 1]} : vector<2x16xf32> to vector<2x1xf32>
    %1516 = vector.extract_strided_slice %203 {offsets = [2, 0], sizes = [1, 48], strides = [1, 1]} : vector<16x48xf32> to vector<1x48xf32>
    %1517 = vector.broadcast %1515 : vector<2x1xf32> to vector<2x48xf32>
    %1518 = vector.broadcast %1516 : vector<1x48xf32> to vector<2x48xf32>
    %1519 = arith.mulf %1517, %1518 : vector<2x48xf32>
    %1520 = arith.addf %1514, %1519 : vector<2x48xf32>
    %1521 = vector.extract_strided_slice %1500 {offsets = [0, 3], sizes = [2, 1], strides = [1, 1]} : vector<2x16xf32> to vector<2x1xf32>
    %1522 = vector.extract_strided_slice %203 {offsets = [3, 0], sizes = [1, 48], strides = [1, 1]} : vector<16x48xf32> to vector<1x48xf32>
    %1523 = vector.broadcast %1521 : vector<2x1xf32> to vector<2x48xf32>
    %1524 = vector.broadcast %1522 : vector<1x48xf32> to vector<2x48xf32>
    %1525 = arith.mulf %1523, %1524 : vector<2x48xf32>
    %1526 = arith.addf %1520, %1525 : vector<2x48xf32>
    %1527 = vector.extract_strided_slice %1500 {offsets = [0, 4], sizes = [2, 1], strides = [1, 1]} : vector<2x16xf32> to vector<2x1xf32>
    %1528 = vector.extract_strided_slice %203 {offsets = [4, 0], sizes = [1, 48], strides = [1, 1]} : vector<16x48xf32> to vector<1x48xf32>
    %1529 = vector.broadcast %1527 : vector<2x1xf32> to vector<2x48xf32>
    %1530 = vector.broadcast %1528 : vector<1x48xf32> to vector<2x48xf32>
    %1531 = arith.mulf %1529, %1530 : vector<2x48xf32>
    %1532 = arith.addf %1526, %1531 : vector<2x48xf32>
    %1533 = vector.extract_strided_slice %1500 {offsets = [0, 5], sizes = [2, 1], strides = [1, 1]} : vector<2x16xf32> to vector<2x1xf32>
    %1534 = vector.extract_strided_slice %203 {offsets = [5, 0], sizes = [1, 48], strides = [1, 1]} : vector<16x48xf32> to vector<1x48xf32>
    %1535 = vector.broadcast %1533 : vector<2x1xf32> to vector<2x48xf32>
    %1536 = vector.broadcast %1534 : vector<1x48xf32> to vector<2x48xf32>
    %1537 = arith.mulf %1535, %1536 : vector<2x48xf32>
    %1538 = arith.addf %1532, %1537 : vector<2x48xf32>
    %1539 = vector.extract_strided_slice %1500 {offsets = [0, 6], sizes = [2, 1], strides = [1, 1]} : vector<2x16xf32> to vector<2x1xf32>
    %1540 = vector.extract_strided_slice %203 {offsets = [6, 0], sizes = [1, 48], strides = [1, 1]} : vector<16x48xf32> to vector<1x48xf32>
    %1541 = vector.broadcast %1539 : vector<2x1xf32> to vector<2x48xf32>
    %1542 = vector.broadcast %1540 : vector<1x48xf32> to vector<2x48xf32>
    %1543 = arith.mulf %1541, %1542 : vector<2x48xf32>
    %1544 = arith.addf %1538, %1543 : vector<2x48xf32>
    %1545 = vector.extract_strided_slice %1500 {offsets = [0, 7], sizes = [2, 1], strides = [1, 1]} : vector<2x16xf32> to vector<2x1xf32>
    %1546 = vector.extract_strided_slice %203 {offsets = [7, 0], sizes = [1, 48], strides = [1, 1]} : vector<16x48xf32> to vector<1x48xf32>
    %1547 = vector.broadcast %1545 : vector<2x1xf32> to vector<2x48xf32>
    %1548 = vector.broadcast %1546 : vector<1x48xf32> to vector<2x48xf32>
    %1549 = arith.mulf %1547, %1548 : vector<2x48xf32>
    %1550 = arith.addf %1544, %1549 : vector<2x48xf32>
    %1551 = vector.extract_strided_slice %1500 {offsets = [0, 8], sizes = [2, 1], strides = [1, 1]} : vector<2x16xf32> to vector<2x1xf32>
    %1552 = vector.extract_strided_slice %203 {offsets = [8, 0], sizes = [1, 48], strides = [1, 1]} : vector<16x48xf32> to vector<1x48xf32>
    %1553 = vector.broadcast %1551 : vector<2x1xf32> to vector<2x48xf32>
    %1554 = vector.broadcast %1552 : vector<1x48xf32> to vector<2x48xf32>
    %1555 = arith.mulf %1553, %1554 : vector<2x48xf32>
    %1556 = arith.addf %1550, %1555 : vector<2x48xf32>
    %1557 = vector.extract_strided_slice %1500 {offsets = [0, 9], sizes = [2, 1], strides = [1, 1]} : vector<2x16xf32> to vector<2x1xf32>
    %1558 = vector.extract_strided_slice %203 {offsets = [9, 0], sizes = [1, 48], strides = [1, 1]} : vector<16x48xf32> to vector<1x48xf32>
    %1559 = vector.broadcast %1557 : vector<2x1xf32> to vector<2x48xf32>
    %1560 = vector.broadcast %1558 : vector<1x48xf32> to vector<2x48xf32>
    %1561 = arith.mulf %1559, %1560 : vector<2x48xf32>
    %1562 = arith.addf %1556, %1561 : vector<2x48xf32>
    %1563 = vector.extract_strided_slice %1500 {offsets = [0, 10], sizes = [2, 1], strides = [1, 1]} : vector<2x16xf32> to vector<2x1xf32>
    %1564 = vector.extract_strided_slice %203 {offsets = [10, 0], sizes = [1, 48], strides = [1, 1]} : vector<16x48xf32> to vector<1x48xf32>
    %1565 = vector.broadcast %1563 : vector<2x1xf32> to vector<2x48xf32>
    %1566 = vector.broadcast %1564 : vector<1x48xf32> to vector<2x48xf32>
    %1567 = arith.mulf %1565, %1566 : vector<2x48xf32>
    %1568 = arith.addf %1562, %1567 : vector<2x48xf32>
    %1569 = vector.extract_strided_slice %1500 {offsets = [0, 11], sizes = [2, 1], strides = [1, 1]} : vector<2x16xf32> to vector<2x1xf32>
    %1570 = vector.extract_strided_slice %203 {offsets = [11, 0], sizes = [1, 48], strides = [1, 1]} : vector<16x48xf32> to vector<1x48xf32>
    %1571 = vector.broadcast %1569 : vector<2x1xf32> to vector<2x48xf32>
    %1572 = vector.broadcast %1570 : vector<1x48xf32> to vector<2x48xf32>
    %1573 = arith.mulf %1571, %1572 : vector<2x48xf32>
    %1574 = arith.addf %1568, %1573 : vector<2x48xf32>
    %1575 = vector.extract_strided_slice %1500 {offsets = [0, 12], sizes = [2, 1], strides = [1, 1]} : vector<2x16xf32> to vector<2x1xf32>
    %1576 = vector.extract_strided_slice %203 {offsets = [12, 0], sizes = [1, 48], strides = [1, 1]} : vector<16x48xf32> to vector<1x48xf32>
    %1577 = vector.broadcast %1575 : vector<2x1xf32> to vector<2x48xf32>
    %1578 = vector.broadcast %1576 : vector<1x48xf32> to vector<2x48xf32>
    %1579 = arith.mulf %1577, %1578 : vector<2x48xf32>
    %1580 = arith.addf %1574, %1579 : vector<2x48xf32>
    %1581 = vector.extract_strided_slice %1500 {offsets = [0, 13], sizes = [2, 1], strides = [1, 1]} : vector<2x16xf32> to vector<2x1xf32>
    %1582 = vector.extract_strided_slice %203 {offsets = [13, 0], sizes = [1, 48], strides = [1, 1]} : vector<16x48xf32> to vector<1x48xf32>
    %1583 = vector.broadcast %1581 : vector<2x1xf32> to vector<2x48xf32>
    %1584 = vector.broadcast %1582 : vector<1x48xf32> to vector<2x48xf32>
    %1585 = arith.mulf %1583, %1584 : vector<2x48xf32>
    %1586 = arith.addf %1580, %1585 : vector<2x48xf32>
    %1587 = vector.extract_strided_slice %1500 {offsets = [0, 14], sizes = [2, 1], strides = [1, 1]} : vector<2x16xf32> to vector<2x1xf32>
    %1588 = vector.extract_strided_slice %203 {offsets = [14, 0], sizes = [1, 48], strides = [1, 1]} : vector<16x48xf32> to vector<1x48xf32>
    %1589 = vector.broadcast %1587 : vector<2x1xf32> to vector<2x48xf32>
    %1590 = vector.broadcast %1588 : vector<1x48xf32> to vector<2x48xf32>
    %1591 = arith.mulf %1589, %1590 : vector<2x48xf32>
    %1592 = arith.addf %1586, %1591 : vector<2x48xf32>
    %1593 = vector.extract_strided_slice %1500 {offsets = [0, 15], sizes = [2, 1], strides = [1, 1]} : vector<2x16xf32> to vector<2x1xf32>
    %1594 = vector.extract_strided_slice %203 {offsets = [15, 0], sizes = [1, 48], strides = [1, 1]} : vector<16x48xf32> to vector<1x48xf32>
    %1595 = vector.broadcast %1593 : vector<2x1xf32> to vector<2x48xf32>
    %1596 = vector.broadcast %1594 : vector<1x48xf32> to vector<2x48xf32>
    %1597 = arith.mulf %1595, %1596 : vector<2x48xf32>
    %1598 = arith.addf %1592, %1597 : vector<2x48xf32>
    %1599 = vector.extract_strided_slice %1598 {offsets = [0, 0], sizes = [2, 24], strides = [1, 1]} : vector<2x48xf32> to vector<2x24xf32>
    %1600 = vector.extract_strided_slice %1499 {offsets = [0, 0], sizes = [2, 8], strides = [1, 1]} : vector<2x24xf32> to vector<2x8xf32>
    %1601 = vector.extract_strided_slice %1599 {offsets = [0, 0], sizes = [2, 8], strides = [1, 1]} : vector<2x24xf32> to vector<2x8xf32>
    %1602 = arith.addf %1600, %1601 : vector<2x8xf32>
    %1603 = arith.negf %1602 : vector<2x8xf32>
    %1604 = math.exp %1603 : vector<2x8xf32>
    %cst_247 = arith.constant 1.000000e+00 : f32
    %1605 = vector.broadcast %cst_247 : f32 to vector<2x8xf32>
    %1606 = arith.addf %1605, %1604 : vector<2x8xf32>
    %1607 = arith.divf %1605, %1606 : vector<2x8xf32>
    %1608 = vector.extract_strided_slice %1499 {offsets = [0, 8], sizes = [2, 8], strides = [1, 1]} : vector<2x24xf32> to vector<2x8xf32>
    %1609 = vector.extract_strided_slice %1599 {offsets = [0, 8], sizes = [2, 8], strides = [1, 1]} : vector<2x24xf32> to vector<2x8xf32>
    %1610 = arith.addf %1608, %1609 : vector<2x8xf32>
    %1611 = arith.negf %1610 : vector<2x8xf32>
    %1612 = math.exp %1611 : vector<2x8xf32>
    %cst_248 = arith.constant 1.000000e+00 : f32
    %1613 = vector.broadcast %cst_248 : f32 to vector<2x8xf32>
    %1614 = arith.addf %1613, %1612 : vector<2x8xf32>
    %1615 = arith.divf %1613, %1614 : vector<2x8xf32>
    %1616 = vector.extract_strided_slice %1499 {offsets = [0, 16], sizes = [2, 8], strides = [1, 1]} : vector<2x24xf32> to vector<2x8xf32>
    %1617 = vector.extract_strided_slice %1599 {offsets = [0, 16], sizes = [2, 8], strides = [1, 1]} : vector<2x24xf32> to vector<2x8xf32>
    %1618 = arith.mulf %1607, %1617 : vector<2x8xf32>
    %1619 = arith.addf %1616, %1618 : vector<2x8xf32>
    %1620 = math.tanh %1619 : vector<2x8xf32>
    %cst_249 = arith.constant 1.000000e+00 : f32
    %1621 = vector.broadcast %cst_249 : f32 to vector<2x8xf32>
    %1622 = arith.subf %1621, %1615 : vector<2x8xf32>
    %1623 = arith.mulf %1622, %1620 : vector<2x8xf32>
    %1624 = arith.mulf %1615, %1411 : vector<2x8xf32>
    %1625 = arith.addf %1623, %1624 : vector<2x8xf32>
    %1626 = vector.shape_cast %206 : vector<1x24xf32> to vector<1x24xf32>
    %1627 = vector.broadcast %1626 : vector<1x24xf32> to vector<2x24xf32>
    %1628 = vector.extract_strided_slice %1625 {offsets = [0, 0], sizes = [2, 1], strides = [1, 1]} : vector<2x8xf32> to vector<2x1xf32>
    %1629 = vector.extract_strided_slice %205 {offsets = [0, 0], sizes = [1, 24], strides = [1, 1]} : vector<8x24xf32> to vector<1x24xf32>
    %1630 = vector.broadcast %1628 : vector<2x1xf32> to vector<2x24xf32>
    %1631 = vector.broadcast %1629 : vector<1x24xf32> to vector<2x24xf32>
    %1632 = arith.mulf %1630, %1631 : vector<2x24xf32>
    %1633 = arith.addf %1627, %1632 : vector<2x24xf32>
    %1634 = vector.extract_strided_slice %1625 {offsets = [0, 1], sizes = [2, 1], strides = [1, 1]} : vector<2x8xf32> to vector<2x1xf32>
    %1635 = vector.extract_strided_slice %205 {offsets = [1, 0], sizes = [1, 24], strides = [1, 1]} : vector<8x24xf32> to vector<1x24xf32>
    %1636 = vector.broadcast %1634 : vector<2x1xf32> to vector<2x24xf32>
    %1637 = vector.broadcast %1635 : vector<1x24xf32> to vector<2x24xf32>
    %1638 = arith.mulf %1636, %1637 : vector<2x24xf32>
    %1639 = arith.addf %1633, %1638 : vector<2x24xf32>
    %1640 = vector.extract_strided_slice %1625 {offsets = [0, 2], sizes = [2, 1], strides = [1, 1]} : vector<2x8xf32> to vector<2x1xf32>
    %1641 = vector.extract_strided_slice %205 {offsets = [2, 0], sizes = [1, 24], strides = [1, 1]} : vector<8x24xf32> to vector<1x24xf32>
    %1642 = vector.broadcast %1640 : vector<2x1xf32> to vector<2x24xf32>
    %1643 = vector.broadcast %1641 : vector<1x24xf32> to vector<2x24xf32>
    %1644 = arith.mulf %1642, %1643 : vector<2x24xf32>
    %1645 = arith.addf %1639, %1644 : vector<2x24xf32>
    %1646 = vector.extract_strided_slice %1625 {offsets = [0, 3], sizes = [2, 1], strides = [1, 1]} : vector<2x8xf32> to vector<2x1xf32>
    %1647 = vector.extract_strided_slice %205 {offsets = [3, 0], sizes = [1, 24], strides = [1, 1]} : vector<8x24xf32> to vector<1x24xf32>
    %1648 = vector.broadcast %1646 : vector<2x1xf32> to vector<2x24xf32>
    %1649 = vector.broadcast %1647 : vector<1x24xf32> to vector<2x24xf32>
    %1650 = arith.mulf %1648, %1649 : vector<2x24xf32>
    %1651 = arith.addf %1645, %1650 : vector<2x24xf32>
    %1652 = vector.extract_strided_slice %1625 {offsets = [0, 4], sizes = [2, 1], strides = [1, 1]} : vector<2x8xf32> to vector<2x1xf32>
    %1653 = vector.extract_strided_slice %205 {offsets = [4, 0], sizes = [1, 24], strides = [1, 1]} : vector<8x24xf32> to vector<1x24xf32>
    %1654 = vector.broadcast %1652 : vector<2x1xf32> to vector<2x24xf32>
    %1655 = vector.broadcast %1653 : vector<1x24xf32> to vector<2x24xf32>
    %1656 = arith.mulf %1654, %1655 : vector<2x24xf32>
    %1657 = arith.addf %1651, %1656 : vector<2x24xf32>
    %1658 = vector.extract_strided_slice %1625 {offsets = [0, 5], sizes = [2, 1], strides = [1, 1]} : vector<2x8xf32> to vector<2x1xf32>
    %1659 = vector.extract_strided_slice %205 {offsets = [5, 0], sizes = [1, 24], strides = [1, 1]} : vector<8x24xf32> to vector<1x24xf32>
    %1660 = vector.broadcast %1658 : vector<2x1xf32> to vector<2x24xf32>
    %1661 = vector.broadcast %1659 : vector<1x24xf32> to vector<2x24xf32>
    %1662 = arith.mulf %1660, %1661 : vector<2x24xf32>
    %1663 = arith.addf %1657, %1662 : vector<2x24xf32>
    %1664 = vector.extract_strided_slice %1625 {offsets = [0, 6], sizes = [2, 1], strides = [1, 1]} : vector<2x8xf32> to vector<2x1xf32>
    %1665 = vector.extract_strided_slice %205 {offsets = [6, 0], sizes = [1, 24], strides = [1, 1]} : vector<8x24xf32> to vector<1x24xf32>
    %1666 = vector.broadcast %1664 : vector<2x1xf32> to vector<2x24xf32>
    %1667 = vector.broadcast %1665 : vector<1x24xf32> to vector<2x24xf32>
    %1668 = arith.mulf %1666, %1667 : vector<2x24xf32>
    %1669 = arith.addf %1663, %1668 : vector<2x24xf32>
    %1670 = vector.extract_strided_slice %1625 {offsets = [0, 7], sizes = [2, 1], strides = [1, 1]} : vector<2x8xf32> to vector<2x1xf32>
    %1671 = vector.extract_strided_slice %205 {offsets = [7, 0], sizes = [1, 24], strides = [1, 1]} : vector<8x24xf32> to vector<1x24xf32>
    %1672 = vector.broadcast %1670 : vector<2x1xf32> to vector<2x24xf32>
    %1673 = vector.broadcast %1671 : vector<1x24xf32> to vector<2x24xf32>
    %1674 = arith.mulf %1672, %1673 : vector<2x24xf32>
    %1675 = arith.addf %1669, %1674 : vector<2x24xf32>
    %1676 = vector.extract_strided_slice %1598 {offsets = [0, 24], sizes = [2, 24], strides = [1, 1]} : vector<2x48xf32> to vector<2x24xf32>
    %1677 = vector.extract_strided_slice %1675 {offsets = [0, 0], sizes = [2, 8], strides = [1, 1]} : vector<2x24xf32> to vector<2x8xf32>
    %1678 = vector.extract_strided_slice %1676 {offsets = [0, 0], sizes = [2, 8], strides = [1, 1]} : vector<2x24xf32> to vector<2x8xf32>
    %1679 = arith.addf %1677, %1678 : vector<2x8xf32>
    %1680 = arith.negf %1679 : vector<2x8xf32>
    %1681 = math.exp %1680 : vector<2x8xf32>
    %cst_250 = arith.constant 1.000000e+00 : f32
    %1682 = vector.broadcast %cst_250 : f32 to vector<2x8xf32>
    %1683 = arith.addf %1682, %1681 : vector<2x8xf32>
    %1684 = arith.divf %1682, %1683 : vector<2x8xf32>
    %1685 = vector.extract_strided_slice %1675 {offsets = [0, 8], sizes = [2, 8], strides = [1, 1]} : vector<2x24xf32> to vector<2x8xf32>
    %1686 = vector.extract_strided_slice %1676 {offsets = [0, 8], sizes = [2, 8], strides = [1, 1]} : vector<2x24xf32> to vector<2x8xf32>
    %1687 = arith.addf %1685, %1686 : vector<2x8xf32>
    %1688 = arith.negf %1687 : vector<2x8xf32>
    %1689 = math.exp %1688 : vector<2x8xf32>
    %cst_251 = arith.constant 1.000000e+00 : f32
    %1690 = vector.broadcast %cst_251 : f32 to vector<2x8xf32>
    %1691 = arith.addf %1690, %1689 : vector<2x8xf32>
    %1692 = arith.divf %1690, %1691 : vector<2x8xf32>
    %1693 = vector.extract_strided_slice %1675 {offsets = [0, 16], sizes = [2, 8], strides = [1, 1]} : vector<2x24xf32> to vector<2x8xf32>
    %1694 = vector.extract_strided_slice %1676 {offsets = [0, 16], sizes = [2, 8], strides = [1, 1]} : vector<2x24xf32> to vector<2x8xf32>
    %1695 = arith.mulf %1684, %1694 : vector<2x8xf32>
    %1696 = arith.addf %1693, %1695 : vector<2x8xf32>
    %1697 = math.tanh %1696 : vector<2x8xf32>
    %cst_252 = arith.constant 1.000000e+00 : f32
    %1698 = vector.broadcast %cst_252 : f32 to vector<2x8xf32>
    %1699 = arith.subf %1698, %1692 : vector<2x8xf32>
    %1700 = arith.mulf %1699, %1697 : vector<2x8xf32>
    %1701 = arith.mulf %1692, %1488 : vector<2x8xf32>
    %1702 = arith.addf %1700, %1701 : vector<2x8xf32>
    %cst_253 = arith.constant 6.000000e+00 : f32
    %1703 = vector.broadcast %cst_253 : f32 to vector<2x1xf32>
    %1704 = arith.subf %211, %1703 : vector<2x1xf32>
    %1705 = math.absf %1704 : vector<2x1xf32>
    %cst_254 = arith.constant 5.000000e-01 : f32
    %1706 = vector.broadcast %cst_254 : f32 to vector<2x1xf32>
    %1707 = arith.cmpf olt, %1705, %1706 : vector<2x1xf32>
    %1708 = arith.extui %1707 : vector<2x1xi1> to vector<2x1xi32>
    %1709 = arith.sitofp %1708 : vector<2x1xi32> to vector<2x1xf32>
    %1710 = vector.broadcast %1709 : vector<2x1xf32> to vector<2x8xf32>
    %1711 = arith.mulf %1710, %1702 : vector<2x8xf32>
    %1712 = arith.addf %1498, %1711 : vector<2x8xf32>
    %1713 = vector.extract_strided_slice %29 {offsets = [14, 0], sizes = [2, 24], strides = [1, 1]} : vector<16x24xf32> to vector<2x24xf32>
    %1714 = tpu.concatenate %1625, %1702 in 1 : vector<2x8xf32>, vector<2x8xf32> -> vector<2x16xf32>
    %1715 = vector.shape_cast %204 : vector<1x48xf32> to vector<1x48xf32>
    %1716 = vector.broadcast %1715 : vector<1x48xf32> to vector<2x48xf32>
    %1717 = vector.extract_strided_slice %1714 {offsets = [0, 0], sizes = [2, 1], strides = [1, 1]} : vector<2x16xf32> to vector<2x1xf32>
    %1718 = vector.extract_strided_slice %203 {offsets = [0, 0], sizes = [1, 48], strides = [1, 1]} : vector<16x48xf32> to vector<1x48xf32>
    %1719 = vector.broadcast %1717 : vector<2x1xf32> to vector<2x48xf32>
    %1720 = vector.broadcast %1718 : vector<1x48xf32> to vector<2x48xf32>
    %1721 = arith.mulf %1719, %1720 : vector<2x48xf32>
    %1722 = arith.addf %1716, %1721 : vector<2x48xf32>
    %1723 = vector.extract_strided_slice %1714 {offsets = [0, 1], sizes = [2, 1], strides = [1, 1]} : vector<2x16xf32> to vector<2x1xf32>
    %1724 = vector.extract_strided_slice %203 {offsets = [1, 0], sizes = [1, 48], strides = [1, 1]} : vector<16x48xf32> to vector<1x48xf32>
    %1725 = vector.broadcast %1723 : vector<2x1xf32> to vector<2x48xf32>
    %1726 = vector.broadcast %1724 : vector<1x48xf32> to vector<2x48xf32>
    %1727 = arith.mulf %1725, %1726 : vector<2x48xf32>
    %1728 = arith.addf %1722, %1727 : vector<2x48xf32>
    %1729 = vector.extract_strided_slice %1714 {offsets = [0, 2], sizes = [2, 1], strides = [1, 1]} : vector<2x16xf32> to vector<2x1xf32>
    %1730 = vector.extract_strided_slice %203 {offsets = [2, 0], sizes = [1, 48], strides = [1, 1]} : vector<16x48xf32> to vector<1x48xf32>
    %1731 = vector.broadcast %1729 : vector<2x1xf32> to vector<2x48xf32>
    %1732 = vector.broadcast %1730 : vector<1x48xf32> to vector<2x48xf32>
    %1733 = arith.mulf %1731, %1732 : vector<2x48xf32>
    %1734 = arith.addf %1728, %1733 : vector<2x48xf32>
    %1735 = vector.extract_strided_slice %1714 {offsets = [0, 3], sizes = [2, 1], strides = [1, 1]} : vector<2x16xf32> to vector<2x1xf32>
    %1736 = vector.extract_strided_slice %203 {offsets = [3, 0], sizes = [1, 48], strides = [1, 1]} : vector<16x48xf32> to vector<1x48xf32>
    %1737 = vector.broadcast %1735 : vector<2x1xf32> to vector<2x48xf32>
    %1738 = vector.broadcast %1736 : vector<1x48xf32> to vector<2x48xf32>
    %1739 = arith.mulf %1737, %1738 : vector<2x48xf32>
    %1740 = arith.addf %1734, %1739 : vector<2x48xf32>
    %1741 = vector.extract_strided_slice %1714 {offsets = [0, 4], sizes = [2, 1], strides = [1, 1]} : vector<2x16xf32> to vector<2x1xf32>
    %1742 = vector.extract_strided_slice %203 {offsets = [4, 0], sizes = [1, 48], strides = [1, 1]} : vector<16x48xf32> to vector<1x48xf32>
    %1743 = vector.broadcast %1741 : vector<2x1xf32> to vector<2x48xf32>
    %1744 = vector.broadcast %1742 : vector<1x48xf32> to vector<2x48xf32>
    %1745 = arith.mulf %1743, %1744 : vector<2x48xf32>
    %1746 = arith.addf %1740, %1745 : vector<2x48xf32>
    %1747 = vector.extract_strided_slice %1714 {offsets = [0, 5], sizes = [2, 1], strides = [1, 1]} : vector<2x16xf32> to vector<2x1xf32>
    %1748 = vector.extract_strided_slice %203 {offsets = [5, 0], sizes = [1, 48], strides = [1, 1]} : vector<16x48xf32> to vector<1x48xf32>
    %1749 = vector.broadcast %1747 : vector<2x1xf32> to vector<2x48xf32>
    %1750 = vector.broadcast %1748 : vector<1x48xf32> to vector<2x48xf32>
    %1751 = arith.mulf %1749, %1750 : vector<2x48xf32>
    %1752 = arith.addf %1746, %1751 : vector<2x48xf32>
    %1753 = vector.extract_strided_slice %1714 {offsets = [0, 6], sizes = [2, 1], strides = [1, 1]} : vector<2x16xf32> to vector<2x1xf32>
    %1754 = vector.extract_strided_slice %203 {offsets = [6, 0], sizes = [1, 48], strides = [1, 1]} : vector<16x48xf32> to vector<1x48xf32>
    %1755 = vector.broadcast %1753 : vector<2x1xf32> to vector<2x48xf32>
    %1756 = vector.broadcast %1754 : vector<1x48xf32> to vector<2x48xf32>
    %1757 = arith.mulf %1755, %1756 : vector<2x48xf32>
    %1758 = arith.addf %1752, %1757 : vector<2x48xf32>
    %1759 = vector.extract_strided_slice %1714 {offsets = [0, 7], sizes = [2, 1], strides = [1, 1]} : vector<2x16xf32> to vector<2x1xf32>
    %1760 = vector.extract_strided_slice %203 {offsets = [7, 0], sizes = [1, 48], strides = [1, 1]} : vector<16x48xf32> to vector<1x48xf32>
    %1761 = vector.broadcast %1759 : vector<2x1xf32> to vector<2x48xf32>
    %1762 = vector.broadcast %1760 : vector<1x48xf32> to vector<2x48xf32>
    %1763 = arith.mulf %1761, %1762 : vector<2x48xf32>
    %1764 = arith.addf %1758, %1763 : vector<2x48xf32>
    %1765 = vector.extract_strided_slice %1714 {offsets = [0, 8], sizes = [2, 1], strides = [1, 1]} : vector<2x16xf32> to vector<2x1xf32>
    %1766 = vector.extract_strided_slice %203 {offsets = [8, 0], sizes = [1, 48], strides = [1, 1]} : vector<16x48xf32> to vector<1x48xf32>
    %1767 = vector.broadcast %1765 : vector<2x1xf32> to vector<2x48xf32>
    %1768 = vector.broadcast %1766 : vector<1x48xf32> to vector<2x48xf32>
    %1769 = arith.mulf %1767, %1768 : vector<2x48xf32>
    %1770 = arith.addf %1764, %1769 : vector<2x48xf32>
    %1771 = vector.extract_strided_slice %1714 {offsets = [0, 9], sizes = [2, 1], strides = [1, 1]} : vector<2x16xf32> to vector<2x1xf32>
    %1772 = vector.extract_strided_slice %203 {offsets = [9, 0], sizes = [1, 48], strides = [1, 1]} : vector<16x48xf32> to vector<1x48xf32>
    %1773 = vector.broadcast %1771 : vector<2x1xf32> to vector<2x48xf32>
    %1774 = vector.broadcast %1772 : vector<1x48xf32> to vector<2x48xf32>
    %1775 = arith.mulf %1773, %1774 : vector<2x48xf32>
    %1776 = arith.addf %1770, %1775 : vector<2x48xf32>
    %1777 = vector.extract_strided_slice %1714 {offsets = [0, 10], sizes = [2, 1], strides = [1, 1]} : vector<2x16xf32> to vector<2x1xf32>
    %1778 = vector.extract_strided_slice %203 {offsets = [10, 0], sizes = [1, 48], strides = [1, 1]} : vector<16x48xf32> to vector<1x48xf32>
    %1779 = vector.broadcast %1777 : vector<2x1xf32> to vector<2x48xf32>
    %1780 = vector.broadcast %1778 : vector<1x48xf32> to vector<2x48xf32>
    %1781 = arith.mulf %1779, %1780 : vector<2x48xf32>
    %1782 = arith.addf %1776, %1781 : vector<2x48xf32>
    %1783 = vector.extract_strided_slice %1714 {offsets = [0, 11], sizes = [2, 1], strides = [1, 1]} : vector<2x16xf32> to vector<2x1xf32>
    %1784 = vector.extract_strided_slice %203 {offsets = [11, 0], sizes = [1, 48], strides = [1, 1]} : vector<16x48xf32> to vector<1x48xf32>
    %1785 = vector.broadcast %1783 : vector<2x1xf32> to vector<2x48xf32>
    %1786 = vector.broadcast %1784 : vector<1x48xf32> to vector<2x48xf32>
    %1787 = arith.mulf %1785, %1786 : vector<2x48xf32>
    %1788 = arith.addf %1782, %1787 : vector<2x48xf32>
    %1789 = vector.extract_strided_slice %1714 {offsets = [0, 12], sizes = [2, 1], strides = [1, 1]} : vector<2x16xf32> to vector<2x1xf32>
    %1790 = vector.extract_strided_slice %203 {offsets = [12, 0], sizes = [1, 48], strides = [1, 1]} : vector<16x48xf32> to vector<1x48xf32>
    %1791 = vector.broadcast %1789 : vector<2x1xf32> to vector<2x48xf32>
    %1792 = vector.broadcast %1790 : vector<1x48xf32> to vector<2x48xf32>
    %1793 = arith.mulf %1791, %1792 : vector<2x48xf32>
    %1794 = arith.addf %1788, %1793 : vector<2x48xf32>
    %1795 = vector.extract_strided_slice %1714 {offsets = [0, 13], sizes = [2, 1], strides = [1, 1]} : vector<2x16xf32> to vector<2x1xf32>
    %1796 = vector.extract_strided_slice %203 {offsets = [13, 0], sizes = [1, 48], strides = [1, 1]} : vector<16x48xf32> to vector<1x48xf32>
    %1797 = vector.broadcast %1795 : vector<2x1xf32> to vector<2x48xf32>
    %1798 = vector.broadcast %1796 : vector<1x48xf32> to vector<2x48xf32>
    %1799 = arith.mulf %1797, %1798 : vector<2x48xf32>
    %1800 = arith.addf %1794, %1799 : vector<2x48xf32>
    %1801 = vector.extract_strided_slice %1714 {offsets = [0, 14], sizes = [2, 1], strides = [1, 1]} : vector<2x16xf32> to vector<2x1xf32>
    %1802 = vector.extract_strided_slice %203 {offsets = [14, 0], sizes = [1, 48], strides = [1, 1]} : vector<16x48xf32> to vector<1x48xf32>
    %1803 = vector.broadcast %1801 : vector<2x1xf32> to vector<2x48xf32>
    %1804 = vector.broadcast %1802 : vector<1x48xf32> to vector<2x48xf32>
    %1805 = arith.mulf %1803, %1804 : vector<2x48xf32>
    %1806 = arith.addf %1800, %1805 : vector<2x48xf32>
    %1807 = vector.extract_strided_slice %1714 {offsets = [0, 15], sizes = [2, 1], strides = [1, 1]} : vector<2x16xf32> to vector<2x1xf32>
    %1808 = vector.extract_strided_slice %203 {offsets = [15, 0], sizes = [1, 48], strides = [1, 1]} : vector<16x48xf32> to vector<1x48xf32>
    %1809 = vector.broadcast %1807 : vector<2x1xf32> to vector<2x48xf32>
    %1810 = vector.broadcast %1808 : vector<1x48xf32> to vector<2x48xf32>
    %1811 = arith.mulf %1809, %1810 : vector<2x48xf32>
    %1812 = arith.addf %1806, %1811 : vector<2x48xf32>
    %1813 = vector.extract_strided_slice %1812 {offsets = [0, 0], sizes = [2, 24], strides = [1, 1]} : vector<2x48xf32> to vector<2x24xf32>
    %1814 = vector.extract_strided_slice %1713 {offsets = [0, 0], sizes = [2, 8], strides = [1, 1]} : vector<2x24xf32> to vector<2x8xf32>
    %1815 = vector.extract_strided_slice %1813 {offsets = [0, 0], sizes = [2, 8], strides = [1, 1]} : vector<2x24xf32> to vector<2x8xf32>
    %1816 = arith.addf %1814, %1815 : vector<2x8xf32>
    %1817 = arith.negf %1816 : vector<2x8xf32>
    %1818 = math.exp %1817 : vector<2x8xf32>
    %cst_255 = arith.constant 1.000000e+00 : f32
    %1819 = vector.broadcast %cst_255 : f32 to vector<2x8xf32>
    %1820 = arith.addf %1819, %1818 : vector<2x8xf32>
    %1821 = arith.divf %1819, %1820 : vector<2x8xf32>
    %1822 = vector.extract_strided_slice %1713 {offsets = [0, 8], sizes = [2, 8], strides = [1, 1]} : vector<2x24xf32> to vector<2x8xf32>
    %1823 = vector.extract_strided_slice %1813 {offsets = [0, 8], sizes = [2, 8], strides = [1, 1]} : vector<2x24xf32> to vector<2x8xf32>
    %1824 = arith.addf %1822, %1823 : vector<2x8xf32>
    %1825 = arith.negf %1824 : vector<2x8xf32>
    %1826 = math.exp %1825 : vector<2x8xf32>
    %cst_256 = arith.constant 1.000000e+00 : f32
    %1827 = vector.broadcast %cst_256 : f32 to vector<2x8xf32>
    %1828 = arith.addf %1827, %1826 : vector<2x8xf32>
    %1829 = arith.divf %1827, %1828 : vector<2x8xf32>
    %1830 = vector.extract_strided_slice %1713 {offsets = [0, 16], sizes = [2, 8], strides = [1, 1]} : vector<2x24xf32> to vector<2x8xf32>
    %1831 = vector.extract_strided_slice %1813 {offsets = [0, 16], sizes = [2, 8], strides = [1, 1]} : vector<2x24xf32> to vector<2x8xf32>
    %1832 = arith.mulf %1821, %1831 : vector<2x8xf32>
    %1833 = arith.addf %1830, %1832 : vector<2x8xf32>
    %1834 = math.tanh %1833 : vector<2x8xf32>
    %cst_257 = arith.constant 1.000000e+00 : f32
    %1835 = vector.broadcast %cst_257 : f32 to vector<2x8xf32>
    %1836 = arith.subf %1835, %1829 : vector<2x8xf32>
    %1837 = arith.mulf %1836, %1834 : vector<2x8xf32>
    %1838 = arith.mulf %1829, %1625 : vector<2x8xf32>
    %1839 = arith.addf %1837, %1838 : vector<2x8xf32>
    %1840 = vector.shape_cast %206 : vector<1x24xf32> to vector<1x24xf32>
    %1841 = vector.broadcast %1840 : vector<1x24xf32> to vector<2x24xf32>
    %1842 = vector.extract_strided_slice %1839 {offsets = [0, 0], sizes = [2, 1], strides = [1, 1]} : vector<2x8xf32> to vector<2x1xf32>
    %1843 = vector.extract_strided_slice %205 {offsets = [0, 0], sizes = [1, 24], strides = [1, 1]} : vector<8x24xf32> to vector<1x24xf32>
    %1844 = vector.broadcast %1842 : vector<2x1xf32> to vector<2x24xf32>
    %1845 = vector.broadcast %1843 : vector<1x24xf32> to vector<2x24xf32>
    %1846 = arith.mulf %1844, %1845 : vector<2x24xf32>
    %1847 = arith.addf %1841, %1846 : vector<2x24xf32>
    %1848 = vector.extract_strided_slice %1839 {offsets = [0, 1], sizes = [2, 1], strides = [1, 1]} : vector<2x8xf32> to vector<2x1xf32>
    %1849 = vector.extract_strided_slice %205 {offsets = [1, 0], sizes = [1, 24], strides = [1, 1]} : vector<8x24xf32> to vector<1x24xf32>
    %1850 = vector.broadcast %1848 : vector<2x1xf32> to vector<2x24xf32>
    %1851 = vector.broadcast %1849 : vector<1x24xf32> to vector<2x24xf32>
    %1852 = arith.mulf %1850, %1851 : vector<2x24xf32>
    %1853 = arith.addf %1847, %1852 : vector<2x24xf32>
    %1854 = vector.extract_strided_slice %1839 {offsets = [0, 2], sizes = [2, 1], strides = [1, 1]} : vector<2x8xf32> to vector<2x1xf32>
    %1855 = vector.extract_strided_slice %205 {offsets = [2, 0], sizes = [1, 24], strides = [1, 1]} : vector<8x24xf32> to vector<1x24xf32>
    %1856 = vector.broadcast %1854 : vector<2x1xf32> to vector<2x24xf32>
    %1857 = vector.broadcast %1855 : vector<1x24xf32> to vector<2x24xf32>
    %1858 = arith.mulf %1856, %1857 : vector<2x24xf32>
    %1859 = arith.addf %1853, %1858 : vector<2x24xf32>
    %1860 = vector.extract_strided_slice %1839 {offsets = [0, 3], sizes = [2, 1], strides = [1, 1]} : vector<2x8xf32> to vector<2x1xf32>
    %1861 = vector.extract_strided_slice %205 {offsets = [3, 0], sizes = [1, 24], strides = [1, 1]} : vector<8x24xf32> to vector<1x24xf32>
    %1862 = vector.broadcast %1860 : vector<2x1xf32> to vector<2x24xf32>
    %1863 = vector.broadcast %1861 : vector<1x24xf32> to vector<2x24xf32>
    %1864 = arith.mulf %1862, %1863 : vector<2x24xf32>
    %1865 = arith.addf %1859, %1864 : vector<2x24xf32>
    %1866 = vector.extract_strided_slice %1839 {offsets = [0, 4], sizes = [2, 1], strides = [1, 1]} : vector<2x8xf32> to vector<2x1xf32>
    %1867 = vector.extract_strided_slice %205 {offsets = [4, 0], sizes = [1, 24], strides = [1, 1]} : vector<8x24xf32> to vector<1x24xf32>
    %1868 = vector.broadcast %1866 : vector<2x1xf32> to vector<2x24xf32>
    %1869 = vector.broadcast %1867 : vector<1x24xf32> to vector<2x24xf32>
    %1870 = arith.mulf %1868, %1869 : vector<2x24xf32>
    %1871 = arith.addf %1865, %1870 : vector<2x24xf32>
    %1872 = vector.extract_strided_slice %1839 {offsets = [0, 5], sizes = [2, 1], strides = [1, 1]} : vector<2x8xf32> to vector<2x1xf32>
    %1873 = vector.extract_strided_slice %205 {offsets = [5, 0], sizes = [1, 24], strides = [1, 1]} : vector<8x24xf32> to vector<1x24xf32>
    %1874 = vector.broadcast %1872 : vector<2x1xf32> to vector<2x24xf32>
    %1875 = vector.broadcast %1873 : vector<1x24xf32> to vector<2x24xf32>
    %1876 = arith.mulf %1874, %1875 : vector<2x24xf32>
    %1877 = arith.addf %1871, %1876 : vector<2x24xf32>
    %1878 = vector.extract_strided_slice %1839 {offsets = [0, 6], sizes = [2, 1], strides = [1, 1]} : vector<2x8xf32> to vector<2x1xf32>
    %1879 = vector.extract_strided_slice %205 {offsets = [6, 0], sizes = [1, 24], strides = [1, 1]} : vector<8x24xf32> to vector<1x24xf32>
    %1880 = vector.broadcast %1878 : vector<2x1xf32> to vector<2x24xf32>
    %1881 = vector.broadcast %1879 : vector<1x24xf32> to vector<2x24xf32>
    %1882 = arith.mulf %1880, %1881 : vector<2x24xf32>
    %1883 = arith.addf %1877, %1882 : vector<2x24xf32>
    %1884 = vector.extract_strided_slice %1839 {offsets = [0, 7], sizes = [2, 1], strides = [1, 1]} : vector<2x8xf32> to vector<2x1xf32>
    %1885 = vector.extract_strided_slice %205 {offsets = [7, 0], sizes = [1, 24], strides = [1, 1]} : vector<8x24xf32> to vector<1x24xf32>
    %1886 = vector.broadcast %1884 : vector<2x1xf32> to vector<2x24xf32>
    %1887 = vector.broadcast %1885 : vector<1x24xf32> to vector<2x24xf32>
    %1888 = arith.mulf %1886, %1887 : vector<2x24xf32>
    %1889 = arith.addf %1883, %1888 : vector<2x24xf32>
    %1890 = vector.extract_strided_slice %1812 {offsets = [0, 24], sizes = [2, 24], strides = [1, 1]} : vector<2x48xf32> to vector<2x24xf32>
    %1891 = vector.extract_strided_slice %1889 {offsets = [0, 0], sizes = [2, 8], strides = [1, 1]} : vector<2x24xf32> to vector<2x8xf32>
    %1892 = vector.extract_strided_slice %1890 {offsets = [0, 0], sizes = [2, 8], strides = [1, 1]} : vector<2x24xf32> to vector<2x8xf32>
    %1893 = arith.addf %1891, %1892 : vector<2x8xf32>
    %1894 = arith.negf %1893 : vector<2x8xf32>
    %1895 = math.exp %1894 : vector<2x8xf32>
    %cst_258 = arith.constant 1.000000e+00 : f32
    %1896 = vector.broadcast %cst_258 : f32 to vector<2x8xf32>
    %1897 = arith.addf %1896, %1895 : vector<2x8xf32>
    %1898 = arith.divf %1896, %1897 : vector<2x8xf32>
    %1899 = vector.extract_strided_slice %1889 {offsets = [0, 8], sizes = [2, 8], strides = [1, 1]} : vector<2x24xf32> to vector<2x8xf32>
    %1900 = vector.extract_strided_slice %1890 {offsets = [0, 8], sizes = [2, 8], strides = [1, 1]} : vector<2x24xf32> to vector<2x8xf32>
    %1901 = arith.addf %1899, %1900 : vector<2x8xf32>
    %1902 = arith.negf %1901 : vector<2x8xf32>
    %1903 = math.exp %1902 : vector<2x8xf32>
    %cst_259 = arith.constant 1.000000e+00 : f32
    %1904 = vector.broadcast %cst_259 : f32 to vector<2x8xf32>
    %1905 = arith.addf %1904, %1903 : vector<2x8xf32>
    %1906 = arith.divf %1904, %1905 : vector<2x8xf32>
    %1907 = vector.extract_strided_slice %1889 {offsets = [0, 16], sizes = [2, 8], strides = [1, 1]} : vector<2x24xf32> to vector<2x8xf32>
    %1908 = vector.extract_strided_slice %1890 {offsets = [0, 16], sizes = [2, 8], strides = [1, 1]} : vector<2x24xf32> to vector<2x8xf32>
    %1909 = arith.mulf %1898, %1908 : vector<2x8xf32>
    %1910 = arith.addf %1907, %1909 : vector<2x8xf32>
    %1911 = math.tanh %1910 : vector<2x8xf32>
    %cst_260 = arith.constant 1.000000e+00 : f32
    %1912 = vector.broadcast %cst_260 : f32 to vector<2x8xf32>
    %1913 = arith.subf %1912, %1906 : vector<2x8xf32>
    %1914 = arith.mulf %1913, %1911 : vector<2x8xf32>
    %1915 = arith.mulf %1906, %1702 : vector<2x8xf32>
    %1916 = arith.addf %1914, %1915 : vector<2x8xf32>
    %cst_261 = arith.constant 7.000000e+00 : f32
    %1917 = vector.broadcast %cst_261 : f32 to vector<2x1xf32>
    %1918 = arith.subf %211, %1917 : vector<2x1xf32>
    %1919 = math.absf %1918 : vector<2x1xf32>
    %cst_262 = arith.constant 5.000000e-01 : f32
    %1920 = vector.broadcast %cst_262 : f32 to vector<2x1xf32>
    %1921 = arith.cmpf olt, %1919, %1920 : vector<2x1xf32>
    %1922 = arith.extui %1921 : vector<2x1xi1> to vector<2x1xi32>
    %1923 = arith.sitofp %1922 : vector<2x1xi32> to vector<2x1xf32>
    %1924 = vector.broadcast %1923 : vector<2x1xf32> to vector<2x8xf32>
    %1925 = arith.mulf %1924, %1916 : vector<2x8xf32>
    %1926 = arith.addf %1712, %1925 : vector<2x8xf32>
    %1927 = tpu.concatenate %1926, %193, %199, %202 in 1 : vector<2x8xf32>, vector<2x8xf32>, vector<2x8xf32>, vector<2x8xf32> -> vector<2x32xf32>
    %cst_263 = arith.constant 5.000000e-01 : f32
    %1928 = vector.broadcast %cst_263 : f32 to vector<2x32xf32>
    %1929 = arith.mulf %1928, %1927 : vector<2x32xf32>
    %cst_264 = arith.constant 0.707106769 : f32
    %1930 = vector.broadcast %cst_264 : f32 to vector<2x32xf32>
    %1931 = arith.mulf %1927, %1930 : vector<2x32xf32>
    %cst_265 = arith.constant 0.000000e+00 : f32
    %1932 = vector.broadcast %cst_265 : f32 to vector<2x32xf32>
    %1933 = arith.cmpf oge, %1931, %1932 : vector<2x32xf32>
    %cst_266 = arith.constant 1.000000e+00 : f32
    %cst_267 = arith.constant -1.000000e+00 : f32
    %1934 = vector.broadcast %cst_266 : f32 to vector<2x32xf32>
    %1935 = vector.broadcast %cst_267 : f32 to vector<2x32xf32>
    %1936 = arith.select %1933, %1934, %1935 : vector<2x32xi1>, vector<2x32xf32>
    %1937 = math.absf %1931 : vector<2x32xf32>
    %cst_268 = arith.constant 0.327591091 : f32
    %1938 = vector.broadcast %cst_268 : f32 to vector<2x32xf32>
    %1939 = arith.mulf %1938, %1937 : vector<2x32xf32>
    %cst_269 = arith.constant 1.000000e+00 : f32
    %1940 = vector.broadcast %cst_269 : f32 to vector<2x32xf32>
    %1941 = arith.addf %1940, %1939 : vector<2x32xf32>
    %cst_270 = arith.constant 1.000000e+00 : f32
    %1942 = vector.broadcast %cst_270 : f32 to vector<2x32xf32>
    %1943 = arith.divf %1942, %1941 : vector<2x32xf32>
    %cst_271 = arith.constant 1.06140542 : f32
    %1944 = vector.broadcast %cst_271 : f32 to vector<2x32xf32>
    %1945 = arith.mulf %1944, %1943 : vector<2x32xf32>
    %cst_272 = arith.constant -1.45315206 : f32
    %1946 = vector.broadcast %cst_272 : f32 to vector<2x32xf32>
    %1947 = arith.addf %1945, %1946 : vector<2x32xf32>
    %1948 = arith.mulf %1947, %1943 : vector<2x32xf32>
    %cst_273 = arith.constant 1.42141378 : f32
    %1949 = vector.broadcast %cst_273 : f32 to vector<2x32xf32>
    %1950 = arith.addf %1948, %1949 : vector<2x32xf32>
    %1951 = arith.mulf %1950, %1943 : vector<2x32xf32>
    %cst_274 = arith.constant -0.284496725 : f32
    %1952 = vector.broadcast %cst_274 : f32 to vector<2x32xf32>
    %1953 = arith.addf %1951, %1952 : vector<2x32xf32>
    %1954 = arith.mulf %1953, %1943 : vector<2x32xf32>
    %cst_275 = arith.constant 0.254829586 : f32
    %1955 = vector.broadcast %cst_275 : f32 to vector<2x32xf32>
    %1956 = arith.addf %1954, %1955 : vector<2x32xf32>
    %1957 = arith.mulf %1956, %1943 : vector<2x32xf32>
    %cst_276 = arith.constant 0.000000e+00 : f32
    %1958 = vector.broadcast %cst_276 : f32 to vector<2x32xf32>
    %1959 = arith.subf %1958, %1937 : vector<2x32xf32>
    %1960 = arith.mulf %1959, %1937 : vector<2x32xf32>
    %1961 = math.exp %1960 : vector<2x32xf32>
    %1962 = arith.mulf %1957, %1961 : vector<2x32xf32>
    %cst_277 = arith.constant 1.000000e+00 : f32
    %1963 = vector.broadcast %cst_277 : f32 to vector<2x32xf32>
    %1964 = arith.subf %1963, %1962 : vector<2x32xf32>
    %1965 = arith.mulf %1936, %1964 : vector<2x32xf32>
    %cst_278 = arith.constant 1.000000e+00 : f32
    %1966 = vector.broadcast %cst_278 : f32 to vector<2x32xf32>
    %1967 = arith.addf %1966, %1965 : vector<2x32xf32>
    %1968 = arith.mulf %1929, %1967 : vector<2x32xf32>
    %c160 = arith.constant 160 : index
    %c0_279 = arith.constant 0 : index
    %1969 = vector.load %arg3[%c160, %c0_279] : memref<224x128xf32, #tpu.memory_space<vmem>>, vector<32x8xf32>
    %cst_280 = arith.constant dense<0.000000e+00> : vector<2x8xf32>
    %1970 = tpu.matmul %1968, %1969, %cst_280 {dimension_numbers = #tpu.dot_dimension_numbers<[1], [0], [0], [1], [0, 0, 1, 1], [], []>} : vector<2x32xf32>, vector<32x8xf32>, vector<2x8xf32> -> vector<2x8xf32>
    %c192 = arith.constant 192 : index
    %c0_281 = arith.constant 0 : index
    %1971 = vector.load %arg3[%c192, %c0_281] : memref<224x128xf32, #tpu.memory_space<vmem>>, vector<1x8xf32>
    %1972 = vector.broadcast %1971 : vector<1x8xf32> to vector<2x8xf32>
    %1973 = arith.addf %1970, %1972 : vector<2x8xf32>
    %cst_282 = arith.constant 5.000000e-01 : f32
    %1974 = vector.broadcast %cst_282 : f32 to vector<2x8xf32>
    %1975 = arith.mulf %1974, %1973 : vector<2x8xf32>
    %cst_283 = arith.constant 0.707106769 : f32
    %1976 = vector.broadcast %cst_283 : f32 to vector<2x8xf32>
    %1977 = arith.mulf %1973, %1976 : vector<2x8xf32>
    %cst_284 = arith.constant 0.000000e+00 : f32
    %1978 = vector.broadcast %cst_284 : f32 to vector<2x8xf32>
    %1979 = arith.cmpf oge, %1977, %1978 : vector<2x8xf32>
    %cst_285 = arith.constant 1.000000e+00 : f32
    %cst_286 = arith.constant -1.000000e+00 : f32
    %1980 = vector.broadcast %cst_285 : f32 to vector<2x8xf32>
    %1981 = vector.broadcast %cst_286 : f32 to vector<2x8xf32>
    %1982 = arith.select %1979, %1980, %1981 : vector<2x8xi1>, vector<2x8xf32>
    %1983 = math.absf %1977 : vector<2x8xf32>
    %cst_287 = arith.constant 0.327591091 : f32
    %1984 = vector.broadcast %cst_287 : f32 to vector<2x8xf32>
    %1985 = arith.mulf %1984, %1983 : vector<2x8xf32>
    %cst_288 = arith.constant 1.000000e+00 : f32
    %1986 = vector.broadcast %cst_288 : f32 to vector<2x8xf32>
    %1987 = arith.addf %1986, %1985 : vector<2x8xf32>
    %cst_289 = arith.constant 1.000000e+00 : f32
    %1988 = vector.broadcast %cst_289 : f32 to vector<2x8xf32>
    %1989 = arith.divf %1988, %1987 : vector<2x8xf32>
    %cst_290 = arith.constant 1.06140542 : f32
    %1990 = vector.broadcast %cst_290 : f32 to vector<2x8xf32>
    %1991 = arith.mulf %1990, %1989 : vector<2x8xf32>
    %cst_291 = arith.constant -1.45315206 : f32
    %1992 = vector.broadcast %cst_291 : f32 to vector<2x8xf32>
    %1993 = arith.addf %1991, %1992 : vector<2x8xf32>
    %1994 = arith.mulf %1993, %1989 : vector<2x8xf32>
    %cst_292 = arith.constant 1.42141378 : f32
    %1995 = vector.broadcast %cst_292 : f32 to vector<2x8xf32>
    %1996 = arith.addf %1994, %1995 : vector<2x8xf32>
    %1997 = arith.mulf %1996, %1989 : vector<2x8xf32>
    %cst_293 = arith.constant -0.284496725 : f32
    %1998 = vector.broadcast %cst_293 : f32 to vector<2x8xf32>
    %1999 = arith.addf %1997, %1998 : vector<2x8xf32>
    %2000 = arith.mulf %1999, %1989 : vector<2x8xf32>
    %cst_294 = arith.constant 0.254829586 : f32
    %2001 = vector.broadcast %cst_294 : f32 to vector<2x8xf32>
    %2002 = arith.addf %2000, %2001 : vector<2x8xf32>
    %2003 = arith.mulf %2002, %1989 : vector<2x8xf32>
    %cst_295 = arith.constant 0.000000e+00 : f32
    %2004 = vector.broadcast %cst_295 : f32 to vector<2x8xf32>
    %2005 = arith.subf %2004, %1983 : vector<2x8xf32>
    %2006 = arith.mulf %2005, %1983 : vector<2x8xf32>
    %2007 = math.exp %2006 : vector<2x8xf32>
    %2008 = arith.mulf %2003, %2007 : vector<2x8xf32>
    %cst_296 = arith.constant 1.000000e+00 : f32
    %2009 = vector.broadcast %cst_296 : f32 to vector<2x8xf32>
    %2010 = arith.subf %2009, %2008 : vector<2x8xf32>
    %2011 = arith.mulf %1982, %2010 : vector<2x8xf32>
    %cst_297 = arith.constant 1.000000e+00 : f32
    %2012 = vector.broadcast %cst_297 : f32 to vector<2x8xf32>
    %2013 = arith.addf %2012, %2011 : vector<2x8xf32>
    %2014 = arith.mulf %1975, %2013 : vector<2x8xf32>
    %c200 = arith.constant 200 : index
    %c0_298 = arith.constant 0 : index
    %2015 = vector.load %arg3[%c200, %c0_298] : memref<224x128xf32, #tpu.memory_space<vmem>>, vector<8x4xf32>
    %cst_299 = arith.constant dense<0.000000e+00> : vector<2x4xf32>
    %2016 = tpu.matmul %2014, %2015, %cst_299 {dimension_numbers = #tpu.dot_dimension_numbers<[1], [0], [0], [1], [0, 0, 1, 1], [], []>} : vector<2x8xf32>, vector<8x4xf32>, vector<2x4xf32> -> vector<2x4xf32>
    %c208 = arith.constant 208 : index
    %c0_300 = arith.constant 0 : index
    %2017 = vector.load %arg3[%c208, %c0_300] : memref<224x128xf32, #tpu.memory_space<vmem>>, vector<1x4xf32>
    %2018 = vector.broadcast %2017 : vector<1x4xf32> to vector<2x4xf32>
    %2019 = arith.addf %2016, %2018 : vector<2x4xf32>
    %2020 = math.exp %2019 : vector<2x4xf32>
    %c0_301 = arith.constant 0 : index
    %c0_302 = arith.constant 0 : index
    %2021 = vector.load %arg4[%c0_301, %c0_302] : memref<2x4xf32, #tpu.memory_space<vmem>>, vector<2x4xf32>
    tpu.vector_store %arg4[%c0_301, %c0_302], %2020 {strides = array<i32>} : memref<2x4xf32, #tpu.memory_space<vmem>>, vector<2x4xf32>,
    return
  }
}

</mosaic_0001>

<bundles_post_ra>
// kernel: tpu_custom_call.1
= control target key start
LH: loop header
LB: loop body
LE: loop exit
PB: predicated region body
PF: predicated region fallthrough
CT: control target
= control target key end

     0   :  { %9 = vsyncpa [#allocation3], 0  ;;  %s7717_s0 = inlined_call_operand.hbm [shape: f32[64,128], index: 0, kind: input, shape index: {}]   ;;  %s7718_s1 = inlined_call_operand.hbm [shape: bf16[2,10240], index: 1, kind: input, shape index: {}]   ;;  %s7719_s2 = inlined_call_operand.hbm [shape: bf16[8,10240], index: 2, kind: input, shape index: {}]   ;;  %s7720_s3 = inlined_call_operand.hbm [shape: f32[224,128], index: 3, kind: input, shape index: {}]   ;;  %s7721_s4 = inlined_call_operand.hbm [shape: f32[2,4], index: 4, kind: output, shape index: {}]  }
   0x1   :  { %10 = vsyncpa [#allocation6], 0 }
   0x2   :  { %11 = vsyncpa [#allocation9], 0 }
   0x3   :  { %12 = vsyncpa [#allocation4], 0  ;;  %s6731_s15 = smov [#allocation5]   ;;  %s6732_s17 = smov [#allocation2]  }
   0x4   :  { %s31_s16 = sshll.u32 %s6731_s15, 4  ;;  %s18_s18 = sshll.u32 %s6732_s17, 4  ;;  %s32_s16 = int_to_ptr.vmem [resolvable:$true] %s31_s16  ;;  %s19_s18 = int_to_ptr.vmem [resolvable:$true] %s18_s18 }
   0x5   :  { %s6631_s19 = scalar_lea.vmem %s32_s16, 1280  ;;  %p6636_p1 = scmp.lt.s32.totalorder %s32_s16, %s32_s16 }
   0x6   :  { %p6632_p0 = scmp.ne.s32.totalorder %s32_s16, %s6631_s19  ;;  %p6637_p2 = scmp.lt.s32.totalorder %s6631_s19, %s6631_s19 }
   0x8   :  { %p6638_p3 = por %p6637_p2, %p6636_p1 }
   0xa   :  { %p6639_p4 = pnand %p6638_p3, %p6632_p0 }
   0xc   :  { %6642 = shalt.err (!%p6639_p4)
}
   0xd   :  { %34 = dma.hbm_to_vmem [thread:$0]  %s7718_s1, 1280, %s32_s16, [#allocation6]  }
   0xe   :  { %s6651_s22 = scalar_lea.vmem %s19_s18, 1024  ;;  %p6656_p6 = scmp.lt.s32.totalorder %s19_s18, %s19_s18 }
   0xf   :  { %p6652_p5 = scmp.ne.s32.totalorder %s19_s18, %s6651_s22  ;;  %p6657_p7 = scmp.lt.s32.totalorder %s6651_s22, %s6651_s22 }
  0x11   :  { %p6658_p8 = por %p6657_p7, %p6656_p6 }
  0x13   :  { %p6659_p9 = pnand %p6658_p8, %p6652_p5 }
  0x15   :  { %6662 = shalt.err (!%p6659_p9)
}
  0x16   :  { %s6733_s23 = smov 128   ;;  %s6734_s24 = smov 8  }
  0x17   :  { %24 = dma.hbm_to_vmem [thread:$0]  %s7717_s0, 1024, %s19_s18, [#allocation3], %s6733_s23, %s6733_s23, %s6734_s24  }
  0x18   :  { %s6735_s27 = smov [#allocation7]   ;;  %s6736_s29 = smov [#allocation8]  }
  0x19   :  { %s41_s28 = sshll.u32 %s6735_s27, 4  ;;  %s50_s30 = sshll.u32 %s6736_s29, 4  ;;  %s42_s28 = int_to_ptr.vmem [resolvable:$true] %s41_s28  ;;  %s51_s30 = int_to_ptr.vmem [resolvable:$true] %s50_s30 }
  0x1a   :  { %s6671_s1 = scalar_lea.vmem %s42_s28, 5120  ;;  %p6676_p11 = scmp.lt.s32.totalorder %s42_s28, %s42_s28 }
  0x1b   :  { %p6672_p10 = scmp.ne.s32.totalorder %s42_s28, %s6671_s1  ;;  %p6677_p12 = scmp.lt.s32.totalorder %s6671_s1, %s6671_s1 }
  0x1d   :  { %p6678_p13 = por %p6677_p12, %p6676_p11 }
  0x1f   :  { %p6679_p0 = pnand %p6678_p13, %p6672_p10 }
  0x21   :  { %6682 = shalt.err (!%p6679_p0)
}
  0x22   :  { %44 = dma.hbm_to_vmem [thread:$0]  %s7719_s2, 5120, %s42_s28, [#allocation6]  }
  0x23   :  { %s6691_s7 = scalar_lea.vmem %s51_s30, 3584  ;;  %p6696_p2 = scmp.lt.s32.totalorder %s51_s30, %s51_s30 }
  0x24   :  { %p6692_p1 = scmp.ne.s32.totalorder %s51_s30, %s6691_s7  ;;  %p6697_p3 = scmp.lt.s32.totalorder %s6691_s7, %s6691_s7 }
  0x26   :  { %p6698_p4 = por %p6697_p3, %p6696_p2 }
  0x28   :  { %p6699_p5 = pnand %p6698_p4, %p6692_p1 }
  0x2a   :  { %6702 = shalt.err (!%p6699_p5)
}
  0x2b   :  { %56 = dma.hbm_to_vmem [thread:$0]  %s7720_s3, 3584, %s51_s30, [#allocation9], %s6733_s23, %s6733_s23, %s6734_s24  }
  0x2c   :  { %6723 = dma.done.wait [#allocation3], 1024  }
  0x2d   :  { %6724 = vsyncadd [#allocation3], 4294966272 }
  0x2e   :  { %6725 = dma.done.wait [#allocation6], 6400  }
  0x2f   :  { %6726 = vsyncadd [#allocation6], 4294960896 }
  0x30   :  { %6727 = dma.done.wait [#allocation9], 3584  }
  0x31   :  { %6728 = vsyncadd [#allocation9], 4294963712  ;;  %v7722_v0 = vmov 0.0   ;;  %vm6738_vm0 = vmmov 0   ;;  %vm79_vm1 = vcmask 64512   ;;  %v169_v1 = vld [vmem:[#allocation8 + $0x30] sm:$0xff]  ;;  %v594_v63 = vlaneseq }
  0x32   :  { %6134 = vmatprep.subr.mxu1 %v7722_v0  ;;  %6136 = vmatprep.mubr.msk.f32.mxu1 %vm6738_vm0, %v7722_v0  ;;  %v70_v2 = vld [vmem:[#allocation2 + $0x28] sm:$0xff]  ;;  %v73_v3 = vld [vmem:[#allocation8 + $0x20] sm:$0xff]  ;;  %v72_v5 = vld [vmem:[#allocation2 + $0x38] sm:$0x7]  ;;  %vm353_vm2 = vcmask 154624   ;;  %vm360_vm3 = vcmask 149504  }
  0x33   :  { %6123 = vmatprep.subr.mxu0 %v7722_v0  ;;  %6125 = vmatprep.mubr.msk.f32.mxu0 %vm6738_vm0, %v7722_v0  ;;  %v71_v4 = vld [vmem:[#allocation2 + $0x30] sm:$0xff]  ;;  %v5904_v14 = vld [vmem:[#allocation8 + $0x38] ss:$0 sm:$0xff]  ;;  %v5900_v21 = vld [vmem:[#allocation8 + $0x28] ss:$0 sm:$0xff]  ;;  %vm403_vm4 = vcmask 1042432  }
  0x34   :  { %6135 = vmatpush3.msra.mxu1 %v169_v1  ;;  %6124 = vmatpush3.msra.mxu0 %v73_v3  ;;  %v390_v50 = vld [vmem:[#allocation8 + $0x50] sm:$0x7]  ;;  %v389_v51 = vld [vmem:[#allocation8 + $0x48] sm:$0xff]  ;;  %v388_v52 = vld [vmem:[#allocation8 + $0x40] sm:$0xff]  ;;  %v6858_v1 = vshrl.u32 %v594_v63, 7  ;;  %s6739_s2 = smov 112  }
  0x35   :  { %6137 = vmatmul.mubr.msk.f32.vlgmr.msra.gmra.mxu1 %vm79_vm1, %v70_v2  ;;  %6126 = vmatmul.mubr.msk.f32.vlgmr.msra.gmra.mxu0 %vm79_vm1, %v70_v2  ;;  %v487_v62 = vld [vmem:[#allocation2 + $0x18] sm:$0xff]  ;;  %v3747_v2 = vld [vmem:[#allocation8 + $0x78] sm:$0xff]  ;;  %s6740_s3 = smov 16   ;;  %s6743_s9 = smov 120   ;;  %vm3753_vm5 = vcmask 58368   ;;  %vm3589_vm6 = vcmask 23552  }
  0x36   :  { %6139 = vmatprep.mubr.msk.f32.mxu1 %vm6738_vm0, %v7722_v0  ;;  %6128 = vmatprep.mubr.msk.f32.mxu0 %vm6738_vm0, %v7722_v0  ;;  %v6861_v3 = vsub.s32 0, %v6858_v1  ;;  %s6750_s10 = smov 104   ;;  %s6751_s11 = smov 88   ;;  %vm3673_vm7 = vcmask 1044480   ;;  %vm3669_vm8 = vcmask 105472  }
  0x37   :  { %6145 = vmatprep.subr.mxu0 %v7722_v0  ;;  %6160 = vmatprep.subr.mxu1 %v7722_v0  ;;  %s6761_s12 = smov 24   ;;  %s6763_s13 = smov [#allocation10]  }
  0x38   :  { %6161 = vmatpush3.msk.msra.mxu1 %vm403_vm4, %v390_v50  ;;  %s5889_s14 = sshll.u32 %s6763_s13, 4  ;;  %s5890_s14 = int_to_ptr.vmem [resolvable:$true] %s5889_s14 }
  0x39   :  { %6140 = vmatmul.mubr.msk.f32.gmra.mxu1 %vm79_vm1, %v71_v4  ;;  %6129 = vmatmul.mubr.msk.f32.gmra.mxu0 %vm79_vm1, %v71_v4  ;;  %v6864_v4 = vsub.s32 1, %v6858_v1  ;;  %s6703_s15 = scalar_lea.vmem %s5890_s14, 32  ;;  %p6708_p7 = scmp.lt.s32.totalorder %s5890_s14, %s5890_s14 }
  0x3a   :  { %6142 = vmatprep.mubr.msk.f32.mxu1 %vm6738_vm0, %v7722_v0  ;;  %6131 = vmatprep.mubr.msk.f32.mxu0 %vm6738_vm0, %v7722_v0  ;;  %p6704_p6 = scmp.ne.s32.totalorder %s5890_s14, %s6703_s15  ;;  %p6709_p8 = scmp.lt.s32.totalorder %s6703_s15, %s6703_s15 }
  0x3b   :  { %6162 = vmatprep.subr.mxu1 %v7722_v0 }
  0x3c   :  { %6163 = vmatpush3.msra.mxu1 %v389_v51  ;;  %p6710_p9 = por %p6709_p8, %p6708_p7 }
  0x3d   :  { %6143 = vmatmul.mubr.msk.f32.gmra.mxu1 %vm79_vm1, %v72_v5  ;;  %6132 = vmatmul.mubr.msk.f32.gmra.mxu0 %vm79_vm1, %v72_v5  ;;  %v6867_v5 = vsub.s32 2, %v6858_v1 }
  0x3e   :  { %6166 = vmatprep.mubr.msk.f32.mxu1 %vm6738_vm0, %v7722_v0  ;;  %6151 = vmatprep.mubr.msk.f32.mxu0 %vm6738_vm0, %v7722_v0  ;;  %p6711_p10 = pnand %p6710_p9, %p6704_p6 }
  0x3f   :  { %6164 = vmatprep.subr.mxu1 %v7722_v0 }
  0x40   :  { %6165 = vmatpush3.msra.mxu1 %v388_v52 }
  0xf5   :  { %v241_v6 = vpop.f32.mrf.mxu1  ;;  %v155_v7 = vpop.f32.mrf.mxu0 }
  0xf6   :  { %v242_v22 = vadd.f32 %v5904_v14, %v241_v6  ;;  %v156_v23 = vadd.f32 %v5900_v21, %v155_v7  ;;  %v6870_v6 = vsub.s32 3, %v6858_v1  ;;  %v6873_v7 = vrot.slane %v3747_v2, %v6861_v3 }
  0xf7   :  { %v6138_v8 = vpop.f32.mrf.mxu1  ;;  %v6127_v9 = vpop.f32.mrf.mxu0 }
  0xf8   :  { %v6876_v8 = vrot.slane %v3747_v2, %v6864_v4  ;;  %v6879_v9 = vrot.slane %v3747_v2, %v6867_v5 }
  0xf9   :  { %v246_v10 = vpop.f32.mrf.mxu1  ;;  %v160_v11 = vpop.f32.mrf.mxu0 }
  0xfa   :  { %v247_v20 = vadd.f32 %v5904_v14, %v246_v10  ;;  %v161_v24 = vadd.f32 %v5900_v21, %v160_v11  ;;  %v6882_v10 = vsub.s32 4, %v6858_v1  ;;  %v6884_v11 = vld [vmem:[#allocation8 + $0x88] ss:$0 sm:$0xff] }
  0xfb   :  { %v6141_v12 = vpop.f32.mrf.mxu1  ;;  %v6130_v13 = vpop.f32.mrf.mxu0 }
  0xfc   :  { %v3771_v12 = vmul.f32 0.0, %v6873_v7  ;;  %v3781_v13 = vmul.f32 0.0, %v6876_v8 }
  0xfd   :  { %v251_v15 = vpop.f32.mrf.mxu1  ;;  %v165_v17 = vpop.f32.mrf.mxu0 }
  0xfe   :  { %v252_v16 = vadd.f32 %v5904_v14, %v251_v15  ;;  %v166_v25 = vadd.f32 %v5900_v21, %v165_v17  ;;  %v6889_v14 = vrot.slane %v3747_v2, %v6870_v6  ;;  %v6892_v15 = vsub.s32 5, %v6858_v1 }
  0xff   :  { %v6144_v18 = vpop.f32.mrf.mxu1  ;;  %v6133_v19 = vpop.f32.mrf.mxu0  ;;  %v3791_v17 = vmul.f32 0.0, %v6879_v9 }
 0x100   :  { %6146 = vmatpush3.xpose.msk.msra.mxu0 %vm79_vm1, %v252_v16  ;;  %v3772_v16 = vadd.f32 %v6884_v11, %v3771_v12  ;;  %v6897_v18 = vrot.slane %v3747_v2, %v6882_v10  ;;  %v6900_v19 = vsub.s32 6, %v6858_v1  ;;  %v3801_v21 = vmul.f32 0.0, %v6889_v14  ;;  %v393_v12 = vld [vmem:[#allocation8 + $0x68] sm:$0x7] }
 0x101   :  { %6147 = vmatprep.subr.mxu0 %v7722_v0 }
 0x104   :  { %6148 = vmatpush3.xpose.msk.msra.mxu0 %vm79_vm1, %v247_v20  ;;  %v3782_v20 = vadd.f32 %v3781_v13, %v3772_v16  ;;  %v392_v13 = vld [vmem:[#allocation8 + $0x60] sm:$0xff] }
 0x105   :  { %6149 = vmatprep.subr.mxu0 %v7722_v0 }
 0x108   :  { %6150 = vmatpush3.xpose.msk.msra.mxu0 %vm79_vm1, %v242_v22  ;;  %v6904_v22 = vrot.slane %v3747_v2, %v6892_v15 }
 0x10b   :  { %6152 = vmatmul.mubr.msk.f32.vlgmr.msra.gmra.mxu0 %vm79_vm1, %v156_v23  ;;  %v6907_v23 = vsub.s32 7, %v6858_v1 }
 0x10c   :  { %6154 = vmatprep.mubr.msk.f32.mxu0 %vm6738_vm0, %v7722_v0 }
 0x10f   :  { %6155 = vmatmul.mubr.msk.f32.gmra.mxu0 %vm79_vm1, %v161_v24  ;;  %v3792_v24 = vadd.f32 %v3791_v17, %v3782_v20  ;;  %v391_v20 = vld [vmem:[#allocation8 + $0x58] sm:$0xff] }
 0x110   :  { %6157 = vmatprep.mubr.msk.f32.mxu0 %vm6738_vm0, %v7722_v0 }
 0x113   :  { %6158 = vmatmul.mubr.msk.f32.gmra.mxu0 %vm79_vm1, %v166_v25  ;;  %v3811_v25 = vmul.f32 0.0, %v6897_v18 }
 0x114   :  { %6181 = vmatprep.mubr.msk.f32.mxu0 %vm353_vm2, %v487_v62 }
 0x1cb   :  { %v339_v26 = vpop.f32.mrf.mxu0 }
 0x1cc   :  { %v354_v27 = vsel %vm353_vm2, %v339_v26, -inf }
 0x1cd   :  { %355 = vmax.xlane.f32.xlu0 %v354_v27  ;;  %v6153_v28 = vpop.f32.mrf.mxu0  ;;  %v3748_v27 = vld [vmem:[#allocation8 + $0x80] sm:$0xff] }
 0x1ce   :  { %v3802_v28 = vadd.f32 %v3801_v21, %v3792_v24  ;;  %v6943_v51 = vrot.slane %v3748_v27, %v6900_v19 }
 0x1cf   :  { %v344_v29 = vpop.f32.mrf.mxu0 }
 0x1d0   :  { %v357_v30 = vsel %vm353_vm2, %v344_v29, -inf }
 0x1d1   :  { %358 = vmax.xlane.f32.xlu0 %v357_v30  ;;  %v6156_v31 = vpop.f32.mrf.mxu0  ;;  %v6915_v30 = vrot.slane %v3747_v2, %v6907_v23 }
 0x1d2   :  { %v3812_v31 = vadd.f32 %v3811_v25, %v3802_v28  ;;  %v5918_v28 = vld [vmem:[#allocation8 + $0x70] ss:$0 sm:$0xff] }
 0x1d3   :  { %v349_v32 = vpop.f32.mrf.mxu0 }
 0x1d4   :  { %v361_v33 = vsel %vm360_vm3, %v349_v32, -inf }
 0x1d5   :  { %362 = vmax.xlane.f32.xlu1 %v361_v33  ;;  %v6159_v34 = vpop.f32.mrf.mxu0  ;;  %v6919_v33 = vrot.slane %v3748_v27, %v6861_v3 }
 0x256   :  { %v356_v35 = vpop.xlane.xlu0 %355 }
 0x257   :  { %v364_v36 = vsub.f32 %v339_v26, %v356_v35  ;;  %v6911_v26 = vrot.slane %v3747_v2, %v6900_v19  ;;  %v3841_v35 = vmul.f32 0.0, %v6915_v30 }
 0x259   :  { %v367_v37 = vmul.f32 1.442695, %v364_v36  ;;  %v6923_v36 = vrot.slane %v3748_v27, %v6864_v4 }
 0x25a   :  { %v359_v38 = vpop.xlane.xlu0 %358 }
 0x25b   :  { %6501 = vpow2.f32 %v367_v37  ;;  %v365_v39 = vsub.f32 %v344_v29, %v359_v38  ;;  %v3821_v29 = vmul.f32 0.0, %v6904_v22  ;;  %v3851_v38 = vmul.f32 0.0, %v6919_v33 }
 0x25d   :  { %v369_v40 = vmul.f32 1.442695, %v365_v39  ;;  %v3822_v34 = vadd.f32 %v3821_v29, %v3812_v31  ;;  %v6927_v39 = vrot.slane %v3748_v27, %v6867_v5 }
 0x25e   :  { %v363_v41 = vpop.xlane.xlu1 %362 }
 0x25f   :  { %6503 = vpow2.f32 %v369_v40  ;;  %v366_v42 = vsub.f32 %v349_v32, %v363_v41  ;;  %v3831_v32 = vmul.f32 0.0, %v6911_v26  ;;  %v3861_v41 = vmul.f32 0.0, %v6923_v36 }
 0x261   :  { %v371_v43 = vmul.f32 1.442695, %v366_v42  ;;  %v3832_v37 = vadd.f32 %v3831_v32, %v3822_v34  ;;  %v6931_v42 = vrot.slane %v3748_v27, %v6870_v6 }
 0x263   :  { %6505 = vpow2.f32 %v371_v43  ;;  %v3842_v40 = vadd.f32 %v3841_v35, %v3832_v37 }
 0x265   :  { %v3852_v43 = vadd.f32 %v3851_v38, %v3842_v40 }
 0x268   :  { %v6502_v44 = vpop.eup %6501 }
 0x269   :  { %v373_v45 = vsel %vm353_vm2, %v6502_v44, 0.0 }
 0x26a   :  { %374 = vadd.xlane.f32.xlu1 %v373_v45  ;;  %v6935_v45 = vrot.slane %v3748_v27, %v6882_v10 }
 0x26c   :  { %v6504_v46 = vpop.eup %6503  ;;  %v3891_v50 = vmul.f32 0.0, %v6935_v45 }
 0x26d   :  { %v376_v47 = vsel %vm353_vm2, %v6504_v46, 0.0 }
 0x26e   :  { %377 = vadd.xlane.f32.xlu0 %v376_v47  ;;  %v3881_v47 = vmul.f32 0.0, %v6931_v42 }
 0x270   :  { %v6506_v48 = vpop.eup %6505 }
 0x271   :  { %v379_v49 = vsel %vm360_vm3, %v6506_v48, 0.0  ;;  %vm5661_vm3 = vcmask 195584  }
 0x272   :  { %380 = vadd.xlane.f32.xlu1 %v379_v49 }
 0x2f3   :  { %v375_v53 = vpop.xlane.xlu1 %374 }
 0x2f4   :  { %6507 = vrcp.f32 %v375_v53 }
 0x2f7   :  { %v378_v54 = vpop.xlane.xlu0 %377 }
 0x2f8   :  { %6509 = vrcp.f32 %v378_v54  ;;  %v6947_v54 = vrot.slane %v3748_v27, %v6907_v23 }
 0x2fb   :  { %v381_v55 = vpop.xlane.xlu1 %380 }
 0x2fc   :  { %6511 = vrcp.f32 %v381_v55 }
 0x301   :  { %v6508_v56 = vpop.eup %6507 }
 0x302   :  { %v383_v57 = vmul.f32 %v6508_v56, %v6502_v44  ;;  %v3871_v44 = vmul.f32 0.0, %v6927_v39  ;;  %v3911_v56 = vmul.f32 0.0, %v6943_v51 }
 0x304   :  { %6167 = vmatmul.mubr.msk.f32.vlgmr.msra.gmra.mxu1 %vm353_vm2, %v383_v57 }
 0x305   :  { %v6510_v58 = vpop.eup %6509  ;;  %6169 = vmatprep.mubr.msk.f32.mxu1 %vm6738_vm0, %v7722_v0 }
 0x306   :  { %v385_v59 = vmul.f32 %v6510_v58, %v6504_v46  ;;  %v3862_v46 = vadd.f32 %v3861_v41, %v3852_v43  ;;  %v3921_v58 = vmul.f32 0.0, %v6947_v54 }
 0x308   :  { %6170 = vmatmul.mubr.msk.f32.gmra.mxu1 %vm353_vm2, %v385_v59  ;;  %v3872_v49 = vadd.f32 %v3871_v44, %v3862_v46 }
 0x309   :  { %v6512_v60 = vpop.eup %6511  ;;  %6172 = vmatprep.mubr.msk.f32.mxu1 %vm6738_vm0, %v7722_v0 }
 0x30a   :  { %v387_v61 = vmul.f32 %v6512_v60, %v6506_v48  ;;  %v6939_v48 = vrot.slane %v3748_v27, %v6892_v15  ;;  %v3882_v52 = vadd.f32 %v3881_v47, %v3872_v49  ;;  %v488_v27 = vld [vmem:[#allocation2 + $0x20] sm:$0xff]  ;;  %v7724_v49 = vmov 9  }
 0x30b   :  { %6246 = vset.pattern.permute.xlu0 %v7724_v49 }
 0x30c   :  { %6173 = vmatmul.mubr.msk.f32.gmra.mxu1 %vm353_vm2, %v387_v61  ;;  %v3901_v53 = vmul.f32 0.0, %v6939_v48  ;;  %v3892_v55 = vadd.f32 %v3891_v50, %v3882_v52  ;;  %v7726_v50 = vmov 8  }
 0x30d   :  { %6245 = vset.pattern.permute.xlu1 %v7726_v50 }
 0x30e   :  { %v3902_v57 = vadd.f32 %v3901_v53, %v3892_v55 }
 0x310   :  { %v3912_v59 = vadd.f32 %v3911_v56, %v3902_v57 }
 0x312   :  { %v6951_v60 = vadd.f32 %v3921_v58, %v3912_v59  ;;  %v7749_v59 = vmov 12  }
 0x314   :  { %3931 = vrot.lane.b32.xlu0 %v6951_v60, %s6739_s2 }
 0x386   :  { %v3932_v41 = vpop.permute.xlu0 %3931 }
 0x3c4   :  { %v473_v61 = vpop.f32.mrf.mxu1 }
 0x3c5   :  { %v474_v25 = vadd.f32 %v473_v61, %v391_v20  ;;  %v7755_v61 = vmov 10  }
 0x3c6   :  { %v6168_v62 = vpop.f32.mrf.mxu1 }
 0x3c7   :  { %v7747_v62 = vmov 15  }
 0x3c8   :  { %v478_v63 = vpop.f32.mrf.mxu1 }
 0x3c9   :  { %v479_v24 = vadd.f32 %v478_v63, %v392_v13  ;;  %v7753_v63 = vmov 11   ;;  %v3750_v13 = vld [vmem:[#allocation8 + $0x90] sm:$0xff] }
 0x3ca   :  { %v6171_v2 = vpop.f32.mrf.mxu1 }
 0x3cb   :  { %v7751_v2 = vmov 13  }
 0x3cc   :  { %v483_v16 = vpop.f32.mrf.mxu1 }
 0x3cd   :  { %v484_v17 = vadd.f32 %v483_v16, %v393_v12  ;;  %v7745_v12 = vmov 14   ;;  %v6990_v16 = vrot.slane %v3750_v13, %v6861_v3 }
 0x3ce   :  { %v6174_v21 = vpop.f32.mrf.mxu1 }
 0x3cf   :  { %6175 = vmatprep.subr.msk.mxu0 %vm403_vm4, %v484_v17  ;;  %v6995_v21 = vrot.slane %v3750_v13, %v6864_v4  ;;  %v7008_v4 = vrot.slane %v3750_v13, %v6882_v10  ;;  %v7020_v10 = vrot.slane %v3750_v13, %v6907_v23 }
 0x3d0   :  { %6176 = vmatpush3.msk.msra.mxu0 %vm403_vm4, %v484_v17  ;;  %v6992_v17 = vld [vmem:[#allocation8 + $0x98] ss:$0 sm:$0xff] }
 0x3d1   :  { %6177 = vmatprep.subr.mxu0 %v479_v24 }
 0x3d2   :  { %6178 = vmatpush3.msra.mxu0 %v479_v24 }
 0x3d3   :  { %6179 = vmatprep.subr.mxu0 %v474_v25 }
 0x3d4   :  { %6180 = vmatpush3.msra.mxu0 %v474_v25 }
 0x3d5   :  { %6182 = vmatmul.mubr.msk.f32.vlgmr.msra.gmra.mxu0 %vm353_vm2, %v488_v27  ;;  %vm5659_vm2 = vcmask 130048  }
 0x495   :  { %v6183_v29 = vpop.f32.mrf.mxu0 }
 0x496   :  { %v6958_v31 = vadd.f32 %v6183_v29, %v5918_v28 }
 0x497   :  { %v569_v32 = vpop.f32.mrf.mxu0 }
 0x498   :  { %v6960_v34 = vadd.f32 %v5918_v28, %v569_v32  ;;  %v7000_v28 = vrot.slane %v3750_v13, %v6867_v5  ;;  %v7012_v5 = vrot.slane %v3750_v13, %v6892_v15 }
 0x49a   :  { %v3923_v35 = vadd.f32 %v6951_v60, %v6960_v34 }
 0x49c   :  { %v6050_v37 = vmul.f32 -1.442695, %v3923_v35  ;;  %v7005_v35 = vrot.slane %v3750_v13, %v6870_v6  ;;  %v7017_v6 = vrot.slane %v3750_v13, %v6900_v19 }
 0x49e   :  { %6513 = vpow2.f32 %v6050_v37 }
 0x4ab   :  { %v6514_v38 = vpop.eup %6513 }
 0x4ac   :  { %v3927_v40 = vadd.f32 1.0, %v6514_v38 }
 0x4ae   :  { %6515 = vrcp.f32 %v3927_v40 }
 0x4bb   :  { %v6516_v43 = vpop.eup %6515 }
 0x4bc   :  { %v3934_v44 = vmul.f32 %v6516_v43, %v3932_v41  ;;  %v3941_v53 = vsub.f32 1.0, %v6516_v43  ;;  %v3947_v56 = vmul.f32 0.0, %v6516_v43 }
 0x4be   :  { %3936 = vrot.lane.b32.xlu1 %v3934_v44, %s6740_s3 }
 0x530   :  { %v3937_v46 = vpop.permute.xlu1 %3936 }
 0x531   :  { %v3939_v47 = vadd.f32 %v3937_v46, %v6960_v34 }
 0x533   :  { %6517 = vtanh.f32 %v3939_v47 }
 0x540   :  { %v6518_v52 = vpop.eup %6517 }
 0x541   :  { %3943 = vrot.lane.b32.xlu1 %v6518_v52, %s6743_s9 }
 0x5b3   :  { %v3944_v55 = vpop.permute.xlu1 %3943 }
 0x5b4   :  { %v3946_v57 = vmul.f32 %v3944_v55, %v3941_v53 }
 0x5b6   :  { %v6969_v58 = vadd.f32 %v3947_v56, %v3946_v57 }
 0x5b8   :  { %3965 = vperm.xlu0 %6246, %v6969_v58   ;;  %3955 = vperm.xlu1 %6245, %v6969_v58  }
 0x5bc   :  { %6249 = vset.pattern.permute.xlu0 %v7749_v59  ;;  %6247 = vset.pattern.permute.xlu1 %v7755_v61 }
 0x5bd   :  { %3995 = vperm.xlu0 %6249, %v6969_v58   ;;  %3975 = vperm.xlu1 %6247, %v6969_v58  }
 0x5c1   :  { %6252 = vset.pattern.permute.xlu0 %v7747_v62  ;;  %6248 = vset.pattern.permute.xlu1 %v7753_v63 }
 0x5c2   :  { %4025 = vperm.xlu0 %6252, %v6969_v58   ;;  %3985 = vperm.xlu1 %6248, %v6969_v58  }
 0x5c6   :  { %6250 = vset.pattern.permute.xlu1 %v7751_v2 }
 0x5c7   :  { %4005 = vperm.xlu1 %6250, %v6969_v58  }
 0x5cb   :  { %6251 = vset.pattern.permute.xlu1 %v7745_v12 }
 0x5cc   :  { %4015 = vperm.xlu1 %6251, %v6969_v58  }
 0x5d0   :  { %4034 = vrot.lane.b32.xlu1 %v6951_v60, %s6750_s10 }
 0x5d4   :  { %4044 = vrot.lane.b32.xlu1 %v6951_v60, %s6751_s11 }
 0x633   :  { %v3956_v20 = vpop.permute.xlu1 %3955  ;;  %v3966_v25 = vpop.permute.xlu0 %3965 }
 0x634   :  { %v3962_v24 = vmul.f32 %v6990_v16, %v3956_v20  ;;  %v3972_v60 = vmul.f32 %v6995_v21, %v3966_v25 }
 0x636   :  { %v3963_v27 = vadd.f32 %v6992_v17, %v3962_v24 }
 0x638   :  { %v3976_v29 = vpop.permute.xlu1 %3975  ;;  %v3973_v32 = vadd.f32 %v3972_v60, %v3963_v27  ;;  %v3996_v41 = vpop.permute.xlu0 %3995 }
 0x639   :  { %v3982_v3 = vmul.f32 %v7000_v28, %v3976_v29  ;;  %v4002_v44 = vmul.f32 %v7008_v4, %v3996_v41 }
 0x63b   :  { %v3983_v38 = vadd.f32 %v3982_v3, %v3973_v32 }
 0x63d   :  { %v3986_v37 = vpop.permute.xlu1 %3985  ;;  %v4026_v53 = vpop.permute.xlu0 %4025 }
 0x63e   :  { %v3992_v40 = vmul.f32 %v7005_v35, %v3986_v37  ;;  %v4032_v15 = vmul.f32 %v7020_v10, %v4026_v53 }
 0x640   :  { %v3993_v43 = vadd.f32 %v3992_v40, %v3983_v38  ;;  %v7738_v38 = vmov 1   ;;  %v7732_v40 = vmov 0  }
 0x641   :  { %6254 = vset.pattern.permute.xlu0 %v7738_v38  ;;  %6253 = vset.pattern.permute.xlu1 %v7732_v40 }
 0x642   :  { %v4006_v46 = vpop.permute.xlu1 %4005  ;;  %v4003_v47 = vadd.f32 %v4002_v44, %v3993_v43 }
 0x643   :  { %v4012_v52 = vmul.f32 %v7012_v5, %v4006_v46 }
 0x645   :  { %v4013_v56 = vadd.f32 %v4012_v52, %v4003_v47 }
 0x647   :  { %v4016_v55 = vpop.permute.xlu1 %4015 }
 0x648   :  { %v4022_v57 = vmul.f32 %v7017_v6, %v4016_v55 }
 0x64a   :  { %v4023_v20 = vadd.f32 %v4022_v57, %v4013_v56  ;;  %v7743_v56 = vmov 4   ;;  %v7741_v57 = vmov 2  }
 0x64b   :  { %v4035_v24 = vpop.permute.xlu1 %4034 }
 0x64c   :  { %v4033_v25 = vadd.f32 %v4032_v15, %v4023_v20  ;;  %v7736_v15 = vmov 7   ;;  %v7734_v20 = vmov 3  }
 0x64e   :  { %v4037_v27 = vadd.f32 %v4035_v24, %v4033_v25  ;;  %v7730_v24 = vmov 5  }
 0x64f   :  { %v4045_v19 = vpop.permute.xlu1 %4044 }
 0x650   :  { %v6052_v60 = vmul.f32 -1.442695, %v4037_v27 }
 0x652   :  { %6519 = vpow2.f32 %v6052_v60 }
 0x65f   :  { %v6520_v29 = vpop.eup %6519 }
 0x660   :  { %v4041_v32 = vadd.f32 1.0, %v6520_v29 }
 0x662   :  { %6521 = vrcp.f32 %v4041_v32 }
 0x66f   :  { %v6522_v3 = vpop.eup %6521 }
 0x670   :  { %v4047_v23 = vmul.f32 %v6522_v3, %v4045_v19  ;;  %v4054_v43 = vsub.f32 1.0, %v6522_v3  ;;  %v4060_v46 = vmul.f32 0.0, %v6522_v3 }
 0x672   :  { %4049 = vrot.lane.b32.xlu0 %v4047_v23, %s6740_s3 }
 0x676   :  { %4068 = vrot.lane.b32.xlu0 %v6969_v58, %s6743_s9 }
 0x6e4   :  { %v4050_v13 = vpop.permute.xlu0 %4049 }
 0x6e5   :  { %v4052_v37 = vadd.f32 %v4050_v13, %v4033_v25  ;;  %v7728_v25 = vmov 6  }
 0x6e7   :  { %6523 = vtanh.f32 %v4052_v37 }
 0x6e8   :  { %v4069_v53 = vpop.permute.xlu0 %4068 }
 0x6f4   :  { %v6524_v41 = vpop.eup %6523 }
 0x6f5   :  { %4056 = vrot.lane.b32.xlu1 %v6524_v41, %s6743_s9 }
 0x767   :  { %v4057_v44 = vpop.permute.xlu1 %4056 }
 0x768   :  { %v4059_v47 = vmul.f32 %v4057_v44, %v4054_v43 }
 0x76a   :  { %v7030_v52 = vadd.f32 %v4060_v46, %v4059_v47 }
 0x76c   :  { %7759 = vst [vmem:[#allocation15_spill] sm:$0xff] %v7030_v52  ;;  %v4071_v55 = vsel %vm79_vm1, %v4069_v53, %v7030_v52 }
 0x76d   :  { %4080 = vperm.xlu0 %6254, %v4071_v55   ;;  %4074 = vperm.xlu1 %6253, %v4071_v55  }
 0x771   :  { %6257 = vset.pattern.permute.xlu0 %v7743_v56  ;;  %6255 = vset.pattern.permute.xlu1 %v7741_v57 }
 0x772   :  { %4098 = vperm.xlu0 %6257, %v4071_v55   ;;  %4086 = vperm.xlu1 %6255, %v4071_v55  }
 0x776   :  { %6260 = vset.pattern.permute.xlu0 %v7736_v15  ;;  %6256 = vset.pattern.permute.xlu1 %v7734_v20 }
 0x777   :  { %4116 = vperm.xlu0 %6260, %v4071_v55   ;;  %4092 = vperm.xlu1 %6256, %v4071_v55  }
 0x77b   :  { %6263 = vset.pattern.permute.xlu0 %v7755_v61  ;;  %6258 = vset.pattern.permute.xlu1 %v7730_v24 }
 0x77c   :  { %4134 = vperm.xlu0 %6263, %v4071_v55   ;;  %4104 = vperm.xlu1 %6258, %v4071_v55  }
 0x780   :  { %6266 = vset.pattern.permute.xlu0 %v7751_v2  ;;  %6259 = vset.pattern.permute.xlu1 %v7728_v25 }
 0x781   :  { %4152 = vperm.xlu0 %6266, %v4071_v55   ;;  %4110 = vperm.xlu1 %6259, %v4071_v55  }
 0x785   :  { %6261 = vset.pattern.permute.xlu1 %v7726_v50  ;;  %6270 = vset.pattern.permute.xlu0 %v7724_v49 }
 0x786   :  { %4122 = vperm.xlu1 %6261, %v4071_v55  }
 0x78a   :  { %6262 = vset.pattern.permute.xlu1 %v7724_v49 }
 0x78b   :  { %4128 = vperm.xlu1 %6262, %v4071_v55  }
 0x78f   :  { %6264 = vset.pattern.permute.xlu1 %v7753_v63 }
 0x790   :  { %4140 = vperm.xlu1 %6264, %v4071_v55  }
 0x794   :  { %6265 = vset.pattern.permute.xlu1 %v7749_v59 }
 0x795   :  { %4146 = vperm.xlu1 %6265, %v4071_v55  }
 0x799   :  { %6267 = vset.pattern.permute.xlu1 %v7745_v12 }
 0x79a   :  { %4158 = vperm.xlu1 %6267, %v4071_v55  }
 0x79e   :  { %6268 = vset.pattern.permute.xlu1 %v7747_v62 }
 0x79f   :  { %4164 = vperm.xlu1 %6268, %v4071_v55  }
 0x7a3   :  { %6269 = vset.pattern.permute.xlu1 %v7726_v50 }
 0x7e8   :  { %v4075_v27 = vpop.permute.xlu1 %4074  ;;  %v4081_v29 = vpop.permute.xlu0 %4080 }
 0x7e9   :  { %v4077_v60 = vmul.f32 %v4075_v27, %v6873_v7  ;;  %v4083_v19 = vmul.f32 %v4081_v29, %v6876_v8 }
 0x7eb   :  { %v4078_v32 = vadd.f32 %v6884_v11, %v4077_v60 }
 0x7ed   :  { %v4087_v3 = vpop.permute.xlu1 %4086  ;;  %v4084_v23 = vadd.f32 %v4083_v19, %v4078_v32  ;;  %v4099_v44 = vpop.permute.xlu0 %4098 }
 0x7ee   :  { %v4089_v13 = vmul.f32 %v4087_v3, %v6879_v9  ;;  %v4101_v47 = vmul.f32 %v4099_v44, %v6897_v18 }
 0x7f0   :  { %v4090_v41 = vadd.f32 %v4089_v13, %v4084_v23 }
 0x7f2   :  { %v4093_v37 = vpop.permute.xlu1 %4092  ;;  %v4117_v49 = vpop.permute.xlu0 %4116 }
 0x7f3   :  { %v4095_v43 = vmul.f32 %v4093_v37, %v6889_v14  ;;  %v4119_v19 = vmul.f32 %v4117_v49, %v6915_v30 }
 0x7f5   :  { %v4096_v46 = vadd.f32 %v4095_v43, %v4090_v41 }
 0x7f7   :  { %v4105_v53 = vpop.permute.xlu1 %4104  ;;  %v4102_v55 = vadd.f32 %v4101_v47, %v4096_v46  ;;  %v4135_v44 = vpop.permute.xlu0 %4134 }
 0x7f8   :  { %v4107_v27 = vmul.f32 %v4105_v53, %v6904_v22  ;;  %v4137_v47 = vmul.f32 %v4135_v44, %v6927_v39 }
 0x7fa   :  { %v4108_v60 = vadd.f32 %v4107_v27, %v4102_v55 }
 0x7fc   :  { %v4111_v0 = vpop.permute.xlu1 %4110 }
 0x7fd   :  { %v4113_v29 = vmul.f32 %v4111_v0, %v6911_v26 }
 0x7ff   :  { %v4114_v32 = vadd.f32 %v4113_v29, %v4108_v60  ;;  %v4153_v29 = vpop.permute.xlu0 %4152 }
 0x801   :  { %v4123_v3 = vpop.permute.xlu1 %4122  ;;  %v4120_v23 = vadd.f32 %v4119_v19, %v4114_v32  ;;  %v4155_v19 = vmul.f32 %v4153_v29, %v6939_v48 }
 0x802   :  { %v4125_v13 = vmul.f32 %v4123_v3, %v6919_v33 }
 0x804   :  { %v4126_v41 = vadd.f32 %v4125_v13, %v4120_v23 }
 0x806   :  { %v4129_v37 = vpop.permute.xlu1 %4128 }
 0x807   :  { %v4131_v43 = vmul.f32 %v4129_v37, %v6923_v36 }
 0x809   :  { %v4132_v46 = vadd.f32 %v4131_v43, %v4126_v41 }
 0x80b   :  { %v4141_v53 = vpop.permute.xlu1 %4140  ;;  %v4138_v55 = vadd.f32 %v4137_v47, %v4132_v46 }
 0x80c   :  { %v4143_v0 = vmul.f32 %v4141_v53, %v6931_v42 }
 0x80e   :  { %v4144_v60 = vadd.f32 %v4143_v0, %v4138_v55 }
 0x810   :  { %v4147_v27 = vpop.permute.xlu1 %4146 }
 0x811   :  { %v4149_v49 = vmul.f32 %v4147_v27, %v6935_v45 }
 0x813   :  { %v4150_v32 = vadd.f32 %v4149_v49, %v4144_v60 }
 0x815   :  { %v4159_v3 = vpop.permute.xlu1 %4158  ;;  %v4156_v23 = vadd.f32 %v4155_v19, %v4150_v32 }
 0x816   :  { %v4161_v13 = vmul.f32 %v4159_v3, %v6943_v51 }
 0x818   :  { %v4162_v41 = vadd.f32 %v4161_v13, %v4156_v23  ;;  %v4195_v23 = vrot.slane %v6969_v58, 6 }
 0x81a   :  { %v4165_v37 = vpop.permute.xlu1 %4164 }
 0x81b   :  { %v4167_v43 = vmul.f32 %v4165_v37, %v6947_v54 }
 0x81d   :  { %v4168_v44 = vadd.f32 %v4167_v43, %v4162_v41 }
 0x81f   :  { %v4170_v46 = vrot.slane %v4168_v44, 6 }
 0x821   :  { %4179 = vrot.lane.b32.xlu0 %v4170_v46, %s6739_s2  ;;  %v4172_v47 = vadd.f32 %v4170_v46, %v6960_v34 }
 0x823   :  { %v6054_v53 = vmul.f32 -1.442695, %v4172_v47 }
 0x825   :  { %6525 = vpow2.f32 %v6054_v53 }
 0x832   :  { %v6526_v55 = vpop.eup %6525 }
 0x833   :  { %v4176_v0 = vadd.f32 1.0, %v6526_v55 }
 0x835   :  { %6527 = vrcp.f32 %v4176_v0 }
 0x842   :  { %v6528_v27 = vpop.eup %6527 }
 0x843   :  { %v4189_v3 = vsub.f32 1.0, %v6528_v27  ;;  %v4197_v41 = vmul.f32 %v6528_v27, %v4195_v23 }
 0x893   :  { %v4180_v60 = vpop.permute.xlu0 %4179 }
 0x894   :  { %v4182_v49 = vmul.f32 %v6528_v27, %v4180_v60 }
 0x896   :  { %4184 = vrot.lane.b32.xlu1 %v4182_v49, %s6740_s3 }
 0x908   :  { %v4185_v29 = vpop.permute.xlu1 %4184 }
 0x909   :  { %v4187_v32 = vadd.f32 %v4185_v29, %v6960_v34 }
 0x90b   :  { %6529 = vtanh.f32 %v4187_v32 }
 0x918   :  { %v6530_v19 = vpop.eup %6529 }
 0x919   :  { %4191 = vrot.lane.b32.xlu0 %v6530_v19, %s6743_s9 }
 0x98b   :  { %v4192_v13 = vpop.permute.xlu0 %4191 }
 0x98c   :  { %v4194_v37 = vmul.f32 %v4192_v13, %v4189_v3 }
 0x98e   :  { %v7073_v43 = vadd.f32 %v4197_v41, %v4194_v37 }
 0x990   :  { %4207 = vperm.xlu0 %6270, %v7073_v43   ;;  %4201 = vperm.xlu1 %6269, %v7073_v43  }
 0x994   :  { %6273 = vset.pattern.permute.xlu0 %v7749_v59  ;;  %6271 = vset.pattern.permute.xlu1 %v7755_v61 }
 0x995   :  { %4225 = vperm.xlu0 %6273, %v7073_v43   ;;  %4213 = vperm.xlu1 %6271, %v7073_v43  }
 0x999   :  { %6276 = vset.pattern.permute.xlu0 %v7747_v62  ;;  %6272 = vset.pattern.permute.xlu1 %v7753_v63 }
 0x99a   :  { %4243 = vperm.xlu0 %6276, %v7073_v43   ;;  %4219 = vperm.xlu1 %6272, %v7073_v43  }
 0x99e   :  { %6274 = vset.pattern.permute.xlu1 %v7751_v2  ;;  %6278 = vset.pattern.permute.xlu0 %v7738_v38 }
 0x99f   :  { %4231 = vperm.xlu1 %6274, %v7073_v43  }
 0x9a3   :  { %6275 = vset.pattern.permute.xlu1 %v7745_v12 }
 0x9a4   :  { %4237 = vperm.xlu1 %6275, %v7073_v43  }
 0x9a8   :  { %4248 = vrot.lane.b32.xlu1 %v4170_v46, %s6750_s10 }
 0x9a9   :  { %6277 = vset.pattern.permute.xlu1 %v7732_v40 }
 0x9ac   :  { %4258 = vrot.lane.b32.xlu1 %v4170_v46, %s6751_s11 }
 0xa0b   :  { %v4202_v58 = vpop.permute.xlu1 %4201  ;;  %v4208_v47 = vpop.permute.xlu0 %4207 }
 0xa0c   :  { %v4204_v44 = vmul.f32 %v4202_v58, %v6990_v16  ;;  %v4210_v55 = vmul.f32 %v4208_v47, %v6995_v21 }
 0xa0e   :  { %v4205_v53 = vadd.f32 %v6992_v17, %v4204_v44 }
 0xa10   :  { %v4214_v0 = vpop.permute.xlu1 %4213  ;;  %v4211_v27 = vadd.f32 %v4210_v55, %v4205_v53  ;;  %v4226_v19 = vpop.permute.xlu0 %4225 }
 0xa11   :  { %v4216_v60 = vmul.f32 %v4214_v0, %v7000_v28  ;;  %v4228_v46 = vmul.f32 %v4226_v19, %v7008_v4 }
 0xa13   :  { %v4217_v29 = vadd.f32 %v4216_v60, %v4211_v27 }
 0xa15   :  { %v4220_v49 = vpop.permute.xlu1 %4219  ;;  %v4244_v41 = vpop.permute.xlu0 %4243 }
 0xa16   :  { %v4222_v32 = vmul.f32 %v4220_v49, %v7005_v35  ;;  %v4246_v53 = vmul.f32 %v4244_v41, %v7020_v10 }
 0xa18   :  { %v4223_v3 = vadd.f32 %v4222_v32, %v4217_v29 }
 0xa1a   :  { %v4232_v23 = vpop.permute.xlu1 %4231  ;;  %v4229_v13 = vadd.f32 %v4228_v46, %v4223_v3 }
 0xa1b   :  { %v4234_v37 = vmul.f32 %v4232_v23, %v7012_v5 }
 0xa1d   :  { %v4235_v44 = vadd.f32 %v4234_v37, %v4229_v13 }
 0xa1f   :  { %v4238_v58 = vpop.permute.xlu1 %4237 }
 0xa20   :  { %v4240_v47 = vmul.f32 %v4238_v58, %v7017_v6  ;;  %v4275_v58 = vrot.slane %v7030_v52, 6 }
 0xa22   :  { %v4241_v55 = vadd.f32 %v4240_v47, %v4235_v44 }
 0xa23   :  { %v4249_v27 = vpop.permute.xlu1 %4248 }
 0xa24   :  { %v4247_v0 = vadd.f32 %v4246_v53, %v4241_v55 }
 0xa26   :  { %v4251_v60 = vadd.f32 %v4249_v27, %v4247_v0 }
 0xa27   :  { %v4259_v3 = vpop.permute.xlu1 %4258 }
 0xa28   :  { %v6055_v49 = vmul.f32 -1.442695, %v4251_v60 }
 0xa2a   :  { %6531 = vpow2.f32 %v6055_v49 }
 0xa37   :  { %v6532_v29 = vpop.eup %6531 }
 0xa38   :  { %v4255_v32 = vadd.f32 1.0, %v6532_v29 }
 0xa3a   :  { %6533 = vrcp.f32 %v4255_v32 }
 0xa47   :  { %v6534_v19 = vpop.eup %6533 }
 0xa48   :  { %v4261_v46 = vmul.f32 %v6534_v19, %v4259_v3  ;;  %v4268_v41 = vsub.f32 1.0, %v6534_v19  ;;  %v4277_v47 = vmul.f32 %v6534_v19, %v4275_v58 }
 0xa4a   :  { %4263 = vrot.lane.b32.xlu0 %v4261_v46, %s6740_s3 }
 0xa4e   :  { %4295 = vrot.lane.b32.xlu0 %v7073_v43, %s6743_s9 }
 0xabc   :  { %v4264_v23 = vpop.permute.xlu0 %4263 }
 0xabd   :  { %v4266_v13 = vadd.f32 %v4264_v23, %v4247_v0  ;;  %v7760_v0 = vmov 9  }
 0xabf   :  { %6535 = vtanh.f32 %v4266_v13 }
 0xac0   :  { %v4296_v27 = vpop.permute.xlu0 %4295 }
 0xacc   :  { %v6536_v37 = vpop.eup %6535 }
 0xacd   :  { %4270 = vrot.lane.b32.xlu1 %v6536_v37, %s6743_s9 }
 0xb3f   :  { %v4271_v44 = vpop.permute.xlu1 %4270 }
 0xb40   :  { %v4273_v53 = vmul.f32 %v4271_v44, %v4268_v41 }
 0xb42   :  { %v7107_v55 = vadd.f32 %v4277_v47, %v4273_v53 }
 0xb44   :  { %v4298_v60 = vsel %vm79_vm1, %v4296_v27, %v7107_v55 }
 0xb45   :  { %4307 = vperm.xlu0 %6278, %v4298_v60   ;;  %4301 = vperm.xlu1 %6277, %v4298_v60  }
 0xb49   :  { %6281 = vset.pattern.permute.xlu0 %v7743_v56  ;;  %6279 = vset.pattern.permute.xlu1 %v7741_v57 }
 0xb4a   :  { %4325 = vperm.xlu0 %6281, %v4298_v60   ;;  %4313 = vperm.xlu1 %6279, %v4298_v60  }
 0xb4e   :  { %6284 = vset.pattern.permute.xlu0 %v7736_v15  ;;  %6280 = vset.pattern.permute.xlu1 %v7734_v20 }
 0xb4f   :  { %4343 = vperm.xlu0 %6284, %v4298_v60   ;;  %4319 = vperm.xlu1 %6280, %v4298_v60  }
 0xb53   :  { %6287 = vset.pattern.permute.xlu0 %v7755_v61  ;;  %6282 = vset.pattern.permute.xlu1 %v7730_v24 }
 0xb54   :  { %4361 = vperm.xlu0 %6287, %v4298_v60   ;;  %4331 = vperm.xlu1 %6282, %v4298_v60  }
 0xb58   :  { %6290 = vset.pattern.permute.xlu0 %v7751_v2  ;;  %6283 = vset.pattern.permute.xlu1 %v7728_v25 }
 0xb59   :  { %4379 = vperm.xlu0 %6290, %v4298_v60   ;;  %4337 = vperm.xlu1 %6283, %v4298_v60  }
 0xb5d   :  { %6285 = vset.pattern.permute.xlu1 %v7726_v50  ;;  %6294 = vset.pattern.permute.xlu0 %v7760_v0 }
 0xb5e   :  { %4349 = vperm.xlu1 %6285, %v4298_v60  }
 0xb62   :  { %6286 = vset.pattern.permute.xlu1 %v7760_v0 }
 0xb63   :  { %4355 = vperm.xlu1 %6286, %v4298_v60  }
 0xb67   :  { %6288 = vset.pattern.permute.xlu1 %v7753_v63 }
 0xb68   :  { %4367 = vperm.xlu1 %6288, %v4298_v60  }
 0xb6c   :  { %6289 = vset.pattern.permute.xlu1 %v7749_v59 }
 0xb6d   :  { %4373 = vperm.xlu1 %6289, %v4298_v60  }
 0xb71   :  { %6291 = vset.pattern.permute.xlu1 %v7745_v12 }
 0xb72   :  { %4385 = vperm.xlu1 %6291, %v4298_v60  }
 0xb76   :  { %6292 = vset.pattern.permute.xlu1 %v7747_v62 }
 0xb77   :  { %4391 = vperm.xlu1 %6292, %v4298_v60  }
 0xb7b   :  { %6293 = vset.pattern.permute.xlu1 %v7726_v50 }
 0xbc0   :  { %v4302_v49 = vpop.permute.xlu1 %4301  ;;  %v4308_v32 = vpop.permute.xlu0 %4307 }
 0xbc1   :  { %v4304_v29 = vmul.f32 %v4302_v49, %v6873_v7  ;;  %v4310_v3 = vmul.f32 %v4308_v32, %v6876_v8 }
 0xbc3   :  { %v4305_v19 = vadd.f32 %v6884_v11, %v4304_v29 }
 0xbc5   :  { %v4314_v46 = vpop.permute.xlu1 %4313  ;;  %v4311_v23 = vadd.f32 %v4310_v3, %v4305_v19  ;;  %v4326_v44 = vpop.permute.xlu0 %4325 }
 0xbc6   :  { %v4316_v13 = vmul.f32 %v4314_v46, %v6879_v9  ;;  %v4328_v53 = vmul.f32 %v4326_v44, %v6897_v18 }
 0xbc8   :  { %v4317_v41 = vadd.f32 %v4316_v13, %v4311_v23 }
 0xbca   :  { %v4320_v37 = vpop.permute.xlu1 %4319  ;;  %v4344_v32 = vpop.permute.xlu0 %4343 }
 0xbcb   :  { %v4322_v58 = vmul.f32 %v4320_v37, %v6889_v14  ;;  %v4346_v3 = vmul.f32 %v4344_v32, %v6915_v30 }
 0xbcd   :  { %v4323_v47 = vadd.f32 %v4322_v58, %v4317_v41 }
 0xbcf   :  { %v4332_v27 = vpop.permute.xlu1 %4331  ;;  %v4329_v60 = vadd.f32 %v4328_v53, %v4323_v47  ;;  %v4362_v44 = vpop.permute.xlu0 %4361 }
 0xbd0   :  { %v4334_v49 = vmul.f32 %v4332_v27, %v6904_v22  ;;  %v4364_v53 = vmul.f32 %v4362_v44, %v6927_v39 }
 0xbd2   :  { %v4335_v11 = vadd.f32 %v4334_v49, %v4329_v60 }
 0xbd4   :  { %v4338_v50 = vpop.permute.xlu1 %4337  ;;  %v4380_v32 = vpop.permute.xlu0 %4379 }
 0xbd5   :  { %v4340_v29 = vmul.f32 %v4338_v50, %v6911_v26 }
 0xbd7   :  { %v4341_v19 = vadd.f32 %v4340_v29, %v4335_v11 }
 0xbd9   :  { %v4350_v46 = vpop.permute.xlu1 %4349  ;;  %v4347_v23 = vadd.f32 %v4346_v3, %v4341_v19  ;;  %v4382_v3 = vmul.f32 %v4380_v32, %v6939_v48 }
 0xbda   :  { %v4352_v13 = vmul.f32 %v4350_v46, %v6919_v33 }
 0xbdc   :  { %v4353_v41 = vadd.f32 %v4352_v13, %v4347_v23 }
 0xbde   :  { %v4356_v37 = vpop.permute.xlu1 %4355 }
 0xbdf   :  { %v4358_v58 = vmul.f32 %v4356_v37, %v6923_v36 }
 0xbe1   :  { %v4359_v47 = vadd.f32 %v4358_v58, %v4353_v41 }
 0xbe3   :  { %v4368_v27 = vpop.permute.xlu1 %4367  ;;  %v4365_v60 = vadd.f32 %v4364_v53, %v4359_v47 }
 0xbe4   :  { %v4370_v50 = vmul.f32 %v4368_v27, %v6931_v42 }
 0xbe6   :  { %v4371_v11 = vadd.f32 %v4370_v50, %v4365_v60 }
 0xbe8   :  { %v4374_v49 = vpop.permute.xlu1 %4373 }
 0xbe9   :  { %v4376_v29 = vmul.f32 %v4374_v49, %v6935_v45 }
 0xbeb   :  { %v4377_v19 = vadd.f32 %v4376_v29, %v4371_v11 }
 0xbed   :  { %v4386_v46 = vpop.permute.xlu1 %4385  ;;  %v4383_v23 = vadd.f32 %v4382_v3, %v4377_v19 }
 0xbee   :  { %v4388_v13 = vmul.f32 %v4386_v46, %v6943_v51 }
 0xbf0   :  { %v4389_v41 = vadd.f32 %v4388_v13, %v4383_v23  ;;  %v4422_v23 = vrot.slane %v7073_v43, 6 }
 0xbf2   :  { %v4392_v37 = vpop.permute.xlu1 %4391 }
 0xbf3   :  { %v4394_v58 = vmul.f32 %v4392_v37, %v6947_v54 }
 0xbf5   :  { %v4395_v44 = vadd.f32 %v4394_v58, %v4389_v41 }
 0xbf7   :  { %v4397_v47 = vrot.slane %v4395_v44, 6 }
 0xbf9   :  { %4406 = vrot.lane.b32.xlu0 %v4397_v47, %s6739_s2  ;;  %v4399_v53 = vadd.f32 %v4397_v47, %v6960_v34 }
 0xbfb   :  { %v6058_v27 = vmul.f32 -1.442695, %v4399_v53 }
 0xbfd   :  { %6537 = vpow2.f32 %v6058_v27 }
 0xc0a   :  { %v6538_v60 = vpop.eup %6537 }
 0xc0b   :  { %v4403_v50 = vadd.f32 1.0, %v6538_v60 }
 0xc0d   :  { %6539 = vrcp.f32 %v4403_v50 }
 0xc1a   :  { %v6540_v49 = vpop.eup %6539 }
 0xc1b   :  { %v4416_v46 = vsub.f32 1.0, %v6540_v49  ;;  %v4424_v41 = vmul.f32 %v6540_v49, %v4422_v23 }
 0xc6b   :  { %v4407_v11 = vpop.permute.xlu0 %4406 }
 0xc6c   :  { %v4409_v29 = vmul.f32 %v6540_v49, %v4407_v11 }
 0xc6e   :  { %4411 = vrot.lane.b32.xlu1 %v4409_v29, %s6740_s3 }
 0xce0   :  { %v4412_v32 = vpop.permute.xlu1 %4411 }
 0xce1   :  { %v4414_v19 = vadd.f32 %v4412_v32, %v6960_v34 }
 0xce3   :  { %6541 = vtanh.f32 %v4414_v19 }
 0xcf0   :  { %v6542_v3 = vpop.eup %6541 }
 0xcf1   :  { %4418 = vrot.lane.b32.xlu0 %v6542_v3, %s6743_s9 }
 0xd63   :  { %v4419_v13 = vpop.permute.xlu0 %4418 }
 0xd64   :  { %v4421_v37 = vmul.f32 %v4419_v13, %v4416_v46 }
 0xd66   :  { %v7150_v58 = vadd.f32 %v4424_v41, %v4421_v37 }
 0xd68   :  { %4434 = vperm.xlu0 %6294, %v7150_v58   ;;  %4428 = vperm.xlu1 %6293, %v7150_v58  }
 0xd6c   :  { %6297 = vset.pattern.permute.xlu0 %v7749_v59  ;;  %6295 = vset.pattern.permute.xlu1 %v7755_v61 }
 0xd6d   :  { %4452 = vperm.xlu0 %6297, %v7150_v58   ;;  %4440 = vperm.xlu1 %6295, %v7150_v58  }
 0xd71   :  { %6300 = vset.pattern.permute.xlu0 %v7747_v62  ;;  %6296 = vset.pattern.permute.xlu1 %v7753_v63 }
 0xd72   :  { %4470 = vperm.xlu0 %6300, %v7150_v58   ;;  %4446 = vperm.xlu1 %6296, %v7150_v58  }
 0xd76   :  { %6298 = vset.pattern.permute.xlu1 %v7751_v2  ;;  %6302 = vset.pattern.permute.xlu0 %v7738_v38 }
 0xd77   :  { %4458 = vperm.xlu1 %6298, %v7150_v58  }
 0xd7b   :  { %6299 = vset.pattern.permute.xlu1 %v7745_v12 }
 0xd7c   :  { %4464 = vperm.xlu1 %6299, %v7150_v58  }
 0xd80   :  { %4475 = vrot.lane.b32.xlu1 %v4397_v47, %s6750_s10 }
 0xd81   :  { %6301 = vset.pattern.permute.xlu1 %v7732_v40 }
 0xd84   :  { %4485 = vrot.lane.b32.xlu1 %v4397_v47, %s6751_s11 }
 0xde3   :  { %v4429_v43 = vpop.permute.xlu1 %4428  ;;  %v4435_v53 = vpop.permute.xlu0 %4434 }
 0xde4   :  { %v4431_v44 = vmul.f32 %v4429_v43, %v6990_v16  ;;  %v4437_v60 = vmul.f32 %v4435_v53, %v6995_v21 }
 0xde6   :  { %v4432_v27 = vadd.f32 %v6992_v17, %v4431_v44 }
 0xde8   :  { %v4441_v50 = vpop.permute.xlu1 %4440  ;;  %v4438_v49 = vadd.f32 %v4437_v60, %v4432_v27  ;;  %v4453_v3 = vpop.permute.xlu0 %4452 }
 0xde9   :  { %v4443_v11 = vmul.f32 %v4441_v50, %v7000_v28  ;;  %v4455_v47 = vmul.f32 %v4453_v3, %v7008_v4 }
 0xdeb   :  { %v4444_v32 = vadd.f32 %v4443_v11, %v4438_v49 }
 0xded   :  { %v4447_v29 = vpop.permute.xlu1 %4446  ;;  %v4471_v41 = vpop.permute.xlu0 %4470 }
 0xdee   :  { %v4449_v19 = vmul.f32 %v4447_v29, %v7005_v35  ;;  %v4473_v53 = vmul.f32 %v4471_v41, %v7020_v10 }
 0xdf0   :  { %v4450_v46 = vadd.f32 %v4449_v19, %v4444_v32  ;;  %v4501_v19 = vrot.slane %v7107_v55, 6 }
 0xdf2   :  { %v4459_v23 = vpop.permute.xlu1 %4458  ;;  %v4456_v13 = vadd.f32 %v4455_v47, %v4450_v46 }
 0xdf3   :  { %v4461_v37 = vmul.f32 %v4459_v23, %v7012_v5 }
 0xdf5   :  { %v4462_v43 = vadd.f32 %v4461_v37, %v4456_v13 }
 0xdf7   :  { %v4465_v17 = vpop.permute.xlu1 %4464 }
 0xdf8   :  { %v4467_v44 = vmul.f32 %v4465_v17, %v7017_v6 }
 0xdfa   :  { %v4468_v27 = vadd.f32 %v4467_v44, %v4462_v43 }
 0xdfb   :  { %v4476_v50 = vpop.permute.xlu1 %4475 }
 0xdfc   :  { %v4474_v60 = vadd.f32 %v4473_v53, %v4468_v27 }
 0xdfe   :  { %v4478_v49 = vadd.f32 %v4476_v50, %v4474_v60 }
 0xdff   :  { %v4486_v46 = vpop.permute.xlu1 %4485 }
 0xe00   :  { %v6059_v11 = vmul.f32 -1.442695, %v4478_v49 }
 0xe02   :  { %6543 = vpow2.f32 %v6059_v11 }
 0xe0f   :  { %v6544_v29 = vpop.eup %6543 }
 0xe10   :  { %v4482_v32 = vadd.f32 1.0, %v6544_v29 }
 0xe12   :  { %6545 = vrcp.f32 %v4482_v32  ;;  %v7205_v32 = vld [vmem:[#allocation8 + $0x88] ss:$0 sm:$0xff] }
 0xe1f   :  { %v6546_v3 = vpop.eup %6545 }
 0xe20   :  { %v4488_v47 = vmul.f32 %v6546_v3, %v4486_v46  ;;  %v4503_v23 = vmul.f32 %v6546_v3, %v4501_v19  ;;  %v4495_v17 = vsub.f32 1.0, %v6546_v3 }
 0xe22   :  { %4490 = vrot.lane.b32.xlu0 %v4488_v47, %s6740_s3 }
 0xe26   :  { %4521 = vrot.lane.b32.xlu0 %v7150_v58, %s6743_s9 }
 0xe94   :  { %v4491_v13 = vpop.permute.xlu0 %4490 }
 0xe95   :  { %v4493_v37 = vadd.f32 %v4491_v13, %v4474_v60  ;;  %v7761_v60 = vmov 8  }
 0xe97   :  { %6547 = vtanh.f32 %v4493_v37 }
 0xe98   :  { %v4522_v27 = vpop.permute.xlu0 %4521 }
 0xea4   :  { %v6548_v41 = vpop.eup %6547 }
 0xea5   :  { %4497 = vrot.lane.b32.xlu1 %v6548_v41, %s6743_s9 }
 0xf17   :  { %v4498_v43 = vpop.permute.xlu1 %4497 }
 0xf18   :  { %v4500_v44 = vmul.f32 %v4498_v43, %v4495_v17 }
 0xf1a   :  { %v7184_v53 = vadd.f32 %v4503_v23, %v4500_v44 }
 0xf1c   :  { %v4524_v50 = vsel %vm79_vm1, %v4522_v27, %v7184_v53 }
 0xf1d   :  { %4533 = vperm.xlu0 %6302, %v4524_v50   ;;  %4527 = vperm.xlu1 %6301, %v4524_v50  }
 0xf21   :  { %6305 = vset.pattern.permute.xlu0 %v7743_v56  ;;  %6303 = vset.pattern.permute.xlu1 %v7741_v57 }
 0xf22   :  { %4551 = vperm.xlu0 %6305, %v4524_v50   ;;  %4539 = vperm.xlu1 %6303, %v4524_v50  }
 0xf26   :  { %6308 = vset.pattern.permute.xlu0 %v7736_v15  ;;  %6304 = vset.pattern.permute.xlu1 %v7734_v20 }
 0xf27   :  { %4569 = vperm.xlu0 %6308, %v4524_v50   ;;  %4545 = vperm.xlu1 %6304, %v4524_v50  }
 0xf2b   :  { %6311 = vset.pattern.permute.xlu0 %v7755_v61  ;;  %6306 = vset.pattern.permute.xlu1 %v7730_v24 }
 0xf2c   :  { %4587 = vperm.xlu0 %6311, %v4524_v50   ;;  %4557 = vperm.xlu1 %6306, %v4524_v50  }
 0xf30   :  { %6314 = vset.pattern.permute.xlu0 %v7751_v2  ;;  %6307 = vset.pattern.permute.xlu1 %v7728_v25 }
 0xf31   :  { %4605 = vperm.xlu0 %6314, %v4524_v50   ;;  %4563 = vperm.xlu1 %6307, %v4524_v50  }
 0xf35   :  { %6309 = vset.pattern.permute.xlu1 %v7761_v60  ;;  %6318 = vset.pattern.permute.xlu0 %v7760_v0 }
 0xf36   :  { %4575 = vperm.xlu1 %6309, %v4524_v50  }
 0xf3a   :  { %6310 = vset.pattern.permute.xlu1 %v7760_v0 }
 0xf3b   :  { %4581 = vperm.xlu1 %6310, %v4524_v50  }
 0xf3f   :  { %6312 = vset.pattern.permute.xlu1 %v7753_v63 }
 0xf40   :  { %4593 = vperm.xlu1 %6312, %v4524_v50  }
 0xf44   :  { %6313 = vset.pattern.permute.xlu1 %v7749_v59 }
 0xf45   :  { %4599 = vperm.xlu1 %6313, %v4524_v50  }
 0xf49   :  { %6315 = vset.pattern.permute.xlu1 %v7745_v12 }
 0xf4a   :  { %4611 = vperm.xlu1 %6315, %v4524_v50  }
 0xf4e   :  { %6316 = vset.pattern.permute.xlu1 %v7747_v62 }
 0xf4f   :  { %4617 = vperm.xlu1 %6316, %v4524_v50  }
 0xf53   :  { %6317 = vset.pattern.permute.xlu1 %v7761_v60 }
 0xf98   :  { %v4528_v49 = vpop.permute.xlu1 %4527  ;;  %v4534_v29 = vpop.permute.xlu0 %4533 }
 0xf99   :  { %v4530_v11 = vmul.f32 %v4528_v49, %v6873_v7  ;;  %v4536_v3 = vmul.f32 %v4534_v29, %v6876_v8 }
 0xf9b   :  { %v4531_v19 = vadd.f32 %v7205_v32, %v4530_v11 }
 0xf9d   :  { %v4540_v46 = vpop.permute.xlu1 %4539  ;;  %v4537_v47 = vadd.f32 %v4536_v3, %v4531_v19  ;;  %v4552_v17 = vpop.permute.xlu0 %4551 }
 0xf9e   :  { %v4542_v23 = vmul.f32 %v4540_v46, %v6879_v9  ;;  %v4554_v44 = vmul.f32 %v4552_v17, %v6897_v18 }
 0xfa0   :  { %v4543_v37 = vadd.f32 %v4542_v23, %v4537_v47 }
 0xfa2   :  { %v4546_v13 = vpop.permute.xlu1 %4545  ;;  %v4570_v24 = vpop.permute.xlu0 %4569 }
 0xfa3   :  { %v4548_v41 = vmul.f32 %v4546_v13, %v6889_v14  ;;  %v4572_v3 = vmul.f32 %v4570_v24, %v6915_v30 }
 0xfa5   :  { %v4549_v43 = vadd.f32 %v4548_v41, %v4543_v37 }
 0xfa7   :  { %v4558_v27 = vpop.permute.xlu1 %4557  ;;  %v4555_v50 = vadd.f32 %v4554_v44, %v4549_v43  ;;  %v4588_v17 = vpop.permute.xlu0 %4587 }
 0xfa8   :  { %v4560_v49 = vmul.f32 %v4558_v27, %v6904_v22  ;;  %v4590_v44 = vmul.f32 %v4588_v17, %v6927_v39 }
 0xfaa   :  { %v4561_v11 = vadd.f32 %v4560_v49, %v4555_v50 }
 0xfac   :  { %v4564_v25 = vpop.permute.xlu1 %4563 }
 0xfad   :  { %v4566_v29 = vmul.f32 %v4564_v25, %v6911_v26 }
 0xfaf   :  { %v4567_v19 = vadd.f32 %v4566_v29, %v4561_v11  ;;  %v4606_v29 = vpop.permute.xlu0 %4605 }
 0xfb1   :  { %v4576_v46 = vpop.permute.xlu1 %4575  ;;  %v4573_v47 = vadd.f32 %v4572_v3, %v4567_v19  ;;  %v4608_v3 = vmul.f32 %v4606_v29, %v6939_v48 }
 0xfb2   :  { %v4578_v23 = vmul.f32 %v4576_v46, %v6919_v33 }
 0xfb4   :  { %v4579_v37 = vadd.f32 %v4578_v23, %v4573_v47 }
 0xfb6   :  { %v4582_v13 = vpop.permute.xlu1 %4581 }
 0xfb7   :  { %v4584_v41 = vmul.f32 %v4582_v13, %v6923_v36 }
 0xfb9   :  { %v4585_v43 = vadd.f32 %v4584_v41, %v4579_v37 }
 0xfbb   :  { %v4594_v27 = vpop.permute.xlu1 %4593  ;;  %v4591_v50 = vadd.f32 %v4590_v44, %v4585_v43 }
 0xfbc   :  { %v4596_v25 = vmul.f32 %v4594_v27, %v6931_v42 }
 0xfbe   :  { %v4597_v11 = vadd.f32 %v4596_v25, %v4591_v50 }
 0xfc0   :  { %v4600_v49 = vpop.permute.xlu1 %4599 }
 0xfc1   :  { %v4602_v24 = vmul.f32 %v4600_v49, %v6935_v45 }
 0xfc3   :  { %v4603_v19 = vadd.f32 %v4602_v24, %v4597_v11 }
 0xfc5   :  { %v4612_v46 = vpop.permute.xlu1 %4611  ;;  %v4609_v47 = vadd.f32 %v4608_v3, %v4603_v19 }
 0xfc6   :  { %v4614_v23 = vmul.f32 %v4612_v46, %v6943_v51 }
 0xfc8   :  { %v4615_v37 = vadd.f32 %v4614_v23, %v4609_v47  ;;  %v4648_v47 = vrot.slane %v7150_v58, 6 }
 0xfca   :  { %v4618_v13 = vpop.permute.xlu1 %4617 }
 0xfcb   :  { %v4620_v41 = vmul.f32 %v4618_v13, %v6947_v54 }
 0xfcd   :  { %v4621_v17 = vadd.f32 %v4620_v41, %v4615_v37 }
 0xfcf   :  { %v4623_v43 = vrot.slane %v4621_v17, 6 }
 0xfd1   :  { %4632 = vrot.lane.b32.xlu0 %v4623_v43, %s6739_s2  ;;  %v4625_v44 = vadd.f32 %v4623_v43, %v6960_v34 }
 0xfd3   :  { %v6062_v27 = vmul.f32 -1.442695, %v4625_v44  ;;  %v7250_v44 = vld [vmem:[#allocation8 + $0x98] ss:$0 sm:$0xff] }
 0xfd5   :  { %6549 = vpow2.f32 %v6062_v27 }
 0xfe2   :  { %v6550_v50 = vpop.eup %6549 }
 0xfe3   :  { %v4629_v25 = vadd.f32 1.0, %v6550_v50 }
 0xfe5   :  { %6551 = vrcp.f32 %v4629_v25 }
 0xff2   :  { %v6552_v49 = vpop.eup %6551 }
 0xff3   :  { %v4642_v46 = vsub.f32 1.0, %v6552_v49  ;;  %v4650_v37 = vmul.f32 %v6552_v49, %v4648_v47 }
0x1043   :  { %v4633_v11 = vpop.permute.xlu0 %4632 }
0x1044   :  { %v4635_v24 = vmul.f32 %v6552_v49, %v4633_v11 }
0x1046   :  { %4637 = vrot.lane.b32.xlu1 %v4635_v24, %s6740_s3 }
0x10b8   :  { %v4638_v29 = vpop.permute.xlu1 %4637 }
0x10b9   :  { %v4640_v19 = vadd.f32 %v4638_v29, %v6960_v34 }
0x10bb   :  { %6553 = vtanh.f32 %v4640_v19 }
0x10c8   :  { %v6554_v3 = vpop.eup %6553 }
0x10c9   :  { %4644 = vrot.lane.b32.xlu0 %v6554_v3, %s6743_s9 }
0x113b   :  { %v4645_v23 = vpop.permute.xlu0 %4644 }
0x113c   :  { %v4647_v13 = vmul.f32 %v4645_v23, %v4642_v46 }
0x113e   :  { %v7229_v41 = vadd.f32 %v4650_v37, %v4647_v13 }
0x1140   :  { %4660 = vperm.xlu0 %6318, %v7229_v41   ;;  %4654 = vperm.xlu1 %6317, %v7229_v41  }
0x1144   :  { %6321 = vset.pattern.permute.xlu0 %v7749_v59  ;;  %6319 = vset.pattern.permute.xlu1 %v7755_v61 }
0x1145   :  { %4678 = vperm.xlu0 %6321, %v7229_v41   ;;  %4666 = vperm.xlu1 %6319, %v7229_v41  }
0x1149   :  { %6324 = vset.pattern.permute.xlu0 %v7747_v62  ;;  %6320 = vset.pattern.permute.xlu1 %v7753_v63 }
0x114a   :  { %4696 = vperm.xlu0 %6324, %v7229_v41   ;;  %4672 = vperm.xlu1 %6320, %v7229_v41  }
0x114e   :  { %6322 = vset.pattern.permute.xlu1 %v7751_v2  ;;  %6326 = vset.pattern.permute.xlu0 %v7738_v38 }
0x114f   :  { %4684 = vperm.xlu1 %6322, %v7229_v41  }
0x1153   :  { %6323 = vset.pattern.permute.xlu1 %v7745_v12 }
0x1154   :  { %4690 = vperm.xlu1 %6323, %v7229_v41  }
0x1158   :  { %4701 = vrot.lane.b32.xlu1 %v4623_v43, %s6750_s10 }
0x1159   :  { %6325 = vset.pattern.permute.xlu1 %v7732_v40 }
0x115c   :  { %4711 = vrot.lane.b32.xlu1 %v4623_v43, %s6751_s11 }
0x11bb   :  { %v4655_v34 = vpop.permute.xlu1 %4654  ;;  %v4661_v17 = vpop.permute.xlu0 %4660 }
0x11bc   :  { %v4657_v58 = vmul.f32 %v4655_v34, %v6990_v16  ;;  %v4663_v50 = vmul.f32 %v4661_v17, %v6995_v21 }
0x11be   :  { %v4658_v27 = vadd.f32 %v7250_v44, %v4657_v58 }
0x11c0   :  { %v4667_v25 = vpop.permute.xlu1 %4666  ;;  %v4664_v49 = vadd.f32 %v4663_v50, %v4658_v27  ;;  %v4679_v3 = vpop.permute.xlu0 %4678 }
0x11c1   :  { %v4669_v11 = vmul.f32 %v4667_v25, %v7000_v28  ;;  %v4681_v46 = vmul.f32 %v4679_v3, %v7008_v4  ;;  %v4727_v3 = vrot.slane %v7184_v53, 6 }
0x11c3   :  { %v4670_v29 = vadd.f32 %v4669_v11, %v4664_v49 }
0x11c5   :  { %v4673_v24 = vpop.permute.xlu1 %4672  ;;  %v4697_v37 = vpop.permute.xlu0 %4696 }
0x11c6   :  { %v4675_v19 = vmul.f32 %v4673_v24, %v7005_v35  ;;  %v4699_v27 = vmul.f32 %v4697_v37, %v7020_v10 }
0x11c8   :  { %v4676_v43 = vadd.f32 %v4675_v19, %v4670_v29 }
0x11ca   :  { %v4685_v47 = vpop.permute.xlu1 %4684  ;;  %v4682_v23 = vadd.f32 %v4681_v46, %v4676_v43 }
0x11cb   :  { %v4687_v13 = vmul.f32 %v4685_v47, %v7012_v5 }
0x11cd   :  { %v4688_v58 = vadd.f32 %v4687_v13, %v4682_v23 }
0x11cf   :  { %v4691_v34 = vpop.permute.xlu1 %4690 }
0x11d0   :  { %v4693_v17 = vmul.f32 %v4691_v34, %v7017_v6 }
0x11d2   :  { %v4694_v50 = vadd.f32 %v4693_v17, %v4688_v58 }
0x11d3   :  { %v4702_v49 = vpop.permute.xlu1 %4701 }
0x11d4   :  { %v4700_v25 = vadd.f32 %v4699_v27, %v4694_v50 }
0x11d6   :  { %v4704_v11 = vadd.f32 %v4702_v49, %v4700_v25 }
0x11d7   :  { %v4712_v46 = vpop.permute.xlu1 %4711 }
0x11d8   :  { %v6063_v24 = vmul.f32 -1.442695, %v4704_v11 }
0x11da   :  { %6555 = vpow2.f32 %v6063_v24 }
0x11e7   :  { %v6556_v29 = vpop.eup %6555 }
0x11e8   :  { %v4708_v19 = vadd.f32 1.0, %v6556_v29 }
0x11ea   :  { %6557 = vrcp.f32 %v4708_v19 }
0x11f7   :  { %v6558_v43 = vpop.eup %6557 }
0x11f8   :  { %v4714_v47 = vmul.f32 %v6558_v43, %v4712_v46  ;;  %v4729_v40 = vmul.f32 %v6558_v43, %v4727_v3  ;;  %v4721_v34 = vsub.f32 1.0, %v6558_v43 }
0x11fa   :  { %4716 = vrot.lane.b32.xlu0 %v4714_v47, %s6740_s3 }
0x11fe   :  { %4747 = vrot.lane.b32.xlu0 %v7229_v41, %s6743_s9 }
0x126c   :  { %v4717_v23 = vpop.permute.xlu0 %4716 }
0x126d   :  { %v4719_v13 = vadd.f32 %v4717_v23, %v4700_v25  ;;  %v7763_v25 = vmov 6  }
0x126f   :  { %6559 = vtanh.f32 %v4719_v13 }
0x1270   :  { %v4748_v50 = vpop.permute.xlu0 %4747 }
0x127c   :  { %v6560_v37 = vpop.eup %6559 }
0x127d   :  { %4723 = vrot.lane.b32.xlu1 %v6560_v37, %s6743_s9 }
0x12ef   :  { %v4724_v58 = vpop.permute.xlu1 %4723 }
0x12f0   :  { %v4726_v17 = vmul.f32 %v4724_v58, %v4721_v34 }
0x12f2   :  { %v7265_v27 = vadd.f32 %v4729_v40, %v4726_v17  ;;  %v7762_v40 = vmov 5  }
0x12f4   :  { %v4750_v49 = vsel %vm79_vm1, %v4748_v50, %v7265_v27 }
0x12f5   :  { %4759 = vperm.xlu0 %6326, %v4750_v49   ;;  %4753 = vperm.xlu1 %6325, %v4750_v49  }
0x12f9   :  { %6329 = vset.pattern.permute.xlu0 %v7743_v56  ;;  %6327 = vset.pattern.permute.xlu1 %v7741_v57 }
0x12fa   :  { %4777 = vperm.xlu0 %6329, %v4750_v49   ;;  %4765 = vperm.xlu1 %6327, %v4750_v49  }
0x12fe   :  { %6332 = vset.pattern.permute.xlu0 %v7736_v15  ;;  %6328 = vset.pattern.permute.xlu1 %v7734_v20 }
0x12ff   :  { %4795 = vperm.xlu0 %6332, %v4750_v49   ;;  %4771 = vperm.xlu1 %6328, %v4750_v49  }
0x1303   :  { %6335 = vset.pattern.permute.xlu0 %v7755_v61  ;;  %6330 = vset.pattern.permute.xlu1 %v7762_v40 }
0x1304   :  { %4813 = vperm.xlu0 %6335, %v4750_v49   ;;  %4783 = vperm.xlu1 %6330, %v4750_v49  }
0x1308   :  { %6338 = vset.pattern.permute.xlu0 %v7751_v2  ;;  %6331 = vset.pattern.permute.xlu1 %v7763_v25 }
0x1309   :  { %4831 = vperm.xlu0 %6338, %v4750_v49   ;;  %4789 = vperm.xlu1 %6331, %v4750_v49  }
0x130d   :  { %6333 = vset.pattern.permute.xlu1 %v7761_v60  ;;  %6342 = vset.pattern.permute.xlu0 %v7760_v0 }
0x130e   :  { %4801 = vperm.xlu1 %6333, %v4750_v49  }
0x1312   :  { %6334 = vset.pattern.permute.xlu1 %v7760_v0 }
0x1313   :  { %4807 = vperm.xlu1 %6334, %v4750_v49  }
0x1317   :  { %6336 = vset.pattern.permute.xlu1 %v7753_v63 }
0x1318   :  { %4819 = vperm.xlu1 %6336, %v4750_v49  }
0x131c   :  { %6337 = vset.pattern.permute.xlu1 %v7749_v59 }
0x131d   :  { %4825 = vperm.xlu1 %6337, %v4750_v49  }
0x1321   :  { %6339 = vset.pattern.permute.xlu1 %v7745_v12 }
0x1322   :  { %4837 = vperm.xlu1 %6339, %v4750_v49  }
0x1326   :  { %6340 = vset.pattern.permute.xlu1 %v7747_v62 }
0x1327   :  { %4843 = vperm.xlu1 %6340, %v4750_v49  }
0x132b   :  { %6341 = vset.pattern.permute.xlu1 %v7761_v60 }
0x1370   :  { %v4754_v11 = vpop.permute.xlu1 %4753  ;;  %v4760_v29 = vpop.permute.xlu0 %4759 }
0x1371   :  { %v4756_v24 = vmul.f32 %v4754_v11, %v6873_v7  ;;  %v4762_v3 = vmul.f32 %v4760_v29, %v6876_v8 }
0x1373   :  { %v4757_v19 = vadd.f32 %v7205_v32, %v4756_v24 }
0x1375   :  { %v4766_v43 = vpop.permute.xlu1 %4765  ;;  %v4763_v46 = vadd.f32 %v4762_v3, %v4757_v19  ;;  %v4778_v34 = vpop.permute.xlu0 %4777 }
0x1376   :  { %v4768_v47 = vmul.f32 %v4766_v43, %v6879_v9  ;;  %v4780_v17 = vmul.f32 %v4778_v34, %v6897_v18 }
0x1378   :  { %v4769_v13 = vadd.f32 %v4768_v47, %v4763_v46 }
0x137a   :  { %v4772_v23 = vpop.permute.xlu1 %4771  ;;  %v4796_v15 = vpop.permute.xlu0 %4795 }
0x137b   :  { %v4774_v37 = vmul.f32 %v4772_v23, %v6889_v14  ;;  %v4798_v3 = vmul.f32 %v4796_v15, %v6915_v30 }
0x137d   :  { %v4775_v58 = vadd.f32 %v4774_v37, %v4769_v13 }
0x137f   :  { %v4784_v50 = vpop.permute.xlu1 %4783  ;;  %v4781_v49 = vadd.f32 %v4780_v17, %v4775_v58  ;;  %v4814_v34 = vpop.permute.xlu0 %4813 }
0x1380   :  { %v4786_v11 = vmul.f32 %v4784_v50, %v6904_v22  ;;  %v4816_v17 = vmul.f32 %v4814_v34, %v6927_v39 }
0x1382   :  { %v4787_v24 = vadd.f32 %v4786_v11, %v4781_v49 }
0x1384   :  { %v4790_v20 = vpop.permute.xlu1 %4789 }
0x1385   :  { %v4792_v29 = vmul.f32 %v4790_v20, %v6911_v26 }
0x1387   :  { %v4793_v19 = vadd.f32 %v4792_v29, %v4787_v24  ;;  %v4832_v29 = vpop.permute.xlu0 %4831 }
0x1389   :  { %v4802_v43 = vpop.permute.xlu1 %4801  ;;  %v4799_v46 = vadd.f32 %v4798_v3, %v4793_v19  ;;  %v4834_v3 = vmul.f32 %v4832_v29, %v6939_v48 }
0x138a   :  { %v4804_v47 = vmul.f32 %v4802_v43, %v6919_v33 }
0x138c   :  { %v4805_v13 = vadd.f32 %v4804_v47, %v4799_v46 }
0x138e   :  { %v4808_v23 = vpop.permute.xlu1 %4807 }
0x138f   :  { %v4810_v37 = vmul.f32 %v4808_v23, %v6923_v36 }
0x1391   :  { %v4811_v58 = vadd.f32 %v4810_v37, %v4805_v13 }
0x1393   :  { %v4820_v50 = vpop.permute.xlu1 %4819  ;;  %v4817_v49 = vadd.f32 %v4816_v17, %v4811_v58 }
0x1394   :  { %v4822_v20 = vmul.f32 %v4820_v50, %v6931_v42 }
0x1396   :  { %v4823_v24 = vadd.f32 %v4822_v20, %v4817_v49 }
0x1398   :  { %v4826_v11 = vpop.permute.xlu1 %4825 }
0x1399   :  { %v4828_v15 = vmul.f32 %v4826_v11, %v6935_v45 }
0x139b   :  { %v4829_v19 = vadd.f32 %v4828_v15, %v4823_v24 }
0x139d   :  { %v4838_v43 = vpop.permute.xlu1 %4837  ;;  %v4835_v46 = vadd.f32 %v4834_v3, %v4829_v19 }
0x139e   :  { %v4840_v47 = vmul.f32 %v4838_v43, %v6943_v51 }
0x13a0   :  { %v4841_v13 = vadd.f32 %v4840_v47, %v4835_v46  ;;  %v4874_v46 = vrot.slane %v7229_v41, 6  ;;  %v7764_v41 = vmov 0  }
0x13a2   :  { %v4844_v23 = vpop.permute.xlu1 %4843 }
0x13a3   :  { %v4846_v37 = vmul.f32 %v4844_v23, %v6947_v54 }
0x13a5   :  { %v4847_v34 = vadd.f32 %v4846_v37, %v4841_v13 }
0x13a7   :  { %v4849_v58 = vrot.slane %v4847_v34, 6 }
0x13a9   :  { %4858 = vrot.lane.b32.xlu0 %v4849_v58, %s6739_s2  ;;  %v4851_v17 = vadd.f32 %v4849_v58, %v6958_v31 }
0x13ab   :  { %v6066_v50 = vmul.f32 -1.442695, %v4851_v17 }
0x13ad   :  { %6561 = vpow2.f32 %v6066_v50 }
0x13ba   :  { %v6562_v49 = vpop.eup %6561 }
0x13bb   :  { %v4855_v20 = vadd.f32 1.0, %v6562_v49 }
0x13bd   :  { %6563 = vrcp.f32 %v4855_v20 }
0x13ca   :  { %v6564_v11 = vpop.eup %6563 }
0x13cb   :  { %v4868_v43 = vsub.f32 1.0, %v6564_v11  ;;  %v4876_v13 = vmul.f32 %v6564_v11, %v4874_v46 }
0x141b   :  { %v4859_v24 = vpop.permute.xlu0 %4858 }
0x141c   :  { %v4861_v15 = vmul.f32 %v6564_v11, %v4859_v24 }
0x141e   :  { %4863 = vrot.lane.b32.xlu1 %v4861_v15, %s6740_s3 }
0x1490   :  { %v4864_v29 = vpop.permute.xlu1 %4863 }
0x1491   :  { %v4866_v19 = vadd.f32 %v4864_v29, %v6958_v31 }
0x1493   :  { %6565 = vtanh.f32 %v4866_v19 }
0x14a0   :  { %v6566_v3 = vpop.eup %6565 }
0x14a1   :  { %4870 = vrot.lane.b32.xlu0 %v6566_v3, %s6743_s9 }
0x1513   :  { %v4871_v47 = vpop.permute.xlu0 %4870 }
0x1514   :  { %v4873_v23 = vmul.f32 %v4871_v47, %v4868_v43 }
0x1516   :  { %v7308_v37 = vadd.f32 %v4876_v13, %v4873_v23 }
0x1518   :  { %4886 = vperm.xlu0 %6342, %v7308_v37   ;;  %4880 = vperm.xlu1 %6341, %v7308_v37  }
0x151c   :  { %6345 = vset.pattern.permute.xlu0 %v7749_v59  ;;  %6343 = vset.pattern.permute.xlu1 %v7755_v61 }
0x151d   :  { %4904 = vperm.xlu0 %6345, %v7308_v37   ;;  %4892 = vperm.xlu1 %6343, %v7308_v37  }
0x1521   :  { %6348 = vset.pattern.permute.xlu0 %v7747_v62  ;;  %6344 = vset.pattern.permute.xlu1 %v7753_v63 }
0x1522   :  { %4922 = vperm.xlu0 %6348, %v7308_v37   ;;  %4898 = vperm.xlu1 %6344, %v7308_v37  }
0x1526   :  { %6346 = vset.pattern.permute.xlu1 %v7751_v2  ;;  %6350 = vset.pattern.permute.xlu0 %v7738_v38 }
0x1527   :  { %4910 = vperm.xlu1 %6346, %v7308_v37  }
0x152b   :  { %6347 = vset.pattern.permute.xlu1 %v7745_v12 }
0x152c   :  { %4916 = vperm.xlu1 %6347, %v7308_v37  }
0x1530   :  { %4927 = vrot.lane.b32.xlu1 %v4849_v58, %s6750_s10 }
0x1531   :  { %6349 = vset.pattern.permute.xlu1 %v7764_v41 }
0x1534   :  { %4937 = vrot.lane.b32.xlu1 %v4849_v58, %s6751_s11 }
0x1593   :  { %v4881_v34 = vpop.permute.xlu1 %4880  ;;  %v4887_v50 = vpop.permute.xlu0 %4886 }
0x1594   :  { %v4883_v17 = vmul.f32 %v4881_v34, %v6990_v16  ;;  %v4889_v20 = vmul.f32 %v4887_v50, %v6995_v21 }
0x1596   :  { %v4884_v49 = vadd.f32 %v7250_v44, %v4883_v17 }
0x1598   :  { %v4893_v11 = vpop.permute.xlu1 %4892  ;;  %v4890_v24 = vadd.f32 %v4889_v20, %v4884_v49  ;;  %v4905_v43 = vpop.permute.xlu0 %4904 }
0x1599   :  { %v4895_v15 = vmul.f32 %v4893_v11, %v7000_v28  ;;  %v4907_v58 = vmul.f32 %v4905_v43, %v7008_v4 }
0x159b   :  { %v4896_v19 = vadd.f32 %v4895_v15, %v4890_v24 }
0x159d   :  { %v4899_v29 = vpop.permute.xlu1 %4898  ;;  %v4923_v34 = vpop.permute.xlu0 %4922 }
0x159e   :  { %v4901_v3 = vmul.f32 %v4899_v29, %v7005_v35  ;;  %v4925_v49 = vmul.f32 %v4923_v34, %v7020_v10 }
0x15a0   :  { %v4902_v46 = vadd.f32 %v4901_v3, %v4896_v19 }
0x15a2   :  { %v4911_v47 = vpop.permute.xlu1 %4910  ;;  %v4908_v23 = vadd.f32 %v4907_v58, %v4902_v46 }
0x15a3   :  { %v4913_v13 = vmul.f32 %v4911_v47, %v7012_v5 }
0x15a5   :  { %v4914_v38 = vadd.f32 %v4913_v13, %v4908_v23  ;;  %v7740_v13 = vrot.slane %v7265_v27, 6 }
0x15a7   :  { %v4917_v17 = vpop.permute.xlu1 %4916 }
0x15a8   :  { %v4919_v50 = vmul.f32 %v4917_v17, %v7017_v6 }
0x15aa   :  { %v4920_v20 = vadd.f32 %v4919_v50, %v4914_v38 }
0x15ab   :  { %v4928_v24 = vpop.permute.xlu1 %4927 }
0x15ac   :  { %v4926_v11 = vadd.f32 %v4925_v49, %v4920_v20 }
0x15ae   :  { %v4930_v15 = vadd.f32 %v4928_v24, %v4926_v11 }
0x15af   :  { %v4938_v46 = vpop.permute.xlu1 %4937 }
0x15b0   :  { %v6067_v29 = vmul.f32 -1.442695, %v4930_v15 }
0x15b2   :  { %6567 = vpow2.f32 %v6067_v29  ;;  %v7767_v29 = vmov 3  }
0x15bf   :  { %v6568_v19 = vpop.eup %6567 }
0x15c0   :  { %v4934_v3 = vadd.f32 1.0, %v6568_v19 }
0x15c2   :  { %6569 = vrcp.f32 %v4934_v3 }
0x15cf   :  { %v6570_v43 = vpop.eup %6569 }
0x15d0   :  { %v4940_v58 = vmul.f32 %v6570_v43, %v4938_v46  ;;  %v4947_v34 = vsub.f32 1.0, %v6570_v43  ;;  %v4954_v50 = vmul.f32 %v6570_v43, %v7740_v13 }
0x15d2   :  { %4942 = vrot.lane.b32.xlu0 %v4940_v58, %s6740_s3 }
0x15d6   :  { %4963 = vrot.lane.b32.xlu0 %v7308_v37, %s6743_s9 }
0x1644   :  { %v4943_v47 = vpop.permute.xlu0 %4942 }
0x1645   :  { %v4945_v23 = vadd.f32 %v4943_v47, %v4926_v11  ;;  %v7766_v11 = vmov 7  }
0x1647   :  { %6571 = vtanh.f32 %v4945_v23 }
0x1648   :  { %v4964_v24 = vpop.permute.xlu0 %4963 }
0x1654   :  { %v6572_v38 = vpop.eup %6571 }
0x1655   :  { %4949 = vrot.lane.b32.xlu1 %v6572_v38, %s6743_s9 }
0x16c7   :  { %v4950_v17 = vpop.permute.xlu1 %4949 }
0x16c8   :  { %v4952_v49 = vmul.f32 %v4950_v17, %v4947_v34 }
0x16ca   :  { %v7344_v20 = vadd.f32 %v4954_v50, %v4952_v49 }
0x16cc   :  { %7765 = vst [vmem:[#allocation16_spill] sm:$0xff] %v7344_v20  ;;  %v4966_v15 = vsel %vm79_vm1, %v4964_v24, %v7344_v20 }
0x16cd   :  { %4975 = vperm.xlu0 %6350, %v4966_v15   ;;  %4969 = vperm.xlu1 %6349, %v4966_v15  }
0x16d1   :  { %6353 = vset.pattern.permute.xlu0 %v7743_v56  ;;  %6351 = vset.pattern.permute.xlu1 %v7741_v57 }
0x16d2   :  { %4993 = vperm.xlu0 %6353, %v4966_v15   ;;  %4981 = vperm.xlu1 %6351, %v4966_v15  }
0x16d6   :  { %6356 = vset.pattern.permute.xlu0 %v7766_v11  ;;  %6352 = vset.pattern.permute.xlu1 %v7767_v29 }
0x16d7   :  { %5011 = vperm.xlu0 %6356, %v4966_v15   ;;  %4987 = vperm.xlu1 %6352, %v4966_v15  }
0x16db   :  { %6359 = vset.pattern.permute.xlu0 %v7755_v61  ;;  %6354 = vset.pattern.permute.xlu1 %v7762_v40 }
0x16dc   :  { %5029 = vperm.xlu0 %6359, %v4966_v15   ;;  %4999 = vperm.xlu1 %6354, %v4966_v15  }
0x16e0   :  { %6362 = vset.pattern.permute.xlu0 %v7751_v2  ;;  %6355 = vset.pattern.permute.xlu1 %v7763_v25 }
0x16e1   :  { %5047 = vperm.xlu0 %6362, %v4966_v15   ;;  %5005 = vperm.xlu1 %6355, %v4966_v15  }
0x16e5   :  { %6357 = vset.pattern.permute.xlu1 %v7761_v60  ;;  %6366 = vset.pattern.permute.xlu0 %v7760_v0 }
0x16e6   :  { %5017 = vperm.xlu1 %6357, %v4966_v15  }
0x16ea   :  { %6358 = vset.pattern.permute.xlu1 %v7760_v0 }
0x16eb   :  { %5023 = vperm.xlu1 %6358, %v4966_v15  }
0x16ef   :  { %6360 = vset.pattern.permute.xlu1 %v7753_v63 }
0x16f0   :  { %5035 = vperm.xlu1 %6360, %v4966_v15  }
0x16f4   :  { %6361 = vset.pattern.permute.xlu1 %v7749_v59 }
0x16f5   :  { %5041 = vperm.xlu1 %6361, %v4966_v15  }
0x16f9   :  { %6363 = vset.pattern.permute.xlu1 %v7745_v12 }
0x16fa   :  { %5053 = vperm.xlu1 %6363, %v4966_v15  }
0x16fe   :  { %6364 = vset.pattern.permute.xlu1 %v7747_v62 }
0x16ff   :  { %5059 = vperm.xlu1 %6364, %v4966_v15  }
0x1703   :  { %6365 = vset.pattern.permute.xlu1 %v7761_v60 }
0x1748   :  { %v4970_v19 = vpop.permute.xlu1 %4969  ;;  %v4976_v43 = vpop.permute.xlu0 %4975 }
0x1749   :  { %v4972_v3 = vmul.f32 %v4970_v19, %v6873_v7  ;;  %v4978_v58 = vmul.f32 %v4976_v43, %v6876_v8 }
0x174b   :  { %v4973_v46 = vadd.f32 %v7205_v32, %v4972_v3 }
0x174d   :  { %v4982_v47 = vpop.permute.xlu1 %4981  ;;  %v4979_v23 = vadd.f32 %v4978_v58, %v4973_v46  ;;  %v4994_v49 = vpop.permute.xlu0 %4993 }
0x174e   :  { %v4984_v38 = vmul.f32 %v4982_v47, %v6879_v9  ;;  %v4996_v15 = vmul.f32 %v4994_v49, %v6897_v18 }
0x1750   :  { %v4985_v17 = vadd.f32 %v4984_v38, %v4979_v23 }
0x1752   :  { %v4988_v34 = vpop.permute.xlu1 %4987  ;;  %v5012_v12 = vpop.permute.xlu0 %5011 }
0x1753   :  { %v4990_v50 = vmul.f32 %v4988_v34, %v6889_v14  ;;  %v5014_v58 = vmul.f32 %v5012_v12, %v6915_v30 }
0x1755   :  { %v4991_v24 = vadd.f32 %v4990_v50, %v4985_v17 }
0x1757   :  { %v5000_v13 = vpop.permute.xlu1 %4999  ;;  %v4997_v57 = vadd.f32 %v4996_v15, %v4991_v24  ;;  %v5030_v49 = vpop.permute.xlu0 %5029 }
0x1758   :  { %v5002_v19 = vmul.f32 %v5000_v13, %v6904_v22  ;;  %v5032_v13 = vmul.f32 %v5030_v49, %v6927_v39 }
0x175a   :  { %v5003_v3 = vadd.f32 %v5002_v19, %v4997_v57 }
0x175c   :  { %v5006_v56 = vpop.permute.xlu1 %5005 }
0x175d   :  { %v5008_v43 = vmul.f32 %v5006_v56, %v6911_v26 }
0x175f   :  { %v5009_v46 = vadd.f32 %v5008_v43, %v5003_v3  ;;  %v5048_v43 = vpop.permute.xlu0 %5047 }
0x1761   :  { %v5018_v47 = vpop.permute.xlu1 %5017  ;;  %v5015_v23 = vadd.f32 %v5014_v58, %v5009_v46  ;;  %v5050_v58 = vmul.f32 %v5048_v43, %v6939_v48 }
0x1762   :  { %v5020_v38 = vmul.f32 %v5018_v47, %v6919_v33 }
0x1764   :  { %v5021_v17 = vadd.f32 %v5020_v38, %v5015_v23 }
0x1766   :  { %v5024_v34 = vpop.permute.xlu1 %5023 }
0x1767   :  { %v5026_v50 = vmul.f32 %v5024_v34, %v6923_v36 }
0x1769   :  { %v5027_v24 = vadd.f32 %v5026_v50, %v5021_v17 }
0x176b   :  { %v5036_v15 = vpop.permute.xlu1 %5035  ;;  %v5033_v57 = vadd.f32 %v5032_v13, %v5027_v24 }
0x176c   :  { %v5038_v56 = vmul.f32 %v5036_v15, %v6931_v42 }
0x176e   :  { %v5039_v3 = vadd.f32 %v5038_v56, %v5033_v57 }
0x1770   :  { %v5042_v19 = vpop.permute.xlu1 %5041 }
0x1771   :  { %v5044_v12 = vmul.f32 %v5042_v19, %v6935_v45 }
0x1773   :  { %v5045_v46 = vadd.f32 %v5044_v12, %v5039_v3 }
0x1775   :  { %v5054_v47 = vpop.permute.xlu1 %5053  ;;  %v5051_v23 = vadd.f32 %v5050_v58, %v5045_v46 }
0x1776   :  { %v5056_v38 = vmul.f32 %v5054_v47, %v6943_v51 }
0x1778   :  { %v5057_v17 = vadd.f32 %v5056_v38, %v5051_v23  ;;  %v5090_v23 = vrot.slane %v7308_v37, 6  ;;  %v7768_v37 = vmov 1  }
0x177a   :  { %v5060_v34 = vpop.permute.xlu1 %5059 }
0x177b   :  { %v5062_v50 = vmul.f32 %v5060_v34, %v6947_v54 }
0x177d   :  { %v5063_v49 = vadd.f32 %v5062_v50, %v5057_v17 }
0x177f   :  { %v5065_v24 = vrot.slane %v5063_v49, 6  ;;  %v7769_v49 = vmov 14  }
0x1781   :  { %5074 = vrot.lane.b32.xlu0 %v5065_v24, %s6739_s2  ;;  %v5067_v13 = vadd.f32 %v5065_v24, %v6958_v31 }
0x1783   :  { %v6070_v15 = vmul.f32 -1.442695, %v5067_v13 }
0x1785   :  { %6573 = vpow2.f32 %v6070_v15 }
0x1792   :  { %v6574_v57 = vpop.eup %6573 }
0x1793   :  { %v5071_v56 = vadd.f32 1.0, %v6574_v57 }
0x1795   :  { %6575 = vrcp.f32 %v5071_v56 }
0x17a2   :  { %v6576_v19 = vpop.eup %6575 }
0x17a3   :  { %v5084_v47 = vsub.f32 1.0, %v6576_v19  ;;  %v5092_v17 = vmul.f32 %v6576_v19, %v5090_v23 }
0x17f3   :  { %v5075_v3 = vpop.permute.xlu0 %5074 }
0x17f4   :  { %v5077_v12 = vmul.f32 %v6576_v19, %v5075_v3 }
0x17f6   :  { %5079 = vrot.lane.b32.xlu1 %v5077_v12, %s6740_s3 }
0x1868   :  { %v5080_v43 = vpop.permute.xlu1 %5079 }
0x1869   :  { %v5082_v46 = vadd.f32 %v5080_v43, %v6958_v31 }
0x186b   :  { %6577 = vtanh.f32 %v5082_v46 }
0x1878   :  { %v6578_v58 = vpop.eup %6577 }
0x1879   :  { %5086 = vrot.lane.b32.xlu0 %v6578_v58, %s6743_s9 }
0x18eb   :  { %v5087_v38 = vpop.permute.xlu0 %5086 }
0x18ec   :  { %v5089_v34 = vmul.f32 %v5087_v38, %v5084_v47 }
0x18ee   :  { %v7387_v50 = vadd.f32 %v5092_v17, %v5089_v34 }
0x18f0   :  { %5102 = vperm.xlu0 %6366, %v7387_v50   ;;  %5096 = vperm.xlu1 %6365, %v7387_v50  }
0x18f4   :  { %6369 = vset.pattern.permute.xlu0 %v7749_v59  ;;  %6367 = vset.pattern.permute.xlu1 %v7755_v61 }
0x18f5   :  { %5120 = vperm.xlu0 %6369, %v7387_v50   ;;  %5108 = vperm.xlu1 %6367, %v7387_v50  }
0x18f9   :  { %6372 = vset.pattern.permute.xlu0 %v7747_v62  ;;  %6368 = vset.pattern.permute.xlu1 %v7753_v63 }
0x18fa   :  { %5138 = vperm.xlu0 %6372, %v7387_v50   ;;  %5114 = vperm.xlu1 %6368, %v7387_v50  }
0x18fe   :  { %6370 = vset.pattern.permute.xlu1 %v7751_v2  ;;  %6374 = vset.pattern.permute.xlu0 %v7768_v37 }
0x18ff   :  { %5126 = vperm.xlu1 %6370, %v7387_v50  }
0x1903   :  { %6371 = vset.pattern.permute.xlu1 %v7769_v49 }
0x1904   :  { %5132 = vperm.xlu1 %6371, %v7387_v50  }
0x1908   :  { %5143 = vrot.lane.b32.xlu1 %v5065_v24, %s6750_s10 }
0x1909   :  { %6373 = vset.pattern.permute.xlu1 %v7764_v41 }
0x190c   :  { %5153 = vrot.lane.b32.xlu1 %v5065_v24, %s6751_s11 }
0x196b   :  { %v5097_v13 = vpop.permute.xlu1 %5096  ;;  %v5103_v57 = vpop.permute.xlu0 %5102 }
0x196c   :  { %v5099_v15 = vmul.f32 %v5097_v13, %v6990_v16  ;;  %v5105_v19 = vmul.f32 %v5103_v57, %v6995_v21 }
0x196e   :  { %v5100_v56 = vadd.f32 %v7250_v44, %v5099_v15 }
0x1970   :  { %v5109_v3 = vpop.permute.xlu1 %5108  ;;  %v5106_v12 = vadd.f32 %v5105_v19, %v5100_v56  ;;  %v5121_v23 = vpop.permute.xlu0 %5120 }
0x1971   :  { %v5111_v43 = vmul.f32 %v5109_v3, %v7000_v28  ;;  %v5123_v24 = vmul.f32 %v5121_v23, %v7008_v4 }
0x1973   :  { %v5112_v58 = vadd.f32 %v5111_v43, %v5106_v12 }
0x1975   :  { %v5115_v46 = vpop.permute.xlu1 %5114  ;;  %v5139_v62 = vpop.permute.xlu0 %5138 }
0x1976   :  { %v5117_v47 = vmul.f32 %v5115_v46, %v7005_v35  ;;  %v5141_v56 = vmul.f32 %v5139_v62, %v7020_v10 }
0x1978   :  { %v5118_v38 = vadd.f32 %v5117_v47, %v5112_v58 }
0x197a   :  { %v5127_v34 = vpop.permute.xlu1 %5126  ;;  %v5124_v17 = vadd.f32 %v5123_v24, %v5118_v38 }
0x197b   :  { %v5129_v13 = vmul.f32 %v5127_v34, %v7012_v5 }
0x197d   :  { %v5130_v59 = vadd.f32 %v5129_v13, %v5124_v17  ;;  %v5170_v13 = vrot.slane %v7344_v20, 6 }
0x197f   :  { %v5133_v15 = vpop.permute.xlu1 %5132 }
0x1980   :  { %v5135_v57 = vmul.f32 %v5133_v15, %v7017_v6 }
0x1982   :  { %v5136_v19 = vadd.f32 %v5135_v57, %v5130_v59 }
0x1983   :  { %v5144_v12 = vpop.permute.xlu1 %5143 }
0x1984   :  { %v5142_v3 = vadd.f32 %v5141_v56, %v5136_v19 }
0x1986   :  { %v5146_v43 = vadd.f32 %v5144_v12, %v5142_v3 }
0x1987   :  { %v5154_v38 = vpop.permute.xlu1 %5153 }
0x1988   :  { %v6071_v46 = vmul.f32 -1.442695, %v5146_v43 }
0x198a   :  { %6579 = vpow2.f32 %v6071_v46  ;;  %v7770_v46 = vmov 4  }
0x1997   :  { %v6580_v58 = vpop.eup %6579 }
0x1998   :  { %v5150_v47 = vadd.f32 1.0, %v6580_v58  ;;  %v7772_v58 = vmov 12  }
0x199a   :  { %6581 = vrcp.f32 %v5150_v47  ;;  %v7773_v47 = vmov 15  }
0x19a7   :  { %v6582_v23 = vpop.eup %6581 }
0x19a8   :  { %v5156_v24 = vmul.f32 %v6582_v23, %v5154_v38  ;;  %v5163_v62 = vsub.f32 1.0, %v6582_v23  ;;  %v5172_v57 = vmul.f32 %v6582_v23, %v5170_v13 }
0x19aa   :  { %5158 = vrot.lane.b32.xlu0 %v5156_v24, %s6740_s3 }
0x19ae   :  { %5190 = vrot.lane.b32.xlu0 %v7387_v50, %s6743_s9 }
0x1a1c   :  { %v5159_v34 = vpop.permute.xlu0 %5158 }
0x1a1d   :  { %v5161_v17 = vadd.f32 %v5159_v34, %v5142_v3  ;;  %v7771_v3 = vmov 2  }
0x1a1f   :  { %6583 = vtanh.f32 %v5161_v17 }
0x1a20   :  { %v5191_v12 = vpop.permute.xlu0 %5190 }
0x1a2c   :  { %v6584_v59 = vpop.eup %6583 }
0x1a2d   :  { %5165 = vrot.lane.b32.xlu1 %v6584_v59, %s6743_s9 }
0x1a9f   :  { %v5166_v15 = vpop.permute.xlu1 %5165 }
0x1aa0   :  { %v5168_v56 = vmul.f32 %v5166_v15, %v5163_v62 }
0x1aa2   :  { %v7421_v19 = vadd.f32 %v5172_v57, %v5168_v56 }
0x1aa4   :  { %v5193_v43 = vsel %vm79_vm1, %v5191_v12, %v7421_v19 }
0x1aa5   :  { %5202 = vperm.xlu0 %6374, %v5193_v43   ;;  %5196 = vperm.xlu1 %6373, %v5193_v43  }
0x1aa9   :  { %6377 = vset.pattern.permute.xlu0 %v7770_v46  ;;  %6375 = vset.pattern.permute.xlu1 %v7771_v3 }
0x1aaa   :  { %5220 = vperm.xlu0 %6377, %v5193_v43   ;;  %5208 = vperm.xlu1 %6375, %v5193_v43  }
0x1aae   :  { %6380 = vset.pattern.permute.xlu0 %v7766_v11  ;;  %6376 = vset.pattern.permute.xlu1 %v7767_v29 }
0x1aaf   :  { %5238 = vperm.xlu0 %6380, %v5193_v43   ;;  %5214 = vperm.xlu1 %6376, %v5193_v43  }
0x1ab3   :  { %6383 = vset.pattern.permute.xlu0 %v7755_v61  ;;  %6378 = vset.pattern.permute.xlu1 %v7762_v40 }
0x1ab4   :  { %5256 = vperm.xlu0 %6383, %v5193_v43   ;;  %5226 = vperm.xlu1 %6378, %v5193_v43  }
0x1ab8   :  { %6386 = vset.pattern.permute.xlu0 %v7751_v2  ;;  %6379 = vset.pattern.permute.xlu1 %v7763_v25 }
0x1ab9   :  { %5274 = vperm.xlu0 %6386, %v5193_v43   ;;  %5232 = vperm.xlu1 %6379, %v5193_v43  }
0x1abd   :  { %6381 = vset.pattern.permute.xlu1 %v7761_v60  ;;  %6390 = vset.pattern.permute.xlu0 %v7760_v0 }
0x1abe   :  { %5244 = vperm.xlu1 %6381, %v5193_v43  }
0x1ac2   :  { %6382 = vset.pattern.permute.xlu1 %v7760_v0 }
0x1ac3   :  { %5250 = vperm.xlu1 %6382, %v5193_v43  }
0x1ac7   :  { %6384 = vset.pattern.permute.xlu1 %v7753_v63 }
0x1ac8   :  { %5262 = vperm.xlu1 %6384, %v5193_v43  }
0x1acc   :  { %6385 = vset.pattern.permute.xlu1 %v7772_v58 }
0x1acd   :  { %5268 = vperm.xlu1 %6385, %v5193_v43  }
0x1ad1   :  { %6387 = vset.pattern.permute.xlu1 %v7769_v49 }
0x1ad2   :  { %5280 = vperm.xlu1 %6387, %v5193_v43  }
0x1ad6   :  { %6388 = vset.pattern.permute.xlu1 %v7773_v47 }
0x1ad7   :  { %5286 = vperm.xlu1 %6388, %v5193_v43  }
0x1adb   :  { %6389 = vset.pattern.permute.xlu1 %v7761_v60 }
0x1b20   :  { %v5197_v23 = vpop.permute.xlu1 %5196  ;;  %v5203_v24 = vpop.permute.xlu0 %5202 }
0x1b21   :  { %v5199_v38 = vmul.f32 %v5197_v23, %v6873_v7  ;;  %v5205_v17 = vmul.f32 %v5203_v24, %v6876_v8 }
0x1b23   :  { %v5200_v34 = vadd.f32 %v7205_v32, %v5199_v38 }
0x1b25   :  { %v5209_v59 = vpop.permute.xlu1 %5208  ;;  %v5206_v62 = vadd.f32 %v5205_v17, %v5200_v34  ;;  %v5221_v12 = vpop.permute.xlu0 %5220 }
0x1b26   :  { %v5211_v13 = vmul.f32 %v5209_v59, %v6879_v9  ;;  %v5223_v2 = vmul.f32 %v5221_v12, %v6897_v18 }
0x1b28   :  { %v5212_v57 = vadd.f32 %v5211_v13, %v5206_v62 }
0x1b2a   :  { %v5215_v15 = vpop.permute.xlu1 %5214  ;;  %v5239_v24 = vpop.permute.xlu0 %5238 }
0x1b2b   :  { %v5217_v56 = vmul.f32 %v5215_v15, %v6889_v14  ;;  %v5241_v17 = vmul.f32 %v5239_v24, %v6915_v30 }
0x1b2d   :  { %v5218_v43 = vadd.f32 %v5217_v56, %v5212_v57 }
0x1b2f   :  { %v5227_v63 = vpop.permute.xlu1 %5226  ;;  %v5224_v61 = vadd.f32 %v5223_v2, %v5218_v43  ;;  %v5257_v12 = vpop.permute.xlu0 %5256 }
0x1b30   :  { %v5229_v23 = vmul.f32 %v5227_v63, %v6904_v22  ;;  %v5259_v63 = vmul.f32 %v5257_v12, %v6927_v39 }
0x1b32   :  { %v5230_v32 = vadd.f32 %v5229_v23, %v5224_v61 }
0x1b34   :  { %v5233_v20 = vpop.permute.xlu1 %5232  ;;  %v5275_v24 = vpop.permute.xlu0 %5274 }
0x1b35   :  { %v5235_v38 = vmul.f32 %v5233_v20, %v6911_v26 }
0x1b37   :  { %v5236_v34 = vadd.f32 %v5235_v38, %v5230_v32 }
0x1b39   :  { %v5245_v59 = vpop.permute.xlu1 %5244  ;;  %v5242_v62 = vadd.f32 %v5241_v17, %v5236_v34  ;;  %v5277_v17 = vmul.f32 %v5275_v24, %v6939_v48 }
0x1b3a   :  { %v5247_v13 = vmul.f32 %v5245_v59, %v6919_v33 }
0x1b3c   :  { %v5248_v57 = vadd.f32 %v5247_v13, %v5242_v62 }
0x1b3e   :  { %v5251_v15 = vpop.permute.xlu1 %5250 }
0x1b3f   :  { %v5253_v56 = vmul.f32 %v5251_v15, %v6923_v36 }
0x1b41   :  { %v5254_v2 = vadd.f32 %v5253_v56, %v5248_v57 }
0x1b43   :  { %v5263_v43 = vpop.permute.xlu1 %5262  ;;  %v5260_v61 = vadd.f32 %v5259_v63, %v5254_v2 }
0x1b44   :  { %v5265_v20 = vmul.f32 %v5263_v43, %v6931_v42 }
0x1b46   :  { %v5266_v32 = vadd.f32 %v5265_v20, %v5260_v61 }
0x1b48   :  { %v5269_v23 = vpop.permute.xlu1 %5268 }
0x1b49   :  { %v5271_v38 = vmul.f32 %v5269_v23, %v6935_v45 }
0x1b4b   :  { %v5272_v34 = vadd.f32 %v5271_v38, %v5266_v32 }
0x1b4d   :  { %v5281_v59 = vpop.permute.xlu1 %5280  ;;  %v5278_v62 = vadd.f32 %v5277_v17, %v5272_v34 }
0x1b4e   :  { %v5283_v13 = vmul.f32 %v5281_v59, %v6943_v51 }
0x1b50   :  { %v5284_v57 = vadd.f32 %v5283_v13, %v5278_v62  ;;  %v5317_v62 = vrot.slane %v7387_v50, 6  ;;  %v7775_v50 = vmov 11  }
0x1b52   :  { %v5287_v15 = vpop.permute.xlu1 %5286 }
0x1b53   :  { %v5289_v56 = vmul.f32 %v5287_v15, %v6947_v54 }
0x1b55   :  { %v5290_v12 = vadd.f32 %v5289_v56, %v5284_v57 }
0x1b57   :  { %v5292_v2 = vrot.slane %v5290_v12, 6  ;;  %v7774_v12 = vmov 10  }
0x1b59   :  { %5301 = vrot.lane.b32.xlu0 %v5292_v2, %s6739_s2  ;;  %v5294_v63 = vadd.f32 %v5292_v2, %v6958_v31 }
0x1b5b   :  { %v6074_v43 = vmul.f32 -1.442695, %v5294_v63  ;;  %v7776_v63 = vmov 13  }
0x1b5d   :  { %6585 = vpow2.f32 %v6074_v43 }
0x1b6a   :  { %v6586_v61 = vpop.eup %6585 }
0x1b6b   :  { %v5298_v20 = vadd.f32 1.0, %v6586_v61 }
0x1b6d   :  { %6587 = vrcp.f32 %v5298_v20 }
0x1b7a   :  { %v6588_v23 = vpop.eup %6587 }
0x1b7b   :  { %v5311_v59 = vsub.f32 1.0, %v6588_v23  ;;  %v5319_v57 = vmul.f32 %v6588_v23, %v5317_v62 }
0x1bcb   :  { %v5302_v32 = vpop.permute.xlu0 %5301 }
0x1bcc   :  { %v5304_v38 = vmul.f32 %v6588_v23, %v5302_v32 }
0x1bce   :  { %5306 = vrot.lane.b32.xlu1 %v5304_v38, %s6740_s3 }
0x1c40   :  { %v5307_v24 = vpop.permute.xlu1 %5306 }
0x1c41   :  { %v5309_v34 = vadd.f32 %v5307_v24, %v6958_v31 }
0x1c43   :  { %6589 = vtanh.f32 %v5309_v34 }
0x1c50   :  { %v6590_v17 = vpop.eup %6589 }
0x1c51   :  { %5313 = vrot.lane.b32.xlu0 %v6590_v17, %s6743_s9 }
0x1cc3   :  { %v5314_v13 = vpop.permute.xlu0 %5313 }
0x1cc4   :  { %v5316_v15 = vmul.f32 %v5314_v13, %v5311_v59 }
0x1cc6   :  { %v7464_v56 = vadd.f32 %v5319_v57, %v5316_v15 }
0x1cc8   :  { %5329 = vperm.xlu0 %6390, %v7464_v56   ;;  %5323 = vperm.xlu1 %6389, %v7464_v56  }
0x1ccc   :  { %6393 = vset.pattern.permute.xlu0 %v7772_v58  ;;  %6391 = vset.pattern.permute.xlu1 %v7774_v12 }
0x1ccd   :  { %5347 = vperm.xlu0 %6393, %v7464_v56   ;;  %5335 = vperm.xlu1 %6391, %v7464_v56  }
0x1cd1   :  { %6396 = vset.pattern.permute.xlu0 %v7773_v47  ;;  %6392 = vset.pattern.permute.xlu1 %v7775_v50 }
0x1cd2   :  { %5365 = vperm.xlu0 %6396, %v7464_v56   ;;  %5341 = vperm.xlu1 %6392, %v7464_v56  }
0x1cd6   :  { %6394 = vset.pattern.permute.xlu1 %v7776_v63  ;;  %6398 = vset.pattern.permute.xlu0 %v7768_v37 }
0x1cd7   :  { %5353 = vperm.xlu1 %6394, %v7464_v56  }
0x1cdb   :  { %6395 = vset.pattern.permute.xlu1 %v7769_v49 }
0x1cdc   :  { %5359 = vperm.xlu1 %6395, %v7464_v56  }
0x1ce0   :  { %5370 = vrot.lane.b32.xlu1 %v5292_v2, %s6750_s10 }
0x1ce1   :  { %6397 = vset.pattern.permute.xlu1 %v7764_v41 }
0x1ce4   :  { %5380 = vrot.lane.b32.xlu1 %v5292_v2, %s6751_s11 }
0x1d43   :  { %v5324_v43 = vpop.permute.xlu1 %5323  ;;  %v5330_v20 = vpop.permute.xlu0 %5329 }
0x1d44   :  { %v5326_v61 = vmul.f32 %v5324_v43, %v6990_v16  ;;  %v5332_v37 = vmul.f32 %v5330_v20, %v6995_v21 }
0x1d46   :  { %v5327_v23 = vadd.f32 %v7250_v44, %v5326_v61 }
0x1d48   :  { %v5336_v32 = vpop.permute.xlu1 %5335  ;;  %v5333_v38 = vadd.f32 %v5332_v37, %v5327_v23  ;;  %v5348_v62 = vpop.permute.xlu0 %5347 }
0x1d49   :  { %v5338_v24 = vmul.f32 %v5336_v32, %v7000_v28  ;;  %v5350_v2 = vmul.f32 %v5348_v62, %v7008_v4  ;;  %v5396_v62 = vrot.slane %v7421_v19, 6 }
0x1d4b   :  { %v5339_v17 = vadd.f32 %v5338_v24, %v5333_v38 }
0x1d4d   :  { %v5342_v34 = vpop.permute.xlu1 %5341  ;;  %v5366_v43 = vpop.permute.xlu0 %5365 }
0x1d4e   :  { %v5344_v59 = vmul.f32 %v5342_v34, %v7005_v35  ;;  %v5368_v23 = vmul.f32 %v5366_v43, %v7020_v10 }
0x1d50   :  { %v5345_v41 = vadd.f32 %v5344_v59, %v5339_v17 }
0x1d52   :  { %v5354_v13 = vpop.permute.xlu1 %5353  ;;  %v5351_v15 = vadd.f32 %v5350_v2, %v5345_v41 }
0x1d53   :  { %v5356_v57 = vmul.f32 %v5354_v13, %v7012_v5 }
0x1d55   :  { %v5357_v61 = vadd.f32 %v5356_v57, %v5351_v15 }
0x1d57   :  { %v5360_v44 = vpop.permute.xlu1 %5359 }
0x1d58   :  { %v5362_v20 = vmul.f32 %v5360_v44, %v7017_v6 }
0x1d5a   :  { %v5363_v37 = vadd.f32 %v5362_v20, %v5357_v61 }
0x1d5b   :  { %v5371_v38 = vpop.permute.xlu1 %5370 }
0x1d5c   :  { %v5369_v32 = vadd.f32 %v5368_v23, %v5363_v37 }
0x1d5e   :  { %v5373_v24 = vadd.f32 %v5371_v38, %v5369_v32 }
0x1d5f   :  { %v5381_v2 = vpop.permute.xlu1 %5380 }
0x1d60   :  { %v6075_v34 = vmul.f32 -1.442695, %v5373_v24 }
0x1d62   :  { %6591 = vpow2.f32 %v6075_v34 }
0x1d6f   :  { %v6592_v17 = vpop.eup %6591 }
0x1d70   :  { %v5377_v59 = vadd.f32 1.0, %v6592_v17 }
0x1d72   :  { %6593 = vrcp.f32 %v5377_v59 }
0x1d7f   :  { %v6594_v41 = vpop.eup %6593 }
0x1d80   :  { %v5383_v13 = vmul.f32 %v6594_v41, %v5381_v2  ;;  %v5398_v52 = vmul.f32 %v6594_v41, %v5396_v62  ;;  %v5390_v44 = vsub.f32 1.0, %v6594_v41 }
0x1d82   :  { %5385 = vrot.lane.b32.xlu0 %v5383_v13, %s6740_s3 }
0x1d86   :  { %5416 = vrot.lane.b32.xlu0 %v7464_v56, %s6743_s9 }
0x1df4   :  { %v5386_v15 = vpop.permute.xlu0 %5385 }
0x1df5   :  { %v5388_v57 = vadd.f32 %v5386_v15, %v5369_v32 }
0x1df7   :  { %6595 = vtanh.f32 %v5388_v57 }
0x1df8   :  { %v5417_v37 = vpop.permute.xlu0 %5416 }
0x1e04   :  { %v6596_v43 = vpop.eup %6595 }
0x1e05   :  { %5392 = vrot.lane.b32.xlu1 %v6596_v43, %s6743_s9 }
0x1e77   :  { %v5393_v61 = vpop.permute.xlu1 %5392 }
0x1e78   :  { %v5395_v20 = vmul.f32 %v5393_v61, %v5390_v44 }
0x1e7a   :  { %v7498_v23 = vadd.f32 %v5398_v52, %v5395_v20 }
0x1e7c   :  { %v5419_v38 = vsel %vm79_vm1, %v5417_v37, %v7498_v23 }
0x1e7d   :  { %5428 = vperm.xlu0 %6398, %v5419_v38   ;;  %5422 = vperm.xlu1 %6397, %v5419_v38  }
0x1e81   :  { %6401 = vset.pattern.permute.xlu0 %v7770_v46  ;;  %6399 = vset.pattern.permute.xlu1 %v7771_v3 }
0x1e82   :  { %5446 = vperm.xlu0 %6401, %v5419_v38   ;;  %5434 = vperm.xlu1 %6399, %v5419_v38  }
0x1e86   :  { %6404 = vset.pattern.permute.xlu0 %v7766_v11  ;;  %6400 = vset.pattern.permute.xlu1 %v7767_v29 }
0x1e87   :  { %5464 = vperm.xlu0 %6404, %v5419_v38   ;;  %5440 = vperm.xlu1 %6400, %v5419_v38  }
0x1e8b   :  { %6407 = vset.pattern.permute.xlu0 %v7774_v12  ;;  %6402 = vset.pattern.permute.xlu1 %v7762_v40 }
0x1e8c   :  { %5482 = vperm.xlu0 %6407, %v5419_v38   ;;  %5452 = vperm.xlu1 %6402, %v5419_v38  }
0x1e90   :  { %6410 = vset.pattern.permute.xlu0 %v7776_v63  ;;  %6403 = vset.pattern.permute.xlu1 %v7763_v25 }
0x1e91   :  { %5500 = vperm.xlu0 %6410, %v5419_v38   ;;  %5458 = vperm.xlu1 %6403, %v5419_v38  }
0x1e95   :  { %6405 = vset.pattern.permute.xlu1 %v7761_v60  ;;  %6414 = vset.pattern.permute.xlu0 %v7760_v0 }
0x1e96   :  { %5470 = vperm.xlu1 %6405, %v5419_v38  }
0x1e9a   :  { %6406 = vset.pattern.permute.xlu1 %v7760_v0  ;;  %v6621_v0 = vld [vmem:[#allocation8 + $0x88] ss:$0 sm:$0xff] }
0x1e9b   :  { %5476 = vperm.xlu1 %6406, %v5419_v38  }
0x1e9f   :  { %6408 = vset.pattern.permute.xlu1 %v7775_v50 }
0x1ea0   :  { %5488 = vperm.xlu1 %6408, %v5419_v38  }
0x1ea4   :  { %6409 = vset.pattern.permute.xlu1 %v7772_v58 }
0x1ea5   :  { %5494 = vperm.xlu1 %6409, %v5419_v38  }
0x1ea9   :  { %6411 = vset.pattern.permute.xlu1 %v7769_v49 }
0x1eaa   :  { %5506 = vperm.xlu1 %6411, %v5419_v38  }
0x1eae   :  { %6412 = vset.pattern.permute.xlu1 %v7773_v47 }
0x1eaf   :  { %5512 = vperm.xlu1 %6412, %v5419_v38  }
0x1eb3   :  { %6413 = vset.pattern.permute.xlu1 %v7761_v60 }
0x1ef8   :  { %v5423_v52 = vpop.permute.xlu1 %5422  ;;  %v5429_v25 = vpop.permute.xlu0 %5428 }
0x1ef9   :  { %v5425_v40 = vmul.f32 %v5423_v52, %v6873_v7  ;;  %v5431_v29 = vmul.f32 %v5429_v25, %v6876_v8 }
0x1efb   :  { %v5426_v11 = vadd.f32 %v6621_v0, %v5425_v40 }
0x1efd   :  { %v5435_v46 = vpop.permute.xlu1 %5434  ;;  %v5432_v3 = vadd.f32 %v5431_v29, %v5426_v11  ;;  %v5447_v59 = vpop.permute.xlu0 %5446 }
0x1efe   :  { %v5437_v32 = vmul.f32 %v5435_v46, %v6879_v9  ;;  %v5449_v60 = vmul.f32 %v5447_v59, %v6897_v18 }
0x1f00   :  { %v5438_v34 = vadd.f32 %v5437_v32, %v5432_v3 }
0x1f02   :  { %v5441_v24 = vpop.permute.xlu1 %5440  ;;  %v5465_v57 = vpop.permute.xlu0 %5464 }
0x1f03   :  { %v5443_v17 = vmul.f32 %v5441_v24, %v6889_v14  ;;  %v5467_v9 = vmul.f32 %v5465_v57, %v6915_v30 }
0x1f05   :  { %v5444_v62 = vadd.f32 %v5443_v17, %v5438_v34 }
0x1f07   :  { %v5453_v41 = vpop.permute.xlu1 %5452  ;;  %v5450_v2 = vadd.f32 %v5449_v60, %v5444_v62  ;;  %v5483_v38 = vpop.permute.xlu0 %5482 }
0x1f08   :  { %v5455_v7 = vmul.f32 %v5453_v41, %v6904_v22  ;;  %v5485_v22 = vmul.f32 %v5483_v38, %v6927_v39 }
0x1f0a   :  { %v5456_v15 = vadd.f32 %v5455_v7, %v5450_v2 }
0x1f0c   :  { %v5459_v13 = vpop.permute.xlu1 %5458  ;;  %v5501_v29 = vpop.permute.xlu0 %5500 }
0x1f0d   :  { %v5461_v8 = vmul.f32 %v5459_v13, %v6911_v26 }
0x1f0f   :  { %v5462_v43 = vadd.f32 %v5461_v8, %v5456_v15  ;;  %v5543_v15 = vrot.slane %v7464_v56, 6 }
0x1f11   :  { %v5471_v44 = vpop.permute.xlu1 %5470  ;;  %v5468_v61 = vadd.f32 %v5467_v9, %v5462_v43 }
0x1f12   :  { %v5473_v14 = vmul.f32 %v5471_v44, %v6919_v33  ;;  %v5503_v33 = vmul.f32 %v5501_v29, %v6939_v48  ;;  %v5922_v44 = vld.sshfl [vmem:[#allocation5 + $0x2] sm:$0x11 pattern:$0x75316420] }
0x1f13   :  { %v590_v38 = vcombine.high %v5922_v44, %v5922_v44 }
0x1f14   :  { %v5474_v37 = vadd.f32 %v5473_v14, %v5468_v61 }
0x1f16   :  { %v5477_v20 = vpop.permute.xlu1 %5476 }
0x1f17   :  { %v5479_v18 = vmul.f32 %v5477_v20, %v6923_v36 }
0x1f19   :  { %v5480_v52 = vadd.f32 %v5479_v18, %v5474_v37  ;;  %v727_v37 = vld [vmem:[#allocation7 + $0x10] sm:$0xff]  ;;  %v802_v18 = vld [vmem:[#allocation7 + $0x18] sm:$0xff] }
0x1f1b   :  { %v5489_v40 = vpop.permute.xlu1 %5488  ;;  %v5486_v25 = vadd.f32 %v5485_v22, %v5480_v52  ;;  %v5930_v52 = vcombine.high %v727_v37, %v727_v37  ;;  %v5928_v22 = vld.sshfl [vmem:[#allocation5 + $0x4] sm:$0x11 pattern:$0x75316420] }
0x1f1c   :  { %v5491_v26 = vmul.f32 %v5489_v40, %v6931_v42 }
0x1f1e   :  { %v5492_v11 = vadd.f32 %v5491_v26, %v5486_v25  ;;  %v5931_v25 = vld.sshfl [vmem:[#allocation5 + $0x6] sm:$0x11 pattern:$0x75316420]  ;;  %v5933_v26 = vcombine.high %v802_v18, %v802_v18 }
0x1f1f   :  { %v811_v29 = vcombine.high %v5931_v25, %v5931_v25 }
0x1f20   :  { %v5495_v0 = vpop.permute.xlu1 %5494 }
0x1f21   :  { %v5497_v30 = vmul.f32 %v5495_v0, %v6935_v45 }
0x1f23   :  { %v5498_v46 = vadd.f32 %v5497_v30, %v5492_v11  ;;  %v736_v11 = vcombine.high %v5928_v22, %v5928_v22  ;;  %v877_v30 = vld [vmem:[#allocation7 + $0x20] sm:$0xff] }
0x1f25   :  { %v5507_v3 = vpop.permute.xlu1 %5506  ;;  %v5504_v32 = vadd.f32 %v5503_v33, %v5498_v46 }
0x1f26   :  { %v5509_v36 = vmul.f32 %v5507_v3, %v6943_v51  ;;  %v952_v3 = vld [vmem:[#allocation7 + $0x28] sm:$0xff] }
0x1f28   :  { %v5510_v34 = vadd.f32 %v5509_v36, %v5504_v32  ;;  %v5929_v32 = vcombine.low %v727_v37, %v727_v37  ;;  %v5932_v36 = vcombine.low %v802_v18, %v802_v18  ;;  %v5949_v18 = vld.sshfl [vmem:[#allocation5 + $0x12] sm:$0x11 pattern:$0x75316420] }
0x1f2a   :  { %v5513_v24 = vpop.permute.xlu1 %5512 }
0x1f2b   :  { %v5515_v39 = vmul.f32 %v5513_v24, %v6947_v54 }
0x1f2d   :  { %v5516_v17 = vadd.f32 %v5515_v39, %v5510_v34  ;;  %v5936_v34 = vcombine.high %v877_v30, %v877_v30 }
0x1f2f   :  { %v5518_v59 = vrot.slane %v5516_v17, 6  ;;  %v5939_v17 = vcombine.high %v952_v3, %v952_v3 }
0x1f31   :  { %5527 = vrot.lane.b32.xlu0 %v5518_v59, %s6739_s2  ;;  %v5520_v42 = vadd.f32 %v5518_v59, %v6958_v31 }
0x1f33   :  { %v6078_v62 = vmul.f32 -1.442695, %v5520_v42  ;;  %v5937_v42 = vld.sshfl [vmem:[#allocation5 + $0xa] sm:$0x11 pattern:$0x75316420] }
0x1f35   :  { %6597 = vpow2.f32 %v6078_v62 }
0x1f42   :  { %v6598_v45 = vpop.eup %6597 }
0x1f43   :  { %v5524_v60 = vadd.f32 1.0, %v6598_v45  ;;  %v1027_v45 = vld [vmem:[#allocation7 + $0x30] sm:$0xff] }
0x1f45   :  { %6599 = vrcp.f32 %v5524_v60  ;;  %v961_v60 = vcombine.high %v5937_v42, %v5937_v42 }
0x1f52   :  { %v6600_v48 = vpop.eup %6599 }
0x1f53   :  { %v5537_v13 = vsub.f32 1.0, %v6600_v48  ;;  %v5545_v43 = vmul.f32 %v6600_v48, %v5543_v15 }
0x1fa3   :  { %v5528_v41 = vpop.permute.xlu0 %5527 }
0x1fa4   :  { %v5530_v2 = vmul.f32 %v6600_v48, %v5528_v41 }
0x1fa6   :  { %5532 = vrot.lane.b32.xlu1 %v5530_v2, %s6740_s3  ;;  %v1102_v2 = vld [vmem:[#allocation7 + $0x38] sm:$0xff] }
0x2018   :  { %v5533_v51 = vpop.permute.xlu1 %5532 }
0x2019   :  { %v5535_v7 = vadd.f32 %v5533_v51, %v6958_v31  ;;  %v6760_v31 = vmov 1966171168   ;;  %v5935_v51 = vcombine.low %v877_v30, %v877_v30 }
0x201b   :  { %6601 = vtanh.f32 %v5535_v7  ;;  %v5938_v7 = vcombine.low %v952_v3, %v952_v3  ;;  %v5952_v3 = vld.sshfl [vmem:[#allocation5 + $0x14] sm:$0x11 pattern:$0x75316420] }
0x2028   :  { %v6602_v54 = vpop.eup %6601 }
0x2029   :  { %5539 = vrot.lane.b32.xlu0 %v6602_v54, %s6743_s9 }
0x209b   :  { %v5540_v8 = vpop.permute.xlu0 %5539 }
0x209c   :  { %v5542_v57 = vmul.f32 %v5540_v8, %v5537_v13  ;;  %v5942_v13 = vcombine.high %v1027_v45, %v1027_v45  ;;  %v5945_v8 = vcombine.high %v1102_v2, %v1102_v2 }
0x209e   :  { %v5546_v9 = vadd.f32 %v5545_v43, %v5542_v57  ;;  %v5940_v57 = vld.sshfl [vmem:[#allocation5 + $0xc] sm:$0x11 pattern:$0x75316420] }
0x209f   :  { %v5943_v43 = vld.sshfl [vmem:[#allocation5 + $0xe] sm:$0x11 pattern:$0x75316420] }
0x20a0   :  { %5555 = vperm.xlu0 %6414, %v5546_v9   ;;  %5549 = vperm.xlu1 %6413, %v5546_v9  }
0x20a4   :  { %6417 = vset.pattern.permute.xlu0 %v7772_v58  ;;  %6415 = vset.pattern.permute.xlu1 %v7774_v12  ;;  %v592_v58 = vunpack.c.l.s4 %v6760_v31  ;;  %v1177_v31 = vld [vmem:[#allocation7 + $0x40] sm:$0xff] }
0x20a5   :  { %5573 = vperm.xlu0 %6417, %v5546_v9   ;;  %5561 = vperm.xlu1 %6415, %v5546_v9  }
0x20a6   :  { %v593_v56 = vunpack.c.0.s8 %v592_v58  ;;  %v1111_v58 = vcombine.high %v5943_v43, %v5943_v43 }
0x20a8   :  { %v7549_v12 = vsub.s32 %v593_v56, %v6858_v1 }
0x20a9   :  { %6420 = vset.pattern.permute.xlu0 %v7773_v47  ;;  %6416 = vset.pattern.permute.xlu1 %v7775_v50  ;;  %v581_v47 = vld [vmem:[#allocation7 + $0x8] sm:$0xff]  ;;  %v579_v50 = vld [vmem:[#allocation7] sm:$0xff] }
0x20aa   :  { %5591 = vperm.xlu0 %6420, %v5546_v9   ;;  %5567 = vperm.xlu1 %6416, %v5546_v9   ;;  %v5923_v61 = vcombine.low %v581_v47, %v581_v47  ;;  %v5924_v14 = vcombine.high %v581_v47, %v581_v47  ;;  %v5927_v20 = vcombine.high %v579_v50, %v579_v50 }
0x20ab   :  { %v604_v1 = vrot.slane %v590_v38, %v7549_v12  ;;  %v597_v46 = vrot.slane %v5922_v44, %v7549_v12  ;;  %v750_v24 = vrot.slane %v736_v11, %v7549_v12  ;;  %v825_v39 = vrot.slane %v811_v29, %v7549_v12 }
0x20ac   :  { %628 = vmatprep.subr.bf16.mxu1 %v5924_v14  ;;  %700 = vmatprep.subr.bf16.mxu0 %v5927_v20  ;;  %v743_v48 = vrot.slane %v5928_v22, %v7549_v12  ;;  %v818_v41 = vrot.slane %v5931_v25, %v7549_v12  ;;  %v975_v15 = vrot.slane %v961_v60, %v7549_v12 }
0x20ad   :  { %629 = vmatpush1.bf16.xpose.msra.mxu1 %v5923_v61  ;;  %646 = vmatprep.mubr.bf16.mxu1 %v604_v1  ;;  %v968_v47 = vrot.slane %v5937_v42, %v7549_v12  ;;  %v5941_v44 = vcombine.low %v1027_v45, %v1027_v45  ;;  %v5944_v61 = vcombine.low %v1102_v2, %v1102_v2  ;;  %v1402_v1 = vld [vmem:[#allocation7 + $0x58] sm:$0xff] }
0x20ae   :  { %6418 = vset.pattern.permute.xlu1 %v7776_v63  ;;  %v5926_v63 = vcombine.low %v579_v50, %v579_v50  ;;  %774 = vmatprep.subr.bf16.mxu1 %v5930_v52  ;;  %v1252_v50 = vld [vmem:[#allocation7 + $0x48] sm:$0xff]  ;;  %v1125_v20 = vrot.slane %v1111_v58, %v7549_v12  ;;  %v1327_v52 = vld [vmem:[#allocation7 + $0x50] sm:$0xff]  ;;  %v1261_v22 = vcombine.high %v5949_v18, %v5949_v18 }
0x20af   :  { %5579 = vperm.xlu1 %6418, %v5546_v9   ;;  %v5951_v37 = vcombine.high %v1252_v50, %v1252_v50  ;;  %v1118_v25 = vrot.slane %v5943_v43, %v7549_v12  ;;  %v5954_v30 = vcombine.high %v1327_v52, %v1327_v52  ;;  %v1268_v60 = vrot.slane %v5949_v18, %v7549_v12 }
0x20b0   :  { %701 = vmatpush1.bf16.xpose.msra.mxu0 %v5926_v63  ;;  %v5948_v63 = vcombine.high %v1177_v31, %v1177_v31  ;;  %v5956_v2 = vcombine.low %v1402_v1, %v1402_v1 }
0x20b1   :  { %849 = vmatprep.subr.bf16.mxu0 %v5933_v26  ;;  %v5947_v26 = vcombine.low %v1177_v31, %v1177_v31 }
0x20b3   :  { %6419 = vset.pattern.permute.xlu1 %v7769_v49  ;;  %v5925_v49 = vld.sshfl [vmem:[#allocation5] sm:$0x11 pattern:$0x75316420] }
0x20b4   :  { %5585 = vperm.xlu1 %6419, %v5546_v9   ;;  %v662_v40 = vcombine.high %v5925_v49, %v5925_v49  ;;  %v669_v33 = vrot.slane %v5925_v49, %v7549_v12  ;;  %647 = vmatmul.mubr.bf16.vlgmr.msra.gmra.mxu1 %v597_v46  ;;  %v1036_v9 = vcombine.high %v5940_v57, %v5940_v57  ;;  %v5946_v49 = vld.sshfl [vmem:[#allocation5 + $0x10] sm:$0x11 pattern:$0x75316420] }
0x20b5   :  { %775 = vmatpush1.bf16.xpose.msra.mxu1 %v5929_v32  ;;  %792 = vmatprep.mubr.bf16.mxu1 %v750_v24  ;;  %v1186_v38 = vcombine.high %v5946_v49, %v5946_v49  ;;  %v1275_v46 = vrot.slane %v1261_v22, %v7549_v12 }
0x20b6   :  { %v676_v0 = vrot.slane %v662_v40, %v7549_v12  ;;  %924 = vmatprep.subr.bf16.mxu1 %v5936_v34  ;;  %v1050_v14 = vrot.slane %v1036_v9, %v7549_v12  ;;  %v1043_v40 = vrot.slane %v5940_v57, %v7549_v12  ;;  %v6622_v34 = vld [vmem:[#allocation8 + $0x98] ss:$0 sm:$0xff]  ;;  %v5958_v57 = vld.sshfl [vmem:[#allocation5 + $0x18] sm:$0x11 pattern:$0x75316420] }
0x20b7   :  { %v1200_v11 = vrot.slane %v1186_v38, %v7549_v12  ;;  %v1486_v58 = vcombine.high %v5958_v57, %v5958_v57 }
0x20b8   :  { %5596 = vrot.lane.b32.xlu1 %v5518_v59, %s6750_s10  ;;  %718 = vmatprep.mubr.bf16.mxu0 %v676_v0  ;;  %v5950_v0 = vcombine.low %v1252_v50, %v1252_v50 }
0x20b9   :  { %719 = vmatmul.mubr.bf16.vlgmr.msra.gmra.mxu0 %v669_v33  ;;  %v5957_v33 = vcombine.high %v1402_v1, %v1402_v1 }
0x20ba   :  { %850 = vmatpush1.bf16.xpose.msra.mxu0 %v5932_v36  ;;  %867 = vmatprep.mubr.bf16.mxu0 %v825_v39  ;;  %v5955_v36 = vld.sshfl [vmem:[#allocation5 + $0x16] sm:$0x11 pattern:$0x75316420] }
0x20bb   :  { %999 = vmatprep.subr.bf16.mxu0 %v5939_v17  ;;  %v1336_v17 = vcombine.high %v5952_v3, %v5952_v3  ;;  %v1411_v42 = vcombine.high %v5955_v36, %v5955_v36 }
0x20bc   :  { %5606 = vrot.lane.b32.xlu1 %v5518_v59, %s6751_s11  ;;  %v5934_v59 = vld.sshfl [vmem:[#allocation5 + $0x8] sm:$0x11 pattern:$0x75316420]  ;;  %793 = vmatmul.mubr.bf16.vlgmr.msra.gmra.mxu1 %v743_v48  ;;  %v1552_v48 = vld [vmem:[#allocation7 + $0x68] sm:$0xff] }
0x20bd   :  { %v886_v62 = vcombine.high %v5934_v59, %v5934_v59  ;;  %925 = vmatpush1.bf16.xpose.msra.mxu1 %v5935_v51  ;;  %v893_v56 = vrot.slane %v5934_v59, %v7549_v12  ;;  %v1477_v59 = vld [vmem:[#allocation7 + $0x60] sm:$0xff] }
0x20be   :  { %1074 = vmatprep.subr.bf16.mxu1 %v5942_v13  ;;  %v5960_v13 = vcombine.high %v1477_v59, %v1477_v59 }
0x20bf   :  { %v900_v54 = vrot.slane %v886_v62, %v7549_v12 }
0x20c1   :  { %868 = vmatmul.mubr.bf16.vlgmr.msra.gmra.mxu0 %v818_v41  ;;  %942 = vmatprep.mubr.bf16.mxu1 %v900_v54  ;;  %v5953_v41 = vcombine.low %v1327_v52, %v1327_v52  ;;  %v1350_v54 = vrot.slane %v1336_v17, %v7549_v12  ;;  %v1777_v17 = vld [vmem:[#allocation7 + $0x80] sm:$0xff] }
0x20c2   :  { %1000 = vmatpush1.bf16.xpose.msra.mxu0 %v5938_v7  ;;  %1017 = vmatprep.mubr.bf16.mxu0 %v975_v15  ;;  %v1425_v15 = vrot.slane %v1411_v42, %v7549_v12  ;;  %v5972_v42 = vcombine.high %v1777_v17, %v1777_v17 }
0x20c3   :  { %1149 = vmatprep.subr.bf16.mxu0 %v5945_v8  ;;  %v5963_v8 = vcombine.high %v1552_v48, %v1552_v48 }
0x20c4   :  { %943 = vmatmul.mubr.bf16.vlgmr.msra.gmra.mxu1 %v893_v56  ;;  %v1627_v56 = vld [vmem:[#allocation7 + $0x70] sm:$0xff] }
0x20c5   :  { %1075 = vmatpush1.bf16.xpose.msra.mxu1 %v5941_v44  ;;  %1092 = vmatprep.mubr.bf16.mxu1 %v1050_v14  ;;  %v1343_v44 = vrot.slane %v5952_v3, %v7549_v12  ;;  %v1702_v14 = vld [vmem:[#allocation7 + $0x78] sm:$0xff]  ;;  %v5966_v18 = vcombine.high %v1627_v56, %v1627_v56 }
0x20c6   :  { %1224 = vmatprep.subr.bf16.mxu1 %v5948_v63  ;;  %v5959_v63 = vcombine.low %v1477_v59, %v1477_v59  ;;  %v5969_v52 = vcombine.high %v1702_v14, %v1702_v14 }
0x20c9   :  { %1018 = vmatmul.mubr.bf16.vlgmr.msra.gmra.mxu0 %v968_v47 }
0x20ca   :  { %1150 = vmatpush1.bf16.xpose.msra.mxu0 %v5944_v61  ;;  %1167 = vmatprep.mubr.bf16.mxu0 %v1125_v20  ;;  %v1418_v61 = vrot.slane %v5955_v36, %v7549_v12  ;;  %v5962_v20 = vcombine.low %v1552_v48, %v1552_v48 }
0x20cb   :  { %1299 = vmatprep.subr.bf16.mxu0 %v5951_v37 }
0x20cc   :  { %1093 = vmatmul.mubr.bf16.vlgmr.msra.gmra.mxu1 %v1043_v40 }
0x20cd   :  { %1225 = vmatpush1.bf16.xpose.msra.mxu1 %v5947_v26  ;;  %1242 = vmatprep.mubr.bf16.mxu1 %v1200_v11 }
0x20ce   :  { %1374 = vmatprep.subr.bf16.mxu1 %v5954_v30  ;;  %v5965_v30 = vcombine.low %v1627_v56, %v1627_v56 }
0x20d1   :  { %1168 = vmatmul.mubr.bf16.vlgmr.msra.gmra.mxu0 %v1118_v25 }
0x20d2   :  { %1300 = vmatpush1.bf16.xpose.msra.mxu0 %v5950_v0  ;;  %1317 = vmatprep.mubr.bf16.mxu0 %v1275_v46  ;;  %v1493_v0 = vrot.slane %v5958_v57, %v7549_v12 }
0x20d3   :  { %1449 = vmatprep.subr.bf16.mxu0 %v5957_v33 }
0x20d9   :  { %1318 = vmatmul.mubr.bf16.vlgmr.msra.gmra.mxu0 %v1268_v60 }
0x20da   :  { %1450 = vmatpush1.bf16.xpose.msra.mxu0 %v5956_v2  ;;  %1467 = vmatprep.mubr.bf16.mxu0 %v1425_v15 }
0x20db   :  { %1599 = vmatprep.subr.bf16.mxu0 %v5963_v8  ;;  %v1927_v8 = vld [vmem:[#allocation7 + $0x90] sm:$0xff] }
0x20e1   :  { %1468 = vmatmul.mubr.bf16.vlgmr.msra.gmra.mxu0 %v1418_v61 }
0x20e2   :  { %1600 = vmatpush1.bf16.xpose.msra.mxu0 %v5962_v20 }
0x20e3   :  { %1749 = vmatprep.subr.bf16.mxu0 %v5969_v52  ;;  %v5622_v52 = vrot.slane %v7498_v23, 6 }
0x211b   :  { %v5550_v29 = vpop.permute.xlu1 %5549  ;;  %v5556_v24 = vpop.permute.xlu0 %5555 }
0x211c   :  { %v5552_v32 = vmul.f32 %v5550_v29, %v6990_v16  ;;  %v5558_v62 = vmul.f32 %v5556_v24, %v6995_v21  ;;  %v1193_v16 = vrot.slane %v5946_v49, %v7549_v12  ;;  %v5961_v21 = vld.sshfl [vmem:[#allocation5 + $0x1a] sm:$0x11 pattern:$0x75316420]  ;;  %v5968_v29 = vcombine.low %v1702_v14, %v1702_v14 }
0x211d   :  { %v1561_v47 = vcombine.high %v5961_v21, %v5961_v21  ;;  %v1568_v11 = vrot.slane %v5961_v21, %v7549_v12  ;;  %v5979_v14 = vld.sshfl [vmem:[#allocation5 + $0x26] sm:$0x11 pattern:$0x75316420] }
0x211e   :  { %v5553_v39 = vadd.f32 %v6622_v34, %v5552_v32  ;;  %1243 = vmatmul.mubr.bf16.vlgmr.msra.gmra.mxu1 %v1193_v16  ;;  %v5967_v34 = vld.sshfl [vmem:[#allocation5 + $0x1e] sm:$0x11 pattern:$0x75316420]  ;;  %v2011_v20 = vcombine.high %v5979_v14, %v5979_v14 }
0x211f   :  { %1375 = vmatpush1.bf16.xpose.msra.mxu1 %v5953_v41  ;;  %1392 = vmatprep.mubr.bf16.mxu1 %v1350_v54  ;;  %v1575_v38 = vrot.slane %v1561_v47, %v7549_v12  ;;  %v1711_v59 = vcombine.high %v5967_v34, %v5967_v34  ;;  %v1852_v16 = vld [vmem:[#allocation7 + $0x88] sm:$0xff]  ;;  %v1718_v48 = vrot.slane %v5967_v34, %v7549_v12  ;;  %v2302_v34 = vld [vmem:[#allocation7 + $0xb8] sm:$0xff] }
0x2120   :  { %v5562_v45 = vpop.permute.xlu1 %5561  ;;  %v5559_v51 = vadd.f32 %v5558_v62, %v5553_v39  ;;  %1524 = vmatprep.subr.bf16.mxu1 %v5960_v13  ;;  %v5971_v62 = vcombine.low %v1777_v17, %v1777_v17  ;;  %v5975_v41 = vcombine.high %v1852_v16, %v1852_v16  ;;  %v5973_v13 = vld.sshfl [vmem:[#allocation5 + $0x22] sm:$0x11 pattern:$0x75316420]  ;;  %v5993_v17 = vcombine.high %v2302_v34, %v2302_v34 }
0x2121   :  { %v5564_v7 = vmul.f32 %v5562_v45, %v7000_v28  ;;  %v5574_v28 = vpop.permute.xlu0 %5573  ;;  %1617 = vmatprep.mubr.bf16.mxu0 %v1575_v38  ;;  %v1725_v45 = vrot.slane %v1711_v59, %v7549_v12  ;;  %v1861_v57 = vcombine.high %v5973_v13, %v5973_v13  ;;  %v2152_v38 = vld [vmem:[#allocation7 + $0xa8] sm:$0xff]  ;;  %v5992_v59 = vcombine.low %v2302_v34, %v2302_v34 }
0x2122   :  { %v5576_v37 = vmul.f32 %v5574_v28, %v7008_v4  ;;  %1618 = vmatmul.mubr.bf16.vlgmr.msra.gmra.mxu0 %v1568_v11  ;;  %v1868_v28 = vrot.slane %v5973_v13, %v7549_v12  ;;  %v5982_v11 = vld.sshfl [vmem:[#allocation5 + $0x28] sm:$0x11 pattern:$0x75316420] }
0x2123   :  { %v5565_v9 = vadd.f32 %v5564_v7, %v5559_v51  ;;  %1750 = vmatpush1.bf16.xpose.msra.mxu0 %v5968_v29  ;;  %1767 = vmatprep.mubr.bf16.mxu0 %v1725_v45  ;;  %v5974_v51 = vcombine.low %v1852_v16, %v1852_v16  ;;  %v5970_v7 = vld.sshfl [vmem:[#allocation5 + $0x20] sm:$0x11 pattern:$0x75316420]  ;;  %v2377_v16 = vld [vmem:[#allocation7 + $0xc0] sm:$0xff] }
0x2124   :  { %1899 = vmatprep.subr.bf16.mxu0 %v5975_v41  ;;  %v1786_v54 = vcombine.high %v5970_v7, %v5970_v7  ;;  %v1793_v21 = vrot.slane %v5970_v7, %v7549_v12  ;;  %v5985_v29 = vld.sshfl [vmem:[#allocation5 + $0x2a] sm:$0x11 pattern:$0x75316420]  ;;  %v5996_v41 = vcombine.high %v2377_v16, %v2377_v16  ;;  %v2452_v7 = vld [vmem:[#allocation7 + $0xc8] sm:$0xff] }
0x2125   :  { %v5568_v43 = vpop.permute.xlu1 %5567  ;;  %v5592_v25 = vpop.permute.xlu0 %5591  ;;  %v5999_v13 = vcombine.high %v2452_v7, %v2452_v7 }
0x2126   :  { %v5570_v31 = vmul.f32 %v5568_v43, %v7005_v35  ;;  %v1500_v35 = vrot.slane %v1486_v58, %v7549_v12  ;;  %1393 = vmatmul.mubr.bf16.vlgmr.msra.gmra.mxu1 %v1343_v44  ;;  %v1800_v15 = vrot.slane %v1786_v54, %v7549_v12  ;;  %v5978_v43 = vcombine.high %v1927_v8, %v1927_v8  ;;  %v2002_v58 = vld [vmem:[#allocation7 + $0x98] sm:$0xff] }
0x2127   :  { %1525 = vmatpush1.bf16.xpose.msra.mxu1 %v5959_v63  ;;  %v5980_v56 = vcombine.low %v2002_v58, %v2002_v58  ;;  %v5981_v47 = vcombine.high %v2002_v58, %v2002_v58  ;;  %v2077_v63 = vld [vmem:[#allocation7 + $0xa0] sm:$0xff] }
0x2128   :  { %v5571_v50 = vadd.f32 %v5570_v31, %v5565_v9  ;;  %1542 = vmatprep.mubr.bf16.mxu1 %v1500_v35  ;;  %1674 = vmatprep.subr.bf16.mxu1 %v5966_v18  ;;  %v5977_v9 = vcombine.low %v1927_v8, %v1927_v8  ;;  %v1875_v31 = vrot.slane %v1861_v57, %v7549_v12  ;;  %v5994_v8 = vld.sshfl [vmem:[#allocation5 + $0x30] sm:$0x11 pattern:$0x75316420] }
0x2129   :  { %v5983_v35 = vcombine.low %v2077_v63, %v2077_v63  ;;  %v2025_v18 = vrot.slane %v2011_v20, %v7549_v12  ;;  %v2386_v57 = vcombine.high %v5994_v8, %v5994_v8  ;;  %v2393_v58 = vrot.slane %v5994_v8, %v7549_v12  ;;  %v2677_v20 = vld [vmem:[#allocation7 + $0xe0] sm:$0xff]  ;;  %v3127_v8 = vld [vmem:[#allocation7 + $0x110] sm:$0xff] }
0x212a   :  { %v5580_v49 = vpop.permute.xlu1 %5579  ;;  %v5577_v22 = vadd.f32 %v5576_v37, %v5571_v50  ;;  %1768 = vmatmul.mubr.bf16.vlgmr.msra.gmra.mxu0 %v1718_v48  ;;  %v5976_v50 = vld.sshfl [vmem:[#allocation5 + $0x24] sm:$0x11 pattern:$0x75316420] }
0x212b   :  { %v5582_v40 = vmul.f32 %v5580_v49, %v7012_v5  ;;  %v5594_v5 = vmul.f32 %v5592_v25, %v7020_v10  ;;  %1900 = vmatpush1.bf16.xpose.msra.mxu0 %v5974_v51  ;;  %1917 = vmatprep.mubr.bf16.mxu0 %v1875_v31  ;;  %v1936_v44 = vcombine.high %v5976_v50, %v5976_v50 }
0x212c   :  { %2049 = vmatprep.subr.bf16.mxu0 %v5981_v47  ;;  %v1943_v37 = vrot.slane %v5976_v50, %v7549_v12  ;;  %v5984_v49 = vcombine.high %v2077_v63, %v2077_v63  ;;  %v2018_v25 = vrot.slane %v5979_v14, %v7549_v12  ;;  %v2602_v50 = vld [vmem:[#allocation7 + $0xd8] sm:$0xff]  ;;  %v6000_v63 = vld.sshfl [vmem:[#allocation5 + $0x34] sm:$0x11 pattern:$0x75316420] }
0x212d   :  { %v5583_v4 = vadd.f32 %v5582_v40, %v5577_v22  ;;  %v1950_v61 = vrot.slane %v1936_v44, %v7549_v12  ;;  %v6004_v14 = vcombine.low %v2602_v50, %v2602_v50 }
0x212e   :  { %1543 = vmatmul.mubr.bf16.vlgmr.msra.gmra.mxu1 %v1493_v0 }
0x212f   :  { %v5586_v1 = vpop.permute.xlu1 %5585  ;;  %1675 = vmatpush1.bf16.xpose.msra.mxu1 %v5965_v30  ;;  %v2086_v30 = vcombine.high %v5982_v11, %v5982_v11 }
0x2130   :  { %v5588_v26 = vmul.f32 %v5586_v1, %v7017_v6  ;;  %v5964_v6 = vld.sshfl [vmem:[#allocation5 + $0x1c] sm:$0x11 pattern:$0x75316420]  ;;  %1824 = vmatprep.subr.bf16.mxu1 %v5972_v42  ;;  %v5987_v1 = vcombine.high %v2152_v38, %v2152_v38 }
0x2131   :  { %v1636_v24 = vcombine.high %v5964_v6, %v5964_v6  ;;  %v1643_v10 = vrot.slane %v5964_v6, %v7549_v12 }
0x2132   :  { %v5589_v46 = vadd.f32 %v5588_v26, %v5583_v4  ;;  %1918 = vmatmul.mubr.bf16.vlgmr.msra.gmra.mxu0 %v1868_v28  ;;  %v5986_v26 = vcombine.low %v2152_v38, %v2152_v38  ;;  %v3752_v38 = vld [vmem:[#allocation2 + $0x10] sm:$0x3] }
0x2133   :  { %v5597_v3 = vpop.permute.xlu1 %5596  ;;  %v1650_v39 = vrot.slane %v1636_v24, %v7549_v12  ;;  %2050 = vmatpush1.bf16.xpose.msra.mxu0 %v5980_v56  ;;  %2067 = vmatprep.mubr.bf16.mxu0 %v2025_v18  ;;  %v6003_v18 = vld.sshfl [vmem:[#allocation5 + $0x36] sm:$0x11 pattern:$0x75316420] }
0x2134   :  { %v7587_v33 = vadd.f32 %v5594_v5, %v5589_v46  ;;  %2199 = vmatprep.subr.bf16.mxu0 %v5987_v1  ;;  %v2100_v5 = vrot.slane %v2086_v30, %v7549_v12  ;;  %v2227_v46 = vld [vmem:[#allocation7 + $0xb0] sm:$0xff]  ;;  %v3754_v30 = vsel %vm3753_vm5, %v3752_v38, 0.0  ;;  %vm5699_vm5 = vcmask 261120  }
0x2135   :  { %1692 = vmatprep.mubr.bf16.mxu1 %v1650_v39  ;;  %v5989_v6 = vcombine.low %v2227_v46, %v2227_v46  ;;  %v2168_v39 = vrot.slane %v5985_v29, %v7549_v12 }
0x2136   :  { %v5599_v32 = vadd.f32 %v5597_v3, %v7587_v33  ;;  %1693 = vmatmul.mubr.bf16.vlgmr.msra.gmra.mxu1 %v1643_v10  ;;  %v2161_v3 = vcombine.high %v5985_v29, %v5985_v29  ;;  %v5988_v10 = vld.sshfl [vmem:[#allocation5 + $0x2c] sm:$0x11 pattern:$0x75316420] }
0x2137   :  { %1825 = vmatpush1.bf16.xpose.msra.mxu1 %v5971_v62  ;;  %1842 = vmatprep.mubr.bf16.mxu1 %v1800_v15  ;;  %v5607_v40 = vpop.permute.xlu1 %5606  ;;  %v2236_v42 = vcombine.high %v5988_v10, %v5988_v10  ;;  %v5991_v62 = vld.sshfl [vmem:[#allocation5 + $0x2e] sm:$0x11 pattern:$0x75316420]  ;;  %v2243_v48 = vrot.slane %v5988_v10, %v7549_v12  ;;  %v5998_v15 = vcombine.low %v2452_v7, %v2452_v7 }
0x2138   :  { %v6079_v36 = vmul.f32 -1.442695, %v5599_v32  ;;  %1974 = vmatprep.subr.bf16.mxu1 %v5978_v43  ;;  %v2093_v32 = vrot.slane %v5982_v11, %v7549_v12  ;;  %v2175_v24 = vrot.slane %v2161_v3, %v7549_v12  ;;  %v2318_v54 = vrot.slane %v5991_v62, %v7549_v12  ;;  %v6009_v3 = vld.sshfl [vmem:[#allocation5 + $0x3a] sm:$0x11 pattern:$0x75316420] }
0x2139   :  { %v2250_v45 = vrot.slane %v2236_v42, %v7549_v12  ;;  %v2400_v43 = vrot.slane %v2386_v57, %v7549_v12  ;;  %v2618_v11 = vrot.slane %v6003_v18, %v7549_v12  ;;  %v2768_v10 = vrot.slane %v6009_v3, %v7549_v12 }
0x213a   :  { %6603 = vpow2.f32 %v6079_v36  ;;  %2068 = vmatmul.mubr.bf16.vlgmr.msra.gmra.mxu0 %v2018_v25  ;;  %v5990_v36 = vcombine.high %v2227_v46, %v2227_v46 }
0x213b   :  { %2200 = vmatpush1.bf16.xpose.msra.mxu0 %v5986_v26  ;;  %2217 = vmatprep.mubr.bf16.mxu0 %v2175_v24 }
0x213c   :  { %2349 = vmatprep.subr.bf16.mxu0 %v5993_v17 }
0x213e   :  { %1843 = vmatmul.mubr.bf16.vlgmr.msra.gmra.mxu1 %v1793_v21  ;;  %v5997_v21 = vld.sshfl [vmem:[#allocation5 + $0x32] sm:$0x11 pattern:$0x75316420] }
0x213f   :  { %1975 = vmatpush1.bf16.xpose.msra.mxu1 %v5977_v9  ;;  %1992 = vmatprep.mubr.bf16.mxu1 %v1950_v61  ;;  %v2527_v9 = vld [vmem:[#allocation7 + $0xd0] sm:$0xff]  ;;  %v2461_v31 = vcombine.high %v5997_v21, %v5997_v21  ;;  %v2468_v44 = vrot.slane %v5997_v21, %v7549_v12  ;;  %v6005_v61 = vcombine.high %v2602_v50, %v2602_v50 }
0x2140   :  { %2124 = vmatprep.subr.bf16.mxu1 %v5984_v49  ;;  %v6002_v28 = vcombine.high %v2527_v9, %v2527_v9  ;;  %v6001_v56 = vcombine.low %v2527_v9, %v2527_v9  ;;  %v2536_v49 = vcombine.high %v6000_v63, %v6000_v63  ;;  %v6021_v9 = vld.sshfl [vmem:[#allocation5 + $0x42] sm:$0x11 pattern:$0x75316420]  ;;  %v6026_v50 = vcombine.high %v3127_v8, %v3127_v8 }
0x2141   :  { %v2475_v47 = vrot.slane %v2461_v31, %v7549_v12  ;;  %v3202_v31 = vld [vmem:[#allocation7 + $0x118] sm:$0xff] }
0x2142   :  { %2218 = vmatmul.mubr.bf16.vlgmr.msra.gmra.mxu0 %v2168_v39  ;;  %v2550_v1 = vrot.slane %v2536_v49, %v7549_v12 }
0x2143   :  { %2350 = vmatpush1.bf16.xpose.msra.mxu0 %v5992_v59  ;;  %v2902_v59 = vld [vmem:[#allocation7 + $0xf8] sm:$0xff] }
0x2144   :  { %2499 = vmatprep.subr.bf16.mxu0 %v5999_v13  ;;  %v6017_v42 = vcombine.high %v2902_v59, %v2902_v59 }
0x2146   :  { %1993 = vmatmul.mubr.bf16.vlgmr.msra.gmra.mxu1 %v1943_v37  ;;  %v2752_v37 = vld [vmem:[#allocation7 + $0xe8] sm:$0xff] }
0x2147   :  { %v6604_v60 = vpop.eup %6603  ;;  %2125 = vmatpush1.bf16.xpose.msra.mxu1 %v5983_v35  ;;  %2142 = vmatprep.mubr.bf16.mxu1 %v2100_v5  ;;  %v6008_v35 = vcombine.high %v2677_v20, %v2677_v20  ;;  %v6011_v25 = vcombine.high %v2752_v37, %v2752_v37  ;;  %v6010_v29 = vcombine.low %v2752_v37, %v2752_v37  ;;  %v6006_v5 = vld.sshfl [vmem:[#allocation5 + $0x38] sm:$0x11 pattern:$0x75316420]  ;;  %v3277_v37 = vld [vmem:[#allocation7 + $0x120] sm:$0xff] }
0x2148   :  { %v5603_v2 = vadd.f32 1.0, %v6604_v60  ;;  %2274 = vmatprep.subr.bf16.mxu1 %v5990_v36  ;;  %v2311_v60 = vcombine.high %v5991_v62, %v5991_v62  ;;  %v2686_v46 = vcombine.high %v6006_v5, %v6006_v5  ;;  %v2827_v36 = vld [vmem:[#allocation7 + $0xf0] sm:$0xff]  ;;  %v2693_v24 = vrot.slane %v6006_v5, %v7549_v12 }
0x2149   :  { %v6014_v34 = vcombine.high %v2827_v36, %v2827_v36  ;;  %v6013_v39 = vcombine.low %v2827_v36, %v2827_v36  ;;  %v6016_v62 = vcombine.low %v2902_v59, %v2902_v59  ;;  %v3427_v5 = vld [vmem:[#allocation7 + $0x130] sm:$0xff] }
0x214a   :  { %6605 = vrcp.f32 %v5603_v2  ;;  %v5995_v2 = vcombine.low %v2377_v16, %v2377_v16  ;;  %v2325_v51 = vrot.slane %v2311_v60, %v7549_v12 }
0x214c   :  { %2367 = vmatprep.mubr.bf16.mxu0 %v2325_v51 }
0x214d   :  { %2368 = vmatmul.mubr.bf16.vlgmr.msra.gmra.mxu0 %v2318_v54 }
0x214e   :  { %2143 = vmatmul.mubr.bf16.vlgmr.msra.gmra.mxu1 %v2093_v32  ;;  %2500 = vmatpush1.bf16.xpose.msra.mxu0 %v5998_v15  ;;  %v2700_v32 = vrot.slane %v2686_v46, %v7549_v12  ;;  %v6018_v15 = vld.sshfl [vmem:[#allocation5 + $0x40] sm:$0x11 pattern:$0x75316420] }
0x214f   :  { %2275 = vmatpush1.bf16.xpose.msra.mxu1 %v5989_v6  ;;  %2292 = vmatprep.mubr.bf16.mxu1 %v2250_v45  ;;  %v2761_v6 = vcombine.high %v6009_v3, %v6009_v3  ;;  %v6012_v45 = vld.sshfl [vmem:[#allocation5 + $0x3c] sm:$0x11 pattern:$0x75316420] }
0x2150   :  { %2424 = vmatprep.subr.bf16.mxu1 %v5996_v41  ;;  %2517 = vmatprep.mubr.bf16.mxu0 %v2475_v47  ;;  %v2836_v16 = vcombine.high %v6012_v45, %v6012_v45  ;;  %v2843_v60 = vrot.slane %v6012_v45, %v7549_v12  ;;  %v6015_v41 = vld.sshfl [vmem:[#allocation5 + $0x3e] sm:$0x11 pattern:$0x75316420] }
0x2151   :  { %2649 = vmatprep.subr.bf16.mxu0 %v6005_v61  ;;  %v2775_v17 = vrot.slane %v2761_v6, %v7549_v12  ;;  %v2911_v13 = vcombine.high %v6015_v41, %v6015_v41  ;;  %v2918_v57 = vrot.slane %v6015_v41, %v7549_v12  ;;  %v6027_v61 = vld.sshfl [vmem:[#allocation5 + $0x46] sm:$0x11 pattern:$0x75316420]  ;;  %v3502_v6 = vld [vmem:[#allocation7 + $0x138] sm:$0xff] }
0x2152   :  { %v2850_v51 = vrot.slane %v2836_v16, %v7549_v12  ;;  %v3211_v49 = vcombine.high %v6027_v61, %v6027_v61 }
0x2155   :  { %2518 = vmatmul.mubr.bf16.vlgmr.msra.gmra.mxu0 %v2468_v44  ;;  %v3061_v44 = vcombine.high %v6021_v9, %v6021_v9 }
0x2156   :  { %2293 = vmatmul.mubr.bf16.vlgmr.msra.gmra.mxu1 %v2243_v48  ;;  %2650 = vmatpush1.bf16.xpose.msra.mxu0 %v6004_v14  ;;  %v2977_v48 = vld [vmem:[#allocation7 + $0x100] sm:$0xff]  ;;  %v6029_v14 = vcombine.high %v3202_v31, %v3202_v31 }
0x2157   :  { %v7602_v22 = vpop.eup %6605  ;;  %2425 = vmatpush1.bf16.xpose.msra.mxu1 %v5995_v2  ;;  %2442 = vmatprep.mubr.bf16.mxu1 %v2400_v43  ;;  %v3052_v2 = vld [vmem:[#allocation7 + $0x108] sm:$0xff]  ;;  %v6019_v7 = vcombine.low %v2977_v48, %v2977_v48  ;;  %v6020_v54 = vcombine.high %v2977_v48, %v2977_v48  ;;  %v2986_v43 = vcombine.high %v6018_v15, %v6018_v15 }
0x2158   :  { %v5609_v4 = vmul.f32 %v7602_v22, %v5607_v40  ;;  %v7607_v0 = vmul.f32 %v7602_v22, %v5622_v52  ;;  %2574 = vmatprep.subr.bf16.mxu1 %v6002_v28  ;;  %v2543_v52 = vrot.slane %v6000_v63, %v7549_v12  ;;  %v2611_v40 = vcombine.high %v6003_v18, %v6003_v18 }
0x2159   :  { %2799 = vmatprep.subr.bf16.mxu0 %v6011_v25  ;;  %v6023_v21 = vcombine.high %v3052_v2, %v3052_v2  ;;  %v6022_v28 = vcombine.low %v3052_v2, %v3052_v2  ;;  %v3000_v47 = vrot.slane %v2986_v43, %v7549_v12  ;;  %v3075_v63 = vrot.slane %v3061_v44, %v7549_v12 }
0x215a   :  { %5611 = vrot.lane.b32.xlu0 %v5609_v4, %s6740_s3  ;;  %v6007_v4 = vcombine.low %v2677_v20, %v2677_v20  ;;  %v2625_v26 = vrot.slane %v2611_v40, %v7549_v12  ;;  %v6025_v18 = vcombine.low %v3127_v8, %v3127_v8  ;;  %v3068_v40 = vrot.slane %v6021_v9, %v7549_v12 }
0x215b   :  { %v6032_v25 = vcombine.high %v3277_v37, %v3277_v37  ;;  %v6040_v2 = vcombine.low %v3502_v6, %v3502_v6 }
0x215c   :  { %2667 = vmatprep.mubr.bf16.mxu0 %v2625_v26  ;;  %v3225_v26 = vrot.slane %v3211_v49, %v7549_v12  ;;  %v4285_v49 = vrot.slane %v7107_v55, 2 }
0x215d   :  { %2668 = vmatmul.mubr.bf16.vlgmr.msra.gmra.mxu0 %v2618_v11 }
0x215e   :  { %2443 = vmatmul.mubr.bf16.vlgmr.msra.gmra.mxu1 %v2393_v58  ;;  %2800 = vmatpush1.bf16.xpose.msra.mxu0 %v6010_v29  ;;  %v2925_v58 = vrot.slane %v2911_v13, %v7549_v12 }
0x215f   :  { %2575 = vmatpush1.bf16.xpose.msra.mxu1 %v6001_v56  ;;  %2592 = vmatprep.mubr.bf16.mxu1 %v2550_v1  ;;  %v6024_v56 = vld.sshfl [vmem:[#allocation5 + $0x44] sm:$0x11 pattern:$0x75316420] }
0x2160   :  { %2724 = vmatprep.subr.bf16.mxu1 %v6008_v35  ;;  %2817 = vmatprep.mubr.bf16.mxu0 %v2775_v17  ;;  %v3136_v20 = vcombine.high %v6024_v56, %v6024_v56  ;;  %v2993_v35 = vrot.slane %v6018_v15, %v7549_v12  ;;  %v6030_v1 = vld.sshfl [vmem:[#allocation5 + $0x48] sm:$0x11 pattern:$0x75316420]  ;;  %v3143_v3 = vrot.slane %v6024_v56, %v7549_v12 }
0x2161   :  { %2949 = vmatprep.subr.bf16.mxu0 %v6017_v42  ;;  %v3286_v29 = vcombine.high %v6030_v1, %v6030_v1  ;;  %v6039_v42 = vld.sshfl [vmem:[#allocation5 + $0x4e] sm:$0x11 pattern:$0x75316420]  ;;  %v3293_v16 = vrot.slane %v6030_v1, %v7549_v12 }
0x2162   :  { %v3150_v38 = vrot.slane %v3136_v20, %v7549_v12  ;;  %v3511_v45 = vcombine.high %v6039_v42, %v6039_v42  ;;  %v3518_v13 = vrot.slane %v6039_v42, %v7549_v12 }
0x2163   :  { %v3300_v36 = vrot.slane %v3286_v29, %v7549_v12 }
0x2165   :  { %2818 = vmatmul.mubr.bf16.vlgmr.msra.gmra.mxu0 %v2768_v10  ;;  %v6041_v10 = vcombine.high %v3502_v6, %v3502_v6  ;;  %v7778_v6 = vrot.slane %v7265_v27, 6 }
0x2166   :  { %2593 = vmatmul.mubr.bf16.vlgmr.msra.gmra.mxu1 %v2543_v52  ;;  %2950 = vmatpush1.bf16.xpose.msra.mxu0 %v6016_v62  ;;  %v3352_v52 = vld [vmem:[#allocation7 + $0x128] sm:$0xff] }
0x2167   :  { %2725 = vmatpush1.bf16.xpose.msra.mxu1 %v6007_v4  ;;  %2742 = vmatprep.mubr.bf16.mxu1 %v2700_v32  ;;  %v6028_v4 = vcombine.low %v3202_v31, %v3202_v31  ;;  %v6035_v11 = vcombine.high %v3352_v52, %v3352_v52  ;;  %v6031_v32 = vcombine.low %v3277_v37, %v3277_v37 }
0x2168   :  { %2874 = vmatprep.subr.bf16.mxu1 %v6014_v34  ;;  %3099 = vmatprep.subr.bf16.mxu0 %v6023_v21  ;;  %v6038_v34 = vcombine.high %v3427_v5, %v3427_v5  ;;  %v6034_v17 = vcombine.low %v3352_v52, %v3352_v52 }
0x2169   :  { %2967 = vmatprep.mubr.bf16.mxu0 %v2925_v58 }
0x216d   :  { %2968 = vmatmul.mubr.bf16.vlgmr.msra.gmra.mxu0 %v2918_v57 }
0x216e   :  { %2743 = vmatmul.mubr.bf16.vlgmr.msra.gmra.mxu1 %v2693_v24  ;;  %3100 = vmatpush1.bf16.xpose.msra.mxu0 %v6022_v28  ;;  %v3218_v24 = vrot.slane %v6027_v61, %v7549_v12 }
0x216f   :  { %2875 = vmatpush1.bf16.xpose.msra.mxu1 %v6013_v39  ;;  %2892 = vmatprep.mubr.bf16.mxu1 %v2850_v51  ;;  %v6036_v39 = vld.sshfl [vmem:[#allocation5 + $0x4c] sm:$0x11 pattern:$0x75316420]  ;;  %v3525_v51 = vrot.slane %v3511_v45, %v7549_v12  ;;  %v5406_v45 = vrot.slane %v7498_v23, 4 }
0x2170   :  { %3024 = vmatprep.subr.bf16.mxu1 %v6020_v54  ;;  %3117 = vmatprep.mubr.bf16.mxu0 %v3075_v63  ;;  %v3436_v62 = vcombine.high %v6036_v39, %v6036_v39  ;;  %v3443_v54 = vrot.slane %v6036_v39, %v7549_v12  ;;  %v3666_v39 = vld [vmem:[#allocation2 + $0x8] sm:$0x3] }
0x2171   :  { %3249 = vmatprep.subr.bf16.mxu0 %v6029_v14 }
0x2172   :  { %v3450_v48 = vrot.slane %v3436_v62, %v7549_v12 }
0x2174   :  { %v648_v57 = vpop.f32.mrf.mxu1 }
0x2175   :  { %3118 = vmatmul.mubr.bf16.vlgmr.msra.gmra.mxu0 %v3068_v40 }
0x2176   :  { %2893 = vmatmul.mubr.bf16.vlgmr.msra.gmra.mxu1 %v2843_v60  ;;  %3250 = vmatpush1.bf16.xpose.msra.mxu0 %v6028_v4  ;;  %v6037_v60 = vcombine.low %v3427_v5, %v3427_v5  ;;  %v650_v21 = vpop.f32.mrf.mxu1  ;;  %v3583_v5 = vld [vmem:[#allocation8] sm:$0x7] }
0x2177   :  { %3025 = vmatpush1.bf16.xpose.msra.mxu1 %v6019_v7  ;;  %3042 = vmatprep.mubr.bf16.mxu1 %v3000_v47  ;;  %v7777_v7 = vmov 0.0  }
0x2178   :  { %3174 = vmatprep.subr.bf16.mxu1 %v6026_v50  ;;  %3267 = vmatprep.mubr.bf16.mxu0 %v3225_v26  ;;  %v651_v9 = vpop.f32.mrf.mxu1 }
0x2179   :  { %3755 = vadd.xlane.f32.xlu0 %v3754_v30  ;;  %v6033_v30 = vld.sshfl [vmem:[#allocation5 + $0x4a] sm:$0x11 pattern:$0x75316420]  ;;  %3399 = vmatprep.subr.bf16.mxu0 %v6035_v11  ;;  %v720_v43 = vpop.f32.mrf.mxu0 }
0x217a   :  { %v3361_v46 = vcombine.high %v6033_v30, %v6033_v30  ;;  %v3368_v41 = vrot.slane %v6033_v30, %v7549_v12  ;;  %v652_v58 = vpop.f32.mrf.mxu1  ;;  %v721_v47 = vadd.f32 %v720_v43, %v648_v57 }
0x217b   :  { %v722_v31 = vpop.f32.mrf.mxu0 }
0x217c   :  { %v3375_v59 = vrot.slane %v3361_v46, %v7549_v12  ;;  %v794_v56 = vpop.f32.mrf.mxu1  ;;  %v3582_v46 = vld [vmem:[#allocation2] sm:$0x3] }
0x217d   :  { %3268 = vmatmul.mubr.bf16.vlgmr.msra.gmra.mxu0 %v3218_v24  ;;  %v723_v28 = vpop.f32.mrf.mxu0  ;;  %v800_v20 = vadd.f32 %v794_v56, %v721_v47 }
0x217e   :  { %3043 = vmatmul.mubr.bf16.vlgmr.msra.gmra.mxu1 %v2993_v35  ;;  %3400 = vmatpush1.bf16.xpose.msra.mxu0 %v6034_v17  ;;  %v796_v50 = vpop.f32.mrf.mxu1 }
0x217f   :  { %3175 = vmatpush1.bf16.xpose.msra.mxu1 %v6025_v18  ;;  %3192 = vmatprep.mubr.bf16.mxu1 %v3150_v38  ;;  %v724_v12 = vpop.f32.mrf.mxu0 }
0x2180   :  { %3324 = vmatprep.subr.bf16.mxu1 %v6032_v25  ;;  %3417 = vmatprep.mubr.bf16.mxu0 %v3375_v59  ;;  %v797_v61 = vpop.f32.mrf.mxu1  ;;  %v4511_v25 = vrot.slane %v7184_v53, 4  ;;  %v3667_v53 = vld [vmem:[#allocation8 + $0x10] sm:$0xff]  ;;  %v5180_v59 = vrot.slane %v7421_v19, 2 }
0x2181   :  { %3549 = vmatprep.subr.bf16.mxu0 %v6041_v10  ;;  %v869_v44 = vpop.f32.mrf.mxu0 }
0x2182   :  { %v875_v38 = vadd.f32 %v869_v44, %v800_v20 }
0x2183   :  { %v871_v14 = vpop.f32.mrf.mxu0 }
0x2185   :  { %3418 = vmatmul.mubr.bf16.vlgmr.msra.gmra.mxu0 %v3368_v41  ;;  %v872_v37 = vpop.f32.mrf.mxu0 }
0x2186   :  { %3193 = vmatmul.mubr.bf16.vlgmr.msra.gmra.mxu1 %v3143_v3  ;;  %3550 = vmatpush1.bf16.xpose.msra.mxu0 %v6040_v2 }
0x2187   :  { %3325 = vmatpush1.bf16.xpose.msra.mxu1 %v6031_v32  ;;  %3342 = vmatprep.mubr.bf16.mxu1 %v3300_v36  ;;  %v873_v35 = vpop.f32.mrf.mxu0  ;;  %v3668_v32 = vld [vmem:[#allocation8 + $0x18] sm:$0x1f] }
0x2188   :  { %3474 = vmatprep.subr.bf16.mxu1 %v6038_v34  ;;  %3567 = vmatprep.mubr.bf16.mxu0 %v3525_v51 }
0x2189   :  { %6196 = vmatprep.subr.mxu0 %v7777_v7  ;;  %v1019_v40 = vpop.f32.mrf.mxu0 }
0x218b   :  { %v1021_v4 = vpop.f32.mrf.mxu0 }
0x218d   :  { %3568 = vmatmul.mubr.bf16.vlgmr.msra.gmra.mxu0 %v3518_v13  ;;  %v1022_v30 = vpop.f32.mrf.mxu0 }
0x218e   :  { %3343 = vmatmul.mubr.bf16.vlgmr.msra.gmra.mxu1 %v3293_v16  ;;  %6204 = vmatprep.mubr.msk.f32.mxu0 %vm6738_vm0, %v7777_v7 }
0x218f   :  { %3475 = vmatpush1.bf16.xpose.msra.mxu1 %v6037_v60  ;;  %3492 = vmatprep.mubr.bf16.mxu1 %v3450_v48  ;;  %v1023_v55 = vpop.f32.mrf.mxu0 }
0x2190   :  { %6184 = vmatprep.subr.mxu1 %v7777_v7 }
0x2191   :  { %v1169_v34 = vpop.f32.mrf.mxu0 }
0x2193   :  { %v1171_v42 = vpop.f32.mrf.mxu0 }
0x2195   :  { %v1172_v62 = vpop.f32.mrf.mxu0 }
0x2196   :  { %3493 = vmatmul.mubr.bf16.vlgmr.msra.gmra.mxu1 %v3443_v54 }
0x2197   :  { %6186 = vmatprep.mubr.msk.f32.mxu1 %vm6738_vm0, %v7777_v7  ;;  %6185 = vmatpush3.msk.msra.mxu1 %vm403_vm4, %v3583_v5  ;;  %v1173_v16 = vpop.f32.mrf.mxu0 }
0x2198   :  { %6189 = vmatprep.subr.mxu1 %v7777_v7 }
0x2199   :  { %v1319_v41 = vpop.f32.mrf.mxu0 }
0x219b   :  { %v1321_v54 = vpop.f32.mrf.mxu0 }
0x219e   :  { %6187 = vmatmul.mubr.msk.f32.vlgmr.msra.gmra.mxu1 %vm3589_vm6, %v3582_v46 }
0x219f   :  { %6190 = vmatpush3.msk.msra.mxu1 %vm3673_vm7, %v3668_v32  ;;  %6193 = vmatprep.mubr.msk.f32.mxu1 %vm6738_vm0, %v7777_v7  ;;  %vm5881_vm7 = vcmask 25600  }
0x21a0   :  { %6191 = vmatprep.subr.mxu1 %v7777_v7 }
0x21a1   :  { %6192 = vmatpush3.msra.mxu1 %v3667_v53 }
0x21a2   :  { %6194 = vmatmul.mubr.msk.f32.vlgmr.msra.gmra.mxu1 %vm3669_vm8, %v3666_v39  ;;  %6207 = vmatprep.subr.mxu1 %v7777_v7 }
0x21a3   :  { %6209 = vmatprep.mubr.msk.f32.mxu1 %vm6738_vm0, %v7777_v7 }
0x21cc   :  { %v5612_v15 = vpop.permute.xlu0 %5611 }
0x21cd   :  { %v5614_v8 = vadd.f32 %v5612_v15, %v7587_v33  ;;  %v798_v33 = vpop.f32.mrf.mxu1  ;;  %v1322_v15 = vpop.f32.mrf.mxu0 }
0x21cf   :  { %6607 = vtanh.f32 %v5614_v8  ;;  %v944_v18 = vpop.f32.mrf.mxu1  ;;  %v1323_v8 = vpop.f32.mrf.mxu0 }
0x21d0   :  { %v950_v26 = vadd.f32 %v944_v18, %v875_v38 }
0x21d1   :  { %v946_v52 = vpop.f32.mrf.mxu1  ;;  %v1469_v9 = vpop.f32.mrf.mxu0 }
0x21d2   :  { %v1025_v29 = vadd.f32 %v1019_v40, %v950_v26 }
0x21d3   :  { %v947_v1 = vpop.f32.mrf.mxu1  ;;  %v1471_v23 = vpop.f32.mrf.mxu0 }
0x21d5   :  { %v948_v11 = vpop.f32.mrf.mxu1  ;;  %v1472_v12 = vpop.f32.mrf.mxu0 }
0x21d7   :  { %v1094_v3 = vpop.f32.mrf.mxu1  ;;  %v1473_v56 = vpop.f32.mrf.mxu0 }
0x21d8   :  { %v1100_v36 = vadd.f32 %v1094_v3, %v1025_v29 }
0x21d9   :  { %v1096_v24 = vpop.f32.mrf.mxu1 }
0x21da   :  { %v1175_v17 = vadd.f32 %v1169_v34, %v1100_v36 }
0x21db   :  { %v1097_v10 = vpop.f32.mrf.mxu1 }
0x21dc   :  { %v6608_v63 = vpop.eup %6607 }
0x21dd   :  { %5618 = vrot.lane.b32.xlu1 %v6608_v63, %s6743_s9  ;;  %v1098_v27 = vpop.f32.mrf.mxu1 }
0x21df   :  { %v1244_v60 = vpop.f32.mrf.mxu1 }
0x21e0   :  { %v1250_v48 = vadd.f32 %v1244_v60, %v1175_v17 }
0x21e1   :  { %4286 = vrot.lane.b32.xlu1 %v4285_v49, %s6743_s9  ;;  %v1246_v19 = vpop.f32.mrf.mxu1 }
0x21e2   :  { %v1325_v2 = vadd.f32 %v1319_v41, %v1250_v48  ;;  %v1619_v61 = vpop.f32.mrf.mxu0 }
0x21e3   :  { %v1247_v51 = vpop.f32.mrf.mxu1 }
0x21e4   :  { %v1621_v20 = vpop.f32.mrf.mxu0 }
0x21e5   :  { %4512 = vrot.lane.b32.xlu1 %v4511_v25, %s6743_s9  ;;  %v1248_v13 = vpop.f32.mrf.mxu1 }
0x21e6   :  { %v1622_v37 = vpop.f32.mrf.mxu0 }
0x21e7   :  { %v1394_v57 = vpop.f32.mrf.mxu1 }
0x21e8   :  { %v1400_v21 = vadd.f32 %v1394_v57, %v1325_v2  ;;  %v1623_v49 = vpop.f32.mrf.mxu0 }
0x21e9   :  { %4738 = vrot.lane.b32.xlu1 %v7778_v6, %s6743_s9  ;;  %v1396_v43 = vpop.f32.mrf.mxu1 }
0x21ea   :  { %v1475_v31 = vadd.f32 %v1469_v9, %v1400_v21  ;;  %v1769_v52 = vpop.f32.mrf.mxu0 }
0x21eb   :  { %v1397_v58 = vpop.f32.mrf.mxu1 }
0x21ec   :  { %v1771_v1 = vpop.f32.mrf.mxu0 }
0x21ed   :  { %5181 = vrot.lane.b32.xlu1 %v5180_v59, %s6743_s9  ;;  %v1398_v28 = vpop.f32.mrf.mxu1 }
0x21ee   :  { %v1772_v26 = vpop.f32.mrf.mxu0 }
0x21ef   :  { %v1544_v47 = vpop.f32.mrf.mxu1 }
0x21f0   :  { %v1550_v50 = vadd.f32 %v1544_v47, %v1475_v31  ;;  %v1773_v11 = vpop.f32.mrf.mxu0 }
0x21f1   :  { %5407 = vrot.lane.b32.xlu1 %v5406_v45, %s6743_s9  ;;  %v1546_v44 = vpop.f32.mrf.mxu1 }
0x21f2   :  { %v1625_v14 = vadd.f32 %v1619_v61, %v1550_v50  ;;  %v1919_v46 = vpop.f32.mrf.mxu0 }
0x21f3   :  { %v1547_v63 = vpop.f32.mrf.mxu1 }
0x21f4   :  { %v1921_v32 = vpop.f32.mrf.mxu0 }
0x21f5   :  { %v1548_v33 = vpop.f32.mrf.mxu1 }
0x21f6   :  { %v1922_v53 = vpop.f32.mrf.mxu0 }
0x21f7   :  { %v1694_v35 = vpop.f32.mrf.mxu1 }
0x21f8   :  { %v1700_v18 = vadd.f32 %v1694_v35, %v1625_v14  ;;  %v1923_v6 = vpop.f32.mrf.mxu0 }
0x21f9   :  { %v1696_v38 = vpop.f32.mrf.mxu1 }
0x21fa   :  { %v1775_v40 = vadd.f32 %v1769_v52, %v1700_v18  ;;  %v2069_v17 = vpop.f32.mrf.mxu0 }
0x21fb   :  { %v1697_v25 = vpop.f32.mrf.mxu1 }
0x21fc   :  { %v2071_v42 = vpop.f32.mrf.mxu0 }
0x21fd   :  { %v1698_v4 = vpop.f32.mrf.mxu1 }
0x21fe   :  { %v2072_v62 = vpop.f32.mrf.mxu0 }
0x21ff   :  { %v1844_v30 = vpop.f32.mrf.mxu1 }
0x2200   :  { %v1850_v29 = vadd.f32 %v1844_v30, %v1775_v40  ;;  %v2073_v45 = vpop.f32.mrf.mxu0 }
0x2201   :  { %v1846_v5 = vpop.f32.mrf.mxu1  ;;  %v5616_v45 = vsub.f32 1.0, %v7602_v22 }
0x2202   :  { %v1925_v55 = vadd.f32 %v1919_v46, %v1850_v29  ;;  %v2219_v19 = vpop.f32.mrf.mxu0  ;;  %v3756_v32 = vpop.xlane.xlu0 %3755 }
0x2203   :  { %v1847_v3 = vpop.f32.mrf.mxu1 }
0x2204   :  { %v2221_v51 = vpop.f32.mrf.mxu0 }
0x2205   :  { %v1848_v36 = vpop.f32.mrf.mxu1 }
0x2206   :  { %v2222_v13 = vpop.f32.mrf.mxu0 }
0x2207   :  { %v1994_v24 = vpop.f32.mrf.mxu1 }
0x2208   :  { %v2000_v34 = vadd.f32 %v1994_v24, %v1925_v55  ;;  %v2223_v15 = vpop.f32.mrf.mxu0  ;;  %v7677_v24 = vadd.f32 -1.0, %v3756_v32 }
0x2209   :  { %v1996_v39 = vpop.f32.mrf.mxu1 }
0x220a   :  { %v2075_v59 = vadd.f32 %v2069_v17, %v2000_v34  ;;  %v6056_v39 = vadd.f32 -1.0, %v7677_v24  ;;  %v6060_v17 = vadd.f32 -2.0, %v7677_v24  ;;  %v6072_v13 = vadd.f32 -5.0, %v7677_v24 }
0x220b   :  { %v1997_v10 = vpop.f32.mrf.mxu1 }
0x220d   :  { %v1998_v27 = vpop.f32.mrf.mxu1  ;;  %v2369_v43 = vpop.f32.mrf.mxu0 }
0x220f   :  { %v2144_v16 = vpop.f32.mrf.mxu1  ;;  %v2371_v58 = vpop.f32.mrf.mxu0 }
0x2210   :  { %v2150_v60 = vadd.f32 %v2144_v16, %v2075_v59  ;;  %v4280_v16 = vand.u32 2147483647, %v6056_v39 }
0x2211   :  { %v2146_v48 = vpop.f32.mrf.mxu1  ;;  %v2372_v28 = vpop.f32.mrf.mxu0 }
0x2212   :  { %v2225_v41 = vadd.f32 %v2219_v19, %v2150_v60  ;;  %v4506_v60 = vand.u32 2147483647, %v6060_v17  ;;  %v6064_v48 = vadd.f32 -3.0, %v7677_v24  ;;  %vm4281_vm9 = vcmp.lt.f32.partialorder %v4280_v16, 0.5 }
0x2213   :  { %v2147_v2 = vpop.f32.mrf.mxu1  ;;  %v2373_v12 = vpop.f32.mrf.mxu0  ;;  %v5175_v28 = vand.u32 2147483647, %v6072_v13 }
0x2214   :  { %vm4507_vm10 = vcmp.lt.f32.partialorder %v4506_v60, 0.5  ;;  %v6076_v12 = vadd.f32 -6.0, %v7677_v24 }
0x2215   :  { %v2148_v54 = vpop.f32.mrf.mxu1  ;;  %v2519_v44 = vpop.f32.mrf.mxu0  ;;  %vm5176_vm12 = vcmp.lt.f32.partialorder %v5175_v28, 0.5  ;;  %v6042_v28 = vld [vmem:[#allocation8 + $0xd8] ss:$0 sm:$0xff] }
0x2217   :  { %v2294_v8 = vpop.f32.mrf.mxu1  ;;  %v2521_v63 = vpop.f32.mrf.mxu0 }
0x2218   :  { %v2300_v57 = vadd.f32 %v2294_v8, %v2225_v41  ;;  %v4732_v8 = vand.u32 2147483647, %v6064_v48 }
0x2219   :  { %v2296_v21 = vpop.f32.mrf.mxu1  ;;  %v2522_v33 = vpop.f32.mrf.mxu0 }
0x221a   :  { %v2375_v9 = vadd.f32 %v2369_v43, %v2300_v57  ;;  %vm4733_vm11 = vcmp.lt.f32.partialorder %v4732_v8, 0.5  ;;  %v5401_v33 = vand.u32 2147483647, %v6076_v12  ;;  %v6043_v8 = vld [vmem:[#allocation8 + $0x8] ss:$0 sm:$0xff] }
0x221b   :  { %v2297_v31 = vpop.f32.mrf.mxu1  ;;  %v2523_v37 = vpop.f32.mrf.mxu0  ;;  %v6065_v63 = vsel %vm4733_vm11, 1.0, %v7777_v7 }
0x221c   :  { %v6061_v31 = vsel %vm4507_vm10, 1.0, %v7777_v7  ;;  %vm5402_vm13 = vcmp.lt.f32.partialorder %v5401_v33, 0.5 }
0x221d   :  { %v2298_v23 = vpop.f32.mrf.mxu1  ;;  %v2669_v38 = vpop.f32.mrf.mxu0 }
0x221f   :  { %v2444_v56 = vpop.f32.mrf.mxu1  ;;  %v2671_v25 = vpop.f32.mrf.mxu0 }
0x2220   :  { %v2450_v47 = vadd.f32 %v2444_v56, %v2375_v9  ;;  %v6057_v9 = vsel %vm4281_vm9, 1.0, %v7777_v7 }
0x2221   :  { %v2446_v50 = vpop.f32.mrf.mxu1  ;;  %v2672_v4 = vpop.f32.mrf.mxu0 }
0x2222   :  { %v2525_v61 = vadd.f32 %v2519_v44, %v2450_v47 }
0x2223   :  { %v2447_v14 = vpop.f32.mrf.mxu1  ;;  %v2673_v26 = vpop.f32.mrf.mxu0 }
0x2225   :  { %v2448_v20 = vpop.f32.mrf.mxu1  ;;  %v2819_v5 = vpop.f32.mrf.mxu0 }
0x2227   :  { %v2594_v49 = vpop.f32.mrf.mxu1  ;;  %v2821_v3 = vpop.f32.mrf.mxu0 }
0x2228   :  { %v2600_v35 = vadd.f32 %v2594_v49, %v2525_v61 }
0x2229   :  { %v2596_v18 = vpop.f32.mrf.mxu1  ;;  %v2822_v53 = vpop.f32.mrf.mxu0 }
0x222a   :  { %v2675_v52 = vadd.f32 %v2669_v38, %v2600_v35 }
0x222b   :  { %v2597_v40 = vpop.f32.mrf.mxu1  ;;  %v2823_v6 = vpop.f32.mrf.mxu0 }
0x222d   :  { %v2598_v1 = vpop.f32.mrf.mxu1  ;;  %v2969_v10 = vpop.f32.mrf.mxu0 }
0x222f   :  { %v2744_v11 = vpop.f32.mrf.mxu1  ;;  %v2971_v62 = vpop.f32.mrf.mxu0 }
0x2230   :  { %v2750_v30 = vadd.f32 %v2744_v11, %v2675_v52  ;;  %v6073_v52 = vsel %vm5176_vm12, 1.0, %v7777_v7 }
0x2231   :  { %v2746_v29 = vpop.f32.mrf.mxu1  ;;  %v2972_v54 = vpop.f32.mrf.mxu0 }
0x2232   :  { %v2825_v46 = vadd.f32 %v2819_v5, %v2750_v30  ;;  %v6077_v5 = vsel %vm5402_vm13, 1.0, %v7777_v7 }
0x2233   :  { %v2747_v55 = vpop.f32.mrf.mxu1  ;;  %v2973_v57 = vpop.f32.mrf.mxu0 }
0x2235   :  { %v2748_v36 = vpop.f32.mrf.mxu1  ;;  %v3119_v23 = vpop.f32.mrf.mxu0 }
0x2237   :  { %v2894_v34 = vpop.f32.mrf.mxu1  ;;  %v3121_v50 = vpop.f32.mrf.mxu0 }
0x2238   :  { %v2900_v42 = vadd.f32 %v2894_v34, %v2825_v46  ;;  %v6068_v50 = vadd.f32 -4.0, %v7677_v24 }
0x2239   :  { %v2896_v59 = vpop.f32.mrf.mxu1  ;;  %v3122_v20 = vpop.f32.mrf.mxu0 }
0x223a   :  { %v2975_v41 = vadd.f32 %v2969_v10, %v2900_v42  ;;  %v4957_v20 = vand.u32 2147483647, %v6068_v50 }
0x223b   :  { %v2897_v27 = vpop.f32.mrf.mxu1  ;;  %v3123_v35 = vpop.f32.mrf.mxu0 }
0x223c   :  { %vm4958_vm0 = vcmp.lt.f32.partialorder %v4957_v20, 0.5 }
0x223d   :  { %v2898_v2 = vpop.f32.mrf.mxu1  ;;  %v3269_v25 = vpop.f32.mrf.mxu0  ;;  %v6069_v35 = vsel %vm4958_vm0, 1.0, %v7777_v7 }
0x223f   :  { %v3044_v22 = vpop.f32.mrf.mxu1  ;;  %v3271_v11 = vpop.f32.mrf.mxu0 }
0x2240   :  { %v3050_v58 = vadd.f32 %v3044_v22, %v2975_v41 }
0x2241   :  { %v3272_v46 = vpop.f32.mrf.mxu0 }
0x2242   :  { %v3125_v47 = vadd.f32 %v3119_v23, %v3050_v58  ;;  %v5690_v46 = vld [vmem:[#allocation8 + $0xa0] sm:$0xff] }
0x2243   :  { %v3273_v32 = vpop.f32.mrf.mxu0 }
0x2245   :  { %v3419_v34 = vpop.f32.mrf.mxu0 }
0x2247   :  { %v3421_v59 = vpop.f32.mrf.mxu0 }
0x2249   :  { %v3422_v42 = vpop.f32.mrf.mxu0 }
0x224b   :  { %v3423_v62 = vpop.f32.mrf.mxu0 }
0x224d   :  { %v3569_v60 = vpop.f32.mrf.mxu0 }
0x224f   :  { %v5619_v19 = vpop.permute.xlu1 %5618  ;;  %v3571_v41 = vpop.f32.mrf.mxu0 }
0x2250   :  { %v5621_v51 = vmul.f32 %v5619_v19, %v5616_v45 }
0x2252   :  { %v5625_v15 = vadd.f32 %v7607_v0, %v5621_v51  ;;  %v3046_v0 = vpop.f32.mrf.mxu1  ;;  %v3572_v51 = vpop.f32.mrf.mxu0 }
0x2253   :  { %v4287_v21 = vpop.permute.xlu1 %4286 }
0x2254   :  { %v5632_v43 = vrot.slane %v5625_v15, 6  ;;  %v4289_v44 = vmul.f32 %v6057_v9, %v4287_v21  ;;  %v3047_v14 = vpop.f32.mrf.mxu1  ;;  %v3573_v13 = vpop.f32.mrf.mxu0  ;;  %v6080_v15 = vadd.f32 -7.0, %v7677_v24 }
0x2256   :  { %5633 = vrot.lane.b32.xlu1 %v5632_v43, %s6743_s9  ;;  %v3048_v37 = vpop.f32.mrf.mxu1  ;;  %v5627_v22 = vand.u32 2147483647, %v6080_v15 }
0x2257   :  { %v4513_v56 = vpop.permute.xlu1 %4512 }
0x2258   :  { %v4515_v61 = vmul.f32 %v6061_v31, %v4513_v56  ;;  %v3194_v38 = vpop.f32.mrf.mxu1  ;;  %vm5628_vm14 = vcmp.lt.f32.partialorder %v5627_v22, 0.5  ;;  %v4062_v56 = vand.u32 2147483647, %v7677_v24 }
0x2259   :  { %v3200_v40 = vadd.f32 %v3194_v38, %v3125_v47  ;;  %v6081_v23 = vsel %vm5628_vm14, 1.0, %v7777_v7 }
0x225a   :  { %4517 = vrot.lane.b32.xlu0 %v4515_v61, %s6734_s24  ;;  %4291 = vrot.lane.b32.xlu1 %v4289_v44, %s6734_s24  ;;  %v3196_v1 = vpop.f32.mrf.mxu1  ;;  %vm4063_vm15 = vcmp.lt.f32.partialorder %v4062_v56, 0.5  ;;  %v7779_v61 = vld [vmem:[#allocation15_spill] sm:$0xff] }
0x225b   :  { %v4739_v49 = vpop.permute.xlu1 %4738  ;;  %v3275_v26 = vadd.f32 %v3269_v25, %v3200_v40  ;;  %v6053_v47 = vsel %vm4063_vm15, 1.0, %v7777_v7 }
0x225c   :  { %v4741_v18 = vmul.f32 %v6065_v63, %v4739_v49  ;;  %v3197_v29 = vpop.f32.mrf.mxu1  ;;  %v4066_v14 = vmul.f32 %v6053_v47, %v7779_v61 }
0x225d   :  { %v5692_v29 = vld [vmem:[#allocation8 + $0xb0] sm:$0xff] }
0x225e   :  { %4743 = vrot.lane.b32.xlu1 %v4741_v18, %s6734_s24  ;;  %v3198_v55 = vpop.f32.mrf.mxu1 }
0x225f   :  { %v5182_v4 = vpop.permute.xlu1 %5181 }
0x2260   :  { %v5184_v30 = vmul.f32 %v6073_v52, %v5182_v4  ;;  %v3344_v53 = vpop.f32.mrf.mxu1  ;;  %v7780_v52 = vld [vmem:[#allocation16_spill] sm:$0xff] }
0x2261   :  { %v3350_v6 = vadd.f32 %v3344_v53, %v3275_v26  ;;  %v4961_v40 = vmul.f32 %v6069_v35, %v7780_v52 }
0x2262   :  { %5186 = vrot.lane.b32.xlu1 %v5184_v30, %s6734_s24  ;;  %v3346_v39 = vpop.f32.mrf.mxu1  ;;  %v5693_v30 = vld [vmem:[#allocation8 + $0xb8] sm:$0xff] }
0x2263   :  { %v5408_v3 = vpop.permute.xlu1 %5407  ;;  %v3425_v17 = vadd.f32 %v3419_v34, %v3350_v6  ;;  %6197 = vmatpush3.msra.mxu0 %v5693_v30 }
0x2264   :  { %v5410_v36 = vmul.f32 %v6077_v5, %v5408_v3  ;;  %v3347_v10 = vpop.f32.mrf.mxu1  ;;  %6198 = vmatprep.subr.mxu0 %v7777_v7  ;;  %v5691_v5 = vld [vmem:[#allocation8 + $0xa8] sm:$0xff] }
0x2265   :  { %6199 = vmatpush3.msra.mxu0 %v5692_v29 }
0x2266   :  { %5412 = vrot.lane.b32.xlu1 %v5410_v36, %s6734_s24  ;;  %v3348_v27 = vpop.f32.mrf.mxu1  ;;  %6200 = vmatprep.subr.mxu0 %v7777_v7 }
0x2267   :  { %6201 = vmatpush3.msra.mxu0 %v5691_v5 }
0x2268   :  { %v3494_v45 = vpop.f32.mrf.mxu1  ;;  %6202 = vmatprep.subr.mxu0 %v7777_v7 }
0x2269   :  { %v3500_v16 = vadd.f32 %v3494_v45, %v3425_v17  ;;  %6203 = vmatpush3.msra.mxu0 %v5690_v46  ;;  %v6084_v46 = vld [vmem:[#allocation8 + $0xd0] ss:$0 sm:$0xff] }
0x226a   :  { %v3496_v48 = vpop.f32.mrf.mxu1 }
0x226b   :  { %v3575_v19 = vadd.f32 %v3569_v60, %v3500_v16 }
0x226c   :  { %v3497_v2 = vpop.f32.mrf.mxu1 }
0x226d   :  { %v3581_v0 = vadd.f32 %v6042_v28, %v3575_v19 }
0x226e   :  { %v3498_v54 = vpop.f32.mrf.mxu1 }
0x2270   :  { %v3662_v57 = vpop.f32.mrf.mxu1 }
0x2271   :  { %v3663_v21 = vadd.f32 %v6043_v8, %v3662_v57  ;;  %v6762_v57 = vmov -1.0  }
0x2272   :  { %v6188_v43 = vpop.f32.mrf.mxu1 }
0x2273   :  { %5651 = vrot.lane.b32.xlu0 %v3663_v21, %s6740_s3 }
0x2274   :  { %v3743_v9 = vpop.f32.mrf.mxu1 }
0x2276   :  { %v6195_v31 = vpop.f32.mrf.mxu1 }
0x22c8   :  { %v5634_v58 = vpop.permute.xlu1 %5633 }
0x22c9   :  { %v5636_v12 = vmul.f32 %v6081_v23, %v5634_v58  ;;  %v5800_v58 = vld [vmem:[#allocation8 + $0xc8] sm:$0xff]  ;;  %v6082_v23 = vld [vmem:[#allocation8 + $0xc0] ss:$0 sm:$0xff] }
0x22ca   :  { %6208 = vmatpush3.msra.mxu1 %v5800_v58 }
0x22cb   :  { %5638 = vrot.lane.b32.xlu1 %v5636_v12, %s6734_s24 }
0x22cc   :  { %v4292_v44 = vpop.permute.xlu1 %4291  ;;  %v4518_v33 = vpop.permute.xlu0 %4517 }
0x22cd   :  { %v4294_v63 = vadd.f32 %v4292_v44, %v4066_v14 }
0x22cf   :  { %5647 = vrot.lane.b32.xlu1 %v3581_v0, %s6734_s24  ;;  %v4520_v49 = vadd.f32 %v4518_v33, %v4294_v63 }
0x22d0   :  { %v4744_v37 = vpop.permute.xlu1 %4743 }
0x22d1   :  { %v4746_v18 = vadd.f32 %v4744_v37, %v4520_v49 }
0x22d3   :  { %v4962_v25 = vadd.f32 %v4961_v40, %v4746_v18 }
0x22d4   :  { %v5187_v38 = vpop.permute.xlu1 %5186 }
0x22d5   :  { %v5189_v4 = vadd.f32 %v5187_v38, %v4962_v25 }
0x22d8   :  { %v5413_v1 = vpop.permute.xlu1 %5412 }
0x22d9   :  { %v5415_v26 = vadd.f32 %v5413_v1, %v5189_v4 }
0x22e5   :  { %v5652_v36 = vpop.permute.xlu0 %5651 }
0x233d   :  { %v5639_v24 = vpop.permute.xlu1 %5638 }
0x233e   :  { %v5641_v11 = vadd.f32 %v5639_v24, %v5415_v26 }
0x2340   :  { %5643 = vrot.lane.b32.xlu1 %v5641_v11, %s6743_s9 }
0x2341   :  { %v5648_v55 = vpop.permute.xlu1 %5647 }
0x2344   :  { %5655 = vrot.lane.b32.xlu1 %v3743_v9, %s6761_s12 }
0x23b2   :  { %v5644_v3 = vpop.permute.xlu1 %5643 }
0x23b3   :  { %v5658_v32 = vsel %vm79_vm1, %v5644_v3, %v5648_v55 }
0x23b4   :  { %v5660_v53 = vsel %vm5659_vm2, %v5658_v32, %v5652_v36 }
0x23b6   :  { %v5656_v6 = vpop.permute.xlu1 %5655 }
0x23b7   :  { %v5662_v34 = vsel %vm5661_vm3, %v5660_v53, %v5656_v6 }
0x23b8   :  { %v5664_v39 = vmul.f32 0.70710677, %v5662_v34  ;;  %v5663_v22 = vmul.f32 0.5, %v5662_v34 }
0x23ba   :  { %v5667_v17 = vand.u32 2147483647, %v5664_v39  ;;  %vm5665_vm4 = vcmp.ge.f32.partialorder %v5664_v39, 0.0 }
0x23bb   :  { %v5666_v21 = vsel %vm5665_vm4, 1.0, %v6762_v57 }
0x23bc   :  { %v5668_v59 = vmul.f32 0.3275911, %v5667_v17  ;;  %v5681_v42 = vsub.f32 0.0, %v5667_v17 }
0x23be   :  { %v5669_v10 = vadd.f32 1.0, %v5668_v59  ;;  %v5682_v27 = vmul.f32 %v5681_v42, %v5667_v17 }
0x23c0   :  { %6609 = vrcp.f32 %v5669_v10  ;;  %v5683_v45 = vmul.f32 1.442695, %v5682_v27 }
0x23c2   :  { %6611 = vpow2.f32 %v5683_v45 }
0x23cd   :  { %v6610_v62 = vpop.eup %6609 }
0x23ce   :  { %v5672_v7 = vmul.f32 1.0614054, %v6610_v62 }
0x23cf   :  { %v6612_v13 = vpop.eup %6611 }
0x23d0   :  { %v5673_v16 = vadd.f32 -1.4531521, %v5672_v7 }
0x23d2   :  { %v5674_v60 = vmul.f32 %v6610_v62, %v5673_v16 }
0x23d4   :  { %v5675_v48 = vadd.f32 1.4214138, %v5674_v60 }
0x23d6   :  { %v5676_v19 = vmul.f32 %v6610_v62, %v5675_v48 }
0x23d8   :  { %v5677_v41 = vadd.f32 -0.28449672, %v5676_v19 }
0x23da   :  { %v5678_v2 = vmul.f32 %v6610_v62, %v5677_v41 }
0x23dc   :  { %v5679_v51 = vadd.f32 0.2548296, %v5678_v2 }
0x23de   :  { %v5680_v54 = vmul.f32 %v6610_v62, %v5679_v51 }
0x23e0   :  { %v5685_v15 = vmul.f32 %v6612_v13, %v5680_v54 }
0x23e2   :  { %v5686_v8 = vsub.f32 1.0, %v5685_v15 }
0x23e4   :  { %v5687_v43 = vmul.f32 %v5686_v8, %v5666_v21 }
0x23e6   :  { %v5688_v9 = vadd.f32 1.0, %v5687_v43 }
0x23e8   :  { %v5689_v31 = vmul.f32 %v5688_v9, %v5663_v22 }
0x23ea   :  { %6205 = vmatmul.mubr.msk.f32.vlgmr.msra.gmra.mxu0 %vm5699_vm5, %v5689_v31 }
0x24aa   :  { %v5769_v28 = vpop.f32.mrf.mxu0 }
0x24ab   :  { %v5770_v12 = vadd.f32 %v6082_v23, %v5769_v28 }
0x24ac   :  { %v6206_v0 = vpop.f32.mrf.mxu0 }
0x24ad   :  { %v5774_v56 = vmul.f32 0.70710677, %v5770_v12  ;;  %v5773_v30 = vmul.f32 0.5, %v5770_v12 }
0x24af   :  { %v5777_v47 = vand.u32 2147483647, %v5774_v56  ;;  %vm5775_vm6 = vcmp.ge.f32.partialorder %v5774_v56, 0.0 }
0x24b0   :  { %v5776_v24 = vsel %vm5775_vm6, 1.0, %v6762_v57 }
0x24b1   :  { %v5778_v50 = vmul.f32 0.3275911, %v5777_v47  ;;  %v5791_v61 = vsub.f32 0.0, %v5777_v47 }
0x24b3   :  { %v5779_v44 = vadd.f32 1.0, %v5778_v50  ;;  %v5792_v14 = vmul.f32 %v5791_v61, %v5777_v47 }
0x24b5   :  { %6613 = vrcp.f32 %v5779_v44  ;;  %v5793_v33 = vmul.f32 1.442695, %v5792_v14 }
0x24b7   :  { %6615 = vpow2.f32 %v5793_v33 }
0x24c2   :  { %v6614_v63 = vpop.eup %6613 }
0x24c3   :  { %v5782_v20 = vmul.f32 1.0614054, %v6614_v63 }
0x24c4   :  { %v6616_v1 = vpop.eup %6615 }
0x24c5   :  { %v5783_v37 = vadd.f32 -1.4531521, %v5782_v20 }
0x24c7   :  { %v5784_v49 = vmul.f32 %v6614_v63, %v5783_v37 }
0x24c9   :  { %v5785_v35 = vadd.f32 1.4214138, %v5784_v49 }
0x24cb   :  { %v5786_v18 = vmul.f32 %v6614_v63, %v5785_v35 }
0x24cd   :  { %v5787_v38 = vadd.f32 -0.28449672, %v5786_v18 }
0x24cf   :  { %v5788_v52 = vmul.f32 %v6614_v63, %v5787_v38 }
0x24d1   :  { %v5789_v40 = vadd.f32 0.2548296, %v5788_v52 }
0x24d3   :  { %v5790_v25 = vmul.f32 %v6614_v63, %v5789_v40 }
0x24d5   :  { %v5795_v4 = vmul.f32 %v6616_v1, %v5790_v25 }
0x24d7   :  { %v5796_v26 = vsub.f32 1.0, %v5795_v4 }
0x24d9   :  { %v5797_v11 = vmul.f32 %v5796_v26, %v5776_v24 }
0x24db   :  { %v5798_v29 = vadd.f32 1.0, %v5797_v11 }
0x24dd   :  { %v5799_v5 = vmul.f32 %v5798_v29, %v5773_v30 }
0x24df   :  { %6210 = vmatmul.mubr.msk.f32.vlgmr.msra.gmra.mxu1 %vm79_vm1, %v5799_v5 }
0x259f   :  { %v5875_v55 = vpop.f32.mrf.mxu1 }
0x25a0   :  { %v5876_v3 = vadd.f32 %v6084_v46, %v5875_v55 }
0x25a1   :  { %v6211_v32 = vpop.f32.mrf.mxu1 }
0x25a2   :  { %v5879_v36 = vmul.f32 1.442695, %v5876_v3 }
0x25a4   :  { %6617 = vpow2.f32 %v5879_v36 }
0x25b1   :  { %v6618_v53 = vpop.eup %6617 }
0x25b2   :  { %5882 = vst.msk [vmem:[#allocation10] sm:$0x3] %vm5881_vm7, %v6618_v53 }
0x25b3   :  { %6714 = shalt.err (!%p6711_p10)
}
0x25b4   :  { %5892 = dma.vmem_to_hbm [thread:$0]  %s5890_s14, 32, %s7721_s4, [#allocation4]  }
0x25b5   :  { %6729 = dma.done.wait [#allocation4], 32  }
0x25b6   :  { %6730 = vsyncadd [#allocation4], 4294967264 }
0x25b7   :  { %5896 = vsyncpa [#allocation3], 1 }
0x25b8   :  { %5897 = vsyncpa [#allocation6], 1 }
0x25b9   :  { %5898 = vsyncpa [#allocation9], 1 }
0x25ba   :  { %5899 = vsyncpa [#allocation4], 1 }

</bundles_post_ra>
